<compile_context>
chip_gen: v5e
topology: v5e:2x2
jax: 0.10.0
libtpu: 0.0.40
codegen_flags: <defaults>
</compile_context>

<pallas_src>
import functools

import jax
import jax.numpy as jnp
from jax import lax
from jax.experimental import pallas as pl
from jax.experimental.pallas import tpu as pltpu


def _round_up(x, m):
    return (x + m - 1) // m * m


# ----------------------------------------------------------------------------
# Fused Pallas kernel:  Y = relu( BN( sum_t X[t] @ W[t] + bias ) )
#   - grid = (grid_m, grid_n, T); the tap/reduction axis T is innermost.
#   - BN (batch statistics over the M axis) is optional (fuse_bn flag); when
#     disabled the epilogue is just bias + ReLU (used for the final conv).
# ----------------------------------------------------------------------------
def _gemm_bn_relu_kernel(x_ref, w_ref, b_ref, g_ref, be_ref, o_ref, acc_ref,
                         *, eps, fuse_bn, apply_relu):
    t = pl.program_id(2)

    @pl.when(t == 0)
    def _():
        acc_ref[...] = jnp.zeros_like(acc_ref)

    # bf16 x bf16 -> f32 accumulation on the MXU.
    acc_ref[...] += jnp.dot(x_ref[...], w_ref[...],
                            preferred_element_type=jnp.float32)

    @pl.when(t == pl.num_programs(2) - 1)
    def _():
        y = acc_ref[...] + b_ref[...]                       # f32, (tm, tn)
        if fuse_bn:
            # Training-mode BatchNorm over the whole batch*spatial axis.
            # Single pass: var = E[y^2] - mean^2 (biased, matches PyTorch).
            mean = jnp.mean(y, axis=0, keepdims=True)
            var = jnp.mean(y * y, axis=0, keepdims=True) - mean * mean
            scale = g_ref[...] * lax.rsqrt(var + eps)
            y = (y - mean) * scale + be_ref[...]
        if apply_relu:
            y = jnp.maximum(y, 0.0)
        o_ref[...] = y.astype(o_ref.dtype)


def conv_gemm(x3, w3, bias, gamma=None, beta=None, *, apply_relu=True,
              eps=1e-5):
    """Fused conv-as-GEMM (+ optional BatchNorm) + ReLU.

    x3   : (T, M, K) f32   stacked LHS taps (T=1 for 1x1 convs, 9 for 3x3)
    w3   : (T, K, N) f32   stacked weights
    bias : (N,) f32
    gamma/beta : (N,) f32 or None (None -> no BatchNorm, bias+ReLU only)
    returns (M, N) f32
    """
    T, M, K = x3.shape
    _, K2, N = w3.shape
    assert K == K2
    fuse_bn = gamma is not None

    # --- adaptive tiling -----------------------------------------------------
    Mp = _round_up(M, 8)
    tm = Mp                                   # single M block (required for BN fusion)
    assert Mp <= 2048, "M too large for single-block BN fusion at these sizes"
    if fuse_bn:
        # BN batch statistics are computed with jnp.mean over the tile rows,
        # so the tile must contain exactly the M real rows (no zero padding).
        assert Mp == M, "BN fusion requires M to be a multiple of 8"

    Kp = _round_up(K, 128)                    # only conv1 (K=4) pads; others are 0-10%
    Np = _round_up(N, 128)
    tn = 256 if Np % 256 == 0 else 128        # >=2 j-blocks for N=512 (v7x megacore)

    # --- pad + cast operands (bf16 MXU inputs, f32 epilogue params) ----------
    xp = jnp.pad(x3, ((0, 0), (0, Mp - M), (0, Kp - K))).astype(jnp.bfloat16)
    wp = jnp.pad(w3, ((0, 0), (0, Kp - K), (0, Np - N))).astype(jnp.bfloat16)
    bp = jnp.pad(bias, (0, Np - N)).reshape(1, Np).astype(jnp.float32)
    g = gamma if fuse_bn else jnp.ones((N,), jnp.float32)
    be = beta if fuse_bn else jnp.zeros((N,), jnp.float32)
    gp = jnp.pad(g, (0, Np - N)).reshape(1, Np).astype(jnp.float32)
    bep = jnp.pad(be, (0, Np - N)).reshape(1, Np).astype(jnp.float32)

    grid = (Mp // tm, Np // tn, T)

    out = pl.pallas_call(
        functools.partial(_gemm_bn_relu_kernel, eps=eps, fuse_bn=fuse_bn,
                          apply_relu=apply_relu),
        out_shape=jax.ShapeDtypeStruct((Mp, Np), jnp.float32),
        grid_spec=pltpu.PrefetchScalarGridSpec(
            num_scalar_prefetch=0,
            grid=grid,
            in_specs=[
                pl.BlockSpec((None, tm, Kp), lambda i, j, t: (t, i, 0)),
                pl.BlockSpec((None, Kp, tn), lambda i, j, t: (t, 0, j)),
                pl.BlockSpec((1, tn), lambda i, j, t: (0, j)),
                pl.BlockSpec((1, tn), lambda i, j, t: (0, j)),
                pl.BlockSpec((1, tn), lambda i, j, t: (0, j)),
            ],
            out_specs=pl.BlockSpec((tm, tn), lambda i, j, t: (i, j)),
            scratch_shapes=[pltpu.VMEM((tm, tn), jnp.float32)],
        ),
        compiler_params=pltpu.CompilerParams(
            dimension_semantics=("parallel", "parallel", "arbitrary"),
        ),
    )(xp, wp, bp, gp, bep)
    return out[:M, :N]


# ----------------------------------------------------------------------------
# Conv lowerings (layout glue only; the GEMM + BN + ReLU run in the kernel)
# ----------------------------------------------------------------------------
def conv1x1_block(x_nhwc, w_oi11, b, gamma=None, beta=None, *, apply_relu=True):
    N, H, W, C = x_nhwc.shape
    Cout = w_oi11.shape[0]
    x3 = x_nhwc.reshape(1, N * H * W, C)
    w3 = w_oi11.reshape(Cout, C).T.reshape(1, C, Cout)
    y = conv_gemm(x3, w3, b, gamma, beta, apply_relu=apply_relu)
    return y.reshape(N, H, W, Cout)


def conv3x3_s2_block(x_nhwc, w_oikk, b, gamma, beta):
    # TODO(synk): the 9-tap gather is done with XLA strided slices (stacked to
    # (9, M, Cin) in bf16 downstream); at these tiny activations that is cheap,
    # but at large resolutions it could be moved fully inside the kernel.
    N, H, W, C = x_nhwc.shape
    Cout = w_oikk.shape[0]
    Hout, Wout = (H - 1) // 2 + 1, (W - 1) // 2 + 1
    xp = jnp.pad(x_nhwc, ((0, 0), (1, 1), (1, 1), (0, 0)))
    taps = [xp[:, kh:kh + 2 * Hout:2, kw:kw + 2 * Wout:2, :]
            for kh in range(3) for kw in range(3)]
    x3 = jnp.stack(taps, axis=0).reshape(9, N * Hout * Wout, C)
    w3 = jnp.transpose(w_oikk, (2, 3, 1, 0)).reshape(9, C, Cout)
    y = conv_gemm(x3, w3, b, gamma, beta, apply_relu=True)
    return y.reshape(N, Hout, Wout, Cout)


# ----------------------------------------------------------------------------
# EncoderBlock forward
# ----------------------------------------------------------------------------
def encoder_block_forward(x_nchw, p):
    x = jnp.transpose(x_nchw, (0, 2, 3, 1))                  # NCHW -> NHWC
    x = conv1x1_block(x, p["w1"], p["b1"], p["g1"], p["be1"])      # conv1+bn1+relu
    x = conv3x3_s2_block(x, p["w2"], p["b2"], p["g2"], p["be2"])   # conv2+bn2+relu
    x = conv1x1_block(x, p["w3"], p["b3"], p["g3"], p["be3"])      # conv3+bn3+relu
    x = conv3x3_s2_block(x, p["w4"], p["b4"], p["g4"], p["be4"])   # conv4+bn4+relu
    x = conv1x1_block(x, p["w5"], p["b5"], None, None, apply_relu=True)  # relu(conv5)
    return jnp.transpose(x, (0, 3, 1, 2))                    # NHWC -> NCHW


def init_params(key, input_channels, encoder_out_channels):
    shapes = {
        "w1": (1048, input_channels, 1, 1), "b1": (1048,),
        "w2": (512, 1048, 3, 3),            "b2": (512,),
        "w3": (512, 512, 1, 1),             "b3": (512,),
        "w4": (256, 512, 3, 3),             "b4": (256,),
        "w5": (encoder_out_channels, 256, 1, 1), "b5": (encoder_out_channels,),
    }
    params = {}
    keys = jax.random.split(key, len(shapes))
    for k, (name, shp) in zip(keys, shapes.items()):
        params[name] = jax.random.normal(k, shp, jnp.float32) * 0.05
    # BatchNorm affine params: PyTorch defaults (gamma=1, beta=0)
    for i, c in zip((1, 2, 3, 4), (1048, 512, 512, 256)):
        params[f"g{i}"] = jnp.ones((c,), jnp.float32)
        params[f"be{i}"] = jnp.zeros((c,), jnp.float32)
    return params


if __name__ == "__main__":
    input_channels = 4
    encoder_out_channels = 64

    key = jax.random.PRNGKey(0)
    kx, kp = jax.random.split(key)
    x = jax.random.normal(kx, (2, input_channels, 16, 16), jnp.float32)  # NCHW
    params = init_params(kp, input_channels, encoder_out_channels)

    out = jax.jit(encoder_block_forward)(x, params)
    out = jax.block_until_ready(out)

    assert out.shape == (2, encoder_out_channels, 4, 4), out.shape
    assert bool(jnp.all(out >= 0.0))  # final ReLU
    print("KERNEL_OK")
</pallas_src>

<mosaic_0001>
module attributes {stable_mosaic.version = 11 : i64} {
  func.func @_gemm_bn_relu_kernel(%arg0: i32, %arg1: i32, %arg2: i32, %arg3: memref<1x512x128xbf16, #tpu.memory_space<vmem>>, %arg4: memref<1x128x128xbf16, #tpu.memory_space<vmem>>, %arg5: memref<1x128xf32, #tpu.memory_space<vmem>>, %arg6: memref<1x128xf32, #tpu.memory_space<vmem>>, %arg7: memref<1x128xf32, #tpu.memory_space<vmem>>, %arg8: memref<512x128xf32, #tpu.memory_space<vmem>>, %arg9: memref<512x128xf32, #tpu.memory_space<vmem>>) attributes {dimension_semantics = [#tpu.dimension_semantics<parallel>, #tpu.dimension_semantics<parallel>, #tpu.dimension_semantics<arbitrary>], iteration_bounds = array<i64: 1, 9, 1>, scalar_prefetch = 0 : i64, scratch_operands = 1 : i64, tpu.core_type = #tpu.core_type<tc>, window_params = [{transform_indices = @transform_0, window_bounds = array<i64: 1, 512, 128>}, {transform_indices = @transform_1, window_bounds = array<i64: 1, 128, 128>}, {transform_indices = @transform_2, window_bounds = array<i64: 1, 128>}, {transform_indices = @transform_3, window_bounds = array<i64: 1, 128>}, {transform_indices = @transform_4, window_bounds = array<i64: 1, 128>}, {transform_indices = @transform_5, window_bounds = array<i64: 512, 128>}]} {
    %c0_i32 = arith.constant 0 : i32
    %0 = arith.cmpi eq, %arg2, %c0_i32 : i32
    %1 = arith.extui %0 : i1 to i32
    %c0_i32_0 = arith.constant 0 : i32
    %2 = arith.cmpi ne, %1, %c0_i32_0 : i32
    scf.if %2 {
      %cst_12 = arith.constant 0.000000e+00 : f32
      %14 = vector.broadcast %cst_12 : f32 to vector<512x128xf32>
      %c0_13 = arith.constant 0 : index
      %c0_14 = arith.constant 0 : index
      %15 = vector.load %arg9[%c0_13, %c0_14] : memref<512x128xf32, #tpu.memory_space<vmem>>, vector<512x128xf32>
      tpu.vector_store %arg9[%c0_13, %c0_14], %14 {strides = array<i32>} : memref<512x128xf32, #tpu.memory_space<vmem>>, vector<512x128xf32>,
    } else {
    }
    %c0 = arith.constant 0 : index
    %c0_1 = arith.constant 0 : index
    %3 = vector.load %arg9[%c0, %c0_1] : memref<512x128xf32, #tpu.memory_space<vmem>>, vector<512x128xf32>
    %c0_2 = arith.constant 0 : index
    %c0_3 = arith.constant 0 : index
    %c0_4 = arith.constant 0 : index
    %4 = vector.load %arg3[%c0_2, %c0_3, %c0_4] : memref<1x512x128xbf16, #tpu.memory_space<vmem>>, vector<1x512x128xbf16>
    %5 = vector.shape_cast %4 : vector<1x512x128xbf16> to vector<512x128xbf16>
    %c0_5 = arith.constant 0 : index
    %c0_6 = arith.constant 0 : index
    %c0_7 = arith.constant 0 : index
    %6 = vector.load %arg4[%c0_5, %c0_6, %c0_7] : memref<1x128x128xbf16, #tpu.memory_space<vmem>>, vector<1x128x128xbf16>
    %7 = vector.shape_cast %6 : vector<1x128x128xbf16> to vector<128x128xbf16>
    %cst = arith.constant dense<0.000000e+00> : vector<512x128xf32>
    %8 = tpu.matmul %5, %7, %cst {dimension_numbers = #tpu.dot_dimension_numbers<[1], [0], [0], [1], [0, 0, 1, 1], [], []>} : vector<512x128xbf16>, vector<128x128xbf16>, vector<512x128xf32> -> vector<512x128xf32>
    %9 = arith.addf %3, %8 : vector<512x128xf32>
    %c0_8 = arith.constant 0 : index
    %c0_9 = arith.constant 0 : index
    %10 = vector.load %arg9[%c0_8, %c0_9] : memref<512x128xf32, #tpu.memory_space<vmem>>, vector<512x128xf32>
    tpu.vector_store %arg9[%c0_8, %c0_9], %9 {strides = array<i32>} : memref<512x128xf32, #tpu.memory_space<vmem>>, vector<512x128xf32>,
    %c0_i32_10 = arith.constant 0 : i32
    %11 = arith.cmpi eq, %arg2, %c0_i32_10 : i32
    %12 = arith.extui %11 : i1 to i32
    %c0_i32_11 = arith.constant 0 : i32
    %13 = arith.cmpi ne, %12, %c0_i32_11 : i32
    scf.if %13 {
      %c0_12 = arith.constant 0 : index
      %c0_13 = arith.constant 0 : index
      %14 = vector.load %arg9[%c0_12, %c0_13] : memref<512x128xf32, #tpu.memory_space<vmem>>, vector<512x128xf32>
      %c0_14 = arith.constant 0 : index
      %c0_15 = arith.constant 0 : index
      %15 = vector.load %arg5[%c0_14, %c0_15] : memref<1x128xf32, #tpu.memory_space<vmem>>, vector<1x128xf32>
      %16 = vector.broadcast %15 : vector<1x128xf32> to vector<512x128xf32>
      %17 = arith.addf %14, %16 : vector<512x128xf32>
      %cst_16 = arith.constant dense<0.000000e+00> : vector<128xf32>
      %18 = vector.multi_reduction <add>, %17, %cst_16 [0] : vector<512x128xf32> to vector<128xf32>
      %19 = vector.shape_cast %18 : vector<128xf32> to vector<1x128xf32>
      %cst_17 = arith.constant 5.120000e+02 : f32
      %20 = vector.broadcast %cst_17 : f32 to vector<1x128xf32>
      %21 = arith.divf %19, %20 : vector<1x128xf32>
      %22 = arith.mulf %17, %17 : vector<512x128xf32>
      %cst_18 = arith.constant dense<0.000000e+00> : vector<128xf32>
      %23 = vector.multi_reduction <add>, %22, %cst_18 [0] : vector<512x128xf32> to vector<128xf32>
      %24 = vector.shape_cast %23 : vector<128xf32> to vector<1x128xf32>
      %cst_19 = arith.constant 5.120000e+02 : f32
      %25 = vector.broadcast %cst_19 : f32 to vector<1x128xf32>
      %26 = arith.divf %24, %25 : vector<1x128xf32>
      %27 = arith.mulf %21, %21 : vector<1x128xf32>
      %28 = arith.subf %26, %27 : vector<1x128xf32>
      %c0_20 = arith.constant 0 : index
      %c0_21 = arith.constant 0 : index
      %29 = vector.load %arg6[%c0_20, %c0_21] : memref<1x128xf32, #tpu.memory_space<vmem>>, vector<1x128xf32>
      %cst_22 = arith.constant 9.99999974E-6 : f32
      %30 = vector.broadcast %cst_22 : f32 to vector<1x128xf32>
      %31 = arith.addf %28, %30 : vector<1x128xf32>
      %32 = math.rsqrt %31 : vector<1x128xf32>
      %33 = arith.mulf %29, %32 : vector<1x128xf32>
      %34 = vector.broadcast %21 : vector<1x128xf32> to vector<512x128xf32>
      %35 = arith.subf %17, %34 : vector<512x128xf32>
      %36 = vector.broadcast %33 : vector<1x128xf32> to vector<512x128xf32>
      %37 = arith.mulf %35, %36 : vector<512x128xf32>
      %c0_23 = arith.constant 0 : index
      %c0_24 = arith.constant 0 : index
      %38 = vector.load %arg7[%c0_23, %c0_24] : memref<1x128xf32, #tpu.memory_space<vmem>>, vector<1x128xf32>
      %39 = vector.broadcast %38 : vector<1x128xf32> to vector<512x128xf32>
      %40 = arith.addf %37, %39 : vector<512x128xf32>
      %cst_25 = arith.constant 0.000000e+00 : f32
      %41 = vector.broadcast %cst_25 : f32 to vector<512x128xf32>
      %42 = arith.maximumf %40, %41 : vector<512x128xf32>
      %c0_26 = arith.constant 0 : index
      %c0_27 = arith.constant 0 : index
      %43 = vector.load %arg8[%c0_26, %c0_27] : memref<512x128xf32, #tpu.memory_space<vmem>>, vector<512x128xf32>
      tpu.vector_store %arg8[%c0_26, %c0_27], %42 {strides = array<i32>} : memref<512x128xf32, #tpu.memory_space<vmem>>, vector<512x128xf32>,
    } else {
    }
    return
  }
  func.func @transform_0(%arg0: i32, %arg1: i32, %arg2: i32) -> (i32, i32, i32) {
    %c0_i32 = arith.constant 0 : i32
    %c0_i32_0 = arith.constant 0 : i32
    return %arg2, %arg0, %c0_i32 : i32, i32, i32
  }
  func.func @transform_1(%arg0: i32, %arg1: i32, %arg2: i32) -> (i32, i32, i32) {
    %c0_i32 = arith.constant 0 : i32
    %c0_i32_0 = arith.constant 0 : i32
    return %arg2, %c0_i32, %arg1 : i32, i32, i32
  }
  func.func @transform_2(%arg0: i32, %arg1: i32, %arg2: i32) -> (i32, i32) {
    %c0_i32 = arith.constant 0 : i32
    %c0_i32_0 = arith.constant 0 : i32
    return %c0_i32, %arg1 : i32, i32
  }
  func.func @transform_3(%arg0: i32, %arg1: i32, %arg2: i32) -> (i32, i32) {
    %c0_i32 = arith.constant 0 : i32
    %c0_i32_0 = arith.constant 0 : i32
    return %c0_i32, %arg1 : i32, i32
  }
  func.func @transform_4(%arg0: i32, %arg1: i32, %arg2: i32) -> (i32, i32) {
    %c0_i32 = arith.constant 0 : i32
    %c0_i32_0 = arith.constant 0 : i32
    return %c0_i32, %arg1 : i32, i32
  }
  func.func @transform_5(%arg0: i32, %arg1: i32, %arg2: i32) -> (i32, i32) {
    %c0_i32 = arith.constant 0 : i32
    return %arg0, %arg1 : i32, i32
  }
}

module attributes {stable_mosaic.version = 11 : i64} {
  func.func @_gemm_bn_relu_kernel(%arg0: i32, %arg1: i32, %arg2: i32, %arg3: memref<1x128x1152xbf16, #tpu.memory_space<vmem>>, %arg4: memref<1x1152x256xbf16, #tpu.memory_space<vmem>>, %arg5: memref<1x256xf32, #tpu.memory_space<vmem>>, %arg6: memref<1x256xf32, #tpu.memory_space<vmem>>, %arg7: memref<1x256xf32, #tpu.memory_space<vmem>>, %arg8: memref<128x256xf32, #tpu.memory_space<vmem>>, %arg9: memref<128x256xf32, #tpu.memory_space<vmem>>) attributes {dimension_semantics = [#tpu.dimension_semantics<parallel>, #tpu.dimension_semantics<parallel>, #tpu.dimension_semantics<arbitrary>], iteration_bounds = array<i64: 1, 2, 9>, scalar_prefetch = 0 : i64, scratch_operands = 1 : i64, tpu.core_type = #tpu.core_type<tc>, window_params = [{transform_indices = @transform_0, window_bounds = array<i64: 1, 128, 1152>}, {transform_indices = @transform_1, window_bounds = array<i64: 1, 1152, 256>}, {transform_indices = @transform_2, window_bounds = array<i64: 1, 256>}, {transform_indices = @transform_3, window_bounds = array<i64: 1, 256>}, {transform_indices = @transform_4, window_bounds = array<i64: 1, 256>}, {transform_indices = @transform_5, window_bounds = array<i64: 128, 256>}]} {
    %c0_i32 = arith.constant 0 : i32
    %0 = arith.cmpi eq, %arg2, %c0_i32 : i32
    %1 = arith.extui %0 : i1 to i32
    %c0_i32_0 = arith.constant 0 : i32
    %2 = arith.cmpi ne, %1, %c0_i32_0 : i32
    scf.if %2 {
      %cst_11 = arith.constant 0.000000e+00 : f32
      %14 = vector.broadcast %cst_11 : f32 to vector<128x256xf32>
      %c0_12 = arith.constant 0 : index
      %c0_13 = arith.constant 0 : index
      %15 = vector.load %arg9[%c0_12, %c0_13] : memref<128x256xf32, #tpu.memory_space<vmem>>, vector<128x256xf32>
      tpu.vector_store %arg9[%c0_12, %c0_13], %14 {strides = array<i32>} : memref<128x256xf32, #tpu.memory_space<vmem>>, vector<128x256xf32>,
    } else {
    }
    %c0 = arith.constant 0 : index
    %c0_1 = arith.constant 0 : index
    %3 = vector.load %arg9[%c0, %c0_1] : memref<128x256xf32, #tpu.memory_space<vmem>>, vector<128x256xf32>
    %c0_2 = arith.constant 0 : index
    %c0_3 = arith.constant 0 : index
    %c0_4 = arith.constant 0 : index
    %4 = vector.load %arg3[%c0_2, %c0_3, %c0_4] : memref<1x128x1152xbf16, #tpu.memory_space<vmem>>, vector<1x128x1152xbf16>
    %5 = vector.shape_cast %4 : vector<1x128x1152xbf16> to vector<128x1152xbf16>
    %c0_5 = arith.constant 0 : index
    %c0_6 = arith.constant 0 : index
    %c0_7 = arith.constant 0 : index
    %6 = vector.load %arg4[%c0_5, %c0_6, %c0_7] : memref<1x1152x256xbf16, #tpu.memory_space<vmem>>, vector<1x1152x256xbf16>
    %7 = vector.shape_cast %6 : vector<1x1152x256xbf16> to vector<1152x256xbf16>
    %cst = arith.constant dense<0.000000e+00> : vector<128x256xf32>
    %8 = tpu.matmul %5, %7, %cst {dimension_numbers = #tpu.dot_dimension_numbers<[1], [0], [0], [1], [0, 0, 1, 1], [], []>} : vector<128x1152xbf16>, vector<1152x256xbf16>, vector<128x256xf32> -> vector<128x256xf32>
    %9 = arith.addf %3, %8 : vector<128x256xf32>
    %c0_8 = arith.constant 0 : index
    %c0_9 = arith.constant 0 : index
    %10 = vector.load %arg9[%c0_8, %c0_9] : memref<128x256xf32, #tpu.memory_space<vmem>>, vector<128x256xf32>
    tpu.vector_store %arg9[%c0_8, %c0_9], %9 {strides = array<i32>} : memref<128x256xf32, #tpu.memory_space<vmem>>, vector<128x256xf32>,
    %c8_i32 = arith.constant 8 : i32
    %11 = arith.cmpi eq, %arg2, %c8_i32 : i32
    %12 = arith.extui %11 : i1 to i32
    %c0_i32_10 = arith.constant 0 : i32
    %13 = arith.cmpi ne, %12, %c0_i32_10 : i32
    scf.if %13 {
      %c0_11 = arith.constant 0 : index
      %c0_12 = arith.constant 0 : index
      %14 = vector.load %arg9[%c0_11, %c0_12] : memref<128x256xf32, #tpu.memory_space<vmem>>, vector<128x256xf32>
      %c0_13 = arith.constant 0 : index
      %c0_14 = arith.constant 0 : index
      %15 = vector.load %arg5[%c0_13, %c0_14] : memref<1x256xf32, #tpu.memory_space<vmem>>, vector<1x256xf32>
      %16 = vector.broadcast %15 : vector<1x256xf32> to vector<128x256xf32>
      %17 = arith.addf %14, %16 : vector<128x256xf32>
      %cst_15 = arith.constant dense<0.000000e+00> : vector<256xf32>
      %18 = vector.multi_reduction <add>, %17, %cst_15 [0] : vector<128x256xf32> to vector<256xf32>
      %19 = vector.shape_cast %18 : vector<256xf32> to vector<1x256xf32>
      %cst_16 = arith.constant 1.280000e+02 : f32
      %20 = vector.broadcast %cst_16 : f32 to vector<1x256xf32>
      %21 = arith.divf %19, %20 : vector<1x256xf32>
      %22 = arith.mulf %17, %17 : vector<128x256xf32>
      %cst_17 = arith.constant dense<0.000000e+00> : vector<256xf32>
      %23 = vector.multi_reduction <add>, %22, %cst_17 [0] : vector<128x256xf32> to vector<256xf32>
      %24 = vector.shape_cast %23 : vector<256xf32> to vector<1x256xf32>
      %cst_18 = arith.constant 1.280000e+02 : f32
      %25 = vector.broadcast %cst_18 : f32 to vector<1x256xf32>
      %26 = arith.divf %24, %25 : vector<1x256xf32>
      %27 = arith.mulf %21, %21 : vector<1x256xf32>
      %28 = arith.subf %26, %27 : vector<1x256xf32>
      %c0_19 = arith.constant 0 : index
      %c0_20 = arith.constant 0 : index
      %29 = vector.load %arg6[%c0_19, %c0_20] : memref<1x256xf32, #tpu.memory_space<vmem>>, vector<1x256xf32>
      %cst_21 = arith.constant 9.99999974E-6 : f32
      %30 = vector.broadcast %cst_21 : f32 to vector<1x256xf32>
      %31 = arith.addf %28, %30 : vector<1x256xf32>
      %32 = math.rsqrt %31 : vector<1x256xf32>
      %33 = arith.mulf %29, %32 : vector<1x256xf32>
      %34 = vector.broadcast %21 : vector<1x256xf32> to vector<128x256xf32>
      %35 = arith.subf %17, %34 : vector<128x256xf32>
      %36 = vector.broadcast %33 : vector<1x256xf32> to vector<128x256xf32>
      %37 = arith.mulf %35, %36 : vector<128x256xf32>
      %c0_22 = arith.constant 0 : index
      %c0_23 = arith.constant 0 : index
      %38 = vector.load %arg7[%c0_22, %c0_23] : memref<1x256xf32, #tpu.memory_space<vmem>>, vector<1x256xf32>
      %39 = vector.broadcast %38 : vector<1x256xf32> to vector<128x256xf32>
      %40 = arith.addf %37, %39 : vector<128x256xf32>
      %cst_24 = arith.constant 0.000000e+00 : f32
      %41 = vector.broadcast %cst_24 : f32 to vector<128x256xf32>
      %42 = arith.maximumf %40, %41 : vector<128x256xf32>
      %c0_25 = arith.constant 0 : index
      %c0_26 = arith.constant 0 : index
      %43 = vector.load %arg8[%c0_25, %c0_26] : memref<128x256xf32, #tpu.memory_space<vmem>>, vector<128x256xf32>
      tpu.vector_store %arg8[%c0_25, %c0_26], %42 {strides = array<i32>} : memref<128x256xf32, #tpu.memory_space<vmem>>, vector<128x256xf32>,
    } else {
    }
    return
  }
  func.func @transform_0(%arg0: i32, %arg1: i32, %arg2: i32) -> (i32, i32, i32) {
    %c0_i32 = arith.constant 0 : i32
    %c0_i32_0 = arith.constant 0 : i32
    return %arg2, %arg0, %c0_i32 : i32, i32, i32
  }
  func.func @transform_1(%arg0: i32, %arg1: i32, %arg2: i32) -> (i32, i32, i32) {
    %c0_i32 = arith.constant 0 : i32
    %c0_i32_0 = arith.constant 0 : i32
    return %arg2, %c0_i32, %arg1 : i32, i32, i32
  }
  func.func @transform_2(%arg0: i32, %arg1: i32, %arg2: i32) -> (i32, i32) {
    %c0_i32 = arith.constant 0 : i32
    %c0_i32_0 = arith.constant 0 : i32
    return %c0_i32, %arg1 : i32, i32
  }
  func.func @transform_3(%arg0: i32, %arg1: i32, %arg2: i32) -> (i32, i32) {
    %c0_i32 = arith.constant 0 : i32
    %c0_i32_0 = arith.constant 0 : i32
    return %c0_i32, %arg1 : i32, i32
  }
  func.func @transform_4(%arg0: i32, %arg1: i32, %arg2: i32) -> (i32, i32) {
    %c0_i32 = arith.constant 0 : i32
    %c0_i32_0 = arith.constant 0 : i32
    return %c0_i32, %arg1 : i32, i32
  }
  func.func @transform_5(%arg0: i32, %arg1: i32, %arg2: i32) -> (i32, i32) {
    %c0_i32 = arith.constant 0 : i32
    return %arg0, %arg1 : i32, i32
  }
}

module attributes {stable_mosaic.version = 11 : i64} {
  func.func @_gemm_bn_relu_kernel(%arg0: i32, %arg1: i32, %arg2: i32, %arg3: memref<1x128x512xbf16, #tpu.memory_space<vmem>>, %arg4: memref<1x512x256xbf16, #tpu.memory_space<vmem>>, %arg5: memref<1x256xf32, #tpu.memory_space<vmem>>, %arg6: memref<1x256xf32, #tpu.memory_space<vmem>>, %arg7: memref<1x256xf32, #tpu.memory_space<vmem>>, %arg8: memref<128x256xf32, #tpu.memory_space<vmem>>, %arg9: memref<128x256xf32, #tpu.memory_space<vmem>>) attributes {dimension_semantics = [#tpu.dimension_semantics<parallel>, #tpu.dimension_semantics<parallel>, #tpu.dimension_semantics<arbitrary>], iteration_bounds = array<i64: 1, 2, 1>, scalar_prefetch = 0 : i64, scratch_operands = 1 : i64, tpu.core_type = #tpu.core_type<tc>, window_params = [{transform_indices = @transform_0, window_bounds = array<i64: 1, 128, 512>}, {transform_indices = @transform_1, window_bounds = array<i64: 1, 512, 256>}, {transform_indices = @transform_2, window_bounds = array<i64: 1, 256>}, {transform_indices = @transform_3, window_bounds = array<i64: 1, 256>}, {transform_indices = @transform_4, window_bounds = array<i64: 1, 256>}, {transform_indices = @transform_5, window_bounds = array<i64: 128, 256>}]} {
    %c0_i32 = arith.constant 0 : i32
    %0 = arith.cmpi eq, %arg2, %c0_i32 : i32
    %1 = arith.extui %0 : i1 to i32
    %c0_i32_0 = arith.constant 0 : i32
    %2 = arith.cmpi ne, %1, %c0_i32_0 : i32
    scf.if %2 {
      %cst_12 = arith.constant 0.000000e+00 : f32
      %14 = vector.broadcast %cst_12 : f32 to vector<128x256xf32>
      %c0_13 = arith.constant 0 : index
      %c0_14 = arith.constant 0 : index
      %15 = vector.load %arg9[%c0_13, %c0_14] : memref<128x256xf32, #tpu.memory_space<vmem>>, vector<128x256xf32>
      tpu.vector_store %arg9[%c0_13, %c0_14], %14 {strides = array<i32>} : memref<128x256xf32, #tpu.memory_space<vmem>>, vector<128x256xf32>,
    } else {
    }
    %c0 = arith.constant 0 : index
    %c0_1 = arith.constant 0 : index
    %3 = vector.load %arg9[%c0, %c0_1] : memref<128x256xf32, #tpu.memory_space<vmem>>, vector<128x256xf32>
    %c0_2 = arith.constant 0 : index
    %c0_3 = arith.constant 0 : index
    %c0_4 = arith.constant 0 : index
    %4 = vector.load %arg3[%c0_2, %c0_3, %c0_4] : memref<1x128x512xbf16, #tpu.memory_space<vmem>>, vector<1x128x512xbf16>
    %5 = vector.shape_cast %4 : vector<1x128x512xbf16> to vector<128x512xbf16>
    %c0_5 = arith.constant 0 : index
    %c0_6 = arith.constant 0 : index
    %c0_7 = arith.constant 0 : index
    %6 = vector.load %arg4[%c0_5, %c0_6, %c0_7] : memref<1x512x256xbf16, #tpu.memory_space<vmem>>, vector<1x512x256xbf16>
    %7 = vector.shape_cast %6 : vector<1x512x256xbf16> to vector<512x256xbf16>
    %cst = arith.constant dense<0.000000e+00> : vector<128x256xf32>
    %8 = tpu.matmul %5, %7, %cst {dimension_numbers = #tpu.dot_dimension_numbers<[1], [0], [0], [1], [0, 0, 1, 1], [], []>} : vector<128x512xbf16>, vector<512x256xbf16>, vector<128x256xf32> -> vector<128x256xf32>
    %9 = arith.addf %3, %8 : vector<128x256xf32>
    %c0_8 = arith.constant 0 : index
    %c0_9 = arith.constant 0 : index
    %10 = vector.load %arg9[%c0_8, %c0_9] : memref<128x256xf32, #tpu.memory_space<vmem>>, vector<128x256xf32>
    tpu.vector_store %arg9[%c0_8, %c0_9], %9 {strides = array<i32>} : memref<128x256xf32, #tpu.memory_space<vmem>>, vector<128x256xf32>,
    %c0_i32_10 = arith.constant 0 : i32
    %11 = arith.cmpi eq, %arg2, %c0_i32_10 : i32
    %12 = arith.extui %11 : i1 to i32
    %c0_i32_11 = arith.constant 0 : i32
    %13 = arith.cmpi ne, %12, %c0_i32_11 : i32
    scf.if %13 {
      %c0_12 = arith.constant 0 : index
      %c0_13 = arith.constant 0 : index
      %14 = vector.load %arg9[%c0_12, %c0_13] : memref<128x256xf32, #tpu.memory_space<vmem>>, vector<128x256xf32>
      %c0_14 = arith.constant 0 : index
      %c0_15 = arith.constant 0 : index
      %15 = vector.load %arg5[%c0_14, %c0_15] : memref<1x256xf32, #tpu.memory_space<vmem>>, vector<1x256xf32>
      %16 = vector.broadcast %15 : vector<1x256xf32> to vector<128x256xf32>
      %17 = arith.addf %14, %16 : vector<128x256xf32>
      %cst_16 = arith.constant dense<0.000000e+00> : vector<256xf32>
      %18 = vector.multi_reduction <add>, %17, %cst_16 [0] : vector<128x256xf32> to vector<256xf32>
      %19 = vector.shape_cast %18 : vector<256xf32> to vector<1x256xf32>
      %cst_17 = arith.constant 1.280000e+02 : f32
      %20 = vector.broadcast %cst_17 : f32 to vector<1x256xf32>
      %21 = arith.divf %19, %20 : vector<1x256xf32>
      %22 = arith.mulf %17, %17 : vector<128x256xf32>
      %cst_18 = arith.constant dense<0.000000e+00> : vector<256xf32>
      %23 = vector.multi_reduction <add>, %22, %cst_18 [0] : vector<128x256xf32> to vector<256xf32>
      %24 = vector.shape_cast %23 : vector<256xf32> to vector<1x256xf32>
      %cst_19 = arith.constant 1.280000e+02 : f32
      %25 = vector.broadcast %cst_19 : f32 to vector<1x256xf32>
      %26 = arith.divf %24, %25 : vector<1x256xf32>
      %27 = arith.mulf %21, %21 : vector<1x256xf32>
      %28 = arith.subf %26, %27 : vector<1x256xf32>
      %c0_20 = arith.constant 0 : index
      %c0_21 = arith.constant 0 : index
      %29 = vector.load %arg6[%c0_20, %c0_21] : memref<1x256xf32, #tpu.memory_space<vmem>>, vector<1x256xf32>
      %cst_22 = arith.constant 9.99999974E-6 : f32
      %30 = vector.broadcast %cst_22 : f32 to vector<1x256xf32>
      %31 = arith.addf %28, %30 : vector<1x256xf32>
      %32 = math.rsqrt %31 : vector<1x256xf32>
      %33 = arith.mulf %29, %32 : vector<1x256xf32>
      %34 = vector.broadcast %21 : vector<1x256xf32> to vector<128x256xf32>
      %35 = arith.subf %17, %34 : vector<128x256xf32>
      %36 = vector.broadcast %33 : vector<1x256xf32> to vector<128x256xf32>
      %37 = arith.mulf %35, %36 : vector<128x256xf32>
      %c0_23 = arith.constant 0 : index
      %c0_24 = arith.constant 0 : index
      %38 = vector.load %arg7[%c0_23, %c0_24] : memref<1x256xf32, #tpu.memory_space<vmem>>, vector<1x256xf32>
      %39 = vector.broadcast %38 : vector<1x256xf32> to vector<128x256xf32>
      %40 = arith.addf %37, %39 : vector<128x256xf32>
      %cst_25 = arith.constant 0.000000e+00 : f32
      %41 = vector.broadcast %cst_25 : f32 to vector<128x256xf32>
      %42 = arith.maximumf %40, %41 : vector<128x256xf32>
      %c0_26 = arith.constant 0 : index
      %c0_27 = arith.constant 0 : index
      %43 = vector.load %arg8[%c0_26, %c0_27] : memref<128x256xf32, #tpu.memory_space<vmem>>, vector<128x256xf32>
      tpu.vector_store %arg8[%c0_26, %c0_27], %42 {strides = array<i32>} : memref<128x256xf32, #tpu.memory_space<vmem>>, vector<128x256xf32>,
    } else {
    }
    return
  }
  func.func @transform_0(%arg0: i32, %arg1: i32, %arg2: i32) -> (i32, i32, i32) {
    %c0_i32 = arith.constant 0 : i32
    %c0_i32_0 = arith.constant 0 : i32
    return %arg2, %arg0, %c0_i32 : i32, i32, i32
  }
  func.func @transform_1(%arg0: i32, %arg1: i32, %arg2: i32) -> (i32, i32, i32) {
    %c0_i32 = arith.constant 0 : i32
    %c0_i32_0 = arith.constant 0 : i32
    return %arg2, %c0_i32, %arg1 : i32, i32, i32
  }
  func.func @transform_2(%arg0: i32, %arg1: i32, %arg2: i32) -> (i32, i32) {
    %c0_i32 = arith.constant 0 : i32
    %c0_i32_0 = arith.constant 0 : i32
    return %c0_i32, %arg1 : i32, i32
  }
  func.func @transform_3(%arg0: i32, %arg1: i32, %arg2: i32) -> (i32, i32) {
    %c0_i32 = arith.constant 0 : i32
    %c0_i32_0 = arith.constant 0 : i32
    return %c0_i32, %arg1 : i32, i32
  }
  func.func @transform_4(%arg0: i32, %arg1: i32, %arg2: i32) -> (i32, i32) {
    %c0_i32 = arith.constant 0 : i32
    %c0_i32_0 = arith.constant 0 : i32
    return %c0_i32, %arg1 : i32, i32
  }
  func.func @transform_5(%arg0: i32, %arg1: i32, %arg2: i32) -> (i32, i32) {
    %c0_i32 = arith.constant 0 : i32
    return %arg0, %arg1 : i32, i32
  }
}

module attributes {stable_mosaic.version = 11 : i64} {
  func.func @_gemm_bn_relu_kernel(%arg0: i32, %arg1: i32, %arg2: i32, %arg3: memref<1x32x512xbf16, #tpu.memory_space<vmem>>, %arg4: memref<1x512x256xbf16, #tpu.memory_space<vmem>>, %arg5: memref<1x256xf32, #tpu.memory_space<vmem>>, %arg6: memref<1x256xf32, #tpu.memory_space<vmem>>, %arg7: memref<1x256xf32, #tpu.memory_space<vmem>>, %arg8: memref<32x256xf32, #tpu.memory_space<vmem>>, %arg9: memref<32x256xf32, #tpu.memory_space<vmem>>) attributes {dimension_semantics = [#tpu.dimension_semantics<parallel>, #tpu.dimension_semantics<parallel>, #tpu.dimension_semantics<arbitrary>], iteration_bounds = array<i64: 1, 1, 9>, scalar_prefetch = 0 : i64, scratch_operands = 1 : i64, tpu.core_type = #tpu.core_type<tc>, window_params = [{transform_indices = @transform_0, window_bounds = array<i64: 1, 32, 512>}, {transform_indices = @transform_1, window_bounds = array<i64: 1, 512, 256>}, {transform_indices = @transform_2, window_bounds = array<i64: 1, 256>}, {transform_indices = @transform_3, window_bounds = array<i64: 1, 256>}, {transform_indices = @transform_4, window_bounds = array<i64: 1, 256>}, {transform_indices = @transform_5, window_bounds = array<i64: 32, 256>}]} {
    %c0_i32 = arith.constant 0 : i32
    %0 = arith.cmpi eq, %arg2, %c0_i32 : i32
    %1 = arith.extui %0 : i1 to i32
    %c0_i32_0 = arith.constant 0 : i32
    %2 = arith.cmpi ne, %1, %c0_i32_0 : i32
    scf.if %2 {
      %cst_11 = arith.constant 0.000000e+00 : f32
      %14 = vector.broadcast %cst_11 : f32 to vector<32x256xf32>
      %c0_12 = arith.constant 0 : index
      %c0_13 = arith.constant 0 : index
      %15 = vector.load %arg9[%c0_12, %c0_13] : memref<32x256xf32, #tpu.memory_space<vmem>>, vector<32x256xf32>
      tpu.vector_store %arg9[%c0_12, %c0_13], %14 {strides = array<i32>} : memref<32x256xf32, #tpu.memory_space<vmem>>, vector<32x256xf32>,
    } else {
    }
    %c0 = arith.constant 0 : index
    %c0_1 = arith.constant 0 : index
    %3 = vector.load %arg9[%c0, %c0_1] : memref<32x256xf32, #tpu.memory_space<vmem>>, vector<32x256xf32>
    %c0_2 = arith.constant 0 : index
    %c0_3 = arith.constant 0 : index
    %c0_4 = arith.constant 0 : index
    %4 = vector.load %arg3[%c0_2, %c0_3, %c0_4] : memref<1x32x512xbf16, #tpu.memory_space<vmem>>, vector<1x32x512xbf16>
    %5 = vector.shape_cast %4 : vector<1x32x512xbf16> to vector<32x512xbf16>
    %c0_5 = arith.constant 0 : index
    %c0_6 = arith.constant 0 : index
    %c0_7 = arith.constant 0 : index
    %6 = vector.load %arg4[%c0_5, %c0_6, %c0_7] : memref<1x512x256xbf16, #tpu.memory_space<vmem>>, vector<1x512x256xbf16>
    %7 = vector.shape_cast %6 : vector<1x512x256xbf16> to vector<512x256xbf16>
    %cst = arith.constant dense<0.000000e+00> : vector<32x256xf32>
    %8 = tpu.matmul %5, %7, %cst {dimension_numbers = #tpu.dot_dimension_numbers<[1], [0], [0], [1], [0, 0, 1, 1], [], []>} : vector<32x512xbf16>, vector<512x256xbf16>, vector<32x256xf32> -> vector<32x256xf32>
    %9 = arith.addf %3, %8 : vector<32x256xf32>
    %c0_8 = arith.constant 0 : index
    %c0_9 = arith.constant 0 : index
    %10 = vector.load %arg9[%c0_8, %c0_9] : memref<32x256xf32, #tpu.memory_space<vmem>>, vector<32x256xf32>
    tpu.vector_store %arg9[%c0_8, %c0_9], %9 {strides = array<i32>} : memref<32x256xf32, #tpu.memory_space<vmem>>, vector<32x256xf32>,
    %c8_i32 = arith.constant 8 : i32
    %11 = arith.cmpi eq, %arg2, %c8_i32 : i32
    %12 = arith.extui %11 : i1 to i32
    %c0_i32_10 = arith.constant 0 : i32
    %13 = arith.cmpi ne, %12, %c0_i32_10 : i32
    scf.if %13 {
      %c0_11 = arith.constant 0 : index
      %c0_12 = arith.constant 0 : index
      %14 = vector.load %arg9[%c0_11, %c0_12] : memref<32x256xf32, #tpu.memory_space<vmem>>, vector<32x256xf32>
      %c0_13 = arith.constant 0 : index
      %c0_14 = arith.constant 0 : index
      %15 = vector.load %arg5[%c0_13, %c0_14] : memref<1x256xf32, #tpu.memory_space<vmem>>, vector<1x256xf32>
      %16 = vector.broadcast %15 : vector<1x256xf32> to vector<32x256xf32>
      %17 = arith.addf %14, %16 : vector<32x256xf32>
      %cst_15 = arith.constant dense<0.000000e+00> : vector<256xf32>
      %18 = vector.multi_reduction <add>, %17, %cst_15 [0] : vector<32x256xf32> to vector<256xf32>
      %19 = vector.shape_cast %18 : vector<256xf32> to vector<1x256xf32>
      %cst_16 = arith.constant 3.200000e+01 : f32
      %20 = vector.broadcast %cst_16 : f32 to vector<1x256xf32>
      %21 = arith.divf %19, %20 : vector<1x256xf32>
      %22 = arith.mulf %17, %17 : vector<32x256xf32>
      %cst_17 = arith.constant dense<0.000000e+00> : vector<256xf32>
      %23 = vector.multi_reduction <add>, %22, %cst_17 [0] : vector<32x256xf32> to vector<256xf32>
      %24 = vector.shape_cast %23 : vector<256xf32> to vector<1x256xf32>
      %cst_18 = arith.constant 3.200000e+01 : f32
      %25 = vector.broadcast %cst_18 : f32 to vector<1x256xf32>
      %26 = arith.divf %24, %25 : vector<1x256xf32>
      %27 = arith.mulf %21, %21 : vector<1x256xf32>
      %28 = arith.subf %26, %27 : vector<1x256xf32>
      %c0_19 = arith.constant 0 : index
      %c0_20 = arith.constant 0 : index
      %29 = vector.load %arg6[%c0_19, %c0_20] : memref<1x256xf32, #tpu.memory_space<vmem>>, vector<1x256xf32>
      %cst_21 = arith.constant 9.99999974E-6 : f32
      %30 = vector.broadcast %cst_21 : f32 to vector<1x256xf32>
      %31 = arith.addf %28, %30 : vector<1x256xf32>
      %32 = math.rsqrt %31 : vector<1x256xf32>
      %33 = arith.mulf %29, %32 : vector<1x256xf32>
      %34 = vector.broadcast %21 : vector<1x256xf32> to vector<32x256xf32>
      %35 = arith.subf %17, %34 : vector<32x256xf32>
      %36 = vector.broadcast %33 : vector<1x256xf32> to vector<32x256xf32>
      %37 = arith.mulf %35, %36 : vector<32x256xf32>
      %c0_22 = arith.constant 0 : index
      %c0_23 = arith.constant 0 : index
      %38 = vector.load %arg7[%c0_22, %c0_23] : memref<1x256xf32, #tpu.memory_space<vmem>>, vector<1x256xf32>
      %39 = vector.broadcast %38 : vector<1x256xf32> to vector<32x256xf32>
      %40 = arith.addf %37, %39 : vector<32x256xf32>
      %cst_24 = arith.constant 0.000000e+00 : f32
      %41 = vector.broadcast %cst_24 : f32 to vector<32x256xf32>
      %42 = arith.maximumf %40, %41 : vector<32x256xf32>
      %c0_25 = arith.constant 0 : index
      %c0_26 = arith.constant 0 : index
      %43 = vector.load %arg8[%c0_25, %c0_26] : memref<32x256xf32, #tpu.memory_space<vmem>>, vector<32x256xf32>
      tpu.vector_store %arg8[%c0_25, %c0_26], %42 {strides = array<i32>} : memref<32x256xf32, #tpu.memory_space<vmem>>, vector<32x256xf32>,
    } else {
    }
    return
  }
  func.func @transform_0(%arg0: i32, %arg1: i32, %arg2: i32) -> (i32, i32, i32) {
    %c0_i32 = arith.constant 0 : i32
    %c0_i32_0 = arith.constant 0 : i32
    return %arg2, %arg0, %c0_i32 : i32, i32, i32
  }
  func.func @transform_1(%arg0: i32, %arg1: i32, %arg2: i32) -> (i32, i32, i32) {
    %c0_i32 = arith.constant 0 : i32
    %c0_i32_0 = arith.constant 0 : i32
    return %arg2, %c0_i32, %arg1 : i32, i32, i32
  }
  func.func @transform_2(%arg0: i32, %arg1: i32, %arg2: i32) -> (i32, i32) {
    %c0_i32 = arith.constant 0 : i32
    %c0_i32_0 = arith.constant 0 : i32
    return %c0_i32, %arg1 : i32, i32
  }
  func.func @transform_3(%arg0: i32, %arg1: i32, %arg2: i32) -> (i32, i32) {
    %c0_i32 = arith.constant 0 : i32
    %c0_i32_0 = arith.constant 0 : i32
    return %c0_i32, %arg1 : i32, i32
  }
  func.func @transform_4(%arg0: i32, %arg1: i32, %arg2: i32) -> (i32, i32) {
    %c0_i32 = arith.constant 0 : i32
    %c0_i32_0 = arith.constant 0 : i32
    return %c0_i32, %arg1 : i32, i32
  }
  func.func @transform_5(%arg0: i32, %arg1: i32, %arg2: i32) -> (i32, i32) {
    %c0_i32 = arith.constant 0 : i32
    return %arg0, %arg1 : i32, i32
  }
}

module attributes {stable_mosaic.version = 11 : i64} {
  func.func @_gemm_bn_relu_kernel(%arg0: i32, %arg1: i32, %arg2: i32, %arg3: memref<1x32x256xbf16, #tpu.memory_space<vmem>>, %arg4: memref<1x256x128xbf16, #tpu.memory_space<vmem>>, %arg5: memref<1x128xf32, #tpu.memory_space<vmem>>, %arg6: memref<1x128xf32, #tpu.memory_space<vmem>>, %arg7: memref<1x128xf32, #tpu.memory_space<vmem>>, %arg8: memref<32x128xf32, #tpu.memory_space<vmem>>, %arg9: memref<32x128xf32, #tpu.memory_space<vmem>>) attributes {dimension_semantics = [#tpu.dimension_semantics<parallel>, #tpu.dimension_semantics<parallel>, #tpu.dimension_semantics<arbitrary>], iteration_bounds = array<i64: 1, 1, 1>, scalar_prefetch = 0 : i64, scratch_operands = 1 : i64, tpu.core_type = #tpu.core_type<tc>, window_params = [{transform_indices = @transform_0, window_bounds = array<i64: 1, 32, 256>}, {transform_indices = @transform_1, window_bounds = array<i64: 1, 256, 128>}, {transform_indices = @transform_2, window_bounds = array<i64: 1, 128>}, {transform_indices = @transform_3, window_bounds = array<i64: 1, 128>}, {transform_indices = @transform_4, window_bounds = array<i64: 1, 128>}, {transform_indices = @transform_5, window_bounds = array<i64: 32, 128>}]} {
    %c0_i32 = arith.constant 0 : i32
    %0 = arith.cmpi eq, %arg2, %c0_i32 : i32
    %1 = arith.extui %0 : i1 to i32
    %c0_i32_0 = arith.constant 0 : i32
    %2 = arith.cmpi ne, %1, %c0_i32_0 : i32
    scf.if %2 {
      %cst_12 = arith.constant 0.000000e+00 : f32
      %14 = vector.broadcast %cst_12 : f32 to vector<32x128xf32>
      %c0_13 = arith.constant 0 : index
      %c0_14 = arith.constant 0 : index
      %15 = vector.load %arg9[%c0_13, %c0_14] : memref<32x128xf32, #tpu.memory_space<vmem>>, vector<32x128xf32>
      tpu.vector_store %arg9[%c0_13, %c0_14], %14 {strides = array<i32>} : memref<32x128xf32, #tpu.memory_space<vmem>>, vector<32x128xf32>,
    } else {
    }
    %c0 = arith.constant 0 : index
    %c0_1 = arith.constant 0 : index
    %3 = vector.load %arg9[%c0, %c0_1] : memref<32x128xf32, #tpu.memory_space<vmem>>, vector<32x128xf32>
    %c0_2 = arith.constant 0 : index
    %c0_3 = arith.constant 0 : index
    %c0_4 = arith.constant 0 : index
    %4 = vector.load %arg3[%c0_2, %c0_3, %c0_4] : memref<1x32x256xbf16, #tpu.memory_space<vmem>>, vector<1x32x256xbf16>
    %5 = vector.shape_cast %4 : vector<1x32x256xbf16> to vector<32x256xbf16>
    %c0_5 = arith.constant 0 : index
    %c0_6 = arith.constant 0 : index
    %c0_7 = arith.constant 0 : index
    %6 = vector.load %arg4[%c0_5, %c0_6, %c0_7] : memref<1x256x128xbf16, #tpu.memory_space<vmem>>, vector<1x256x128xbf16>
    %7 = vector.shape_cast %6 : vector<1x256x128xbf16> to vector<256x128xbf16>
    %cst = arith.constant dense<0.000000e+00> : vector<32x128xf32>
    %8 = tpu.matmul %5, %7, %cst {dimension_numbers = #tpu.dot_dimension_numbers<[1], [0], [0], [1], [0, 0, 1, 1], [], []>} : vector<32x256xbf16>, vector<256x128xbf16>, vector<32x128xf32> -> vector<32x128xf32>
    %9 = arith.addf %3, %8 : vector<32x128xf32>
    %c0_8 = arith.constant 0 : index
    %c0_9 = arith.constant 0 : index
    %10 = vector.load %arg9[%c0_8, %c0_9] : memref<32x128xf32, #tpu.memory_space<vmem>>, vector<32x128xf32>
    tpu.vector_store %arg9[%c0_8, %c0_9], %9 {strides = array<i32>} : memref<32x128xf32, #tpu.memory_space<vmem>>, vector<32x128xf32>,
    %c0_i32_10 = arith.constant 0 : i32
    %11 = arith.cmpi eq, %arg2, %c0_i32_10 : i32
    %12 = arith.extui %11 : i1 to i32
    %c0_i32_11 = arith.constant 0 : i32
    %13 = arith.cmpi ne, %12, %c0_i32_11 : i32
    scf.if %13 {
      %c0_12 = arith.constant 0 : index
      %c0_13 = arith.constant 0 : index
      %14 = vector.load %arg9[%c0_12, %c0_13] : memref<32x128xf32, #tpu.memory_space<vmem>>, vector<32x128xf32>
      %c0_14 = arith.constant 0 : index
      %c0_15 = arith.constant 0 : index
      %15 = vector.load %arg5[%c0_14, %c0_15] : memref<1x128xf32, #tpu.memory_space<vmem>>, vector<1x128xf32>
      %16 = vector.broadcast %15 : vector<1x128xf32> to vector<32x128xf32>
      %17 = arith.addf %14, %16 : vector<32x128xf32>
      %cst_16 = arith.constant 0.000000e+00 : f32
      %18 = vector.broadcast %cst_16 : f32 to vector<32x128xf32>
      %19 = arith.maximumf %17, %18 : vector<32x128xf32>
      %c0_17 = arith.constant 0 : index
      %c0_18 = arith.constant 0 : index
      %20 = vector.load %arg8[%c0_17, %c0_18] : memref<32x128xf32, #tpu.memory_space<vmem>>, vector<32x128xf32>
      tpu.vector_store %arg8[%c0_17, %c0_18], %19 {strides = array<i32>} : memref<32x128xf32, #tpu.memory_space<vmem>>, vector<32x128xf32>,
    } else {
    }
    return
  }
  func.func @transform_0(%arg0: i32, %arg1: i32, %arg2: i32) -> (i32, i32, i32) {
    %c0_i32 = arith.constant 0 : i32
    %c0_i32_0 = arith.constant 0 : i32
    return %arg2, %arg0, %c0_i32 : i32, i32, i32
  }
  func.func @transform_1(%arg0: i32, %arg1: i32, %arg2: i32) -> (i32, i32, i32) {
    %c0_i32 = arith.constant 0 : i32
    %c0_i32_0 = arith.constant 0 : i32
    return %arg2, %c0_i32, %arg1 : i32, i32, i32
  }
  func.func @transform_2(%arg0: i32, %arg1: i32, %arg2: i32) -> (i32, i32) {
    %c0_i32 = arith.constant 0 : i32
    %c0_i32_0 = arith.constant 0 : i32
    return %c0_i32, %arg1 : i32, i32
  }
  func.func @transform_3(%arg0: i32, %arg1: i32, %arg2: i32) -> (i32, i32) {
    %c0_i32 = arith.constant 0 : i32
    %c0_i32_0 = arith.constant 0 : i32
    return %c0_i32, %arg1 : i32, i32
  }
  func.func @transform_4(%arg0: i32, %arg1: i32, %arg2: i32) -> (i32, i32) {
    %c0_i32 = arith.constant 0 : i32
    %c0_i32_0 = arith.constant 0 : i32
    return %c0_i32, %arg1 : i32, i32
  }
  func.func @transform_5(%arg0: i32, %arg1: i32, %arg2: i32) -> (i32, i32) {
    %c0_i32 = arith.constant 0 : i32
    return %arg0, %arg1 : i32, i32
  }
}

</mosaic_0001>

<bundles_post_ra>
// kernel: encoder_block_forward.5
= control target key start
LH: loop header
LB: loop body
LE: loop exit
PB: predicated region body
PF: predicated region fallthrough
CT: control target
= control target key end

     0   :  { %s2636_s18 = smov 0   ;;  %s2638_s19 = smov 0   ;;  %s3813_s0 = inlined_call_operand.vmem [shape: bf16[1,512,128], index: 0, kind: input, shape index: {}]   ;;  %s3814_s1 = inlined_call_operand.vmem [shape: bf16[1,128,1152], index: 1, kind: input, shape index: {}]   ;;  %s3815_s2 = inlined_call_operand.vmem [shape: f32[1,1152], index: 2, kind: input, shape index: {}]   ;;  %s3816_s3 = inlined_call_operand.vmem [shape: f32[1,1152], index: 3, kind: input, shape index: {}]   ;;  %s3817_s4 = inlined_call_operand.vmem [shape: f32[1,1152], index: 4, kind: input, shape index: {}]   ;;  %s3818_s5 = inlined_call_operand.vmem [shape: f32[512,1152], index: 5, kind: output, shape index: {}]  }
   0x1   :  { %s2640_s20 = smov 0   ;;  %s2642_s21 = smov 0  }
   0x2   :  { %s2644_s22 = smov 0  }
   0x3 LB: > { %s30_s23 = sadd.s32 1, %s2599_s21  ;;  %s2280_s24 = sadd.s32 4294967295, %s2603_s22   ;;  %s2603_s22 = sphi %s2644_s22, %s15_s22   ;;  %s2599_s21 = sphi %s2642_s21, %s3892_s21   ;;  %s2595_s20 = sphi %s2640_s20, %s3891_s20   ;;  %s2591_s19 = sphi %s2638_s19, %s3890_s19   ;;  %s2587_s18 = sphi %s2636_s18, %s3889_s18  }
   0x4   : > { %p32_p0 = scmp.ge.s32.totalorder %s30_s23, 9  ;;  %p78_p1 = scmp.ne.s32.totalorder %s2591_s19, %s2587_s18 }
   0x5   : > { %p79_p2 = scmp.eq.s32.totalorder %s2603_s22, 0  ;;  %p188_p4 = scmp.eq.s32.totalorder %s2280_s24, 8 }
   0x6   : > { %s3894_s23 = smov (%p32_p0, %s30_s23), 0  ;;  %s71_s26 = sadd.s32 1, %s2591_s19 }
   0x7   : > { %p80_p3 = por %p79_p2, %p78_p1  ;;  %s67_s25 = ssub.s32 %s2599_s21, %s3894_s23 }
   0x8   : > { %p69_p5 = scmp.eq.s32.totalorder %s67_s25, 0  ;;  %p2671_p6 = por %p188_p4, %p78_p1 }
   0x9   : > { %p2284_p7 = scmp.ge.s32.totalorder %s2603_s22, 9 }
   0xa   : > { %s2676_s28 = scalar_select %p69_p5, %s2591_s19, %s71_s26  }
   0xb   : > { %223 = sbr.rel (%p2284_p7) target bundleno = 36 (0x24), region = 20 }
  0x10   : > { %226 = sbr.rel (!%p80_p3) target bundleno = 36 (0x24), region = 24  ;;  %s228_s29 = sand.u32 (%p80_p3), 1, %s2591_s19  }
  0x11   : > { %s2286_s30 = sshll.u32 (%p80_p3), %s2599_s21, 2  ;;  %s2285_s6 = sshll.u32 (%p80_p3), %s228_s29, 6 }
  0x12   : > { %s2684_s9 = scalar_lea.vmem (%p80_p3), %s3814_s1, %s2286_s30  ;;  %s230_s10 = scalar_lea.vmem (%p80_p3), [#allocation3], %s2285_s6 }
  0x13   : > { %v251_v0 = vld [vmem:[%s2684_s9] sm:$0xf] (%p80_p3)  ;;  %v253_v1 = vld [vmem:[%s2684_s9 + $0x24] sm:$0xf] (%p80_p3)  ;;  %v255_v2 = vld [vmem:[%s2684_s9 + $0x48] sm:$0xf] (%p80_p3) }
  0x14   : > { %252 = vst [vmem:[%s230_s10] sm:$0xf] (%p80_p3), %v251_v0  ;;  %v257_v3 = vld [vmem:[%s2684_s9 + $0x6c] sm:$0xf] (%p80_p3)  ;;  %v259_v4 = vld [vmem:[%s2684_s9 + $0x90] sm:$0xf] (%p80_p3) }
  0x15   : > { %254 = vst [vmem:[%s230_s10 + $0x4] sm:$0xf] %v253_v1  ;;  %v261_v5 = vld [vmem:[%s2684_s9 + $0xb4] sm:$0xf]  ;;  %v263_v6 = vld [vmem:[%s2684_s9 + $0xd8] sm:$0xf] }
  0x16   : > { %256 = vst [vmem:[%s230_s10 + $0x8] sm:$0xf] %v255_v2  ;;  %v265_v7 = vld [vmem:[%s2684_s9 + $0xfc] sm:$0xf]  ;;  %v267_v8 = vld [vmem:[%s2684_s9 + $0x120] sm:$0xf] }
  0x17   : > { %258 = vst [vmem:[%s230_s10 + $0xc] sm:$0xf] %v257_v3  ;;  %v269_v9 = vld [vmem:[%s2684_s9 + $0x144] sm:$0xf]  ;;  %v271_v10 = vld [vmem:[%s2684_s9 + $0x168] sm:$0xf] }
  0x18   : > { %260 = vst [vmem:[%s230_s10 + $0x10] sm:$0xf] %v259_v4  ;;  %v273_v11 = vld [vmem:[%s2684_s9 + $0x18c] sm:$0xf]  ;;  %v275_v12 = vld [vmem:[%s2684_s9 + $0x1b0] sm:$0xf] }
  0x19   : > { %262 = vst [vmem:[%s230_s10 + $0x14] sm:$0xf] %v261_v5  ;;  %v277_v13 = vld [vmem:[%s2684_s9 + $0x1d4] sm:$0xf]  ;;  %v279_v14 = vld [vmem:[%s2684_s9 + $0x1f8] sm:$0xf] }
  0x1a   : > { %264 = vst [vmem:[%s230_s10 + $0x18] sm:$0xf] %v263_v6  ;;  %v281_v15 = vld [vmem:[%s2684_s9 + $0x21c] sm:$0xf] }
  0x1b   : > { %266 = vst [vmem:[%s230_s10 + $0x1c] sm:$0xf] %v265_v7 }
  0x1c   : > { %268 = vst [vmem:[%s230_s10 + $0x20] sm:$0xf] %v267_v8 }
  0x1d   : > { %270 = vst [vmem:[%s230_s10 + $0x24] sm:$0xf] %v269_v9 }
  0x1e   : > { %272 = vst [vmem:[%s230_s10 + $0x28] sm:$0xf] %v271_v10 }
  0x1f   : > { %274 = vst [vmem:[%s230_s10 + $0x2c] sm:$0xf] %v273_v11 }
  0x20   : > { %276 = vst [vmem:[%s230_s10 + $0x30] sm:$0xf] %v275_v12 }
  0x21   : > { %278 = vst [vmem:[%s230_s10 + $0x34] sm:$0xf] %v277_v13 }
  0x22   : > { %280 = vst [vmem:[%s230_s10 + $0x38] sm:$0xf] %v279_v14 }
  0x23   : > { %282 = vst [vmem:[%s230_s10 + $0x3c] sm:$0xf] %v281_v15 }
  0x24 PF: > { %p2287_p8 = scmp.ge.s32.totalorder %s2603_s22, 1  ;;  %p355_p9 = scmp.lt.s32.totalorder %s2603_s22, 10 }
  0x26   : > { %p356_p10 = pnand %p2287_p8, %p355_p9 }
  0x28   : > { %359 = sbr.rel (%p356_p10) target bundleno = 603 (0x25b), region = 77 }
  0x2d   : > { %s362_s11 = sand.u32 1, %s2587_s18   ;;  %p416_p11 = scmp.lt.s32.totalorder %s2595_s20, 8  ;;  %v2454_v24 = vld [vmem:[%s3813_s0] sm:$0xff]  ;;  %v2455_v26 = vld [vmem:[%s3813_s0 + $0x8] sm:$0xff]  ;;  %v2456_v29 = vld [vmem:[%s3813_s0 + $0x10] sm:$0xff] }
  0x2e   : > { %s2288_s12 = sshll.u32 %s362_s11, 6  ;;  %v2462_v25 = vld [vmem:[%s3813_s0 + $0x40] sm:$0xff]  ;;  %v2463_v27 = vld [vmem:[%s3813_s0 + $0x48] sm:$0xff]  ;;  %v2464_v30 = vld [vmem:[%s3813_s0 + $0x50] sm:$0xff] }
  0x2f   : > { %s2707_s13 = scalar_lea.vmem [#allocation3], %s2288_s12  ;;  %v2470_v28 = vld [vmem:[%s3813_s0 + $0x80] sm:$0xff]  ;;  %v2471_v31 = vld [vmem:[%s3813_s0 + $0x88] sm:$0xff]  ;;  %v2457_v32 = vld [vmem:[%s3813_s0 + $0x18] sm:$0xff] }
  0x30   : > { %v2493_v16 = vld [vmem:[%s2707_s13 + $0x38] sm:$0xff]  ;;  %v2492_v17 = vld [vmem:[%s2707_s13 + $0x30] sm:$0xff]  ;;  %v2491_v18 = vld [vmem:[%s2707_s13 + $0x28] sm:$0xff]  ;;  %s2717_s14 = scalar_select %p416_p11, %s2595_s20, 8 }
  0x31   : > { %878 = vmatpush.bf16.msra.mxu0 %v2493_v16  ;;  %2494 = vmatpush.bf16.msra.mxu1 %v2493_v16  ;;  %v2490_v19 = vld [vmem:[%s2707_s13 + $0x20] sm:$0xff]  ;;  %v2489_v20 = vld [vmem:[%s2707_s13 + $0x18] sm:$0xff]  ;;  %v2488_v21 = vld [vmem:[%s2707_s13 + $0x10] sm:$0xff] }
  0x32   : > { %2495 = vmatpush.bf16.msra.mxu2 %v2493_v16  ;;  %2496 = vmatpush.bf16.msra.mxu3 %v2493_v16  ;;  %s418_s17 = scalar_lea.vmem %s3815_s2, %s2717_s14  ;;  %v2487_v22 = vld [vmem:[%s2707_s13 + $0x8] sm:$0xff]  ;;  %v2486_v23 = vld [vmem:[%s2707_s13] sm:$0xff]  ;;  %v2465_v33 = vld [vmem:[%s3813_s0 + $0x58] sm:$0xff]  ;;  %s424_s15 = scalar_lea.vmem %s3817_s4, %s2717_s14 }
  0x33   : > { %v2472_v34 = vld [vmem:[%s3813_s0 + $0x90] sm:$0xff]  ;;  %v2478_v35 = vld [vmem:[%s3813_s0 + $0xc0] sm:$0xff]  ;;  %v2473_v38 = vld [vmem:[%s3813_s0 + $0x98] sm:$0xff]  ;;  %s421_s24 = scalar_lea.vmem %s3816_s3, %s2717_s14  ;;  %s2289_s14 = sshll.u32 %s362_s11, 9 }
  0x34   : > { %v2458_v36 = vld [vmem:[%s3813_s0 + $0x20] sm:$0xff]  ;;  %v2479_v39 = vld [vmem:[%s3813_s0 + $0xc8] sm:$0xff]  ;;  %v2480_v43 = vld [vmem:[%s3813_s0 + $0xd0] sm:$0xff]  ;;  %s3395_s18 = scalar_lea.vmem [#allocation4], %s2289_s14  ;;  %s2451_s11 = sshll.u32 (%p2671_p6), %s2595_s20, 3 }
  0x35   : > { %879 = vmatpush.bf16.msra.mxu0 %v2492_v17  ;;  %2497 = vmatpush.bf16.msra.mxu1 %v2492_v17  ;;  %v2466_v37 = vld [vmem:[%s3813_s0 + $0x60] sm:$0xff]  ;;  %v2459_v40 = vld [vmem:[%s3813_s0 + $0x28] sm:$0xff]  ;;  %v2460_v44 = vld [vmem:[%s3813_s0 + $0x30] sm:$0xff]  ;;  %s3670_s6 = scalar_lea.vmem (%p2671_p6), %s3818_s5, %s2451_s11 }
  0x36   : > { %2498 = vmatpush.bf16.msra.mxu2 %v2492_v17  ;;  %2499 = vmatpush.bf16.msra.mxu3 %v2492_v17  ;;  %v2467_v41 = vld [vmem:[%s3813_s0 + $0x68] sm:$0xff]  ;;  %v2474_v42 = vld [vmem:[%s3813_s0 + $0xa0] sm:$0xff]  ;;  %v2468_v45 = vld [vmem:[%s3813_s0 + $0x70] sm:$0xff] }
  0x37   : > { %v2475_v46 = vld [vmem:[%s3813_s0 + $0xa8] sm:$0xff]  ;;  %v2481_v47 = vld [vmem:[%s3813_s0 + $0xd8] sm:$0xff]  ;;  %v2476_v50 = vld [vmem:[%s3813_s0 + $0xb0] sm:$0xff] }
  0x38   : > { %v2461_v48 = vld [vmem:[%s3813_s0 + $0x38] sm:$0xff]  ;;  %v2482_v51 = vld [vmem:[%s3813_s0 + $0xe0] sm:$0xff]  ;;  %v2483_v55 = vld [vmem:[%s3813_s0 + $0xe8] sm:$0xff] }
  0x39   : > { %880 = vmatpush.bf16.msra.mxu0 %v2491_v18  ;;  %2500 = vmatpush.bf16.msra.mxu1 %v2491_v18  ;;  %v2469_v49 = vld [vmem:[%s3813_s0 + $0x78] sm:$0xff]  ;;  %v2484_v60 = vld [vmem:[%s3813_s0 + $0xf0] sm:$0xff] }
  0x3a   : > { %2501 = vmatpush.bf16.msra.mxu2 %v2491_v18  ;;  %2502 = vmatpush.bf16.msra.mxu3 %v2491_v18  ;;  %v2477_v54 = vld [vmem:[%s3813_s0 + $0xb8] sm:$0xff] }
  0x3b   : > { %v2485_v1 = vld [vmem:[%s3813_s0 + $0xf8] sm:$0xff] }
  0x3d   : > { %881 = vmatpush.bf16.msra.mxu0 %v2490_v19  ;;  %2503 = vmatpush.bf16.msra.mxu1 %v2490_v19 }
  0x3e   : > { %2504 = vmatpush.bf16.msra.mxu2 %v2490_v19  ;;  %2505 = vmatpush.bf16.msra.mxu3 %v2490_v19 }
  0x41   : > { %882 = vmatpush.bf16.msra.mxu0 %v2489_v20  ;;  %2506 = vmatpush.bf16.msra.mxu1 %v2489_v20 }
  0x42   : > { %2507 = vmatpush.bf16.msra.mxu2 %v2489_v20  ;;  %2508 = vmatpush.bf16.msra.mxu3 %v2489_v20 }
  0x45   : > { %883 = vmatpush.bf16.msra.mxu0 %v2488_v21  ;;  %2509 = vmatpush.bf16.msra.mxu1 %v2488_v21 }
  0x46   : > { %2510 = vmatpush.bf16.msra.mxu2 %v2488_v21  ;;  %2511 = vmatpush.bf16.msra.mxu3 %v2488_v21  ;;  %v2862_v21 = vld [vmem:[%s418_s17] ss:$0 sm:$0xff] }
  0x49   : > { %884 = vmatpush.bf16.msra.mxu0 %v2487_v22  ;;  %2512 = vmatpush.bf16.msra.mxu1 %v2487_v22 }
  0x4a   : > { %2513 = vmatpush.bf16.msra.mxu2 %v2487_v22  ;;  %2514 = vmatpush.bf16.msra.mxu3 %v2487_v22 }
  0x4d   : > { %885 = vmatpush.bf16.msra.mxu0 %v2486_v23  ;;  %2515 = vmatpush.bf16.msra.mxu1 %v2486_v23 }
  0x4e   : > { %2516 = vmatpush.bf16.msra.mxu2 %v2486_v23  ;;  %2517 = vmatpush.bf16.msra.mxu3 %v2486_v23 }
  0x50   : > { %886 = vmatmul.bf16.vlgmr.msra.gmra.mxu0 %v2454_v24  ;;  %926 = vmatmul.bf16.vlgmr.msra.gmra.mxu1 %v2462_v25 }
  0x51   : > { %966 = vmatmul.bf16.vlgmr.msra.gmra.mxu2 %v2470_v28  ;;  %1006 = vmatmul.bf16.vlgmr.msra.gmra.mxu3 %v2478_v35 }
  0x60   : > { %891 = vmatmul.bf16.gmra.mxu0 %v2455_v26  ;;  %931 = vmatmul.bf16.gmra.mxu1 %v2463_v27 }
  0x61   : > { %971 = vmatmul.bf16.gmra.mxu2 %v2471_v31  ;;  %1011 = vmatmul.bf16.gmra.mxu3 %v2479_v39 }
  0x70   : > { %896 = vmatmul.bf16.gmra.mxu0 %v2456_v29  ;;  %936 = vmatmul.bf16.gmra.mxu1 %v2464_v30 }
  0x71   : > { %976 = vmatmul.bf16.gmra.mxu2 %v2472_v34  ;;  %1016 = vmatmul.bf16.gmra.mxu3 %v2480_v43 }
  0x80   : > { %901 = vmatmul.bf16.gmra.mxu0 %v2457_v32  ;;  %941 = vmatmul.bf16.gmra.mxu1 %v2465_v33 }
  0x81   : > { %981 = vmatmul.bf16.gmra.mxu2 %v2473_v38  ;;  %1021 = vmatmul.bf16.gmra.mxu3 %v2481_v47 }
  0x90   : > { %906 = vmatmul.bf16.gmra.mxu0 %v2458_v36  ;;  %946 = vmatmul.bf16.gmra.mxu1 %v2466_v37 }
  0x91   : > { %986 = vmatmul.bf16.gmra.mxu2 %v2474_v42  ;;  %1026 = vmatmul.bf16.gmra.mxu3 %v2482_v51 }
  0xa0   : > { %911 = vmatmul.bf16.gmra.mxu0 %v2459_v40  ;;  %951 = vmatmul.bf16.gmra.mxu1 %v2467_v41 }
  0xa1   : > { %991 = vmatmul.bf16.gmra.mxu2 %v2475_v46  ;;  %1031 = vmatmul.bf16.gmra.mxu3 %v2483_v55 }
  0xb0   : > { %916 = vmatmul.bf16.gmra.mxu0 %v2460_v44  ;;  %956 = vmatmul.bf16.gmra.mxu1 %v2468_v45 }
  0xb1   : > { %996 = vmatmul.bf16.gmra.mxu2 %v2476_v50  ;;  %1036 = vmatmul.bf16.gmra.mxu3 %v2484_v60 }
  0xc0   : > { %921 = vmatmul.bf16.gmra.mxu0 %v2461_v48  ;;  %961 = vmatmul.bf16.gmra.mxu1 %v2469_v49 }
  0xc1   : > { %1001 = vmatmul.bf16.gmra.mxu2 %v2477_v54  ;;  %1041 = vmatmul.bf16.gmra.mxu3 %v2485_v1 }
  0xcd   : > { %v887_v52 = vpop.f32.mrf.mxu0  ;;  %v2809_v53 = vpop.f32.mrf.mxu1 }
  0xce   : > { %v2872_v26 = vadd.f32 %v2862_v21, %v887_v52 }
  0xd0   : > { %v1387_v31 = vmul.f32 %v2872_v26, %v2872_v26 }
  0xd4   : > { %v2826_v63 = vpop.f32.mrf.mxu2  ;;  %v2843_v11 = vpop.f32.mrf.mxu3 }
  0xd5   : > { %v889_v56 = vpop.f32.mrf.mxu0  ;;  %v2817_v57 = vpop.f32.mrf.mxu1 }
  0xd6   : > { %v2867_v24 = vadd.f32 %v2862_v21, %v889_v56 }
  0xd8   : > { %v1388_v29 = vmul.f32 %v2867_v24, %v2867_v24  ;;  %v1310_v32 = vadd.f32 %v2867_v24, %v2872_v26 }
  0xda   : > { %v1451_v36 = vadd.f32 %v1388_v29, %v1387_v31 }
  0xdc   : > { %v2833_v4 = vpop.f32.mrf.mxu2  ;;  %v2849_v16 = vpop.f32.mrf.mxu3 }
  0xdd   : > { %v892_v58 = vpop.f32.mrf.mxu0  ;;  %v2819_v59 = vpop.f32.mrf.mxu1 }
  0xde   : > { %v2875_v27 = vadd.f32 %v2862_v21, %v892_v58 }
  0xe0   : > { %v1389_v33 = vmul.f32 %v2875_v27, %v2875_v27  ;;  %v1311_v37 = vadd.f32 %v1310_v32, %v2875_v27 }
  0xe2   : > { %v1452_v41 = vadd.f32 %v1451_v36, %v1389_v33 }
  0xe4   : > { %v2837_v7 = vpop.f32.mrf.mxu2  ;;  %v2855_v20 = vpop.f32.mrf.mxu3 }
  0xe5   : > { %v894_v61 = vpop.f32.mrf.mxu0  ;;  %v2824_v62 = vpop.f32.mrf.mxu1 }
  0xe6   : > { %v2886_v30 = vadd.f32 %v2862_v21, %v894_v61 }
  0xe8   : > { %v1390_v38 = vmul.f32 %v2886_v30, %v2886_v30  ;;  %v1312_v42 = vadd.f32 %v1311_v37, %v2886_v30 }
  0xea   : > { %v1453_v46 = vadd.f32 %v1452_v41, %v1390_v38 }
  0xec   : > { %v2841_v10 = vpop.f32.mrf.mxu2  ;;  %v2881_v28 = vpop.f32.mrf.mxu3 }
  0xed   : > { %v897_v0 = vpop.f32.mrf.mxu0  ;;  %v2831_v2 = vpop.f32.mrf.mxu1 }
  0xee   : > { %v2895_v34 = vadd.f32 %v2862_v21, %v897_v0 }
  0xf0   : > { %v1391_v43 = vmul.f32 %v2895_v34, %v2895_v34  ;;  %v1313_v47 = vadd.f32 %v1312_v42, %v2895_v34 }
  0xf2   : > { %v1454_v51 = vadd.f32 %v1453_v46, %v1391_v43 }
  0xf4   : > { %v2847_v14 = vpop.f32.mrf.mxu2  ;;  %v2919_v50 = vpop.f32.mrf.mxu3 }
  0xf5   : > { %v899_v3 = vpop.f32.mrf.mxu0  ;;  %v2835_v6 = vpop.f32.mrf.mxu1 }
  0xf6   : > { %v2901_v39 = vadd.f32 %v2862_v21, %v899_v3 }
  0xf8   : > { %v1392_v48 = vmul.f32 %v2901_v39, %v2901_v39  ;;  %v1314_v52 = vadd.f32 %v1313_v47, %v2901_v39 }
  0xfa   : > { %v1455_v58 = vadd.f32 %v1454_v51, %v1392_v48 }
  0xfc   : > { %v2853_v19 = vpop.f32.mrf.mxu2  ;;  %v2955_v42 = vpop.f32.mrf.mxu3 }
  0xfd   : > { %v902_v5 = vpop.f32.mrf.mxu0  ;;  %v2839_v9 = vpop.f32.mrf.mxu1 }
  0xfe   : > { %v2909_v44 = vadd.f32 %v2862_v21, %v902_v5 }
 0x100   : > { %v1393_v54 = vmul.f32 %v2909_v44, %v2909_v44  ;;  %v1315_v60 = vadd.f32 %v1314_v52, %v2909_v44 }
 0x102   : > { %v1456_v1 = vadd.f32 %v1455_v58, %v1393_v54 }
 0x104   : > { %v2869_v25 = vpop.f32.mrf.mxu2 }
 0x105   : > { %v904_v8 = vpop.f32.mrf.mxu0  ;;  %v2845_v13 = vpop.f32.mrf.mxu1 }
 0x106   : > { %v2917_v49 = vadd.f32 %v2862_v21, %v904_v8 }
 0x108   : > { %v1394_v61 = vmul.f32 %v2917_v49, %v2917_v49  ;;  %v1316_v3 = vadd.f32 %v1315_v60, %v2917_v49 }
 0x10a   : > { %v1457_v29 = vadd.f32 %v1456_v1, %v1394_v61 }
 0x10c   : > { %v2911_v45 = vpop.f32.mrf.mxu2 }
 0x10d   : > { %v907_v12 = vpop.f32.mrf.mxu0  ;;  %v2851_v17 = vpop.f32.mrf.mxu1 }
 0x10e   : > { %v2925_v55 = vadd.f32 %v2862_v21, %v907_v12 }
 0x110   : > { %v1395_v5 = vmul.f32 %v2925_v55, %v2925_v55  ;;  %v1317_v31 = vadd.f32 %v1316_v3, %v2925_v55 }
 0x112   : > { %v1458_v36 = vadd.f32 %v1457_v29, %v1395_v5 }
 0x114   : > { %v2947_v33 = vpop.f32.mrf.mxu2 }
 0x115   : > { %v909_v15 = vpop.f32.mrf.mxu0  ;;  %v2864_v23 = vpop.f32.mrf.mxu1 }
 0x116   : > { %v2931_v0 = vadd.f32 %v2862_v21, %v909_v15 }
 0x118   : > { %v1396_v32 = vmul.f32 %v2931_v0, %v2931_v0  ;;  %v1318_v37 = vadd.f32 %v1317_v31, %v2931_v0  ;;  %v2979_v31 = vadd.f32 %v2862_v21, %v2809_v53 }
 0x11a   : > { %v1459_v43 = vadd.f32 %v1458_v36, %v1396_v32  ;;  %v1403_v53 = vmul.f32 %v2979_v31, %v2979_v31 }
 0x11c   : > { %v2975_v29 = vpop.f32.mrf.mxu2 }
 0x11d   : > { %v912_v18 = vpop.f32.mrf.mxu0  ;;  %v2903_v40 = vpop.f32.mrf.mxu1 }
 0x11e   : > { %v2937_v8 = vadd.f32 %v2862_v21, %v912_v18 }
 0x120   : > { %v1397_v18 = vmul.f32 %v2937_v8, %v2937_v8  ;;  %v1319_v46 = vadd.f32 %v1318_v37, %v2937_v8 }
 0x122   : > { %v1460_v48 = vadd.f32 %v1459_v43, %v1397_v18  ;;  %v2985_v18 = vpop.f32.mrf.mxu3 }
 0x125   : > { %v914_v22 = vpop.f32.mrf.mxu0  ;;  %v2939_v12 = vpop.f32.mrf.mxu1 }
 0x126   : > { %v2945_v15 = vadd.f32 %v2862_v21, %v914_v22 }
 0x128   : > { %v1398_v22 = vmul.f32 %v2945_v15, %v2945_v15  ;;  %v1320_v51 = vadd.f32 %v1319_v46, %v2945_v15 }
 0x12a   : > { %v1461_v54 = vadd.f32 %v1460_v48, %v1398_v22  ;;  %v2998_v48 = vadd.f32 %v2862_v21, %v2819_v59  ;;  %v3012_v59 = vadd.f32 %v2862_v21, %v2831_v2 }
 0x12c   : > { %v1407_v2 = vmul.f32 %v3012_v59, %v3012_v59 }
 0x12d   : > { %v917_v35 = vpop.f32.mrf.mxu0  ;;  %v957_v61 = vpop.f32.mrf.mxu1 }
 0x12e   : > { %v2953_v38 = vadd.f32 %v2862_v21, %v917_v35 }
 0x130   : > { %v1399_v52 = vmul.f32 %v2953_v38, %v2953_v38  ;;  %v1321_v58 = vadd.f32 %v1320_v51, %v2953_v38 }
 0x132   : > { %v1462_v1 = vadd.f32 %v1461_v54, %v1399_v52  ;;  %v3005_v54 = vadd.f32 %v2862_v21, %v2824_v62 }
 0x134   : > { %v1406_v62 = vmul.f32 %v3005_v54, %v3005_v54 }
 0x135   : > { %v919_v56 = vpop.f32.mrf.mxu0 }
 0x136   : > { %v2961_v47 = vadd.f32 %v2862_v21, %v919_v56 }
 0x138   : > { %v1400_v60 = vmul.f32 %v2961_v47, %v2961_v47  ;;  %v1322_v56 = vadd.f32 %v1321_v58, %v2961_v47 }
 0x13a   : > { %v1463_v32 = vadd.f32 %v1462_v1, %v1400_v60  ;;  %v959_v1 = vpop.f32.mrf.mxu1 }
 0x13d   : > { %v922_v41 = vpop.f32.mrf.mxu0 }
 0x13e   : > { %v2967_v35 = vadd.f32 %v2862_v21, %v922_v41  ;;  %v2989_v41 = vadd.f32 %v2862_v21, %v2817_v57 }
 0x140   : > { %v1401_v3 = vmul.f32 %v2967_v35, %v2967_v35  ;;  %v1323_v36 = vadd.f32 %v1322_v56, %v2967_v35  ;;  %v1404_v57 = vmul.f32 %v2989_v41, %v2989_v41  ;;  %v1405_v56 = vmul.f32 %v2998_v48, %v2998_v48 }
 0x142   : > { %v1464_v43 = vadd.f32 %v1463_v32, %v1401_v3  ;;  %v3015_v32 = vpop.f32.mrf.mxu2 }
 0x145   : > { %v924_v5 = vpop.f32.mrf.mxu0 }
 0x146   : > { %v2983_v37 = vadd.f32 %v2862_v21, %v924_v5 }
 0x148   : > { %v1324_v46 = vadd.f32 %v1323_v36, %v2983_v37  ;;  %v1402_v22 = vmul.f32 %v2983_v37, %v2983_v37  ;;  %v3021_v36 = vadd.f32 %v2862_v21, %v2835_v6  ;;  %v3037_v6 = vadd.f32 %v2862_v21, %v2845_v13 }
 0x149   : > { %v3051_v13 = vadd.f32 %v2862_v21, %v2864_v23 }
 0x14a   : > { %v1325_v51 = vadd.f32 %v1324_v46, %v2979_v31  ;;  %v1465_v52 = vadd.f32 %v1464_v43, %v1402_v22  ;;  %v3024_v22 = vpop.f32.mrf.mxu3  ;;  %3844 = vst [vmem:[#allocation6_spill] sm:$0xff] %v3037_v6 }
 0x14b   : > { %3846 = vst [vmem:[#allocation8_spill] sm:$0xff] %v3051_v13  ;;  %v1412_v23 = vmul.f32 %v3051_v13, %v3051_v13 }
 0x14c   : > { %v1326_v58 = vadd.f32 %v1325_v51, %v2989_v41  ;;  %v1466_v60 = vadd.f32 %v1465_v52, %v1403_v53  ;;  %v3030_v53 = vadd.f32 %v2862_v21, %v2839_v9  ;;  %v3044_v9 = vadd.f32 %v2862_v21, %v2851_v17 }
 0x14e   : > { %v1327_v3 = vadd.f32 %v1326_v58, %v2998_v48  ;;  %v1467_v5 = vadd.f32 %v1466_v60, %v1404_v57  ;;  %3843 = vst [vmem:[#allocation5_spill] sm:$0xff] %v3030_v53  ;;  %v1408_v57 = vmul.f32 %v3021_v36, %v3021_v36  ;;  %v1411_v17 = vmul.f32 %v3044_v9, %v3044_v9 }
 0x14f   : > { %3845 = vst [vmem:[#allocation7_spill] sm:$0xff] %v3044_v9 }
 0x150   : > { %v1328_v43 = vadd.f32 %v1327_v3, %v3005_v54  ;;  %v1468_v46 = vadd.f32 %v1467_v5, %v1405_v56  ;;  %v1409_v56 = vmul.f32 %v3030_v53, %v3030_v53 }
 0x152   : > { %v1329_v51 = vadd.f32 %v1328_v43, %v3012_v59  ;;  %v1469_v52 = vadd.f32 %v1468_v46, %v1406_v62  ;;  %v962_v62 = vpop.f32.mrf.mxu1  ;;  %v1410_v43 = vmul.f32 %v3037_v6, %v3037_v6 }
 0x154   : > { %v1330_v58 = vadd.f32 %v1329_v51, %v3021_v36  ;;  %v1470_v60 = vadd.f32 %v1469_v52, %v1407_v2  ;;  %v3054_v51 = vpop.f32.mrf.mxu2  ;;  %v3060_v52 = vadd.f32 %v2862_v21, %v2903_v40  ;;  %v3075_v40 = vadd.f32 %v2862_v21, %v957_v61 }
 0x156   : > { %v1471_v3 = vadd.f32 %v1470_v60, %v1408_v57  ;;  %v1331_v5 = vadd.f32 %v1330_v58, %v3030_v53  ;;  %v3063_v60 = vpop.f32.mrf.mxu3 }
 0x158   : > { %v1332_v46 = vadd.f32 %v1331_v5, %v3037_v6  ;;  %v1472_v2 = vadd.f32 %v1471_v3, %v1409_v56  ;;  %v3069_v56 = vadd.f32 %v2862_v21, %v2939_v12  ;;  %v1413_v6 = vmul.f32 %v3060_v52, %v3060_v52 }
 0x159   : > { %v3082_v12 = vadd.f32 %v2862_v21, %v959_v1 }
 0x15a   : > { %v1333_v57 = vadd.f32 %v1332_v46, %v3044_v9  ;;  %v1473_v58 = vadd.f32 %v1472_v2, %v1410_v43  ;;  %v1414_v2 = vmul.f32 %v3069_v56, %v3069_v56 }
 0x15c   : > { %v1334_v3 = vadd.f32 %v1333_v57, %v3051_v13  ;;  %v1474_v5 = vadd.f32 %v1473_v58, %v1411_v17  ;;  %v964_v57 = vpop.f32.mrf.mxu1  ;;  %v1415_v58 = vmul.f32 %v3075_v40, %v3075_v40  ;;  %v3088_v13 = vadd.f32 %v2862_v21, %v962_v62 }
 0x15d   : > { %v3094_v1 = vadd.f32 %v2862_v21, %v964_v57 }
 0x15e   : > { %v1335_v43 = vadd.f32 %v1334_v3, %v3060_v52  ;;  %v1475_v46 = vadd.f32 %v1474_v5, %v1412_v23  ;;  %v997_v23 = vpop.f32.mrf.mxu2 }
 0x15f   : > { %3847 = vst [vmem:[#allocation9_spill] sm:$0xff] %v3094_v1 }
 0x160   : > { %v1336_v9 = vadd.f32 %v1335_v43, %v3069_v56  ;;  %v1476_v53 = vadd.f32 %v1475_v46, %v1413_v6  ;;  %v1416_v6 = vmul.f32 %v3082_v12, %v3082_v12  ;;  %v3096_v43 = vpop.f32.mrf.mxu3  ;;  %v1417_v46 = vmul.f32 %v3088_v13, %v3088_v13 }
 0x162   : > { %v1337_v17 = vadd.f32 %v1336_v9, %v3075_v40  ;;  %v1477_v61 = vadd.f32 %v1476_v53, %v1414_v2  ;;  %v3100_v9 = vadd.f32 %v2862_v21, %v2826_v63  ;;  %v3107_v2 = vadd.f32 %v2862_v21, %v2833_v4 }
 0x164   : > { %v1478_v3 = vadd.f32 %v1477_v61, %v1415_v58  ;;  %v1338_v5 = vadd.f32 %v1337_v17, %v3082_v12  ;;  %3848 = vst [vmem:[#allocation10_spill] sm:$0xff] %v3107_v2  ;;  %v1418_v58 = vmul.f32 %v3094_v1, %v3094_v1  ;;  %v1419_v63 = vmul.f32 %v3100_v9, %v3100_v9 }
 0x165   : > { %v3116_v61 = vadd.f32 %v2862_v21, %v2837_v7  ;;  %v1420_v4 = vmul.f32 %v3107_v2, %v3107_v2  ;;  %v3130_v7 = vadd.f32 %v2862_v21, %v2847_v14  ;;  %v3146_v14 = vadd.f32 %v2862_v21, %v2869_v25 }
 0x166   : > { %v1479_v53 = vadd.f32 %v1478_v3, %v1416_v6  ;;  %v1339_v62 = vadd.f32 %v1338_v5, %v3088_v13  ;;  %v3123_v6 = vadd.f32 %v2862_v21, %v2841_v10  ;;  %v3160_v25 = vadd.f32 %v2862_v21, %v2947_v33 }
 0x167   : > { %3849 = vst [vmem:[#allocation11_spill] sm:$0xff] %v3116_v61 }
 0x168   : > { %v1480_v17 = vadd.f32 %v1479_v53, %v1417_v46  ;;  %v1340_v57 = vadd.f32 %v1339_v62, %v3094_v1  ;;  %v999_v46 = vpop.f32.mrf.mxu2  ;;  %v1421_v1 = vmul.f32 %v3116_v61, %v3116_v61  ;;  %v1422_v10 = vmul.f32 %v3123_v6, %v3123_v6  ;;  %3851 = vst [vmem:[#allocation13_spill] sm:$0xff] %v3146_v14 }
 0x169   : > { %v1427_v33 = vmul.f32 %v3160_v25, %v3160_v25 }
 0x16a   : > { %v1341_v3 = vadd.f32 %v1340_v57, %v3100_v9  ;;  %v1481_v5 = vadd.f32 %v1480_v17, %v1418_v58  ;;  %v3133_v58 = vpop.f32.mrf.mxu3 }
 0x16c   : > { %v1342_v53 = vadd.f32 %v1341_v3, %v3107_v2  ;;  %v1482_v62 = vadd.f32 %v1481_v5, %v1419_v63  ;;  %v3139_v3 = vadd.f32 %v2862_v21, %v2853_v19  ;;  %v1423_v2 = vmul.f32 %v3130_v7, %v3130_v7 }
 0x16d   : > { %v3153_v19 = vadd.f32 %v2862_v21, %v2911_v45  ;;  %v3167_v45 = vadd.f32 %v2862_v21, %v2975_v29  ;;  %v3183_v29 = vadd.f32 %v2862_v21, %v3054_v51  ;;  %v3196_v51 = vadd.f32 %v2862_v21, %v999_v46 }
 0x16e   : > { %v1343_v17 = vadd.f32 %v1342_v53, %v3116_v61  ;;  %v1483_v57 = vadd.f32 %v1482_v62, %v1420_v4  ;;  %3850 = vst [vmem:[#allocation12_spill] sm:$0xff] %v3139_v3  ;;  %v1424_v62 = vmul.f32 %v3139_v3, %v3139_v3 }
 0x16f   : > { %3852 = vst [vmem:[#allocation14_spill] sm:$0xff] %v3153_v19 }
 0x170   : > { %v1344_v63 = vadd.f32 %v1343_v17, %v3123_v6  ;;  %v1484_v5 = vadd.f32 %v1483_v57, %v1421_v1  ;;  %v1425_v17 = vmul.f32 %v3146_v14, %v3146_v14 }
 0x172   : > { %v1345_v4 = vadd.f32 %v1344_v63, %v3130_v7  ;;  %v1485_v53 = vadd.f32 %v1484_v5, %v1422_v10  ;;  %v1002_v63 = vpop.f32.mrf.mxu2  ;;  %v1426_v5 = vmul.f32 %v3153_v19, %v3153_v19 }
 0x174   : > { %v1486_v61 = vadd.f32 %v1485_v53, %v1423_v2  ;;  %v1346_v1 = vadd.f32 %v1345_v4, %v3139_v3  ;;  %v3170_v53 = vpop.f32.mrf.mxu3  ;;  %v3190_v3 = vadd.f32 %v2862_v21, %v997_v23 }
 0x176   : > { %v1347_v57 = vadd.f32 %v1346_v1, %v3146_v14  ;;  %v1487_v10 = vadd.f32 %v1486_v61, %v1424_v62  ;;  %v3176_v1 = vadd.f32 %v2862_v21, %v3015_v32  ;;  %v1428_v14 = vmul.f32 %v3167_v45, %v3167_v45 }
 0x178   : > { %v1348_v2 = vadd.f32 %v1347_v57, %v3153_v19  ;;  %v1488_v4 = vadd.f32 %v1487_v10, %v1425_v17  ;;  %v1429_v10 = vmul.f32 %v3176_v1, %v3176_v1 }
 0x17a   : > { %v1349_v61 = vadd.f32 %v1348_v2, %v3160_v25  ;;  %v1489_v62 = vadd.f32 %v1488_v4, %v1426_v5  ;;  %v1430_v2 = vmul.f32 %v3183_v29, %v3183_v29 }
 0x17c   : > { %v1350_v17 = vadd.f32 %v1349_v61, %v3167_v45  ;;  %v1490_v57 = vadd.f32 %v1489_v62, %v1427_v33  ;;  %v1004_v61 = vpop.f32.mrf.mxu2  ;;  %v1037_v23 = vpop.f32.mrf.mxu3 }
 0x17d   : > { %v3208_v46 = vadd.f32 %v2862_v21, %v1004_v61 }
 0x17e   : > { %v1351_v19 = vadd.f32 %v1350_v17, %v3176_v1  ;;  %v1491_v32 = vadd.f32 %v1490_v57, %v1428_v14  ;;  %v1431_v17 = vmul.f32 %v3190_v3, %v3190_v3  ;;  %v3202_v14 = vadd.f32 %v2862_v21, %v1002_v63 }
 0x17f   : > { %3853 = vst [vmem:[#allocation15_spill] sm:$0xff] %v3208_v46  ;;  %v1434_v61 = vmul.f32 %v3208_v46, %v3208_v46 }
 0x180   : > { %v1352_v5 = vadd.f32 %v1351_v19, %v3183_v29  ;;  %v1492_v4 = vadd.f32 %v1491_v32, %v1429_v10  ;;  %v1432_v10 = vmul.f32 %v3196_v51, %v3196_v51  ;;  %v3212_v32 = vadd.f32 %v2862_v21, %v2843_v11 }
 0x181   : > { %v1433_v63 = vmul.f32 %v3202_v14, %v3202_v14 }
 0x182   : > { %v1493_v33 = vadd.f32 %v1492_v4, %v1430_v2  ;;  %v1353_v62 = vadd.f32 %v1352_v5, %v3190_v3  ;;  %v3219_v4 = vadd.f32 %v2862_v21, %v2849_v16  ;;  %v1435_v11 = vmul.f32 %v3212_v32, %v3212_v32 }
 0x184   : > { %v1494_v57 = vadd.f32 %v1493_v33, %v1431_v17  ;;  %v1354_v19 = vadd.f32 %v1353_v62, %v3196_v51  ;;  %v3228_v17 = vadd.f32 %v2862_v21, %v2855_v20  ;;  %v1436_v16 = vmul.f32 %v3219_v4, %v3219_v4 }
 0x185   : > { %v3242_v20 = vadd.f32 %v2862_v21, %v2919_v50  ;;  %v3256_v50 = vadd.f32 %v2862_v21, %v2985_v18 }
 0x186   : > { %v1495_v5 = vadd.f32 %v1494_v57, %v1432_v10  ;;  %v1355_v2 = vadd.f32 %v1354_v19, %v3202_v14  ;;  %3854 = vst [vmem:[#allocation16_spill] sm:$0xff] %v3228_v17  ;;  %v3235_v10 = vadd.f32 %v2862_v21, %v2881_v28  ;;  %v3249_v28 = vadd.f32 %v2862_v21, %v2955_v42 }
 0x187   : > { %3856 = vst [vmem:[#allocation18_spill] sm:$0xff] %v3242_v20  ;;  %v3263_v42 = vadd.f32 %v2862_v21, %v3024_v22  ;;  %v1441_v18 = vmul.f32 %v3256_v50, %v3256_v50  ;;  %v3277_v22 = vadd.f32 %v2862_v21, %v3096_v43  ;;  %v3291_v43 = vadd.f32 %v2862_v21, %v3170_v53 }
 0x188   : > { %v1496_v33 = vadd.f32 %v1495_v5, %v1433_v63  ;;  %v1356_v62 = vadd.f32 %v1355_v2, %v3208_v46  ;;  %3855 = vst [vmem:[#allocation17_spill] sm:$0xff] %v3235_v10  ;;  %v1039_v63 = vpop.f32.mrf.mxu3  ;;  %v1437_v46 = vmul.f32 %v3228_v17, %v3228_v17 }
 0x189   : > { %3857 = vst [vmem:[#allocation19_spill] sm:$0xff] %v3249_v28 }
 0x18a   : > { %v1357_v57 = vadd.f32 %v1356_v62, %v3212_v32  ;;  %v1497_v19 = vadd.f32 %v1496_v33, %v1434_v61  ;;  %v1438_v61 = vmul.f32 %v3235_v10, %v3235_v10  ;;  %3858 = vst [vmem:[#allocation20_spill] sm:$0xff] %v3256_v50 }
 0x18b   : > { %3859 = vst [vmem:[#allocation21_spill] sm:$0xff] %v3263_v42 }
 0x18c   : > { %v1358_v5 = vadd.f32 %v1357_v57, %v3219_v4  ;;  %v1498_v2 = vadd.f32 %v1497_v19, %v1435_v11  ;;  %v1439_v19 = vmul.f32 %v3242_v20, %v3242_v20  ;;  %3861 = vst [vmem:[#allocation23_spill] sm:$0xff] %v3277_v22 }
 0x18d   : > { %3863 = vst [vmem:[#allocation25_spill] sm:$0xff] %v3291_v43 }
 0x18e   : > { %v1359_v33 = vadd.f32 %v1358_v5, %v3228_v17  ;;  %v1499_v62 = vadd.f32 %v1498_v2, %v1436_v16  ;;  %v1440_v2 = vmul.f32 %v3249_v28, %v3249_v28 }
 0x190   : > { %v1360_v11 = vadd.f32 %v1359_v33, %v3235_v10  ;;  %v1500_v57 = vadd.f32 %v1499_v62, %v1437_v46  ;;  %v3268_v33 = vadd.f32 %v2862_v21, %v3063_v60 }
 0x192   : > { %v1361_v5 = vadd.f32 %v1360_v11, %v3242_v20  ;;  %v1501_v16 = vadd.f32 %v1500_v57, %v1438_v61  ;;  %3860 = vst [vmem:[#allocation22_spill] sm:$0xff] %v3268_v33  ;;  %v1042_v11 = vpop.f32.mrf.mxu3  ;;  %v1442_v57 = vmul.f32 %v3263_v42, %v3263_v42  ;;  %v1443_v60 = vmul.f32 %v3268_v33, %v3268_v33 }
 0x194   : > { %v1502_v17 = vadd.f32 %v1501_v16, %v1439_v19  ;;  %v1362_v46 = vadd.f32 %v1361_v5, %v3249_v28  ;;  %v3284_v16 = vadd.f32 %v2862_v21, %v3133_v58 }
 0x196   : > { %v1363_v62 = vadd.f32 %v1362_v46, %v3256_v50  ;;  %v1503_v61 = vadd.f32 %v1502_v17, %v1440_v2  ;;  %3862 = vst [vmem:[#allocation24_spill] sm:$0xff] %v3284_v16  ;;  %v2605_v46 = vmov 512.0   ;;  %v1444_v50 = vmul.f32 %v3277_v22, %v3277_v22 }
 0x197   : > { %2561 = vrcp.f32 %v2605_v46  ;;  %v1446_v46 = vmul.f32 %v3291_v43, %v3291_v43 }
 0x198   : > { %v1364_v19 = vadd.f32 %v1363_v62, %v3263_v42  ;;  %v1504_v5 = vadd.f32 %v1503_v61, %v1441_v18  ;;  %v1445_v61 = vmul.f32 %v3284_v16, %v3284_v16 }
 0x19a   : > { %v1365_v17 = vadd.f32 %v1364_v19, %v3268_v33  ;;  %v1505_v2 = vadd.f32 %v1504_v5, %v1442_v57  ;;  %v3298_v57 = vadd.f32 %v2862_v21, %v1037_v23  ;;  %v3304_v33 = vadd.f32 %v2862_v21, %v1039_v63 }
 0x19b   : > { %v3310_v23 = vadd.f32 %v2862_v21, %v1042_v11 }
 0x19c   : > { %v1366_v18 = vadd.f32 %v1365_v17, %v3277_v22  ;;  %v1506_v62 = vadd.f32 %v1505_v2, %v1443_v60  ;;  %3864 = vst [vmem:[#allocation26_spill] sm:$0xff] %v3298_v57  ;;  %v1044_v60 = vpop.f32.mrf.mxu3 }
 0x19d   : > { %v2562_v19 = vpop.eup %2561  ;;  %3865 = vst [vmem:[#allocation27_spill] sm:$0xff] %v3304_v33  ;;  %v1309_v63 = vadd.f32 %v2862_v21, %v1044_v60 }
 0x19e   : > { %v1367_v58 = vadd.f32 %v1366_v18, %v3284_v16  ;;  %v1507_v42 = vadd.f32 %v1506_v62, %v1444_v50  ;;  %v1447_v50 = vmul.f32 %v3298_v57, %v3298_v57  ;;  %v1380_v18 = vmul.f32 512.0, %v2562_v19 }
 0x19f   : > { %v1450_v11 = vmul.f32 %v1309_v63, %v1309_v63  ;;  %vm1384_vm0 = vweird.f32 %v2562_v19 }
 0x1a0   : > { %v1368_v5 = vadd.f32 %v1367_v58, %v3291_v43  ;;  %v1508_v53 = vadd.f32 %v1507_v42, %v1445_v61  ;;  %v1448_v42 = vmul.f32 %v3304_v33, %v3304_v33 }
 0x1a2   : > { %v1509_v17 = vadd.f32 %v1508_v53, %v1446_v46  ;;  %v1369_v2 = vadd.f32 %v1368_v5, %v3298_v57  ;;  %v1449_v5 = vmul.f32 %v3310_v23, %v3310_v23  ;;  %v1381_v53 = vsub.f32 1.0, %v1380_v18 }
 0x1a4   : > { %v1510_v62 = vadd.f32 %v1509_v17, %v1447_v50  ;;  %v1370_v58 = vadd.f32 %v1369_v2, %v3304_v33  ;;  %v1382_v17 = vmul.f32 %v2562_v19, %v1381_v53 }
 0x1a6   : > { %v1511_v61 = vadd.f32 %v1510_v62, %v1448_v42  ;;  %v1371_v46 = vadd.f32 %v1370_v58, %v3310_v23  ;;  %v1383_v33 = vadd.f32 %v2562_v19, %v1382_v17 }
 0x1a8   : > { %v1512_v57 = vadd.f32 %v1511_v61, %v1449_v5  ;;  %v1372_v43 = vadd.f32 %v1371_v46, %v1309_v63  ;;  %v1385_v58 = vsel %vm1384_vm0, %v2562_v19, %v1383_v33 }
 0x1aa   : > { %v1373_v16 = vrot.slane %v1372_v43, 4  ;;  %v1513_v22 = vadd.f32 %v1512_v57, %v1450_v11 }
 0x1ac   : > { %v1374_v50 = vadd.f32 %v1373_v16, %v1372_v43  ;;  %v1514_v2 = vrot.slane %v1513_v22, 4 }
 0x1ae   : > { %v1375_v28 = vrot.slane %v1374_v50, 2  ;;  %v1515_v20 = vadd.f32 %v1514_v2, %v1513_v22 }
 0x1b0   : > { %v1376_v10 = vadd.f32 %v1375_v28, %v1374_v50  ;;  %v1516_v21 = vrot.slane %v1515_v20, 2 }
 0x1b2   : > { %v1377_v60 = vrot.slane %v1376_v10, 1  ;;  %v1517_v62 = vadd.f32 %v1516_v21, %v1515_v20 }
 0x1b4   : > { %v1378_v42 = vadd.f32 %v1377_v60, %v1376_v10  ;;  %v1518_v18 = vrot.slane %v1517_v62, 1  ;;  %v1523_v10 = vld [vmem:[%s421_s24] sm:$0x1] }
 0x1b6   : > { %v3319_v61 = vmul.f32 %v1385_v58, %v1378_v42  ;;  %v1519_v46 = vadd.f32 %v1518_v18, %v1517_v62 }
 0x1b8   : > { %v1520_v5 = vmul.f32 %v1519_v46, %v1385_v58  ;;  %v1521_v16 = vmul.f32 %v3319_v61, %v3319_v61  ;;  %v1599_v2 = vsub.f32 %v1309_v63, %v3319_v61  ;;  %v1536_v60 = vsub.f32 %v2872_v26, %v3319_v61 }
 0x1b9   : > { %v1537_v62 = vsub.f32 %v2867_v24, %v3319_v61  ;;  %v1538_v58 = vsub.f32 %v2875_v27, %v3319_v61  ;;  %v1539_v42 = vsub.f32 %v2886_v30, %v3319_v61  ;;  %v1540_v18 = vsub.f32 %v2895_v34, %v3319_v61  ;;  %v3349_v24 = vld [vmem:[%s424_s15] ss:$0 sm:$0xff] }
 0x1ba   : > { %v1522_v43 = vsub.f32 %v1520_v5, %v1521_v16  ;;  %v1541_v26 = vsub.f32 %v2901_v39, %v3319_v61  ;;  %v1542_v30 = vsub.f32 %v2909_v44, %v3319_v61  ;;  %v1543_v16 = vsub.f32 %v2917_v49, %v3319_v61 }
 0x1bb   : > { %v1546_v49 = vsub.f32 %v2937_v8, %v3319_v61 }
 0x1bc   : > { %v1524_v57 = vadd.f32 1e-05, %v1522_v43  ;;  %v1544_v43 = vsub.f32 %v2925_v55, %v3319_v61 }
 0x1be   : > { %2563 = vrsqrt.f32 %v1524_v57  ;;  %vm1531_vm2 = vweird.f32 %v1524_v57 }
 0x1c4   : > { %v2564_v22 = vpop.eup %2563 }
 0x1c5   : > { %v1526_v28 = vmul.f32 %v2564_v22, %v1524_v57  ;;  %vm1532_vm1 = vweird.f32 %v2564_v22 }
 0x1c6   : > { %vm1533_vm3 = vmor %vm1531_vm2, %vm1532_vm1 }
 0x1c7   : > { %v1527_v53 = vmul.f32 %v2564_v22, %v1526_v28 }
 0x1c9   : > { %v1528_v11 = vmul.f32 0.5, %v1527_v53  ;;  %v1545_v53 = vsub.f32 %v2931_v0, %v3319_v61 }
 0x1cb   : > { %v1529_v17 = vsub.f32 1.5, %v1528_v11 }
 0x1cd   : > { %v1530_v20 = vmul.f32 %v2564_v22, %v1529_v17  ;;  %v1547_v17 = vsub.f32 %v2945_v15, %v3319_v61 }
 0x1cf   : > { %v1534_v33 = vsel %vm1533_vm3, %v2564_v22, %v1530_v20  ;;  %v1548_v20 = vsub.f32 %v2953_v38, %v3319_v61  ;;  %v1549_v38 = vsub.f32 %v2961_v47, %v3319_v61  ;;  %v1551_v47 = vsub.f32 %v2983_v37, %v3319_v61 }
 0x1d0   : > { %v1535_v19 = vmul.f32 %v1534_v33, %v1523_v10  ;;  %v1553_v37 = vsub.f32 %v2989_v41, %v3319_v61  ;;  %v1555_v41 = vsub.f32 %v3005_v54, %v3319_v61  ;;  %v1557_v54 = vsub.f32 %v3021_v36, %v3319_v61 }
 0x1d2   : > { %v3327_v50 = vperm.slane %v1535_v19, 0 }
 0x1d4   : > { %v1666_v21 = vmul.f32 %v3327_v50, %v1599_v2  ;;  %v1603_v63 = vmul.f32 %v3327_v50, %v1536_v60  ;;  %v1604_v46 = vmul.f32 %v3327_v50, %v1537_v62  ;;  %v1605_v5 = vmul.f32 %v3327_v50, %v1538_v58 }
 0x1d5   : > { %v1606_v27 = vmul.f32 %v3327_v50, %v1539_v42  ;;  %v1607_v34 = vmul.f32 %v3327_v50, %v1540_v18  ;;  %v1608_v57 = vmul.f32 %v3327_v50, %v1541_v26  ;;  %v1609_v22 = vmul.f32 %v3327_v50, %v1542_v30 }
 0x1d6   : > { %v1671_v39 = vadd.f32 %v3349_v24, %v1603_v63  ;;  %v1672_v28 = vadd.f32 %v3349_v24, %v1604_v46  ;;  %v1673_v44 = vadd.f32 %v3349_v24, %v1605_v5  ;;  %v1610_v55 = vmul.f32 %v3327_v50, %v1543_v16 }
 0x1d7   : > { %v1674_v11 = vadd.f32 %v3349_v24, %v1606_v27  ;;  %v1611_v10 = vmul.f32 %v3327_v50, %v1544_v43  ;;  %v1675_v33 = vadd.f32 %v3349_v24, %v1607_v34  ;;  %v1612_v19 = vmul.f32 %v3327_v50, %v1545_v53 }
 0x1d8   : > { %v1613_v0 = vmul.f32 %v3327_v50, %v1546_v49  ;;  %v1676_v8 = vadd.f32 %v3349_v24, %v1608_v57  ;;  %v3384_v2 = vadd.f32 %v3349_v24, %v1666_v21  ;;  %v1677_v60 = vadd.f32 %v3349_v24, %v1609_v22 }
 0x1d9   : > { %v1735_v62 = vmax.f32 %v1671_v39, 0.0  ;;  %v1736_v15 = vmax.f32 %v1672_v28, 0.0  ;;  %v1737_v58 = vmax.f32 %v1673_v44, 0.0  ;;  %v1614_v42 = vmul.f32 %v3327_v50, %v1547_v17 }
 0x1da   : > { %v1678_v18 = vadd.f32 %v3349_v24, %v1610_v55  ;;  %v1738_v63 = vmax.f32 %v1674_v11, 0.0  ;;  %v1550_v46 = vsub.f32 %v2967_v35, %v3319_v61  ;;  %v1615_v5 = vmul.f32 %v3327_v50, %v1548_v20 }
 0x1db   : > { %v1679_v21 = vadd.f32 %v3349_v24, %v1611_v10  ;;  %v1739_v26 = vmax.f32 %v1675_v33, 0.0  ;;  %1799 = vst [vmem:[%s3395_s18] sm:$0xff] %v1735_v62  ;;  %v1616_v27 = vmul.f32 %v3327_v50, %v1549_v38  ;;  %v1680_v30 = vadd.f32 %v3349_v24, %v1612_v19  ;;  %v3867_v38 = vld [vmem:[#allocation6_spill] sm:$0xff] }
 0x1dc   : > { %v1740_v35 = vmax.f32 %v1676_v8, 0.0  ;;  %1800 = vst [vmem:[%s3395_s18 + $0x8] sm:$0xff] %v1736_v15  ;;  %v1552_v34 = vsub.f32 %v2979_v31, %v3319_v61  ;;  %v1617_v16 = vmul.f32 %v3327_v50, %v1550_v46  ;;  %v1681_v43 = vadd.f32 %v3349_v24, %v1613_v0  ;;  %v3868_v46 = vld [vmem:[#allocation7_spill] sm:$0xff] }
 0x1dd   : > { %v1741_v57 = vmax.f32 %v1677_v60, 0.0  ;;  %1801 = vst [vmem:[%s3395_s18 + $0x10] sm:$0xff] %v1737_v58  ;;  %v1618_v22 = vmul.f32 %v3327_v50, %v1551_v47  ;;  %v1682_v39 = vadd.f32 %v3349_v24, %v1614_v42  ;;  %v1742_v28 = vmax.f32 %v1678_v18, 0.0  ;;  %v3866_v60 = vld [vmem:[#allocation5_spill] sm:$0xff] }
 0x1de   : > { %1802 = vst [vmem:[%s3395_s18 + $0x18] sm:$0xff] %v1738_v63  ;;  %v1554_v31 = vsub.f32 %v2998_v48, %v3319_v61  ;;  %v1619_v44 = vmul.f32 %v3327_v50, %v1552_v34  ;;  %v1683_v53 = vadd.f32 %v3349_v24, %v1615_v5  ;;  %v1743_v49 = vmax.f32 %v1679_v21, 0.0 }
 0x1df   : > { %1803 = vst [vmem:[%s3395_s18 + $0x20] sm:$0xff] %v1739_v26  ;;  %v1620_v55 = vmul.f32 %v3327_v50, %v1553_v37  ;;  %v1684_v11 = vadd.f32 %v3349_v24, %v1616_v27  ;;  %v1744_v17 = vmax.f32 %v1680_v30, 0.0  ;;  %v1556_v48 = vsub.f32 %v3012_v59, %v3319_v61  ;;  %v3869_v27 = vld [vmem:[#allocation8_spill] sm:$0xff] }
 0x1e0   : > { %1804 = vst [vmem:[%s3395_s18 + $0x28] sm:$0xff] %v1740_v35  ;;  %v1621_v20 = vmul.f32 %v3327_v50, %v1554_v31  ;;  %v1685_v10 = vadd.f32 %v3349_v24, %v1617_v16  ;;  %v1745_v33 = vmax.f32 %v1681_v43, 0.0  ;;  %v1622_v19 = vmul.f32 %v3327_v50, %v1555_v41 }
 0x1e1   : > { %1805 = vst [vmem:[%s3395_s18 + $0x30] sm:$0xff] %v1741_v57  ;;  %v1686_v0 = vadd.f32 %v3349_v24, %v1618_v22  ;;  %v1746_v8 = vmax.f32 %v1682_v39, 0.0  ;;  %v1558_v59 = vsub.f32 %v3866_v60, %v3319_v61  ;;  %v1623_v62 = vmul.f32 %v3327_v50, %v1556_v48 }
 0x1e2   : > { %1806 = vst [vmem:[%s3395_s18 + $0x38] sm:$0xff] %v1742_v28  ;;  %v1687_v15 = vadd.f32 %v3349_v24, %v1619_v44  ;;  %v1747_v58 = vmax.f32 %v1683_v53, 0.0  ;;  %v1559_v36 = vsub.f32 %v3867_v38, %v3319_v61  ;;  %v1624_v42 = vmul.f32 %v3327_v50, %v1557_v54 }
 0x1e3   : > { %1807 = vst [vmem:[%s3395_s18 + $0x40] sm:$0xff] %v1743_v49  ;;  %v1688_v18 = vadd.f32 %v3349_v24, %v1620_v55  ;;  %v1748_v63 = vmax.f32 %v1684_v11, 0.0  ;;  %v1560_v5 = vsub.f32 %v3868_v46, %v3319_v61  ;;  %v1625_v21 = vmul.f32 %v3327_v50, %v1558_v59 }
 0x1e4   : > { %1808 = vst [vmem:[%s3395_s18 + $0x48] sm:$0xff] %v1744_v17  ;;  %v1689_v26 = vadd.f32 %v3349_v24, %v1621_v20  ;;  %v1749_v47 = vmax.f32 %v1685_v10, 0.0  ;;  %v1561_v30 = vsub.f32 %v3869_v27, %v3319_v61  ;;  %v1626_v35 = vmul.f32 %v3327_v50, %v1559_v36 }
 0x1e5   : > { %1809 = vst [vmem:[%s3395_s18 + $0x50] sm:$0xff] %v1745_v33  ;;  %v1690_v34 = vadd.f32 %v3349_v24, %v1622_v19  ;;  %v1750_v16 = vmax.f32 %v1686_v0, 0.0  ;;  %v1562_v43 = vsub.f32 %v3060_v52, %v3319_v61  ;;  %v1627_v57 = vmul.f32 %v3327_v50, %v1560_v5  ;;  %v3870_v33 = vld [vmem:[#allocation9_spill] sm:$0xff] }
 0x1e6   : > { %1810 = vst [vmem:[%s3395_s18 + $0x58] sm:$0xff] %v1746_v8  ;;  %v1691_v37 = vadd.f32 %v3349_v24, %v1623_v62  ;;  %v1751_v22 = vmax.f32 %v1687_v15, 0.0  ;;  %v1563_v39 = vsub.f32 %v3069_v56, %v3319_v61  ;;  %v1628_v28 = vmul.f32 %v3327_v50, %v1561_v30  ;;  %v3871_v62 = vld [vmem:[#allocation10_spill] sm:$0xff] }
 0x1e7   : > { %1811 = vst [vmem:[%s3395_s18 + $0x60] sm:$0xff] %v1747_v58  ;;  %v1692_v31 = vadd.f32 %v3349_v24, %v1624_v42  ;;  %v1752_v44 = vmax.f32 %v1688_v18, 0.0  ;;  %v1564_v52 = vsub.f32 %v3075_v40, %v3319_v61  ;;  %v1629_v53 = vmul.f32 %v3327_v50, %v1562_v43  ;;  %v3872_v42 = vld [vmem:[#allocation11_spill] sm:$0xff] }
 0x1e8   : > { %1812 = vst [vmem:[%s3395_s18 + $0x68] sm:$0xff] %v1748_v63  ;;  %v1693_v49 = vadd.f32 %v3349_v24, %v1625_v21  ;;  %v1753_v41 = vmax.f32 %v1689_v26, 0.0  ;;  %v1565_v56 = vsub.f32 %v3082_v12, %v3319_v61  ;;  %v1630_v55 = vmul.f32 %v3327_v50, %v1563_v39 }
 0x1e9   : > { %1813 = vst [vmem:[%s3395_s18 + $0x70] sm:$0xff] %v1749_v47  ;;  %v1694_v11 = vadd.f32 %v3349_v24, %v1626_v35  ;;  %v1754_v17 = vmax.f32 %v1690_v34, 0.0  ;;  %v1566_v40 = vsub.f32 %v3088_v13, %v3319_v61  ;;  %v1631_v48 = vmul.f32 %v3327_v50, %v1564_v52 }
 0x1ea   : > { %1814 = vst [vmem:[%s3395_s18 + $0x78] sm:$0xff] %v1750_v16  ;;  %v1695_v20 = vadd.f32 %v3349_v24, %v1627_v57  ;;  %v1755_v10 = vmax.f32 %v1691_v37, 0.0  ;;  %v1567_v12 = vsub.f32 %v3870_v33, %v3319_v61  ;;  %v1632_v54 = vmul.f32 %v3327_v50, %v1565_v56  ;;  %v3873_v16 = vld [vmem:[#allocation12_spill] sm:$0xff] }
 0x1eb   : > { %1815 = vst [vmem:[%s3395_s18 + $0x80] sm:$0xff] %v1751_v22  ;;  %v1696_v19 = vadd.f32 %v3349_v24, %v1628_v28  ;;  %v1756_v0 = vmax.f32 %v1692_v31, 0.0  ;;  %v1568_v13 = vsub.f32 %v3100_v9, %v3319_v61  ;;  %v1633_v8 = vmul.f32 %v3327_v50, %v1566_v40  ;;  %v3874_v22 = vld [vmem:[#allocation13_spill] sm:$0xff] }
 0x1ec   : > { %1816 = vst [vmem:[%s3395_s18 + $0x88] sm:$0xff] %v1752_v44  ;;  %v1697_v60 = vadd.f32 %v3349_v24, %v1629_v53  ;;  %v1757_v59 = vmax.f32 %v1693_v49, 0.0  ;;  %v1569_v15 = vsub.f32 %v3871_v62, %v3319_v61  ;;  %v1634_v58 = vmul.f32 %v3327_v50, %v1567_v12  ;;  %v3875_v44 = vld [vmem:[#allocation14_spill] sm:$0xff] }
 0x1ed   : > { %1817 = vst [vmem:[%s3395_s18 + $0x90] sm:$0xff] %v1753_v41  ;;  %v1698_v38 = vadd.f32 %v3349_v24, %v1630_v55  ;;  %v1758_v36 = vmax.f32 %v1694_v11, 0.0  ;;  %v1570_v9 = vsub.f32 %v3872_v42, %v3319_v61  ;;  %v1635_v18 = vmul.f32 %v3327_v50, %v1568_v13 }
 0x1ee   : > { %1818 = vst [vmem:[%s3395_s18 + $0x98] sm:$0xff] %v1754_v17  ;;  %v1699_v63 = vadd.f32 %v3349_v24, %v1631_v48  ;;  %v1759_v46 = vmax.f32 %v1695_v20, 0.0  ;;  %v1571_v5 = vsub.f32 %v3123_v6, %v3319_v61  ;;  %v1636_v21 = vmul.f32 %v3327_v50, %v1569_v15 }
 0x1ef   : > { %1819 = vst [vmem:[%s3395_s18 + $0xa0] sm:$0xff] %v1755_v10  ;;  %v1700_v26 = vadd.f32 %v3349_v24, %v1632_v54  ;;  %v1760_v47 = vmax.f32 %v1696_v19, 0.0  ;;  %v1572_v27 = vsub.f32 %v3130_v7, %v3319_v61  ;;  %v1637_v30 = vmul.f32 %v3327_v50, %v1570_v9  ;;  %v3876_v9 = vld [vmem:[#allocation15_spill] sm:$0xff] }
 0x1f0   : > { %1820 = vst [vmem:[%s3395_s18 + $0xa8] sm:$0xff] %v1756_v0  ;;  %v1701_v35 = vadd.f32 %v3349_v24, %v1633_v8  ;;  %v1761_v34 = vmax.f32 %v1697_v60, 0.0  ;;  %v1573_v6 = vsub.f32 %v3873_v16, %v3319_v61  ;;  %v1638_v43 = vmul.f32 %v3327_v50, %v1571_v5 }
 0x1f1   : > { %1821 = vst [vmem:[%s3395_s18 + $0xb0] sm:$0xff] %v1757_v59  ;;  %v1702_v57 = vadd.f32 %v3349_v24, %v1634_v58  ;;  %v1762_v37 = vmax.f32 %v1698_v38, 0.0  ;;  %v1574_v7 = vsub.f32 %v3874_v22, %v3319_v61  ;;  %v1639_v39 = vmul.f32 %v3327_v50, %v1572_v27 }
 0x1f2   : > { %1822 = vst [vmem:[%s3395_s18 + $0xb8] sm:$0xff] %v1758_v36  ;;  %v1703_v28 = vadd.f32 %v3349_v24, %v1635_v18  ;;  %v1763_v31 = vmax.f32 %v1699_v63, 0.0  ;;  %v1575_v52 = vsub.f32 %v3875_v44, %v3319_v61  ;;  %v1640_v53 = vmul.f32 %v3327_v50, %v1573_v6 }
 0x1f3   : > { %1823 = vst [vmem:[%s3395_s18 + $0xc0] sm:$0xff] %v1759_v46  ;;  %v1704_v49 = vadd.f32 %v3349_v24, %v1636_v21  ;;  %v1764_v41 = vmax.f32 %v1700_v26, 0.0  ;;  %v1576_v56 = vsub.f32 %v3160_v25, %v3319_v61  ;;  %v1641_v55 = vmul.f32 %v3327_v50, %v1574_v7 }
 0x1f4   : > { %1824 = vst [vmem:[%s3395_s18 + $0xc8] sm:$0xff] %v1760_v47  ;;  %v1705_v11 = vadd.f32 %v3349_v24, %v1637_v30  ;;  %v1765_v17 = vmax.f32 %v1701_v35, 0.0  ;;  %v1577_v40 = vsub.f32 %v3167_v45, %v3319_v61  ;;  %v1642_v48 = vmul.f32 %v3327_v50, %v1575_v52 }
 0x1f5   : > { %1825 = vst [vmem:[%s3395_s18 + $0xd0] sm:$0xff] %v1761_v34  ;;  %v1706_v20 = vadd.f32 %v3349_v24, %v1638_v43  ;;  %v1766_v10 = vmax.f32 %v1702_v57, 0.0  ;;  %v1578_v25 = vsub.f32 %v3176_v1, %v3319_v61  ;;  %v1643_v33 = vmul.f32 %v3327_v50, %v1576_v56  ;;  %v3877_v34 = vld [vmem:[#allocation16_spill] sm:$0xff]  ;;  %v3878_v57 = vld [vmem:[#allocation17_spill] sm:$0xff] }
 0x1f6   : > { %1826 = vst [vmem:[%s3395_s18 + $0xd8] sm:$0xff] %v1762_v37  ;;  %v1707_v12 = vadd.f32 %v3349_v24, %v1639_v39  ;;  %v1767_v54 = vmax.f32 %v1703_v28, 0.0  ;;  %v1579_v45 = vsub.f32 %v3183_v29, %v3319_v61  ;;  %v1644_v19 = vmul.f32 %v3327_v50, %v1577_v40  ;;  %v3879_v39 = vld [vmem:[#allocation18_spill] sm:$0xff] }
 0x1f7   : > { %1827 = vst [vmem:[%s3395_s18 + $0xe0] sm:$0xff] %v1763_v31  ;;  %v1708_v0 = vadd.f32 %v3349_v24, %v1640_v53  ;;  %v1768_v13 = vmax.f32 %v1704_v49, 0.0  ;;  %v1580_v1 = vsub.f32 %v3190_v3, %v3319_v61  ;;  %v1645_v8 = vmul.f32 %v3327_v50, %v1578_v25  ;;  %v3880_v53 = vld [vmem:[#allocation19_spill] sm:$0xff] }
 0x1f8   : > { %1828 = vst [vmem:[%s3395_s18 + $0xe8] sm:$0xff] %v1764_v41  ;;  %v1709_v60 = vadd.f32 %v3349_v24, %v1641_v55  ;;  %v1769_v59 = vmax.f32 %v1705_v11, 0.0  ;;  %v1581_v29 = vsub.f32 %v3196_v51, %v3319_v61  ;;  %v1646_v62 = vmul.f32 %v3327_v50, %v1579_v45  ;;  %v3881_v11 = vld [vmem:[#allocation20_spill] sm:$0xff]  ;;  %v3883_v45 = vld [vmem:[#allocation22_spill] sm:$0xff] }
 0x1f9   : > { %1829 = vst [vmem:[%s3395_s18 + $0xf0] sm:$0xff] %v1765_v17  ;;  %v1710_v15 = vadd.f32 %v3349_v24, %v1642_v48  ;;  %v1770_v58 = vmax.f32 %v1706_v20, 0.0  ;;  %v1582_v3 = vsub.f32 %v3202_v14, %v3319_v61  ;;  %v1647_v38 = vmul.f32 %v3327_v50, %v1580_v1 }
 0x1fa   : > { %1830 = vst [vmem:[%s3395_s18 + $0xf8] sm:$0xff] %v1766_v10  ;;  %v1711_v36 = vadd.f32 %v3349_v24, %v1643_v33  ;;  %v1771_v42 = vmax.f32 %v1707_v12, 0.0  ;;  %v1583_v51 = vsub.f32 %v3876_v9, %v3319_v61  ;;  %v1648_v18 = vmul.f32 %v3327_v50, %v1581_v29  ;;  %v3882_v10 = vld [vmem:[#allocation21_spill] sm:$0xff] }
 0x1fb   : > { %1831 = vst [vmem:[%s3395_s18 + $0x100] sm:$0xff] %v1767_v54  ;;  %v1712_v63 = vadd.f32 %v3349_v24, %v1644_v19  ;;  %v1772_v46 = vmax.f32 %v1708_v0, 0.0  ;;  %v1584_v14 = vsub.f32 %v3212_v32, %v3319_v61  ;;  %v1649_v5 = vmul.f32 %v3327_v50, %v1582_v3 }
 0x1fc   : > { %1832 = vst [vmem:[%s3395_s18 + $0x108] sm:$0xff] %v1768_v13  ;;  %v1713_v21 = vadd.f32 %v3349_v24, %v1645_v8  ;;  %v1773_v26 = vmax.f32 %v1709_v60, 0.0  ;;  %v1585_v47 = vsub.f32 %v3219_v4, %v3319_v61  ;;  %v1650_v27 = vmul.f32 %v3327_v50, %v1583_v51  ;;  %v3884_v8 = vld [vmem:[#allocation23_spill] sm:$0xff] }
 0x1fd   : > { %1833 = vst [vmem:[%s3395_s18 + $0x110] sm:$0xff] %v1769_v59  ;;  %v1714_v30 = vadd.f32 %v3349_v24, %v1646_v62  ;;  %v1774_v35 = vmax.f32 %v1710_v15, 0.0  ;;  %v1586_v32 = vsub.f32 %v3877_v34, %v3319_v61  ;;  %v1651_v16 = vmul.f32 %v3327_v50, %v1584_v14  ;;  %v3885_v15 = vld [vmem:[#allocation24_spill] sm:$0xff] }
 0x1fe   : > { %1834 = vst [vmem:[%s3395_s18 + $0x118] sm:$0xff] %v1770_v58  ;;  %v1715_v6 = vadd.f32 %v3349_v24, %v1647_v38  ;;  %v1775_v43 = vmax.f32 %v1711_v36, 0.0  ;;  %v1587_v4 = vsub.f32 %v3878_v57, %v3319_v61  ;;  %v1652_v37 = vmul.f32 %v3327_v50, %v1585_v47  ;;  %v3888_v47 = vld [vmem:[#allocation27_spill] sm:$0xff] }
 0x1ff   : > { %1835 = vst [vmem:[%s3395_s18 + $0x120] sm:$0xff] %v1771_v42  ;;  %v1716_v22 = vadd.f32 %v3349_v24, %v1648_v18  ;;  %v1776_v7 = vmax.f32 %v1712_v63, 0.0  ;;  %v1588_v28 = vsub.f32 %v3879_v39, %v3319_v61  ;;  %v1653_v31 = vmul.f32 %v3327_v50, %v1586_v32  ;;  %v3886_v42 = vld [vmem:[#allocation25_spill] sm:$0xff] }
 0x200   : > { %1836 = vst [vmem:[%s3395_s18 + $0x128] sm:$0xff] %v1772_v46  ;;  %v1717_v44 = vadd.f32 %v3349_v24, %v1649_v5  ;;  %v1777_v52 = vmax.f32 %v1713_v21, 0.0  ;;  %v1589_v49 = vsub.f32 %v3880_v53, %v3319_v61  ;;  %v1654_v41 = vmul.f32 %v3327_v50, %v1587_v4  ;;  %v3887_v46 = vld [vmem:[#allocation26_spill] sm:$0xff] }
 0x201   : > { %1837 = vst [vmem:[%s3395_s18 + $0x130] sm:$0xff] %v1773_v26  ;;  %v1718_v56 = vadd.f32 %v3349_v24, %v1650_v27  ;;  %v1778_v55 = vmax.f32 %v1714_v30, 0.0  ;;  %v1590_v17 = vsub.f32 %v3881_v11, %v3319_v61  ;;  %v1655_v40 = vmul.f32 %v3327_v50, %v1588_v28 }
 0x202   : > { %1838 = vst [vmem:[%s3395_s18 + $0x138] sm:$0xff] %v1774_v35  ;;  %v1719_v48 = vadd.f32 %v3349_v24, %v1651_v16  ;;  %v1779_v20 = vmax.f32 %v1715_v6, 0.0  ;;  %v1591_v25 = vsub.f32 %v3882_v10, %v3319_v61  ;;  %v1656_v33 = vmul.f32 %v3327_v50, %v1589_v49  ;;  %v2041_v10 = vld [vmem:[%s3395_s18 + $0x30] sm:$0xff] (%p2671_p6) }
 0x203   : > { %1839 = vst [vmem:[%s3395_s18 + $0x140] sm:$0xff] %v1775_v43  ;;  %v1720_v12 = vadd.f32 %v3349_v24, %v1652_v37  ;;  %v1780_v54 = vmax.f32 %v1716_v22, 0.0  ;;  %v1592_v19 = vsub.f32 %v3883_v45, %v3319_v61  ;;  %v1657_v0 = vmul.f32 %v3327_v50, %v1590_v17  ;;  %v2033_v17 = vld [vmem:[%s3395_s18 + $0x10] sm:$0xff] (%p2671_p6)  ;;  %v2051_v45 = vld [vmem:[%s3395_s18 + $0x58] sm:$0xff] (%p2671_p6) }
 0x204   : > { %1840 = vst [vmem:[%s3395_s18 + $0x148] sm:$0xff] %v1776_v7  ;;  %v1721_v13 = vadd.f32 %v3349_v24, %v1653_v31  ;;  %v1781_v1 = vmax.f32 %v1717_v44, 0.0  ;;  %v1593_v60 = vsub.f32 %v3884_v8, %v3319_v61  ;;  %v1658_v59 = vmul.f32 %v3327_v50, %v1591_v25  ;;  %v2043_v25 = vld [vmem:[%s3395_s18 + $0x38] sm:$0xff] (%p2671_p6)  ;;  %v2061_v8 = vld [vmem:[%s3395_s18 + $0x80] sm:$0xff] (%p2671_p6) }
 0x205   : > { %1841 = vst [vmem:[%s3395_s18 + $0x150] sm:$0xff] %v1777_v52  ;;  %v1722_v29 = vadd.f32 %v3349_v24, %v1654_v41  ;;  %v1782_v62 = vmax.f32 %v1718_v56, 0.0  ;;  %v1594_v58 = vsub.f32 %v3885_v15, %v3319_v61  ;;  %v1659_v3 = vmul.f32 %v3327_v50, %v1592_v19  ;;  %v2053_v19 = vld [vmem:[%s3395_s18 + $0x60] sm:$0xff] (%p2671_p6)  ;;  %v2071_v15 = vld [vmem:[%s3395_s18 + $0xa8] sm:$0xff] (%p2671_p6) }
 0x206   : > { %1842 = vst [vmem:[%s3395_s18 + $0x158] sm:$0xff] %v1778_v55  ;;  %v1723_v38 = vadd.f32 %v3349_v24, %v1655_v40  ;;  %v1783_v36 = vmax.f32 %v1719_v48, 0.0  ;;  %v1595_v9 = vsub.f32 %v3886_v42, %v3319_v61  ;;  %v1660_v51 = vmul.f32 %v3327_v50, %v1593_v60  ;;  %v2035_v40 = vld [vmem:[%s3395_s18 + $0x18] sm:$0xff] (%p2671_p6)  ;;  %v2037_v48 = vld [vmem:[%s3395_s18 + $0x20] sm:$0xff] (%p2671_p6)  ;;  %v2063_v60 = vld [vmem:[%s3395_s18 + $0x88] sm:$0xff] (%p2671_p6) }
 0x207   : > { %1843 = vst [vmem:[%s3395_s18 + $0x160] sm:$0xff] %v1779_v20  ;;  %v1724_v18 = vadd.f32 %v3349_v24, %v1656_v33  ;;  %v1784_v63 = vmax.f32 %v1720_v12, 0.0  ;;  %v1596_v14 = vsub.f32 %v3887_v46, %v3319_v61  ;;  %v1661_v5 = vmul.f32 %v3327_v50, %v1594_v58  ;;  %v2039_v20 = vld [vmem:[%s3395_s18 + $0x28] sm:$0xff] (%p2671_p6)  ;;  %v2045_v33 = vld [vmem:[%s3395_s18 + $0x40] sm:$0xff] (%p2671_p6)  ;;  %v2073_v58 = vld [vmem:[%s3395_s18 + $0xb0] sm:$0xff] (%p2671_p6) }
 0x208   : > { %1844 = vst [vmem:[%s3395_s18 + $0x168] sm:$0xff] %v1780_v54  ;;  %v1725_v21 = vadd.f32 %v3349_v24, %v1657_v0  ;;  %v1785_v26 = vmax.f32 %v1721_v13, 0.0  ;;  %v1597_v27 = vsub.f32 %v3888_v47, %v3319_v61  ;;  %v1662_v30 = vmul.f32 %v3327_v50, %v1595_v9  ;;  %v2047_v12 = vld [vmem:[%s3395_s18 + $0x48] sm:$0xff] (%p2671_p6)  ;;  %v2049_v54 = vld [vmem:[%s3395_s18 + $0x50] sm:$0xff] (%p2671_p6)  ;;  %v2083_v9 = vld [vmem:[%s3395_s18 + $0xd8] sm:$0xff] (%p2671_p6) }
 0x209   : > { %1845 = vst [vmem:[%s3395_s18 + $0x170] sm:$0xff] %v1781_v1  ;;  %v1726_v35 = vadd.f32 %v3349_v24, %v1658_v59  ;;  %v1786_v34 = vmax.f32 %v1722_v29, 0.0  ;;  %v1598_v32 = vsub.f32 %v3310_v23, %v3319_v61  ;;  %v1663_v16 = vmul.f32 %v3327_v50, %v1596_v14  ;;  %v2055_v0 = vld [vmem:[%s3395_s18 + $0x68] sm:$0xff] (%p2671_p6)  ;;  %v2057_v13 = vld [vmem:[%s3395_s18 + $0x70] sm:$0xff] (%p2671_p6)  ;;  %v2059_v1 = vld [vmem:[%s3395_s18 + $0x78] sm:$0xff] (%p2671_p6) }
 0x20a   : > { %1846 = vst [vmem:[%s3395_s18 + $0x178] sm:$0xff] %v1782_v62  ;;  %v1727_v6 = vadd.f32 %v3349_v24, %v1659_v3  ;;  %v1787_v43 = vmax.f32 %v1723_v38, 0.0  ;;  %v1664_v57 = vmul.f32 %v3327_v50, %v1597_v27  ;;  %v1728_v4 = vadd.f32 %v3349_v24, %v1660_v51  ;;  %v2065_v59 = vld [vmem:[%s3395_s18 + $0x90] sm:$0xff] (%p2671_p6)  ;;  %v2067_v29 = vld [vmem:[%s3395_s18 + $0x98] sm:$0xff] (%p2671_p6)  ;;  %v2069_v62 = vld [vmem:[%s3395_s18 + $0xa0] sm:$0xff] (%p2671_p6) }
 0x20b   : > { %1847 = vst [vmem:[%s3395_s18 + $0x180] sm:$0xff] %v1783_v36  ;;  %v1788_v37 = vmax.f32 %v1724_v18, 0.0  ;;  %v1665_v22 = vmul.f32 %v3327_v50, %v1598_v32  ;;  %v1729_v7 = vadd.f32 %v3349_v24, %v1661_v5  ;;  %v1789_v23 = vmax.f32 %v1725_v21, 0.0  ;;  %v2075_v3 = vld [vmem:[%s3395_s18 + $0xb8] sm:$0xff] (%p2671_p6)  ;;  %v2077_v38 = vld [vmem:[%s3395_s18 + $0xc0] sm:$0xff] (%p2671_p6)  ;;  %v2079_v36 = vld [vmem:[%s3395_s18 + $0xc8] sm:$0xff] (%p2671_p6) }
 0x20c   : > { %1848 = vst [vmem:[%s3395_s18 + $0x188] sm:$0xff] %v1784_v63  ;;  %v1730_v61 = vadd.f32 %v3349_v24, %v1662_v30  ;;  %v1790_v39 = vmax.f32 %v1726_v35, 0.0  ;;  %v1731_v28 = vadd.f32 %v3349_v24, %v1663_v16  ;;  %v1791_v31 = vmax.f32 %v1727_v6, 0.0  ;;  %v2081_v42 = vld [vmem:[%s3395_s18 + $0xd0] sm:$0xff] (%p2671_p6)  ;;  %v2085_v51 = vld [vmem:[%s3395_s18 + $0xe0] sm:$0xff] (%p2671_p6)  ;;  %v2087_v18 = vld [vmem:[%s3395_s18 + $0xe8] sm:$0xff] (%p2671_p6) }
 0x20d   : > { %1849 = vst [vmem:[%s3395_s18 + $0x190] sm:$0xff] %v1785_v26  ;;  %v1732_v44 = vadd.f32 %v3349_v24, %v1664_v57  ;;  %v1792_v50 = vmax.f32 %v1728_v4, 0.0  ;;  %v1733_v52 = vadd.f32 %v3349_v24, %v1665_v22  ;;  %v1793_v53 = vmax.f32 %v1729_v7, 0.0  ;;  %v2029_v24 = vld [vmem:[%s3395_s18] sm:$0xff] (%p2671_p6)  ;;  %v2089_v63 = vld [vmem:[%s3395_s18 + $0xf0] sm:$0xff] (%p2671_p6)  ;;  %v2091_v46 = vld [vmem:[%s3395_s18 + $0xf8] sm:$0xff] (%p2671_p6) }
 0x20e   : > { %1850 = vst [vmem:[%s3395_s18 + $0x198] sm:$0xff] %v1786_v34  ;;  %v1794_v49 = vmax.f32 %v1730_v61, 0.0  ;;  %v1795_v41 = vmax.f32 %v1731_v28, 0.0  ;;  %v1798_v11 = vmax.f32 %v3384_v2, 0.0  ;;  %v2031_v2 = vld [vmem:[%s3395_s18 + $0x8] sm:$0xff] (%p2671_p6)  ;;  %v2093_v14 = vld [vmem:[%s3395_s18 + $0x100] sm:$0xff] (%p2671_p6) }
 0x20f   : > { %1851 = vst [vmem:[%s3395_s18 + $0x1a0] sm:$0xff] %v1787_v43  ;;  %v1796_v56 = vmax.f32 %v1732_v44, 0.0  ;;  %v1797_v55 = vmax.f32 %v1733_v52, 0.0  ;;  %v2095_v5 = vld [vmem:[%s3395_s18 + $0x108] sm:$0xff] (%p2671_p6)  ;;  %v2097_v21 = vld [vmem:[%s3395_s18 + $0x110] sm:$0xff] (%p2671_p6)  ;;  %v2099_v26 = vld [vmem:[%s3395_s18 + $0x118] sm:$0xff] (%p2671_p6) }
 0x210   : > { %1852 = vst [vmem:[%s3395_s18 + $0x1a8] sm:$0xff] %v1788_v37  ;;  %v2101_v47 = vld [vmem:[%s3395_s18 + $0x120] sm:$0xff] (%p2671_p6)  ;;  %v2103_v27 = vld [vmem:[%s3395_s18 + $0x128] sm:$0xff] (%p2671_p6)  ;;  %v2105_v30 = vld [vmem:[%s3395_s18 + $0x130] sm:$0xff] (%p2671_p6) }
 0x211   : > { %1853 = vst [vmem:[%s3395_s18 + $0x1b0] sm:$0xff] %v1789_v23  ;;  %v2107_v35 = vld [vmem:[%s3395_s18 + $0x138] sm:$0xff] (%p2671_p6)  ;;  %v2109_v34 = vld [vmem:[%s3395_s18 + $0x140] sm:$0xff] (%p2671_p6)  ;;  %v2111_v32 = vld [vmem:[%s3395_s18 + $0x148] sm:$0xff] (%p2671_p6) }
 0x212   : > { %1854 = vst [vmem:[%s3395_s18 + $0x1b8] sm:$0xff] %v1790_v39  ;;  %v2113_v16 = vld [vmem:[%s3395_s18 + $0x150] sm:$0xff] (%p2671_p6)  ;;  %v2115_v6 = vld [vmem:[%s3395_s18 + $0x158] sm:$0xff] (%p2671_p6)  ;;  %v2117_v43 = vld [vmem:[%s3395_s18 + $0x160] sm:$0xff] (%p2671_p6) }
 0x213   : > { %1855 = vst [vmem:[%s3395_s18 + $0x1c0] sm:$0xff] %v1791_v31  ;;  %v2119_v57 = vld [vmem:[%s3395_s18 + $0x168] sm:$0xff] (%p2671_p6)  ;;  %v2121_v4 = vld [vmem:[%s3395_s18 + $0x170] sm:$0xff] (%p2671_p6)  ;;  %v2123_v37 = vld [vmem:[%s3395_s18 + $0x178] sm:$0xff] (%p2671_p6) }
 0x214   : > { %1856 = vst [vmem:[%s3395_s18 + $0x1c8] sm:$0xff] %v1792_v50  ;;  %v2125_v22 = vld [vmem:[%s3395_s18 + $0x180] sm:$0xff] (%p2671_p6)  ;;  %v2127_v7 = vld [vmem:[%s3395_s18 + $0x188] sm:$0xff] (%p2671_p6)  ;;  %v2129_v23 = vld [vmem:[%s3395_s18 + $0x190] sm:$0xff] (%p2671_p6) }
 0x215   : > { %1857 = vst [vmem:[%s3395_s18 + $0x1d0] sm:$0xff] %v1793_v53  ;;  %v2131_v61 = vld [vmem:[%s3395_s18 + $0x198] sm:$0xff] (%p2671_p6) }
 0x216   : > { %1858 = vst [vmem:[%s3395_s18 + $0x1d8] sm:$0xff] %v1794_v49  ;;  %1869 = sbr.rel (!%p2671_p6) target bundleno = 603 (0x25b), region = 93  ;;  %v2133_v39 = vld [vmem:[%s3395_s18 + $0x1a0] sm:$0xff] (%p2671_p6) }
 0x217   : > { %1859 = vst [vmem:[%s3395_s18 + $0x1e0] sm:$0xff] %v1795_v41  ;;  %v2135_v28 = vld [vmem:[%s3395_s18 + $0x1a8] sm:$0xff] (%p2671_p6) }
 0x218   : > { %1860 = vst [vmem:[%s3395_s18 + $0x1e8] sm:$0xff] %v1796_v56  ;;  %v2137_v31 = vld [vmem:[%s3395_s18 + $0x1b0] sm:$0xff] (%p2671_p6) }
 0x219   : > { %1861 = vst [vmem:[%s3395_s18 + $0x1f0] sm:$0xff] %v1797_v55  ;;  %v2139_v44 = vld [vmem:[%s3395_s18 + $0x1b8] sm:$0xff] (%p2671_p6) }
 0x21a   : > { %1862 = vst [vmem:[%s3395_s18 + $0x1f8] sm:$0xff] %v1798_v11  ;;  %v2141_v50 = vld [vmem:[%s3395_s18 + $0x1c0] sm:$0xff] (%p2671_p6) }
 0x21b   : > { %2030 = vst [vmem:[%s3670_s6] sm:$0xff] %v2029_v24  ;;  %v2143_v52 = vld [vmem:[%s3395_s18 + $0x1c8] sm:$0xff] }
 0x21c   : > { %2032 = vst [vmem:[%s3670_s6 + $0x48] sm:$0xff] %v2031_v2  ;;  %v2145_v53 = vld [vmem:[%s3395_s18 + $0x1d0] sm:$0xff] }
 0x21d   : > { %2034 = vst [vmem:[%s3670_s6 + $0x90] sm:$0xff] %v2033_v17  ;;  %v2147_v49 = vld [vmem:[%s3395_s18 + $0x1d8] sm:$0xff] }
 0x21e   : > { %2036 = vst [vmem:[%s3670_s6 + $0xd8] sm:$0xff] %v2035_v40  ;;  %v2149_v41 = vld [vmem:[%s3395_s18 + $0x1e0] sm:$0xff] }
 0x21f   : > { %2038 = vst [vmem:[%s3670_s6 + $0x120] sm:$0xff] %v2037_v48  ;;  %v2151_v56 = vld [vmem:[%s3395_s18 + $0x1e8] sm:$0xff] }
 0x220   : > { %2040 = vst [vmem:[%s3670_s6 + $0x168] sm:$0xff] %v2039_v20  ;;  %v2153_v55 = vld [vmem:[%s3395_s18 + $0x1f0] sm:$0xff] }
 0x221   : > { %2042 = vst [vmem:[%s3670_s6 + $0x1b0] sm:$0xff] %v2041_v10  ;;  %v2155_v11 = vld [vmem:[%s3395_s18 + $0x1f8] sm:$0xff] }
 0x222   : > { %2044 = vst [vmem:[%s3670_s6 + $0x1f8] sm:$0xff] %v2043_v25 }
 0x223   : > { %2046 = vst [vmem:[%s3670_s6 + $0x240] sm:$0xff] %v2045_v33 }
 0x224   : > { %2048 = vst [vmem:[%s3670_s6 + $0x288] sm:$0xff] %v2047_v12 }
 0x225   : > { %2050 = vst [vmem:[%s3670_s6 + $0x2d0] sm:$0xff] %v2049_v54 }
 0x226   : > { %2052 = vst [vmem:[%s3670_s6 + $0x318] sm:$0xff] %v2051_v45 }
 0x227   : > { %2054 = vst [vmem:[%s3670_s6 + $0x360] sm:$0xff] %v2053_v19 }
 0x228   : > { %2056 = vst [vmem:[%s3670_s6 + $0x3a8] sm:$0xff] %v2055_v0 }
 0x229   : > { %2058 = vst [vmem:[%s3670_s6 + $0x3f0] sm:$0xff] %v2057_v13 }
 0x22a   : > { %2060 = vst [vmem:[%s3670_s6 + $0x438] sm:$0xff] %v2059_v1 }
 0x22b   : > { %2062 = vst [vmem:[%s3670_s6 + $0x480] sm:$0xff] %v2061_v8 }
 0x22c   : > { %2064 = vst [vmem:[%s3670_s6 + $0x4c8] sm:$0xff] %v2063_v60 }
 0x22d   : > { %2066 = vst [vmem:[%s3670_s6 + $0x510] sm:$0xff] %v2065_v59 }
 0x22e   : > { %2068 = vst [vmem:[%s3670_s6 + $0x558] sm:$0xff] %v2067_v29 }
 0x22f   : > { %2070 = vst [vmem:[%s3670_s6 + $0x5a0] sm:$0xff] %v2069_v62 }
 0x230   : > { %2072 = vst [vmem:[%s3670_s6 + $0x5e8] sm:$0xff] %v2071_v15 }
 0x231   : > { %2074 = vst [vmem:[%s3670_s6 + $0x630] sm:$0xff] %v2073_v58 }
 0x232   : > { %2076 = vst [vmem:[%s3670_s6 + $0x678] sm:$0xff] %v2075_v3 }
 0x233   : > { %2078 = vst [vmem:[%s3670_s6 + $0x6c0] sm:$0xff] %v2077_v38 }
 0x234   : > { %2080 = vst [vmem:[%s3670_s6 + $0x708] sm:$0xff] %v2079_v36 }
 0x235   : > { %2082 = vst [vmem:[%s3670_s6 + $0x750] sm:$0xff] %v2081_v42 }
 0x236   : > { %2084 = vst [vmem:[%s3670_s6 + $0x798] sm:$0xff] %v2083_v9 }
 0x237   : > { %2086 = vst [vmem:[%s3670_s6 + $0x7e0] sm:$0xff] %v2085_v51 }
 0x238   : > { %2088 = vst [vmem:[%s3670_s6 + $0x828] sm:$0xff] %v2087_v18 }
 0x239   : > { %2090 = vst [vmem:[%s3670_s6 + $0x870] sm:$0xff] %v2089_v63 }
 0x23a   : > { %2092 = vst [vmem:[%s3670_s6 + $0x8b8] sm:$0xff] %v2091_v46 }
 0x23b   : > { %2094 = vst [vmem:[%s3670_s6 + $0x900] sm:$0xff] %v2093_v14 }
 0x23c   : > { %2096 = vst [vmem:[%s3670_s6 + $0x948] sm:$0xff] %v2095_v5 }
 0x23d   : > { %2098 = vst [vmem:[%s3670_s6 + $0x990] sm:$0xff] %v2097_v21 }
 0x23e   : > { %2100 = vst [vmem:[%s3670_s6 + $0x9d8] sm:$0xff] %v2099_v26 }
 0x23f   : > { %2102 = vst [vmem:[%s3670_s6 + $0xa20] sm:$0xff] %v2101_v47 }
 0x240   : > { %2104 = vst [vmem:[%s3670_s6 + $0xa68] sm:$0xff] %v2103_v27 }
 0x241   : > { %2106 = vst [vmem:[%s3670_s6 + $0xab0] sm:$0xff] %v2105_v30 }
 0x242   : > { %2108 = vst [vmem:[%s3670_s6 + $0xaf8] sm:$0xff] %v2107_v35 }
 0x243   : > { %2110 = vst [vmem:[%s3670_s6 + $0xb40] sm:$0xff] %v2109_v34 }
 0x244   : > { %2112 = vst [vmem:[%s3670_s6 + $0xb88] sm:$0xff] %v2111_v32 }
 0x245   : > { %2114 = vst [vmem:[%s3670_s6 + $0xbd0] sm:$0xff] %v2113_v16 }
 0x246   : > { %2116 = vst [vmem:[%s3670_s6 + $0xc18] sm:$0xff] %v2115_v6 }
 0x247   : > { %2118 = vst [vmem:[%s3670_s6 + $0xc60] sm:$0xff] %v2117_v43 }
 0x248   : > { %2120 = vst [vmem:[%s3670_s6 + $0xca8] sm:$0xff] %v2119_v57 }
 0x249   : > { %2122 = vst [vmem:[%s3670_s6 + $0xcf0] sm:$0xff] %v2121_v4 }
 0x24a   : > { %2124 = vst [vmem:[%s3670_s6 + $0xd38] sm:$0xff] %v2123_v37 }
 0x24b   : > { %2126 = vst [vmem:[%s3670_s6 + $0xd80] sm:$0xff] %v2125_v22 }
 0x24c   : > { %2128 = vst [vmem:[%s3670_s6 + $0xdc8] sm:$0xff] %v2127_v7 }
 0x24d   : > { %2130 = vst [vmem:[%s3670_s6 + $0xe10] sm:$0xff] %v2129_v23 }
 0x24e   : > { %2132 = vst [vmem:[%s3670_s6 + $0xe58] sm:$0xff] %v2131_v61 }
 0x24f   : > { %2134 = vst [vmem:[%s3670_s6 + $0xea0] sm:$0xff] %v2133_v39 }
 0x250   : > { %2136 = vst [vmem:[%s3670_s6 + $0xee8] sm:$0xff] %v2135_v28 }
 0x251   : > { %2138 = vst [vmem:[%s3670_s6 + $0xf30] sm:$0xff] %v2137_v31 }
 0x252   : > { %2140 = vst [vmem:[%s3670_s6 + $0xf78] sm:$0xff] %v2139_v44 }
 0x253   : > { %2142 = vst [vmem:[%s3670_s6 + $0xfc0] sm:$0xff] %v2141_v50 }
 0x254   : > { %2144 = vst [vmem:[%s3670_s6 + $0x1008] sm:$0xff] %v2143_v52 }
 0x255   : > { %2146 = vst [vmem:[%s3670_s6 + $0x1050] sm:$0xff] %v2145_v53 }
 0x256   : > { %2148 = vst [vmem:[%s3670_s6 + $0x1098] sm:$0xff] %v2147_v49 }
 0x257   : > { %2150 = vst [vmem:[%s3670_s6 + $0x10e0] sm:$0xff] %v2149_v41 }
 0x258   : > { %2152 = vst [vmem:[%s3670_s6 + $0x1128] sm:$0xff] %v2151_v56 }
 0x259   : > { %2154 = vst [vmem:[%s3670_s6 + $0x1170] sm:$0xff] %v2153_v55 }
 0x25a   : > { %2156 = vst [vmem:[%s3670_s6 + $0x11b8] sm:$0xff] %v2155_v11 }
 0x25b PF: > { %s15_s22 = sadd.s32 1, %s2603_s22   ;;  %s3889_s18 = smov %s2591_s19 }
 0x25c   : > { %p12_p12 = scmp.ge.s32.totalorder %s15_s22, 11   ;;  %s3890_s19 = smov %s2676_s28 }
 0x25d   : > { %s3891_s20 = smov %s2599_s21  ;;  %s3892_s21 = smov %s3894_s23 }
 0x25e   :  { %14 = sbr.rel (!%p12_p12) target bundleno = 3 (0x3), region = 174 }

// kernel: encoder_block_forward.6
= control target key start
LH: loop header
LB: loop body
LE: loop exit
PB: predicated region body
PF: predicated region fallthrough
CT: control target
= control target key end

     0   :  { %s7013_s0 = inlined_call_operand.vmem [shape: bf16[9,128,1152], index: 0, kind: input, shape index: {}]   ;;  %s7014_s1 = inlined_call_operand.vmem [shape: bf16[9,1152,512], index: 1, kind: input, shape index: {}]   ;;  %s7015_s2 = inlined_call_operand.vmem [shape: f32[1,512], index: 2, kind: input, shape index: {}]   ;;  %s7016_s3 = inlined_call_operand.vmem [shape: f32[1,512], index: 3, kind: input, shape index: {}]   ;;  %s7017_s4 = inlined_call_operand.vmem [shape: f32[1,512], index: 4, kind: input, shape index: {}]   ;;  %s7018_s5 = inlined_call_operand.vmem [shape: f32[128,512], index: 5, kind: output, shape index: {}]  }
   0x1   :  { %7060 = sst [smem:[#allocation46_spill]] %s7014_s1 }
   0x2   :  { %s5204_s18 = smov 0   ;;  %s5206_s19 = smov 0  }
   0x3   :  { %s5208_s20 = smov 0   ;;  %s5210_s21 = smov 0  }
   0x4   :  { %s5212_s22 = smov 0   ;;  %s5214_s23 = smov 0  }
   0x5   :  { %s5216_s24 = smov 0   ;;  %s5218_s25 = smov 0  }
   0x6   :  { %s5220_s26 = smov 0  }
   0x7 LB: > { %7061 = sst [smem:[#allocation5_spill]] %s5166_s25  ;;  %s27_s27 = sadd.s32 1, %s5162_s24  ;;  %s5170_s26 = sphi %s5220_s26, %s15_s26   ;;  %s5166_s25 = sphi %s5218_s25, %s7145_s25   ;;  %s5162_s24 = sphi %s5216_s24, %s7151_s24   ;;  %s5158_s23 = sphi %s5214_s23, %s7143_s23   ;;  %s5154_s22 = sphi %s5212_s22, %s7150_s22   ;;  %s5150_s21 = sphi %s5210_s21, %s7149_s21   ;;  %s5146_s20 = sphi %s5208_s20, %s7148_s20   ;;  %s5142_s19 = sphi %s5206_s19, %s7147_s19   ;;  %s5138_s18 = sphi %s5204_s18, %s7146_s18  }
   0x8   : > { %p28_p0 = scmp.ge.s32.totalorder %s27_s27, 9  ;;  %s30_s28 = sadd.s32 1, %s5166_s25 }
   0x9   : > { %p78_p1 = scmp.ne.s32.totalorder %s5150_s21, %s5146_s20  ;;  %s3900_s29 = sadd.s32 4294967295, %s5170_s26  }
   0xa   : > { %s7153_s27 = smov (%p28_p0, %s27_s27), 0  ;;  %s7155_s28 = smov (!%p28_p0, %s30_s28), %s5166_s25 }
   0xb   : > { %7062 = sst [smem:[#allocation6_spill]] %s7153_s27  ;;  %p79_p2 = scmp.eq.s32.totalorder %s5170_s26, 0 }
   0xc   : > { %p32_p3 = scmp.ge.s32.totalorder %s7155_s28, 2  ;;  %s66_s30 = ssub.s32 %s5162_s24, %s7153_s27 }
   0xd   : > { %p5260_p4 = por %p79_p2, %p78_p1  ;;  %p187_p5 = scmp.ne.s32.totalorder %s5142_s19, %s5138_s18 }
   0xe   : > { %s7157_s28 = smov (%p32_p3, %s7155_s28), 0  ;;  %s71_s7 = sadd.s32 1, %s5150_s21 }
   0xf   : > { %7064 = sst [smem:[#allocation7_spill]] %s7157_s28  ;;  %p188_p6 = scmp.eq.s32.totalorder %s3900_s29, 17 }
  0x10   : > { %s67_s8 = ssub.s32 %s5166_s25, %s7157_s28  ;;  %s177_s9 = sadd.s32 1, %s5142_s19 }
  0x11   : > { %s68_s10 = sor.u32 %s67_s8, %s66_s30  ;;  %p175_p7 = scmp.eq.s32.totalorder %s67_s8, 0 }
  0x12   : > { %p69_p8 = scmp.eq.s32.totalorder %s68_s10, 0  ;;  %p5272_p9 = por %p188_p6, %p187_p5 }
  0x13   : > { %s5277_s12 = scalar_select %p175_p7, %s5142_s19, %s177_s9  }
  0x14   : > { %s5280_s13 = scalar_select %p69_p8, %s5150_s21, %s71_s7  }
  0x15   : > { %p3903_p10 = scmp.ge.s32.totalorder %s5170_s26, 18 }
  0x17   : > { %210 = sbr.rel (%p3903_p10) target bundleno = 182 (0xb6), region = 16 }
  0x1c   : > { %227 = sbr.rel (!%p5260_p4) target bundleno = 182 (0xb6), region = 24  ;;  %s229_s14 = sand.u32 (%p5260_p4), 1, %s5150_s21  }
  0x1d   : > { %s5016_s15 = smul.u32 (%p5260_p4), 1152, %s229_s14  ;;  %s3904_s16 = sshll.u32 (%p5260_p4), %s5166_s25, 1 }
  0x1e   : > { %s5017_s17 = smul.u32 (%p5260_p4), 576, %s5162_s24  ;;  %s7066_s1 = sld [smem:[#allocation46_spill]] (%p5260_p4) }
  0x1f   : > { %s5296_s6 = scalar_lea.vmem (%p5260_p4), [#allocation3], %s5016_s15 }
  0x20   : > { %s234_s29 = sadd.s32 (%p5260_p4), %s5017_s17, %s3904_s16 }
  0x21   : > { %s3905_s30 = sshll.u32 %s234_s29, 2 }
  0x24   : > { %s5291_s7 = scalar_lea.vmem %s7066_s1, %s3905_s30 }
  0x25   : > { %v551_v0 = vld [vmem:[%s5291_s7] sm:$0xff]  ;;  %v553_v1 = vld [vmem:[%s5291_s7 + $0x10] sm:$0xff] }
  0x26   : > { %v555_v2 = vld [vmem:[%s5291_s7 + $0x20] sm:$0xff]  ;;  %552 = vst [vmem:[%s5296_s6] sm:$0xff] %v551_v0  ;;  %v557_v3 = vld [vmem:[%s5291_s7 + $0x30] sm:$0xff] }
  0x27   : > { %554 = vst [vmem:[%s5296_s6 + $0x8] sm:$0xff] %v553_v1  ;;  %v559_v4 = vld [vmem:[%s5291_s7 + $0x40] sm:$0xff]  ;;  %v561_v5 = vld [vmem:[%s5291_s7 + $0x50] sm:$0xff] }
  0x28   : > { %556 = vst [vmem:[%s5296_s6 + $0x10] sm:$0xff] %v555_v2  ;;  %v563_v6 = vld [vmem:[%s5291_s7 + $0x60] sm:$0xff]  ;;  %v565_v7 = vld [vmem:[%s5291_s7 + $0x70] sm:$0xff] }
  0x29   : > { %558 = vst [vmem:[%s5296_s6 + $0x18] sm:$0xff] %v557_v3  ;;  %v567_v8 = vld [vmem:[%s5291_s7 + $0x80] sm:$0xff]  ;;  %v569_v9 = vld [vmem:[%s5291_s7 + $0x90] sm:$0xff] }
  0x2a   : > { %560 = vst [vmem:[%s5296_s6 + $0x20] sm:$0xff] %v559_v4  ;;  %v571_v10 = vld [vmem:[%s5291_s7 + $0xa0] sm:$0xff]  ;;  %v573_v11 = vld [vmem:[%s5291_s7 + $0xb0] sm:$0xff] }
  0x2b   : > { %562 = vst [vmem:[%s5296_s6 + $0x28] sm:$0xff] %v561_v5  ;;  %v575_v12 = vld [vmem:[%s5291_s7 + $0xc0] sm:$0xff]  ;;  %v577_v13 = vld [vmem:[%s5291_s7 + $0xd0] sm:$0xff] }
  0x2c   : > { %564 = vst [vmem:[%s5296_s6 + $0x30] sm:$0xff] %v563_v6  ;;  %v579_v14 = vld [vmem:[%s5291_s7 + $0xe0] sm:$0xff]  ;;  %v581_v15 = vld [vmem:[%s5291_s7 + $0xf0] sm:$0xff] }
  0x2d   : > { %566 = vst [vmem:[%s5296_s6 + $0x38] sm:$0xff] %v565_v7  ;;  %v583_v16 = vld [vmem:[%s5291_s7 + $0x100] sm:$0xff]  ;;  %v585_v17 = vld [vmem:[%s5291_s7 + $0x110] sm:$0xff] }
  0x2e   : > { %568 = vst [vmem:[%s5296_s6 + $0x40] sm:$0xff] %v567_v8  ;;  %v587_v18 = vld [vmem:[%s5291_s7 + $0x120] sm:$0xff]  ;;  %v589_v19 = vld [vmem:[%s5291_s7 + $0x130] sm:$0xff] }
  0x2f   : > { %570 = vst [vmem:[%s5296_s6 + $0x48] sm:$0xff] %v569_v9  ;;  %v591_v20 = vld [vmem:[%s5291_s7 + $0x140] sm:$0xff]  ;;  %v593_v21 = vld [vmem:[%s5291_s7 + $0x150] sm:$0xff] }
  0x30   : > { %572 = vst [vmem:[%s5296_s6 + $0x50] sm:$0xff] %v571_v10  ;;  %v595_v22 = vld [vmem:[%s5291_s7 + $0x160] sm:$0xff]  ;;  %v597_v23 = vld [vmem:[%s5291_s7 + $0x170] sm:$0xff] }
  0x31   : > { %574 = vst [vmem:[%s5296_s6 + $0x58] sm:$0xff] %v573_v11  ;;  %v599_v24 = vld [vmem:[%s5291_s7 + $0x180] sm:$0xff]  ;;  %v601_v25 = vld [vmem:[%s5291_s7 + $0x190] sm:$0xff] }
  0x32   : > { %576 = vst [vmem:[%s5296_s6 + $0x60] sm:$0xff] %v575_v12  ;;  %v603_v26 = vld [vmem:[%s5291_s7 + $0x1a0] sm:$0xff]  ;;  %v605_v27 = vld [vmem:[%s5291_s7 + $0x1b0] sm:$0xff] }
  0x33   : > { %578 = vst [vmem:[%s5296_s6 + $0x68] sm:$0xff] %v577_v13  ;;  %v607_v28 = vld [vmem:[%s5291_s7 + $0x1c0] sm:$0xff]  ;;  %v609_v29 = vld [vmem:[%s5291_s7 + $0x1d0] sm:$0xff] }
  0x34   : > { %580 = vst [vmem:[%s5296_s6 + $0x70] sm:$0xff] %v579_v14  ;;  %v611_v30 = vld [vmem:[%s5291_s7 + $0x1e0] sm:$0xff]  ;;  %v613_v31 = vld [vmem:[%s5291_s7 + $0x1f0] sm:$0xff] }
  0x35   : > { %582 = vst [vmem:[%s5296_s6 + $0x78] sm:$0xff] %v581_v15  ;;  %v615_v32 = vld [vmem:[%s5291_s7 + $0x200] sm:$0xff]  ;;  %v617_v33 = vld [vmem:[%s5291_s7 + $0x210] sm:$0xff] }
  0x36   : > { %584 = vst [vmem:[%s5296_s6 + $0x80] sm:$0xff] %v583_v16  ;;  %v619_v34 = vld [vmem:[%s5291_s7 + $0x220] sm:$0xff]  ;;  %v621_v35 = vld [vmem:[%s5291_s7 + $0x230] sm:$0xff] }
  0x37   : > { %586 = vst [vmem:[%s5296_s6 + $0x88] sm:$0xff] %v585_v17  ;;  %v623_v36 = vld [vmem:[%s5291_s7 + $0x240] sm:$0xff]  ;;  %v625_v37 = vld [vmem:[%s5291_s7 + $0x250] sm:$0xff] }
  0x38   : > { %588 = vst [vmem:[%s5296_s6 + $0x90] sm:$0xff] %v587_v18  ;;  %v627_v38 = vld [vmem:[%s5291_s7 + $0x260] sm:$0xff]  ;;  %v629_v39 = vld [vmem:[%s5291_s7 + $0x270] sm:$0xff] }
  0x39   : > { %590 = vst [vmem:[%s5296_s6 + $0x98] sm:$0xff] %v589_v19  ;;  %v631_v40 = vld [vmem:[%s5291_s7 + $0x280] sm:$0xff]  ;;  %v633_v41 = vld [vmem:[%s5291_s7 + $0x290] sm:$0xff] }
  0x3a   : > { %592 = vst [vmem:[%s5296_s6 + $0xa0] sm:$0xff] %v591_v20  ;;  %v635_v42 = vld [vmem:[%s5291_s7 + $0x2a0] sm:$0xff]  ;;  %v637_v43 = vld [vmem:[%s5291_s7 + $0x2b0] sm:$0xff] }
  0x3b   : > { %594 = vst [vmem:[%s5296_s6 + $0xa8] sm:$0xff] %v593_v21  ;;  %v639_v44 = vld [vmem:[%s5291_s7 + $0x2c0] sm:$0xff]  ;;  %v641_v45 = vld [vmem:[%s5291_s7 + $0x2d0] sm:$0xff] }
  0x3c   : > { %596 = vst [vmem:[%s5296_s6 + $0xb0] sm:$0xff] %v595_v22  ;;  %v643_v46 = vld [vmem:[%s5291_s7 + $0x2e0] sm:$0xff]  ;;  %v645_v47 = vld [vmem:[%s5291_s7 + $0x2f0] sm:$0xff] }
  0x3d   : > { %598 = vst [vmem:[%s5296_s6 + $0xb8] sm:$0xff] %v597_v23  ;;  %v647_v48 = vld [vmem:[%s5291_s7 + $0x300] sm:$0xff]  ;;  %v649_v49 = vld [vmem:[%s5291_s7 + $0x310] sm:$0xff] }
  0x3e   : > { %600 = vst [vmem:[%s5296_s6 + $0xc0] sm:$0xff] %v599_v24  ;;  %v651_v50 = vld [vmem:[%s5291_s7 + $0x320] sm:$0xff]  ;;  %v653_v51 = vld [vmem:[%s5291_s7 + $0x330] sm:$0xff] }
  0x3f   : > { %602 = vst [vmem:[%s5296_s6 + $0xc8] sm:$0xff] %v601_v25  ;;  %v655_v52 = vld [vmem:[%s5291_s7 + $0x340] sm:$0xff]  ;;  %v657_v53 = vld [vmem:[%s5291_s7 + $0x350] sm:$0xff] }
  0x40   : > { %604 = vst [vmem:[%s5296_s6 + $0xd0] sm:$0xff] %v603_v26  ;;  %v659_v54 = vld [vmem:[%s5291_s7 + $0x360] sm:$0xff]  ;;  %v661_v55 = vld [vmem:[%s5291_s7 + $0x370] sm:$0xff] }
  0x41   : > { %606 = vst [vmem:[%s5296_s6 + $0xd8] sm:$0xff] %v605_v27  ;;  %v663_v56 = vld [vmem:[%s5291_s7 + $0x380] sm:$0xff]  ;;  %v665_v57 = vld [vmem:[%s5291_s7 + $0x390] sm:$0xff] }
  0x42   : > { %608 = vst [vmem:[%s5296_s6 + $0xe0] sm:$0xff] %v607_v28  ;;  %v667_v58 = vld [vmem:[%s5291_s7 + $0x3a0] sm:$0xff]  ;;  %v669_v59 = vld [vmem:[%s5291_s7 + $0x3b0] sm:$0xff] }
  0x43   : > { %610 = vst [vmem:[%s5296_s6 + $0xe8] sm:$0xff] %v609_v29  ;;  %v671_v60 = vld [vmem:[%s5291_s7 + $0x3c0] sm:$0xff]  ;;  %v673_v61 = vld [vmem:[%s5291_s7 + $0x3d0] sm:$0xff] }
  0x44   : > { %612 = vst [vmem:[%s5296_s6 + $0xf0] sm:$0xff] %v611_v30  ;;  %v675_v62 = vld [vmem:[%s5291_s7 + $0x3e0] sm:$0xff]  ;;  %v677_v63 = vld [vmem:[%s5291_s7 + $0x3f0] sm:$0xff] }
  0x45   : > { %614 = vst [vmem:[%s5296_s6 + $0xf8] sm:$0xff] %v613_v31  ;;  %v679_v0 = vld [vmem:[%s5291_s7 + $0x400] sm:$0xff]  ;;  %v681_v1 = vld [vmem:[%s5291_s7 + $0x410] sm:$0xff] }
  0x46   : > { %616 = vst [vmem:[%s5296_s6 + $0x100] sm:$0xff] %v615_v32  ;;  %v683_v2 = vld [vmem:[%s5291_s7 + $0x420] sm:$0xff]  ;;  %v685_v3 = vld [vmem:[%s5291_s7 + $0x430] sm:$0xff] }
  0x47   : > { %618 = vst [vmem:[%s5296_s6 + $0x108] sm:$0xff] %v617_v33  ;;  %v687_v4 = vld [vmem:[%s5291_s7 + $0x440] sm:$0xff]  ;;  %v689_v5 = vld [vmem:[%s5291_s7 + $0x450] sm:$0xff] }
  0x48   : > { %620 = vst [vmem:[%s5296_s6 + $0x110] sm:$0xff] %v619_v34  ;;  %v691_v6 = vld [vmem:[%s5291_s7 + $0x460] sm:$0xff]  ;;  %v693_v7 = vld [vmem:[%s5291_s7 + $0x470] sm:$0xff] }
  0x49   : > { %622 = vst [vmem:[%s5296_s6 + $0x118] sm:$0xff] %v621_v35  ;;  %v695_v8 = vld [vmem:[%s5291_s7 + $0x480] sm:$0xff]  ;;  %v697_v9 = vld [vmem:[%s5291_s7 + $0x490] sm:$0xff] }
  0x4a   : > { %624 = vst [vmem:[%s5296_s6 + $0x120] sm:$0xff] %v623_v36  ;;  %v699_v10 = vld [vmem:[%s5291_s7 + $0x4a0] sm:$0xff]  ;;  %v701_v11 = vld [vmem:[%s5291_s7 + $0x4b0] sm:$0xff] }
  0x4b   : > { %626 = vst [vmem:[%s5296_s6 + $0x128] sm:$0xff] %v625_v37  ;;  %v703_v12 = vld [vmem:[%s5291_s7 + $0x4c0] sm:$0xff]  ;;  %v705_v13 = vld [vmem:[%s5291_s7 + $0x4d0] sm:$0xff] }
  0x4c   : > { %628 = vst [vmem:[%s5296_s6 + $0x130] sm:$0xff] %v627_v38  ;;  %v707_v14 = vld [vmem:[%s5291_s7 + $0x4e0] sm:$0xff]  ;;  %v709_v15 = vld [vmem:[%s5291_s7 + $0x4f0] sm:$0xff] }
  0x4d   : > { %630 = vst [vmem:[%s5296_s6 + $0x138] sm:$0xff] %v629_v39  ;;  %v711_v16 = vld [vmem:[%s5291_s7 + $0x500] sm:$0xff]  ;;  %v713_v17 = vld [vmem:[%s5291_s7 + $0x510] sm:$0xff] }
  0x4e   : > { %632 = vst [vmem:[%s5296_s6 + $0x140] sm:$0xff] %v631_v40  ;;  %v715_v18 = vld [vmem:[%s5291_s7 + $0x520] sm:$0xff]  ;;  %v717_v19 = vld [vmem:[%s5291_s7 + $0x530] sm:$0xff] }
  0x4f   : > { %634 = vst [vmem:[%s5296_s6 + $0x148] sm:$0xff] %v633_v41  ;;  %v719_v20 = vld [vmem:[%s5291_s7 + $0x540] sm:$0xff]  ;;  %v721_v21 = vld [vmem:[%s5291_s7 + $0x550] sm:$0xff] }
  0x50   : > { %636 = vst [vmem:[%s5296_s6 + $0x150] sm:$0xff] %v635_v42  ;;  %v723_v22 = vld [vmem:[%s5291_s7 + $0x560] sm:$0xff]  ;;  %v725_v23 = vld [vmem:[%s5291_s7 + $0x570] sm:$0xff] }
  0x51   : > { %638 = vst [vmem:[%s5296_s6 + $0x158] sm:$0xff] %v637_v43  ;;  %v727_v24 = vld [vmem:[%s5291_s7 + $0x580] sm:$0xff]  ;;  %v729_v25 = vld [vmem:[%s5291_s7 + $0x590] sm:$0xff] }
  0x52   : > { %640 = vst [vmem:[%s5296_s6 + $0x160] sm:$0xff] %v639_v44  ;;  %v731_v26 = vld [vmem:[%s5291_s7 + $0x5a0] sm:$0xff]  ;;  %v733_v27 = vld [vmem:[%s5291_s7 + $0x5b0] sm:$0xff] }
  0x53   : > { %642 = vst [vmem:[%s5296_s6 + $0x168] sm:$0xff] %v641_v45  ;;  %v735_v28 = vld [vmem:[%s5291_s7 + $0x5c0] sm:$0xff]  ;;  %v737_v29 = vld [vmem:[%s5291_s7 + $0x5d0] sm:$0xff] }
  0x54   : > { %644 = vst [vmem:[%s5296_s6 + $0x170] sm:$0xff] %v643_v46  ;;  %v739_v30 = vld [vmem:[%s5291_s7 + $0x5e0] sm:$0xff]  ;;  %v741_v31 = vld [vmem:[%s5291_s7 + $0x5f0] sm:$0xff] }
  0x55   : > { %646 = vst [vmem:[%s5296_s6 + $0x178] sm:$0xff] %v645_v47  ;;  %v743_v32 = vld [vmem:[%s5291_s7 + $0x600] sm:$0xff]  ;;  %v745_v33 = vld [vmem:[%s5291_s7 + $0x610] sm:$0xff] }
  0x56   : > { %648 = vst [vmem:[%s5296_s6 + $0x180] sm:$0xff] %v647_v48  ;;  %v747_v34 = vld [vmem:[%s5291_s7 + $0x620] sm:$0xff]  ;;  %v749_v35 = vld [vmem:[%s5291_s7 + $0x630] sm:$0xff] }
  0x57   : > { %650 = vst [vmem:[%s5296_s6 + $0x188] sm:$0xff] %v649_v49  ;;  %v751_v36 = vld [vmem:[%s5291_s7 + $0x640] sm:$0xff]  ;;  %v753_v37 = vld [vmem:[%s5291_s7 + $0x650] sm:$0xff] }
  0x58   : > { %652 = vst [vmem:[%s5296_s6 + $0x190] sm:$0xff] %v651_v50  ;;  %v755_v38 = vld [vmem:[%s5291_s7 + $0x660] sm:$0xff]  ;;  %v757_v39 = vld [vmem:[%s5291_s7 + $0x670] sm:$0xff] }
  0x59   : > { %654 = vst [vmem:[%s5296_s6 + $0x198] sm:$0xff] %v653_v51  ;;  %v759_v40 = vld [vmem:[%s5291_s7 + $0x680] sm:$0xff]  ;;  %v761_v41 = vld [vmem:[%s5291_s7 + $0x690] sm:$0xff] }
  0x5a   : > { %656 = vst [vmem:[%s5296_s6 + $0x1a0] sm:$0xff] %v655_v52  ;;  %v763_v42 = vld [vmem:[%s5291_s7 + $0x6a0] sm:$0xff]  ;;  %v765_v43 = vld [vmem:[%s5291_s7 + $0x6b0] sm:$0xff] }
  0x5b   : > { %658 = vst [vmem:[%s5296_s6 + $0x1a8] sm:$0xff] %v657_v53  ;;  %v767_v44 = vld [vmem:[%s5291_s7 + $0x6c0] sm:$0xff]  ;;  %v769_v45 = vld [vmem:[%s5291_s7 + $0x6d0] sm:$0xff] }
  0x5c   : > { %660 = vst [vmem:[%s5296_s6 + $0x1b0] sm:$0xff] %v659_v54  ;;  %v771_v46 = vld [vmem:[%s5291_s7 + $0x6e0] sm:$0xff]  ;;  %v773_v47 = vld [vmem:[%s5291_s7 + $0x6f0] sm:$0xff] }
  0x5d   : > { %662 = vst [vmem:[%s5296_s6 + $0x1b8] sm:$0xff] %v661_v55  ;;  %v775_v48 = vld [vmem:[%s5291_s7 + $0x700] sm:$0xff]  ;;  %v777_v49 = vld [vmem:[%s5291_s7 + $0x710] sm:$0xff] }
  0x5e   : > { %664 = vst [vmem:[%s5296_s6 + $0x1c0] sm:$0xff] %v663_v56  ;;  %v779_v50 = vld [vmem:[%s5291_s7 + $0x720] sm:$0xff]  ;;  %v781_v51 = vld [vmem:[%s5291_s7 + $0x730] sm:$0xff] }
  0x5f   : > { %666 = vst [vmem:[%s5296_s6 + $0x1c8] sm:$0xff] %v665_v57  ;;  %v783_v52 = vld [vmem:[%s5291_s7 + $0x740] sm:$0xff]  ;;  %v785_v53 = vld [vmem:[%s5291_s7 + $0x750] sm:$0xff] }
  0x60   : > { %668 = vst [vmem:[%s5296_s6 + $0x1d0] sm:$0xff] %v667_v58  ;;  %v787_v54 = vld [vmem:[%s5291_s7 + $0x760] sm:$0xff]  ;;  %v789_v55 = vld [vmem:[%s5291_s7 + $0x770] sm:$0xff] }
  0x61   : > { %670 = vst [vmem:[%s5296_s6 + $0x1d8] sm:$0xff] %v669_v59  ;;  %v791_v56 = vld [vmem:[%s5291_s7 + $0x780] sm:$0xff]  ;;  %v793_v57 = vld [vmem:[%s5291_s7 + $0x790] sm:$0xff] }
  0x62   : > { %672 = vst [vmem:[%s5296_s6 + $0x1e0] sm:$0xff] %v671_v60  ;;  %v795_v58 = vld [vmem:[%s5291_s7 + $0x7a0] sm:$0xff]  ;;  %v797_v59 = vld [vmem:[%s5291_s7 + $0x7b0] sm:$0xff] }
  0x63   : > { %674 = vst [vmem:[%s5296_s6 + $0x1e8] sm:$0xff] %v673_v61  ;;  %v799_v60 = vld [vmem:[%s5291_s7 + $0x7c0] sm:$0xff]  ;;  %v801_v61 = vld [vmem:[%s5291_s7 + $0x7d0] sm:$0xff] }
  0x64   : > { %676 = vst [vmem:[%s5296_s6 + $0x1f0] sm:$0xff] %v675_v62  ;;  %v803_v62 = vld [vmem:[%s5291_s7 + $0x7e0] sm:$0xff] }
  0x65   : > { %678 = vst [vmem:[%s5296_s6 + $0x1f8] sm:$0xff] %v677_v63  ;;  %v805_v63 = vld [vmem:[%s5291_s7 + $0x7f0] sm:$0xff] }
  0x66   : > { %680 = vst [vmem:[%s5296_s6 + $0x200] sm:$0xff] %v679_v0  ;;  %v807_v0 = vld [vmem:[%s5291_s7 + $0x800] sm:$0xff] }
  0x67   : > { %682 = vst [vmem:[%s5296_s6 + $0x208] sm:$0xff] %v681_v1  ;;  %v809_v1 = vld [vmem:[%s5291_s7 + $0x810] sm:$0xff] }
  0x68   : > { %684 = vst [vmem:[%s5296_s6 + $0x210] sm:$0xff] %v683_v2  ;;  %v811_v2 = vld [vmem:[%s5291_s7 + $0x820] sm:$0xff] }
  0x69   : > { %686 = vst [vmem:[%s5296_s6 + $0x218] sm:$0xff] %v685_v3  ;;  %v813_v3 = vld [vmem:[%s5291_s7 + $0x830] sm:$0xff] }
  0x6a   : > { %688 = vst [vmem:[%s5296_s6 + $0x220] sm:$0xff] %v687_v4  ;;  %v815_v4 = vld [vmem:[%s5291_s7 + $0x840] sm:$0xff] }
  0x6b   : > { %690 = vst [vmem:[%s5296_s6 + $0x228] sm:$0xff] %v689_v5  ;;  %v817_v5 = vld [vmem:[%s5291_s7 + $0x850] sm:$0xff] }
  0x6c   : > { %692 = vst [vmem:[%s5296_s6 + $0x230] sm:$0xff] %v691_v6  ;;  %v819_v6 = vld [vmem:[%s5291_s7 + $0x860] sm:$0xff] }
  0x6d   : > { %694 = vst [vmem:[%s5296_s6 + $0x238] sm:$0xff] %v693_v7  ;;  %v821_v7 = vld [vmem:[%s5291_s7 + $0x870] sm:$0xff] }
  0x6e   : > { %696 = vst [vmem:[%s5296_s6 + $0x240] sm:$0xff] %v695_v8  ;;  %v823_v8 = vld [vmem:[%s5291_s7 + $0x880] sm:$0xff] }
  0x6f   : > { %698 = vst [vmem:[%s5296_s6 + $0x248] sm:$0xff] %v697_v9  ;;  %v825_v9 = vld [vmem:[%s5291_s7 + $0x890] sm:$0xff] }
  0x70   : > { %700 = vst [vmem:[%s5296_s6 + $0x250] sm:$0xff] %v699_v10  ;;  %v827_v10 = vld [vmem:[%s5291_s7 + $0x8a0] sm:$0xff] }
  0x71   : > { %702 = vst [vmem:[%s5296_s6 + $0x258] sm:$0xff] %v701_v11  ;;  %v829_v11 = vld [vmem:[%s5291_s7 + $0x8b0] sm:$0xff] }
  0x72   : > { %704 = vst [vmem:[%s5296_s6 + $0x260] sm:$0xff] %v703_v12  ;;  %v831_v12 = vld [vmem:[%s5291_s7 + $0x8c0] sm:$0xff] }
  0x73   : > { %706 = vst [vmem:[%s5296_s6 + $0x268] sm:$0xff] %v705_v13  ;;  %v833_v13 = vld [vmem:[%s5291_s7 + $0x8d0] sm:$0xff] }
  0x74   : > { %708 = vst [vmem:[%s5296_s6 + $0x270] sm:$0xff] %v707_v14  ;;  %v835_v14 = vld [vmem:[%s5291_s7 + $0x8e0] sm:$0xff] }
  0x75   : > { %710 = vst [vmem:[%s5296_s6 + $0x278] sm:$0xff] %v709_v15  ;;  %v837_v15 = vld [vmem:[%s5291_s7 + $0x8f0] sm:$0xff] }
  0x76   : > { %712 = vst [vmem:[%s5296_s6 + $0x280] sm:$0xff] %v711_v16 }
  0x77   : > { %714 = vst [vmem:[%s5296_s6 + $0x288] sm:$0xff] %v713_v17 }
  0x78   : > { %716 = vst [vmem:[%s5296_s6 + $0x290] sm:$0xff] %v715_v18 }
  0x79   : > { %718 = vst [vmem:[%s5296_s6 + $0x298] sm:$0xff] %v717_v19 }
  0x7a   : > { %720 = vst [vmem:[%s5296_s6 + $0x2a0] sm:$0xff] %v719_v20 }
  0x7b   : > { %722 = vst [vmem:[%s5296_s6 + $0x2a8] sm:$0xff] %v721_v21 }
  0x7c   : > { %724 = vst [vmem:[%s5296_s6 + $0x2b0] sm:$0xff] %v723_v22 }
  0x7d   : > { %726 = vst [vmem:[%s5296_s6 + $0x2b8] sm:$0xff] %v725_v23 }
  0x7e   : > { %728 = vst [vmem:[%s5296_s6 + $0x2c0] sm:$0xff] %v727_v24 }
  0x7f   : > { %730 = vst [vmem:[%s5296_s6 + $0x2c8] sm:$0xff] %v729_v25 }
  0x80   : > { %732 = vst [vmem:[%s5296_s6 + $0x2d0] sm:$0xff] %v731_v26 }
  0x81   : > { %734 = vst [vmem:[%s5296_s6 + $0x2d8] sm:$0xff] %v733_v27 }
  0x82   : > { %736 = vst [vmem:[%s5296_s6 + $0x2e0] sm:$0xff] %v735_v28 }
  0x83   : > { %738 = vst [vmem:[%s5296_s6 + $0x2e8] sm:$0xff] %v737_v29 }
  0x84   : > { %740 = vst [vmem:[%s5296_s6 + $0x2f0] sm:$0xff] %v739_v30 }
  0x85   : > { %742 = vst [vmem:[%s5296_s6 + $0x2f8] sm:$0xff] %v741_v31 }
  0x86   : > { %744 = vst [vmem:[%s5296_s6 + $0x300] sm:$0xff] %v743_v32 }
  0x87   : > { %746 = vst [vmem:[%s5296_s6 + $0x308] sm:$0xff] %v745_v33 }
  0x88   : > { %748 = vst [vmem:[%s5296_s6 + $0x310] sm:$0xff] %v747_v34 }
  0x89   : > { %750 = vst [vmem:[%s5296_s6 + $0x318] sm:$0xff] %v749_v35 }
  0x8a   : > { %752 = vst [vmem:[%s5296_s6 + $0x320] sm:$0xff] %v751_v36 }
  0x8b   : > { %754 = vst [vmem:[%s5296_s6 + $0x328] sm:$0xff] %v753_v37 }
  0x8c   : > { %756 = vst [vmem:[%s5296_s6 + $0x330] sm:$0xff] %v755_v38 }
  0x8d   : > { %758 = vst [vmem:[%s5296_s6 + $0x338] sm:$0xff] %v757_v39 }
  0x8e   : > { %760 = vst [vmem:[%s5296_s6 + $0x340] sm:$0xff] %v759_v40 }
  0x8f   : > { %762 = vst [vmem:[%s5296_s6 + $0x348] sm:$0xff] %v761_v41 }
  0x90   : > { %764 = vst [vmem:[%s5296_s6 + $0x350] sm:$0xff] %v763_v42 }
  0x91   : > { %766 = vst [vmem:[%s5296_s6 + $0x358] sm:$0xff] %v765_v43 }
  0x92   : > { %768 = vst [vmem:[%s5296_s6 + $0x360] sm:$0xff] %v767_v44 }
  0x93   : > { %770 = vst [vmem:[%s5296_s6 + $0x368] sm:$0xff] %v769_v45 }
  0x94   : > { %772 = vst [vmem:[%s5296_s6 + $0x370] sm:$0xff] %v771_v46 }
  0x95   : > { %774 = vst [vmem:[%s5296_s6 + $0x378] sm:$0xff] %v773_v47 }
  0x96   : > { %776 = vst [vmem:[%s5296_s6 + $0x380] sm:$0xff] %v775_v48 }
  0x97   : > { %778 = vst [vmem:[%s5296_s6 + $0x388] sm:$0xff] %v777_v49 }
  0x98   : > { %780 = vst [vmem:[%s5296_s6 + $0x390] sm:$0xff] %v779_v50 }
  0x99   : > { %782 = vst [vmem:[%s5296_s6 + $0x398] sm:$0xff] %v781_v51 }
  0x9a   : > { %784 = vst [vmem:[%s5296_s6 + $0x3a0] sm:$0xff] %v783_v52 }
  0x9b   : > { %786 = vst [vmem:[%s5296_s6 + $0x3a8] sm:$0xff] %v785_v53 }
  0x9c   : > { %788 = vst [vmem:[%s5296_s6 + $0x3b0] sm:$0xff] %v787_v54 }
  0x9d   : > { %790 = vst [vmem:[%s5296_s6 + $0x3b8] sm:$0xff] %v789_v55 }
  0x9e   : > { %792 = vst [vmem:[%s5296_s6 + $0x3c0] sm:$0xff] %v791_v56 }
  0x9f   : > { %794 = vst [vmem:[%s5296_s6 + $0x3c8] sm:$0xff] %v793_v57 }
  0xa0   : > { %796 = vst [vmem:[%s5296_s6 + $0x3d0] sm:$0xff] %v795_v58 }
  0xa1   : > { %798 = vst [vmem:[%s5296_s6 + $0x3d8] sm:$0xff] %v797_v59 }
  0xa2   : > { %800 = vst [vmem:[%s5296_s6 + $0x3e0] sm:$0xff] %v799_v60 }
  0xa3   : > { %802 = vst [vmem:[%s5296_s6 + $0x3e8] sm:$0xff] %v801_v61 }
  0xa4   : > { %804 = vst [vmem:[%s5296_s6 + $0x3f0] sm:$0xff] %v803_v62 }
  0xa5   : > { %806 = vst [vmem:[%s5296_s6 + $0x3f8] sm:$0xff] %v805_v63 }
  0xa6   : > { %808 = vst [vmem:[%s5296_s6 + $0x400] sm:$0xff] %v807_v0 }
  0xa7   : > { %810 = vst [vmem:[%s5296_s6 + $0x408] sm:$0xff] %v809_v1 }
  0xa8   : > { %812 = vst [vmem:[%s5296_s6 + $0x410] sm:$0xff] %v811_v2 }
  0xa9   : > { %814 = vst [vmem:[%s5296_s6 + $0x418] sm:$0xff] %v813_v3 }
  0xaa   : > { %816 = vst [vmem:[%s5296_s6 + $0x420] sm:$0xff] %v815_v4 }
  0xab   : > { %818 = vst [vmem:[%s5296_s6 + $0x428] sm:$0xff] %v817_v5 }
  0xac   : > { %820 = vst [vmem:[%s5296_s6 + $0x430] sm:$0xff] %v819_v6 }
  0xad   : > { %822 = vst [vmem:[%s5296_s6 + $0x438] sm:$0xff] %v821_v7 }
  0xae   : > { %824 = vst [vmem:[%s5296_s6 + $0x440] sm:$0xff] %v823_v8 }
  0xaf   : > { %826 = vst [vmem:[%s5296_s6 + $0x448] sm:$0xff] %v825_v9 }
  0xb0   : > { %828 = vst [vmem:[%s5296_s6 + $0x450] sm:$0xff] %v827_v10 }
  0xb1   : > { %830 = vst [vmem:[%s5296_s6 + $0x458] sm:$0xff] %v829_v11 }
  0xb2   : > { %832 = vst [vmem:[%s5296_s6 + $0x460] sm:$0xff] %v831_v12 }
  0xb3   : > { %834 = vst [vmem:[%s5296_s6 + $0x468] sm:$0xff] %v833_v13 }
  0xb4   : > { %836 = vst [vmem:[%s5296_s6 + $0x470] sm:$0xff] %v835_v14 }
  0xb5   : > { %838 = vst [vmem:[%s5296_s6 + $0x478] sm:$0xff] %v837_v15 }
  0xb6 PF: > { %p3906_p11 = scmp.ge.s32.totalorder %s5170_s26, 1  ;;  %p867_p12 = scmp.lt.s32.totalorder %s5170_s26, 19 }
  0xb8   : > { %p868_p13 = pnand %p3906_p11, %p867_p12 }
  0xba   : > { %871 = sbr.rel (%p868_p13) target bundleno = 1142 (0x476), region = 74 }
  0xbf   : > { %s874_s10 = sand.u32 1, %s5146_s20   ;;  %s919_s14 = sand.u32 1, %s5138_s18  }
  0xc0   : > { %s5018_s15 = smul.u32 1152, %s874_s10  ;;  %s3907_s16 = sshll.u32 %s919_s14, 8 }
  0xc1   : > { %p923_p0 = scmp.lt.s32.totalorder %s5154_s22, 8  ;;  %s3909_s17 = sshll.u32 %s5158_s23, 1 }
  0xc2   : > { %p935_p1 = scmp.lt.s32.totalorder %s3909_s17, 3  ;;  %s5609_s25 = scalar_lea.vmem [#allocation3], %s5018_s15 }
  0xc3   : > { %s924_s29 = scalar_select %p923_p0, %s5154_s22, 8 }
  0xc4   : > { %s7159_s17 = smov (!%p935_p1, %s3909_s17), 3  ;;  %s5611_s8 = scalar_lea.vmem [#allocation4], %s3907_s16 }
  0xc5   : > { %s5019_s30 = smul.u32 576, %s924_s29  ;;  %s937_s18 = scalar_lea.vmem %s7015_s2, %s7159_s17 }
  0xc6   : > { %s942_s1 = scalar_lea.vmem %s7016_s3, %s7159_s17  ;;  %s947_s27 = scalar_lea.vmem %s7017_s4, %s7159_s17 }
  0xc7   : > { %s5595_s7 = scalar_lea.vmem %s7013_s0, %s5019_s30  ;;  %p3912_p2 = scmp.ne.s32.totalorder %s5154_s22, 0 }
  0xc9   : > { %954 = sbr.rel (%p3912_p2) target bundleno = 239 (0xef), region = 82 }
  0xce   : > { %v5172_v16 = vmov 0.0  }
  0xcf   : > { %955 = vst [vmem:[#allocation2 + $0xb0] sm:$0xff] %v5172_v16 }
  0xd0   : > { %956 = vst [vmem:[#allocation2] sm:$0xff] %v5172_v16 }
  0xd1   : > { %957 = vst [vmem:[#allocation2 + $0xd8] sm:$0xff] %v5172_v16 }
  0xd2   : > { %958 = vst [vmem:[#allocation2 + $0x18] sm:$0xff] %v5172_v16 }
  0xd3   : > { %959 = vst [vmem:[#allocation2 + $0x50] sm:$0xff] %v5172_v16 }
  0xd4   : > { %960 = vst [vmem:[#allocation2 + $0x68] sm:$0xff] %v5172_v16 }
  0xd5   : > { %961 = vst [vmem:[#allocation2 + $0x30] sm:$0xff] %v5172_v16 }
  0xd6   : > { %962 = vst [vmem:[#allocation2 + $0x48] sm:$0xff] %v5172_v16 }
  0xd7   : > { %963 = vst [vmem:[#allocation2 + $0x80] sm:$0xff] %v5172_v16 }
  0xd8   : > { %964 = vst [vmem:[#allocation2 + $0x88] sm:$0xff] %v5172_v16 }
  0xd9   : > { %965 = vst [vmem:[#allocation2 + $0xe8] sm:$0xff] %v5172_v16 }
  0xda   : > { %966 = vst [vmem:[#allocation2 + $0xb8] sm:$0xff] %v5172_v16 }
  0xdb   : > { %967 = vst [vmem:[#allocation2 + $0x60] sm:$0xff] %v5172_v16 }
  0xdc   : > { %968 = vst [vmem:[#allocation2 + $0xf0] sm:$0xff] %v5172_v16 }
  0xdd   : > { %969 = vst [vmem:[#allocation2 + $0x8] sm:$0xff] %v5172_v16 }
  0xde   : > { %970 = vst [vmem:[#allocation2 + $0x78] sm:$0xff] %v5172_v16 }
  0xdf   : > { %971 = vst [vmem:[#allocation2 + $0x38] sm:$0xff] %v5172_v16 }
  0xe0   : > { %972 = vst [vmem:[#allocation2 + $0x58] sm:$0xff] %v5172_v16 }
  0xe1   : > { %973 = vst [vmem:[#allocation2 + $0x40] sm:$0xff] %v5172_v16 }
  0xe2   : > { %974 = vst [vmem:[#allocation2 + $0xc8] sm:$0xff] %v5172_v16 }
  0xe3   : > { %975 = vst [vmem:[#allocation2 + $0xe0] sm:$0xff] %v5172_v16 }
  0xe4   : > { %976 = vst [vmem:[#allocation2 + $0x90] sm:$0xff] %v5172_v16 }
  0xe5   : > { %977 = vst [vmem:[#allocation2 + $0x70] sm:$0xff] %v5172_v16 }
  0xe6   : > { %978 = vst [vmem:[#allocation2 + $0xc0] sm:$0xff] %v5172_v16 }
  0xe7   : > { %979 = vst [vmem:[#allocation2 + $0xa8] sm:$0xff] %v5172_v16 }
  0xe8   : > { %980 = vst [vmem:[#allocation2 + $0xd0] sm:$0xff] %v5172_v16 }
  0xe9   : > { %981 = vst [vmem:[#allocation2 + $0x10] sm:$0xff] %v5172_v16 }
  0xea   : > { %982 = vst [vmem:[#allocation2 + $0x28] sm:$0xff] %v5172_v16 }
  0xeb   : > { %983 = vst [vmem:[#allocation2 + $0xa0] sm:$0xff] %v5172_v16 }
  0xec   : > { %984 = vst [vmem:[#allocation2 + $0xf8] sm:$0xff] %v5172_v16 }
  0xed   : > { %985 = vst [vmem:[#allocation2 + $0x20] sm:$0xff] %v5172_v16 }
  0xee   : > { %986 = vst [vmem:[#allocation2 + $0x98] sm:$0xff] %v5172_v16 }
  0xef PF: > { %v4259_v17 = vld [vmem:[%s5609_s25 + $0x70] sm:$0xf]  ;;  %v4870_v18 = vld [vmem:[%s5609_s25 + $0x74] sm:$0xf0]  ;;  %v4251_v22 = vld [vmem:[%s5609_s25 + $0x60] sm:$0xf] }
  0xf0   : > { %v4323_v19 = vld [vmem:[%s5609_s25 + $0xf0] sm:$0xf]  ;;  %v4260_v20 = vor.u32 %v4870_v18, %v4259_v17  ;;  %v4886_v21 = vld [vmem:[%s5609_s25 + $0xf4] sm:$0xf0]  ;;  %v4868_v23 = vld [vmem:[%s5609_s25 + $0x64] sm:$0xf0] }
  0xf1   : > { %v4324_v24 = vor.u32 %v4886_v21, %v4323_v19  ;;  %v4315_v25 = vld [vmem:[%s5609_s25 + $0xe0] sm:$0xf]  ;;  %v4884_v26 = vld [vmem:[%s5609_s25 + $0xe4] sm:$0xf0]  ;;  %v4252_v27 = vor.u32 %v4868_v23, %v4251_v22  ;;  %v4243_v29 = vld [vmem:[%s5609_s25 + $0x50] sm:$0xf] }
  0xf2   : > { %5000 = vmatpush.bf16.msra.mxu2 %v4260_v20  ;;  %2331 = vmatpush.bf16.msra.mxu0 %v4260_v20  ;;  %v4316_v28 = vor.u32 %v4884_v26, %v4315_v25  ;;  %v4866_v30 = vld [vmem:[%s5609_s25 + $0x54] sm:$0xf0]  ;;  %v4307_v31 = vld [vmem:[%s5609_s25 + $0xd0] sm:$0xf]  ;;  %v4235_v35 = vld [vmem:[%s5609_s25 + $0x40] sm:$0xf] }
  0xf3   : > { %5008 = vmatpush.bf16.msra.mxu3 %v4324_v24  ;;  %2380 = vmatpush.bf16.msra.mxu1 %v4324_v24  ;;  %v4882_v32 = vld [vmem:[%s5609_s25 + $0xd4] sm:$0xf0]  ;;  %v4244_v33 = vor.u32 %v4866_v30, %v4243_v29  ;;  %v4864_v36 = vld [vmem:[%s5609_s25 + $0x44] sm:$0xf0]  ;;  %v4299_v37 = vld [vmem:[%s5609_s25 + $0xc0] sm:$0xf] }
  0xf4   : > { %v4308_v34 = vor.u32 %v4882_v32, %v4307_v31  ;;  %v4880_v38 = vld [vmem:[%s5609_s25 + $0xc4] sm:$0xf0]  ;;  %v4236_v39 = vor.u32 %v4864_v36, %v4235_v35  ;;  %v4227_v41 = vld [vmem:[%s5609_s25 + $0x30] sm:$0xf]  ;;  %v4862_v42 = vld [vmem:[%s5609_s25 + $0x34] sm:$0xf0] }
  0xf5   : > { %v4300_v40 = vor.u32 %v4880_v38, %v4299_v37  ;;  %v4291_v43 = vld [vmem:[%s5609_s25 + $0xb0] sm:$0xf]  ;;  %v4878_v44 = vld [vmem:[%s5609_s25 + $0xb4] sm:$0xf0]  ;;  %v4228_v45 = vor.u32 %v4862_v42, %v4227_v41  ;;  %v4219_v47 = vld [vmem:[%s5609_s25 + $0x20] sm:$0xf] }
  0xf6   : > { %5001 = vmatpush.bf16.msra.mxu2 %v4252_v27  ;;  %2332 = vmatpush.bf16.msra.mxu0 %v4252_v27  ;;  %v4292_v46 = vor.u32 %v4878_v44, %v4291_v43  ;;  %v4860_v48 = vld [vmem:[%s5609_s25 + $0x24] sm:$0xf0]  ;;  %v4283_v49 = vld [vmem:[%s5609_s25 + $0xa0] sm:$0xf]  ;;  %v4211_v53 = vld [vmem:[%s5609_s25 + $0x10] sm:$0xf] }
  0xf7   : > { %5009 = vmatpush.bf16.msra.mxu3 %v4316_v28  ;;  %2381 = vmatpush.bf16.msra.mxu1 %v4316_v28  ;;  %v4876_v50 = vld [vmem:[%s5609_s25 + $0xa4] sm:$0xf0]  ;;  %v4220_v51 = vor.u32 %v4860_v48, %v4219_v47  ;;  %v4858_v54 = vld [vmem:[%s5609_s25 + $0x14] sm:$0xf0]  ;;  %v4275_v55 = vld [vmem:[%s5609_s25 + $0x90] sm:$0xf] }
  0xf8   : > { %v4284_v52 = vor.u32 %v4876_v50, %v4283_v49  ;;  %v4874_v56 = vld [vmem:[%s5609_s25 + $0x94] sm:$0xf0]  ;;  %v4212_v57 = vor.u32 %v4858_v54, %v4211_v53  ;;  %v4203_v58 = vld [vmem:[%s5609_s25] sm:$0xf]  ;;  %v4856_v60 = vld [vmem:[%s5609_s25 + $0x4] sm:$0xf0] }
  0xf9   : > { %v4276_v59 = vor.u32 %v4874_v56, %v4275_v55  ;;  %v4267_v61 = vld [vmem:[%s5609_s25 + $0x80] sm:$0xf]  ;;  %v4872_v62 = vld [vmem:[%s5609_s25 + $0x84] sm:$0xf0]  ;;  %v4823_v0 = vld [vmem:[%s5595_s7 + $0x140] sm:$0xf0]  ;;  %v4204_v7 = vor.u32 %v4856_v60, %v4203_v58 }
  0xfa   : > { %5002 = vmatpush.bf16.msra.mxu2 %v4244_v33  ;;  %2333 = vmatpush.bf16.msra.mxu0 %v4244_v33  ;;  %v4059_v63 = vld [vmem:[%s5595_s7 + $0x120] sm:$0xf]  ;;  %v4387_v1 = vld [vmem:[%s5609_s25 + $0x170] sm:$0xf]  ;;  %v4819_v2 = vld [vmem:[%s5595_s7 + $0x124] sm:$0xf]  ;;  %v4268_v11 = vor.u32 %v4872_v62, %v4267_v61 }
  0xfb   : > { %5010 = vmatpush.bf16.msra.mxu3 %v4308_v34  ;;  %2382 = vmatpush.bf16.msra.mxu1 %v4308_v34  ;;  %v4061_v3 = vld [vmem:[%s5595_s7 + $0x144] sm:$0xf0]  ;;  %v4902_v4 = vld [vmem:[%s5609_s25 + $0x174] sm:$0xf0]  ;;  %v4451_v5 = vld [vmem:[%s5609_s25 + $0x1f0] sm:$0xf]  ;;  %v5663_v20 = vor.u32 %v4823_v0, %v4059_v63 }
  0xfc   : > { %v4918_v6 = vld [vmem:[%s5609_s25 + $0x1f4] sm:$0xf0]  ;;  %v3915_v8 = vld [vmem:[%s5595_s7] sm:$0xf]  ;;  %v4787_v9 = vld [vmem:[%s5595_s7 + $0x20] sm:$0xf0]  ;;  %v4388_v15 = vor.u32 %v4902_v4, %v4387_v1  ;;  %v5670_v25 = vor.u32 %v4819_v2, %v4061_v3 }
  0xfd   : > { %v4783_v10 = vld [vmem:[%s5595_s7 + $0x4] sm:$0xf]  ;;  %v3917_v12 = vld [vmem:[%s5595_s7 + $0x24] sm:$0xf0]  ;;  %v4379_v13 = vld [vmem:[%s5609_s25 + $0x160] sm:$0xf]  ;;  %v4452_v16 = vor.u32 %v4918_v6, %v4451_v5  ;;  %v5665_v21 = vor.u32 %v4787_v9, %v3915_v8 }
  0xfe   : > { %5003 = vmatpush.bf16.msra.mxu2 %v4236_v39  ;;  %2334 = vmatpush.bf16.msra.mxu0 %v4236_v39  ;;  %v4515_v14 = vld [vmem:[%s5609_s25 + $0x270] sm:$0xf]  ;;  %v4934_v17 = vld [vmem:[%s5609_s25 + $0x274] sm:$0xf0]  ;;  %v4900_v22 = vld [vmem:[%s5609_s25 + $0x164] sm:$0xf0]  ;;  %v5672_v26 = vor.u32 %v4783_v10, %v3917_v12 }
  0xff   : > { %5011 = vmatpush.bf16.msra.mxu3 %v4300_v40  ;;  %2383 = vmatpush.bf16.msra.mxu1 %v4300_v40  ;;  %v4579_v18 = vld [vmem:[%s5609_s25 + $0x2f0] sm:$0xf]  ;;  %v4950_v19 = vld [vmem:[%s5609_s25 + $0x2f4] sm:$0xf0]  ;;  %v4443_v23 = vld [vmem:[%s5609_s25 + $0x1e0] sm:$0xf]  ;;  %v4516_v27 = vor.u32 %v4934_v17, %v4515_v14  ;;  %v4380_v31 = vor.u32 %v4900_v22, %v4379_v13 }
 0x100   : > { %v4916_v24 = vld [vmem:[%s5609_s25 + $0x1e4] sm:$0xf0]  ;;  %v4580_v28 = vor.u32 %v4950_v19, %v4579_v18  ;;  %v4371_v29 = vld [vmem:[%s5609_s25 + $0x150] sm:$0xf]  ;;  %v4507_v30 = vld [vmem:[%s5609_s25 + $0x260] sm:$0xf] }
 0x101   : > { %v4444_v32 = vor.u32 %v4916_v24, %v4443_v23  ;;  %v4932_v33 = vld [vmem:[%s5609_s25 + $0x264] sm:$0xf0]  ;;  %v4571_v34 = vld [vmem:[%s5609_s25 + $0x2e0] sm:$0xf]  ;;  %v4898_v36 = vld [vmem:[%s5609_s25 + $0x154] sm:$0xf0] }
 0x102   : > { %5004 = vmatpush.bf16.msra.mxu2 %v4228_v45  ;;  %2335 = vmatpush.bf16.msra.mxu0 %v4228_v45  ;;  %v4948_v35 = vld [vmem:[%s5609_s25 + $0x2e4] sm:$0xf0]  ;;  %v4435_v37 = vld [vmem:[%s5609_s25 + $0x1d0] sm:$0xf]  ;;  %v4914_v38 = vld [vmem:[%s5609_s25 + $0x1d4] sm:$0xf0]  ;;  %v4508_v39 = vor.u32 %v4932_v33, %v4507_v30  ;;  %v4372_v43 = vor.u32 %v4898_v36, %v4371_v29 }
 0x103   : > { %5012 = vmatpush.bf16.msra.mxu3 %v4292_v46  ;;  %2384 = vmatpush.bf16.msra.mxu1 %v4292_v46  ;;  %v4572_v40 = vor.u32 %v4948_v35, %v4571_v34  ;;  %v4363_v41 = vld [vmem:[%s5609_s25 + $0x140] sm:$0xf]  ;;  %v4499_v42 = vld [vmem:[%s5609_s25 + $0x250] sm:$0xf]  ;;  %v4436_v44 = vor.u32 %v4914_v38, %v4435_v37  ;;  %v4930_v45 = vld [vmem:[%s5609_s25 + $0x254] sm:$0xf0] }
 0x104   : > { %v4563_v46 = vld [vmem:[%s5609_s25 + $0x2d0] sm:$0xf]  ;;  %v4946_v47 = vld [vmem:[%s5609_s25 + $0x2d4] sm:$0xf0]  ;;  %v4896_v48 = vld [vmem:[%s5609_s25 + $0x144] sm:$0xf0] }
 0x105   : > { %v4427_v49 = vld [vmem:[%s5609_s25 + $0x1c0] sm:$0xf]  ;;  %v4912_v50 = vld [vmem:[%s5609_s25 + $0x1c4] sm:$0xf0]  ;;  %v4355_v53 = vld [vmem:[%s5609_s25 + $0x130] sm:$0xf] }
 0x106   : > { %5005 = vmatpush.bf16.msra.mxu2 %v4220_v51  ;;  %2336 = vmatpush.bf16.msra.mxu0 %v4220_v51  ;;  %v4500_v51 = vor.u32 %v4930_v45, %v4499_v42  ;;  %v4491_v54 = vld [vmem:[%s5609_s25 + $0x240] sm:$0xf]  ;;  %v4095_v55 = vld [vmem:[%s5595_s7 + $0x168] sm:$0xf]  ;;  %v4832_v56 = vld [vmem:[%s5595_s7 + $0x188] sm:$0xf0]  ;;  %v4428_v58 = vor.u32 %v4912_v50, %v4427_v49 }
 0x107   : > { %5013 = vmatpush.bf16.msra.mxu3 %v4284_v52  ;;  %2385 = vmatpush.bf16.msra.mxu1 %v4284_v52  ;;  %v4564_v52 = vor.u32 %v4946_v47, %v4563_v46  ;;  %v4555_v60 = vld [vmem:[%s5609_s25 + $0x2c0] sm:$0xf]  ;;  %v4944_v61 = vld [vmem:[%s5609_s25 + $0x2c4] sm:$0xf0]  ;;  %v4828_v62 = vld [vmem:[%s5595_s7 + $0x16c] sm:$0xf] }
 0x108   : > { %v4097_v63 = vld [vmem:[%s5595_s7 + $0x18c] sm:$0xf0]  ;;  %v4894_v0 = vld [vmem:[%s5609_s25 + $0x134] sm:$0xf0]  ;;  %v3951_v3 = vld [vmem:[%s5595_s7 + $0x48] sm:$0xf]  ;;  %v4556_v8 = vor.u32 %v4944_v61, %v4555_v60 }
 0x109   : > { %v4419_v1 = vld [vmem:[%s5609_s25 + $0x1b0] sm:$0xf]  ;;  %v4910_v2 = vld [vmem:[%s5609_s25 + $0x1b4] sm:$0xf0]  ;;  %v4796_v4 = vld [vmem:[%s5595_s7 + $0x68] sm:$0xf0]  ;;  %v5722_v23 = vor.u32 %v4828_v62, %v4097_v63 }
 0x10a   : > { %5006 = vmatpush.bf16.msra.mxu2 %v4212_v57  ;;  %2337 = vmatpush.bf16.msra.mxu0 %v4212_v57  ;;  %v4364_v57 = vor.u32 %v4896_v48, %v4363_v41  ;;  %v4792_v5 = vld [vmem:[%s5595_s7 + $0x4c] sm:$0xf]  ;;  %v3953_v6 = vld [vmem:[%s5595_s7 + $0x6c] sm:$0xf0]  ;;  %v4347_v9 = vld [vmem:[%s5609_s25 + $0x120] sm:$0xf]  ;;  %v4420_v12 = vor.u32 %v4910_v2, %v4419_v1  ;;  %v5717_v17 = vor.u32 %v4796_v4, %v3951_v3 }
 0x10b   : > { %5014 = vmatpush.bf16.msra.mxu3 %v4276_v59  ;;  %2386 = vmatpush.bf16.msra.mxu1 %v4276_v59  ;;  %v4928_v59 = vld [vmem:[%s5609_s25 + $0x244] sm:$0xf0]  ;;  %v4483_v10 = vld [vmem:[%s5609_s25 + $0x230] sm:$0xf]  ;;  %v4926_v13 = vld [vmem:[%s5609_s25 + $0x234] sm:$0xf0]  ;;  %v5724_v24 = vor.u32 %v4792_v5, %v3953_v6 }
 0x10c   : > { %v4547_v14 = vld [vmem:[%s5609_s25 + $0x2b0] sm:$0xf]  ;;  %v4892_v18 = vld [vmem:[%s5609_s25 + $0x124] sm:$0xf0]  ;;  %v4411_v19 = vld [vmem:[%s5609_s25 + $0x1a0] sm:$0xf] }
 0x10d   : > { %v4908_v22 = vld [vmem:[%s5609_s25 + $0x1a4] sm:$0xf0]  ;;  %7067 = vst [vmem:[#allocation8_spill] sm:$0xff] %v5722_v23  ;;  %v4348_v29 = vor.u32 %v4892_v18, %v4347_v9  ;;  %v4403_v33 = vld [vmem:[%s5609_s25 + $0x190] sm:$0xf]  ;;  %p4777_p3 = scmp.ne.s32.totalorder %s5154_s22, 8 }
 0x10e   : > { %5007 = vmatpush.bf16.msra.mxu2 %v4204_v7  ;;  %2338 = vmatpush.bf16.msra.mxu0 %v4204_v7  ;;  %v4492_v7 = vor.u32 %v4928_v59, %v4491_v54  ;;  %v4412_v30 = vor.u32 %v4908_v22, %v4411_v19  ;;  %v4906_v34 = vld [vmem:[%s5609_s25 + $0x194] sm:$0xf0]  ;;  %v4475_v35 = vld [vmem:[%s5609_s25 + $0x220] sm:$0xf]  ;;  %v4924_v38 = vld [vmem:[%s5609_s25 + $0x224] sm:$0xf0] }
 0x10f   : > { %5015 = vmatpush.bf16.msra.mxu3 %v4268_v11  ;;  %2387 = vmatpush.bf16.msra.mxu1 %v4268_v11  ;;  %v4356_v11 = vor.u32 %v4894_v0, %v4355_v53  ;;  %v4404_v37 = vor.u32 %v4906_v34, %v4403_v33  ;;  %v4476_v41 = vor.u32 %v4924_v38, %v4475_v35  ;;  %v4395_v45 = vld [vmem:[%s5609_s25 + $0x180] sm:$0xf]  ;;  %v4904_v46 = vld [vmem:[%s5609_s25 + $0x184] sm:$0xf0]  ;;  %v4467_v47 = vld [vmem:[%s5609_s25 + $0x210] sm:$0xf] }
 0x110   : > { %v4922_v48 = vld [vmem:[%s5609_s25 + $0x214] sm:$0xf0]  ;;  %v4531_v50 = vld [vmem:[%s5609_s25 + $0x290] sm:$0xf]  ;;  %v4396_v53 = vor.u32 %v4904_v46, %v4395_v45  ;;  %v4837_v59 = vld [vmem:[%s5595_s7 + $0x1b4] sm:$0xf] }
 0x111   : > { %2359 = vmatmul.bf16.vlgmr.msra.gmra.mxu2 %v5663_v20  ;;  %2339 = vmatmul.bf16.vlgmr.msra.gmra.mxu0 %v5665_v21  ;;  %v4468_v49 = vor.u32 %v4922_v48, %v4467_v47  ;;  %v3987_v60 = vld [vmem:[%s5595_s7 + $0x90] sm:$0xf]  ;;  %v4805_v61 = vld [vmem:[%s5595_s7 + $0xb0] sm:$0xf0]  ;;  %v4133_v62 = vld [vmem:[%s5595_s7 + $0x1d4] sm:$0xf0] }
 0x112   : > { %2429 = vmatpush.bf16.msrb.mxu2 %v4388_v15  ;;  %2408 = vmatmul.bf16.vlgmr.msra.gmra.mxu3 %v5670_v25  ;;  %v4942_v15 = vld [vmem:[%s5609_s25 + $0x2b4] sm:$0xf0]  ;;  %v4801_v63 = vld [vmem:[%s5595_s7 + $0x94] sm:$0xf]  ;;  %v5758_v3 = vor.u32 %v4805_v61, %v3987_v60  ;;  %v5760_v4 = vor.u32 %v4837_v59, %v4133_v62  ;;  %v4523_v6 = vld [vmem:[%s5609_s25 + $0x280] sm:$0xf] }
 0x113   : > { %2478 = vmatpush.bf16.msrb.mxu3 %v4452_v16  ;;  %2388 = vmatmul.bf16.vlgmr.msra.gmra.mxu1 %v5672_v26  ;;  %v5715_v16 = vor.u32 %v4832_v56, %v4095_v55  ;;  %v4459_v55 = vld [vmem:[%s5609_s25 + $0x200] sm:$0xf]  ;;  %v4920_v56 = vld [vmem:[%s5609_s25 + $0x204] sm:$0xf0]  ;;  %v3989_v0 = vld [vmem:[%s5595_s7 + $0xb4] sm:$0xf0] }
 0x114   : > { %2527 = vmatpush.bf16.msrb.mxu0 %v4516_v27  ;;  %2576 = vmatpush.bf16.msrb.mxu1 %v4580_v28  ;;  %v4484_v27 = vor.u32 %v4926_v13, %v4483_v10  ;;  %v4548_v28 = vor.u32 %v4942_v15, %v4547_v14  ;;  %v4460_v1 = vor.u32 %v4920_v56, %v4459_v55  ;;  %v4643_v9 = vld [vmem:[%s5609_s25 + $0x370] sm:$0xf]  ;;  %v4966_v10 = vld [vmem:[%s5609_s25 + $0x374] sm:$0xf0]  ;;  %v4869_v19 = vld [vmem:[%s5609_s25 + $0x74] sm:$0xf] }
 0x115   : > { %7068 = vst [vmem:[#allocation9_spill] sm:$0xff] %v5760_v4  ;;  %v5762_v5 = vor.u32 %v4801_v63, %v3989_v0  ;;  %v4982_v13 = vld [vmem:[%s5609_s25 + $0x3f4] sm:$0xf0]  ;;  %v4771_v15 = vld [vmem:[%s5609_s25 + $0x470] sm:$0xf] }
 0x116   : > { %2430 = vmatpush.bf16.msrb.mxu2 %v4380_v31  ;;  %v4339_v31 = vld [vmem:[%s5609_s25 + $0x110] sm:$0xf]  ;;  %v4998_v18 = vld [vmem:[%s5609_s25 + $0x474] sm:$0xf0]  ;;  %v4814_v33 = vld [vmem:[%s5595_s7 + $0xf8] sm:$0xf0] }
 0x117   : > { %2479 = vmatpush.bf16.msrb.mxu3 %v4444_v32  ;;  %v4890_v32 = vld [vmem:[%s5609_s25 + $0x114] sm:$0xf0]  ;;  %v4772_v22 = vor.u32 %v4998_v18, %v4771_v15  ;;  %v4169_v34 = vld [vmem:[%s5595_s7 + $0x21c] sm:$0xf0]  ;;  %v4810_v35 = vld [vmem:[%s5595_s7 + $0xdc] sm:$0xf] }
 0x118   : > { %2528 = vmatpush.bf16.msrb.mxu0 %v4508_v39  ;;  %2577 = vmatpush.bf16.msrb.mxu1 %v4572_v40  ;;  %v4340_v36 = vor.u32 %v4890_v32, %v4339_v31  ;;  %v4539_v39 = vld [vmem:[%s5609_s25 + $0x2a0] sm:$0xf]  ;;  %v4940_v40 = vld [vmem:[%s5609_s25 + $0x2a4] sm:$0xf0]  ;;  %v4846_v31 = vld [vmem:[%s5595_s7 + $0x1fc] sm:$0xf] }
 0x119   : > { %v4540_v42 = vor.u32 %v4940_v40, %v4539_v39  ;;  %v4023_v32 = vld [vmem:[%s5595_s7 + $0xd8] sm:$0xf]  ;;  %v5790_v39 = vor.u32 %v4846_v31, %v4169_v34  ;;  %v4980_v45 = vld [vmem:[%s5609_s25 + $0x3e4] sm:$0xf0]  ;;  %v4763_v47 = vld [vmem:[%s5609_s25 + $0x460] sm:$0xf] }
 0x11a   : > { %2431 = vmatpush.bf16.msrb.mxu2 %v4372_v43  ;;  %v4331_v43 = vld [vmem:[%s5609_s25 + $0x100] sm:$0xf]  ;;  %v5788_v38 = vor.u32 %v4814_v33, %v4023_v32  ;;  %v4996_v48 = vld [vmem:[%s5609_s25 + $0x464] sm:$0xf0]  ;;  %v4784_v55 = vld [vmem:[%s5595_s7 + $0xc] sm:$0xf] }
 0x11b   : > { %2480 = vmatpush.bf16.msrb.mxu3 %v4436_v44  ;;  %v4888_v44 = vld [vmem:[%s5609_s25 + $0x104] sm:$0xf0]  ;;  %7069 = vst [vmem:[#allocation10_spill] sm:$0xff] %v5790_v39  ;;  %v3931_v56 = vld [vmem:[%s5595_s7 + $0x10] sm:$0xf] }
 0x11c   : > { %2529 = vmatpush.bf16.msrb.mxu0 %v4500_v51  ;;  %2578 = vmatpush.bf16.msrb.mxu1 %v4564_v52  ;;  %v4938_v51 = vld [vmem:[%s5609_s25 + $0x294] sm:$0xf0]  ;;  %v4332_v52 = vor.u32 %v4888_v44, %v4331_v43  ;;  %v4699_v43 = vld [vmem:[%s5609_s25 + $0x3e0] sm:$0xf]  ;;  %v4785_v59 = vld [vmem:[%s5595_s7 + $0x14] sm:$0xf] }
 0x11d   : > { %v4532_v54 = vor.u32 %v4938_v51, %v4531_v50  ;;  %v4700_v46 = vor.u32 %v4980_v45, %v4699_v43  ;;  %v4764_v50 = vor.u32 %v4996_v48, %v4763_v47  ;;  %v4253_v51 = vld [vmem:[%s5609_s25 + $0x68] sm:$0xf0]  ;;  %v3933_v60 = vld [vmem:[%s5595_s7 + $0x34] sm:$0xf0]  ;;  %v4245_v15 = vld [vmem:[%s5609_s25 + $0x58] sm:$0xf0] }
 0x11e   : > { %2432 = vmatpush.bf16.msrb.mxu2 %v4364_v57  ;;  %v4131_v57 = vld [vmem:[%s5595_s7 + $0x1b0] sm:$0xf]  ;;  %v5820_v0 = vor.u32 %v4785_v59, %v3933_v60  ;;  %v4794_v31 = vld [vmem:[%s5595_s7 + $0x5c] sm:$0xf]  ;;  %v3969_v32 = vld [vmem:[%s5595_s7 + $0x7c] sm:$0xf0] }
 0x11f   : > { %2481 = vmatpush.bf16.msrb.mxu3 %v4428_v58  ;;  %v4841_v58 = vld [vmem:[%s5595_s7 + $0x1d0] sm:$0xf0]  ;;  %v4683_v43 = vld [vmem:[%s5609_s25 + $0x3c0] sm:$0xf]  ;;  %v4976_v45 = vld [vmem:[%s5609_s25 + $0x3c4] sm:$0xf0] }
 0x120   : > { %2530 = vmatpush.bf16.msrb.mxu0 %v4492_v7  ;;  %2579 = vmatpush.bf16.msrb.mxu1 %v4556_v8  ;;  %v5756_v2 = vor.u32 %v4841_v58, %v4131_v57  ;;  %v4936_v7 = vld [vmem:[%s5609_s25 + $0x284] sm:$0xf0]  ;;  %v4789_v57 = vld [vmem:[%s5595_s7 + $0x30] sm:$0xf0]  ;;  %v3925_v58 = vld [vmem:[%s5595_s7 + $0x2c] sm:$0xf0] }
 0x121   : > { %2364 = vmatmul.bf16.gmra.mxu2 %v5715_v16  ;;  %2344 = vmatmul.bf16.gmra.mxu0 %v5717_v17  ;;  %v4524_v8 = vor.u32 %v4936_v7, %v4523_v6  ;;  %v5816_v62 = vor.u32 %v4789_v57, %v3931_v56  ;;  %v5818_v63 = vor.u32 %v4784_v55, %v3925_v58  ;;  %v4962_v6 = vld [vmem:[%s5609_s25 + $0x354] sm:$0xf0]  ;;  %v4691_v7 = vld [vmem:[%s5609_s25 + $0x3d0] sm:$0xf]  ;;  %v4747_v47 = vld [vmem:[%s5609_s25 + $0x440] sm:$0xf] }
 0x122   : > { %2433 = vmatpush.bf16.msrb.mxu2 %v4356_v11  ;;  %2413 = vmatmul.bf16.gmra.mxu3 %v5722_v23  ;;  %v4707_v11 = vld [vmem:[%s5609_s25 + $0x3f0] sm:$0xf]  ;;  %7070 = vst [vmem:[#allocation11_spill] sm:$0xff] %v5820_v0  ;;  %v4992_v48 = vld [vmem:[%s5609_s25 + $0x444] sm:$0xf0] }
 0x123   : > { %2482 = vmatpush.bf16.msrb.mxu3 %v4420_v12  ;;  %2393 = vmatmul.bf16.gmra.mxu1 %v5724_v24  ;;  %v4644_v12 = vor.u32 %v4966_v10, %v4643_v9  ;;  %v4708_v14 = vor.u32 %v4982_v13, %v4707_v11  ;;  %v4978_v9 = vld [vmem:[%s5609_s25 + $0x3d4] sm:$0xf0]  ;;  %v4755_v11 = vld [vmem:[%s5609_s25 + $0x450] sm:$0xf]  ;;  %v4865_v13 = vld [vmem:[%s5609_s25 + $0x54] sm:$0xf] }
 0x124   : > { %2531 = vmatpush.bf16.msrb.mxu0 %v4484_v27  ;;  %2580 = vmatpush.bf16.msrb.mxu1 %v4548_v28  ;;  %v4261_v27 = vld [vmem:[%s5609_s25 + $0x78] sm:$0xf0]  ;;  %v4692_v10 = vor.u32 %v4978_v9, %v4691_v7  ;;  %v4248_v18 = vor.u32 %v4865_v13, %v4245_v15  ;;  %v4003_v56 = vld [vmem:[%s5595_s7 + $0xa0] sm:$0xf]  ;;  %v4807_v57 = vld [vmem:[%s5595_s7 + $0xc0] sm:$0xf0] }
 0x125   : > { %v4264_v28 = vor.u32 %v4869_v19, %v4261_v27  ;;  %v3959_v19 = vld [vmem:[%s5595_s7 + $0x50] sm:$0xf]  ;;  %v4793_v27 = vld [vmem:[%s5595_s7 + $0x54] sm:$0xf]  ;;  %v4802_v55 = vld [vmem:[%s5595_s7 + $0x9c] sm:$0xf] }
 0x126   : > { %2434 = vmatpush.bf16.msrb.mxu2 %v4348_v29  ;;  %v4167_v29 = vld [vmem:[%s5595_s7 + $0x1f8] sm:$0xf]  ;;  %v3997_v58 = vld [vmem:[%s5595_s7 + $0xbc] sm:$0xf0]  ;;  %v4803_v59 = vld [vmem:[%s5595_s7 + $0xa4] sm:$0xf] }
 0x127   : > { %2483 = vmatpush.bf16.msrb.mxu3 %v4412_v30  ;;  %v4850_v30 = vld [vmem:[%s5595_s7 + $0x218] sm:$0xf0]  ;;  %v4005_v60 = vld [vmem:[%s5595_s7 + $0xc4] sm:$0xf0]  ;;  %v5874_v7 = vor.u32 %v4802_v55, %v3997_v58  ;;  %v4611_v9 = vld [vmem:[%s5609_s25 + $0x330] sm:$0xf] }
 0x128   : > { %2532 = vmatpush.bf16.msrb.mxu0 %v4476_v41  ;;  %2581 = vmatpush.bf16.msrb.mxu1 %v4540_v42  ;;  %v4635_v41 = vld [vmem:[%s5609_s25 + $0x360] sm:$0xf]  ;;  %v4964_v42 = vld [vmem:[%s5609_s25 + $0x364] sm:$0xf0]  ;;  %v4974_v13 = vld [vmem:[%s5609_s25 + $0x3b4] sm:$0xf0] }
 0x129   : > { %v4636_v44 = vor.u32 %v4964_v42, %v4635_v41  ;;  %v4619_v41 = vld [vmem:[%s5609_s25 + $0x340] sm:$0xf]  ;;  %v4960_v42 = vld [vmem:[%s5609_s25 + $0x344] sm:$0xf0]  ;;  %v4739_v15 = vld [vmem:[%s5609_s25 + $0x430] sm:$0xf] }
 0x12a   : > { %2435 = vmatpush.bf16.msrb.mxu2 %v4340_v36  ;;  %v4025_v36 = vld [vmem:[%s5595_s7 + $0xfc] sm:$0xf0]  ;;  %v4824_v58 = vld [vmem:[%s5595_s7 + $0x148] sm:$0xf0] }
 0x12b   : > { %2484 = vmatpush.bf16.msrb.mxu3 %v4404_v37  ;;  %v5786_v37 = vor.u32 %v4850_v30, %v4167_v29  ;;  %v5792_v40 = vor.u32 %v4810_v35, %v4025_v36  ;;  %v4798_v29 = vld [vmem:[%s5595_s7 + $0x78] sm:$0xf0]  ;;  %v3961_v30 = vld [vmem:[%s5595_s7 + $0x74] sm:$0xf0]  ;;  %v5848_v36 = vor.u32 %v4794_v31, %v3969_v32  ;;  %v4033_v31 = vld [vmem:[%s5595_s7 + $0x104] sm:$0xf0] }
 0x12c   : > { %2533 = vmatpush.bf16.msrb.mxu0 %v4468_v49  ;;  %2582 = vmatpush.bf16.msrb.mxu1 %v4532_v54  ;;  %v4867_v49 = vld [vmem:[%s5609_s25 + $0x64] sm:$0xf]  ;;  %v4788_v54 = vld [vmem:[%s5595_s7 + $0x28] sm:$0xf0]  ;;  %v5846_v35 = vor.u32 %v4793_v27, %v3961_v30  ;;  %v4731_v55 = vld [vmem:[%s5609_s25 + $0x420] sm:$0xf] }
 0x12d   : > { %7071 = vst [vmem:[#allocation12_spill] sm:$0xff] %v5848_v36  ;;  %v4816_v30 = vld [vmem:[%s5595_s7 + $0x108] sm:$0xf0] }
 0x12e   : > { %2436 = vmatpush.bf16.msrb.mxu2 %v4332_v52  ;;  %v4256_v52 = vor.u32 %v4867_v49, %v4253_v51  ;;  %v4863_v49 = vld [vmem:[%s5609_s25 + $0x44] sm:$0xf]  ;;  %v4237_v51 = vld [vmem:[%s5609_s25 + $0x48] sm:$0xf0] }
 0x12f   : > { %2485 = vmatpush.bf16.msrb.mxu3 %v4396_v53  ;;  %v3923_v53 = vld [vmem:[%s5595_s7 + $0x8] sm:$0xf]  ;;  %v4812_v32 = vld [vmem:[%s5595_s7 + $0xec] sm:$0xf] }
 0x130   : > { %2534 = vmatpush.bf16.msrb.mxu0 %v4460_v1  ;;  %2583 = vmatpush.bf16.msrb.mxu1 %v4524_v8  ;;  %v5814_v61 = vor.u32 %v4788_v54, %v3923_v53  ;;  %v4627_v1 = vld [vmem:[%s5609_s25 + $0x350] sm:$0xf]  ;;  %v3995_v53 = vld [vmem:[%s5595_s7 + $0x98] sm:$0xf]  ;;  %v4806_v54 = vld [vmem:[%s5595_s7 + $0xb8] sm:$0xf0] }
 0x131   : > { %2369 = vmatmul.bf16.gmra.mxu2 %v5756_v2  ;;  %2349 = vmatmul.bf16.gmra.mxu0 %v5758_v3  ;;  %v4628_v8 = vor.u32 %v4962_v6, %v4627_v1  ;;  %v5870_v1 = vor.u32 %v4806_v54, %v3995_v53  ;;  %v5872_v6 = vor.u32 %v4807_v57, %v4003_v56  ;;  %v4972_v53 = vld [vmem:[%s5609_s25 + $0x3a4] sm:$0xf0] }
 0x132   : > { %2418 = vmatmul.bf16.gmra.mxu3 %v5760_v4  ;;  %2625 = vmatpush.bf16.msra.mxu2 %v4644_v12  ;;  %v4994_v12 = vld [vmem:[%s5609_s25 + $0x454] sm:$0xf0]  ;;  %v4988_v56 = vld [vmem:[%s5609_s25 + $0x424] sm:$0xf0] }
 0x133   : > { %2398 = vmatmul.bf16.gmra.mxu1 %v5762_v5  ;;  %2674 = vmatpush.bf16.msra.mxu3 %v4708_v14  ;;  %v4756_v14 = vor.u32 %v4994_v12, %v4755_v11  ;;  %v4675_v11 = vld [vmem:[%s5609_s25 + $0x3b0] sm:$0xf]  ;;  %v4067_v57 = vld [vmem:[%s5595_s7 + $0x128] sm:$0xf] }
 0x134   : > { %2723 = vmatpush.bf16.msra.mxu0 %v4772_v22  ;;  %2772 = vmatpush.bf16.msra.mxu1 %v4264_v28  ;;  %v4797_v22 = vld [vmem:[%s5595_s7 + $0x70] sm:$0xf0]  ;;  %v3967_v28 = vld [vmem:[%s5595_s7 + $0x58] sm:$0xf] }
 0x135   : > { %v5842_v33 = vor.u32 %v4797_v22, %v3959_v19  ;;  %v5844_v34 = vor.u32 %v4798_v29, %v3967_v28  ;;  %v4031_v19 = vld [vmem:[%s5595_s7 + $0xe0] sm:$0xf]  ;;  %v4815_v22 = vld [vmem:[%s5595_s7 + $0x100] sm:$0xf0]  ;;  %v4039_v29 = vld [vmem:[%s5595_s7 + $0xe8] sm:$0xf] }
 0x136   : > { %2626 = vmatpush.bf16.msra.mxu2 %v4636_v44  ;;  %v4620_v44 = vor.u32 %v4960_v42, %v4619_v41  ;;  %v4811_v28 = vld [vmem:[%s5595_s7 + $0xe4] sm:$0xf]  ;;  %v4041_v41 = vld [vmem:[%s5595_s7 + $0x10c] sm:$0xf0]  ;;  %v5896_v42 = vor.u32 %v4815_v22, %v4031_v19 }
 0x137   : > { %2675 = vmatpush.bf16.msra.mxu3 %v4700_v46  ;;  %v4684_v46 = vor.u32 %v4976_v45, %v4683_v43  ;;  %v5898_v43 = vor.u32 %v4816_v30, %v4039_v29  ;;  %v5902_v45 = vor.u32 %v4812_v32, %v4041_v41  ;;  %v4595_v32 = vld [vmem:[%s5609_s25 + $0x310] sm:$0xf]  ;;  %v4954_v41 = vld [vmem:[%s5609_s25 + $0x314] sm:$0xf0] }
 0x138   : > { %2724 = vmatpush.bf16.msra.mxu0 %v4764_v50  ;;  %2773 = vmatpush.bf16.msra.mxu1 %v4256_v52  ;;  %v4748_v50 = vor.u32 %v4992_v48, %v4747_v47  ;;  %v4240_v52 = vor.u32 %v4863_v49, %v4237_v51  ;;  %v4229_v47 = vld [vmem:[%s5609_s25 + $0x38] sm:$0xf0]  ;;  %v4603_v49 = vld [vmem:[%s5609_s25 + $0x320] sm:$0xf] }
 0x139   : > { %7073 = vst [vmem:[#allocation14_spill] sm:$0xff] %v5902_v45  ;;  %v4667_v51 = vld [vmem:[%s5609_s25 + $0x3a0] sm:$0xf] }
 0x13a   : > { %2627 = vmatpush.bf16.msra.mxu2 %v4628_v8  ;;  %v5876_v8 = vor.u32 %v4803_v59, %v4005_v60  ;;  %v4668_v54 = vor.u32 %v4972_v53, %v4667_v51  ;;  %v4732_v59 = vor.u32 %v4988_v56, %v4731_v55  ;;  %v4820_v60 = vld [vmem:[%s5595_s7 + $0x12c] sm:$0xf]  ;;  %v4723_v56 = vld [vmem:[%s5609_s25 + $0x410] sm:$0xf] }
 0x13b   : > { %2676 = vmatpush.bf16.msra.mxu3 %v4692_v10  ;;  %v4958_v10 = vld [vmem:[%s5609_s25 + $0x334] sm:$0xf0] }
 0x13c   : > { %2725 = vmatpush.bf16.msra.mxu0 %v4756_v14  ;;  %2774 = vmatpush.bf16.msra.mxu1 %v4248_v18  ;;  %7072 = vst [vmem:[#allocation13_spill] sm:$0xff] %v5876_v8  ;;  %v4612_v12 = vor.u32 %v4958_v10, %v4611_v9  ;;  %v4676_v14 = vor.u32 %v4974_v13, %v4675_v11  ;;  %v4990_v18 = vld [vmem:[%s5609_s25 + $0x434] sm:$0xf0]  ;;  %v4075_v9 = vld [vmem:[%s5595_s7 + $0x130] sm:$0xf] }
 0x13d   : > { %v4740_v27 = vor.u32 %v4990_v18, %v4739_v15  ;;  %v4825_v10 = vld [vmem:[%s5595_s7 + $0x150] sm:$0xf0]  ;;  %v4069_v11 = vld [vmem:[%s5595_s7 + $0x14c] sm:$0xf0]  ;;  %v4077_v13 = vld [vmem:[%s5595_s7 + $0x154] sm:$0xf0] }
 0x13e   : > { %2628 = vmatpush.bf16.msra.mxu2 %v4620_v44  ;;  %v5900_v44 = vor.u32 %v4811_v28, %v4033_v31  ;;  %v5926_v15 = vor.u32 %v4825_v10, %v4075_v9  ;;  %v5928_v19 = vor.u32 %v4820_v60, %v4069_v11  ;;  %v4221_v28 = vld [vmem:[%s5609_s25 + $0x28] sm:$0xf0]  ;;  %v4829_v9 = vld [vmem:[%s5595_s7 + $0x174] sm:$0xf]  ;;  %v4111_v10 = vld [vmem:[%s5595_s7 + $0x178] sm:$0xf] }
 0x13f   : > { %2677 = vmatpush.bf16.msra.mxu3 %v4684_v46  ;;  %v4861_v46 = vld [vmem:[%s5609_s25 + $0x34] sm:$0xf]  ;;  %v4834_v11 = vld [vmem:[%s5595_s7 + $0x198] sm:$0xf0] }
 0x140   : > { %2726 = vmatpush.bf16.msra.mxu0 %v4748_v50  ;;  %2775 = vmatpush.bf16.msra.mxu1 %v4240_v52  ;;  %v4232_v48 = vor.u32 %v4861_v46, %v4229_v47  ;;  %v4956_v50 = vld [vmem:[%s5609_s25 + $0x324] sm:$0xf0]  ;;  %v4659_v46 = vld [vmem:[%s5609_s25 + $0x390] sm:$0xf]  ;;  %v4596_v47 = vor.u32 %v4954_v41, %v4595_v32 }
 0x141   : > { %2374 = vmatmul.bf16.gmra.mxu2 %v5786_v37  ;;  %2354 = vmatmul.bf16.gmra.mxu0 %v5788_v38  ;;  %v4604_v52 = vor.u32 %v4956_v50, %v4603_v49 }
 0x142   : > { %2423 = vmatmul.bf16.gmra.mxu3 %v5790_v39  ;;  %2629 = vmatpush.bf16.msra.mxu2 %v4612_v12  ;;  %v4821_v12 = vld [vmem:[%s5595_s7 + $0x134] sm:$0xf] }
 0x143   : > { %2403 = vmatmul.bf16.gmra.mxu1 %v5792_v40  ;;  %2678 = vmatpush.bf16.msra.mxu3 %v4676_v14  ;;  %v5924_v14 = vor.u32 %v4824_v58, %v4067_v57  ;;  %v5930_v22 = vor.u32 %v4821_v12, %v4077_v13  ;;  %v4986_v57 = vld [vmem:[%s5609_s25 + $0x414] sm:$0xf0]  ;;  %v4103_v58 = vld [vmem:[%s5595_s7 + $0x170] sm:$0xf]  ;;  %v4830_v13 = vld [vmem:[%s5595_s7 + $0x17c] sm:$0xf] }
 0x144   : > { %2727 = vmatpush.bf16.msra.mxu0 %v4740_v27  ;;  %2776 = vmatpush.bf16.msra.mxu1 %v4232_v48  ;;  %v4859_v27 = vld [vmem:[%s5609_s25 + $0x24] sm:$0xf]  ;;  %v4970_v48 = vld [vmem:[%s5609_s25 + $0x394] sm:$0xf0]  ;;  %v4724_v60 = vor.u32 %v4986_v57, %v4723_v56  ;;  %v4952_v56 = vld [vmem:[%s5609_s25 + $0x304] sm:$0xf0] }
 0x145   : > { %7074 = vst [vmem:[#allocation15_spill] sm:$0xff] %v5930_v22  ;;  %v4224_v30 = vor.u32 %v4859_v27, %v4221_v28  ;;  %v4660_v50 = vor.u32 %v4970_v48, %v4659_v46  ;;  %v4105_v12 = vld [vmem:[%s5595_s7 + $0x194] sm:$0xf0]  ;;  %v4857_v48 = vld [vmem:[%s5609_s25 + $0x14] sm:$0xf] }
 0x146   : > { %2630 = vmatpush.bf16.msra.mxu2 %v4604_v52  ;;  %v5964_v46 = vor.u32 %v4829_v9, %v4105_v12  ;;  %v4651_v57 = vld [vmem:[%s5609_s25 + $0x380] sm:$0xf] }
 0x147   : > { %2679 = vmatpush.bf16.msra.mxu3 %v4668_v54 }
 0x148   : > { %2728 = vmatpush.bf16.msra.mxu0 %v4732_v59  ;;  %2777 = vmatpush.bf16.msra.mxu1 %v4224_v30  ;;  %v4833_v59 = vld [vmem:[%s5595_s7 + $0x190] sm:$0xf0]  ;;  %v5960_v30 = vor.u32 %v4834_v11, %v4111_v10  ;;  %7077 = vst [vmem:[#allocation18_spill] sm:$0xff] %v5964_v46 }
 0x14a   : > { %2631 = vmatpush.bf16.msra.mxu2 %v4596_v47  ;;  %7076 = vst [vmem:[#allocation17_spill] sm:$0xff] %v5960_v30 }
 0x14b   : > { %2680 = vmatpush.bf16.msra.mxu3 %v4660_v50 }
 0x14c   : > { %2729 = vmatpush.bf16.msra.mxu0 %v4724_v60 }
 0x151   : > { %2437 = vmatmul.bf16.vlgmr.msrb.gmra.mxu2 %v5814_v61  ;;  %2535 = vmatmul.bf16.vlgmr.msrb.gmra.mxu0 %v5816_v62 }
 0x152   : > { %2486 = vmatmul.bf16.vlgmr.msrb.gmra.mxu3 %v5818_v63 }
 0x153   : > { %2584 = vmatmul.bf16.vlgmr.msrb.gmra.mxu1 %v5820_v0  ;;  %v4848_v0 = vld [vmem:[%s5595_s7 + $0x20c] sm:$0xf] }
 0x161   : > { %2442 = vmatmul.bf16.gmra.mxu2 %v5842_v33  ;;  %2540 = vmatmul.bf16.gmra.mxu0 %v5844_v34 }
 0x162   : > { %2491 = vmatmul.bf16.gmra.mxu3 %v5846_v35 }
 0x163   : > { %2589 = vmatmul.bf16.gmra.mxu1 %v5848_v36  ;;  %v4852_v36 = vld [vmem:[%s5595_s7 + $0x228] sm:$0xf0] }
 0x171   : > { %2447 = vmatmul.bf16.gmra.mxu2 %v5870_v1  ;;  %2545 = vmatmul.bf16.gmra.mxu0 %v5872_v6 }
 0x172   : > { %2496 = vmatmul.bf16.gmra.mxu3 %v5874_v7 }
 0x173   : > { %2594 = vmatmul.bf16.gmra.mxu1 %v5876_v8 }
 0x181   : > { %2452 = vmatmul.bf16.gmra.mxu2 %v5896_v42  ;;  %2550 = vmatmul.bf16.gmra.mxu0 %v5898_v43 }
 0x182   : > { %2501 = vmatmul.bf16.gmra.mxu3 %v5900_v44 }
 0x183   : > { %2599 = vmatmul.bf16.gmra.mxu1 %v5902_v45 }
 0x18e   : > { %v2340_v18 = vpop.f32.mrf.mxu0 }
 0x190   : > { %v2389_v29 = vpop.f32.mrf.mxu1 }
 0x191   : > { %v5934_v31 = vadd.f32 %v2389_v29, %v2340_v18  ;;  %2457 = vmatmul.bf16.gmra.mxu2 %v5924_v14  ;;  %2555 = vmatmul.bf16.gmra.mxu0 %v5926_v15  ;;  %v4113_v18 = vld [vmem:[%s5595_s7 + $0x19c] sm:$0xf0]  ;;  %v5958_v29 = vor.u32 %v4833_v59, %v4103_v58  ;;  %v4968_v59 = vld [vmem:[%s5609_s25 + $0x384] sm:$0xf0] }
 0x192   : > { %2506 = vmatmul.bf16.gmra.mxu3 %v5928_v19  ;;  %v5966_v47 = vor.u32 %v4830_v13, %v4113_v18  ;;  %v4652_v9 = vor.u32 %v4968_v59, %v4651_v57  ;;  %v4839_v57 = vld [vmem:[%s5595_s7 + $0x1c4] sm:$0xf] }
 0x193   : > { %2604 = vmatmul.bf16.gmra.mxu1 %v5930_v22  ;;  %7075 = vst [vmem:[#allocation16_spill] sm:$0xff] %v5958_v29  ;;  %v4205_v22 = vld [vmem:[%s5609_s25 + $0x8] sm:$0xf0] }
 0x194   : > { %v2360_v49 = vpop.f32.mrf.mxu2  ;;  %7078 = vst [vmem:[#allocation19_spill] sm:$0xff] %v5966_v47  ;;  %2681 = vmatpush.bf16.msra.mxu3 %v4652_v9 }
 0x195   : > { %v2409_v51 = vpop.f32.mrf.mxu3 }
 0x196   : > { %v5944_v52 = vadd.f32 %v2409_v51, %v2360_v49  ;;  %v2342_v53 = vpop.f32.mrf.mxu0  ;;  %v4213_v49 = vld [vmem:[%s5609_s25 + $0x18] sm:$0xf0] }
 0x197   : > { %v4216_v51 = vor.u32 %v4857_v48, %v4213_v49  ;;  %v4842_v48 = vld [vmem:[%s5595_s7 + $0x1d8] sm:$0xf0] }
 0x198   : > { %v2391_v54 = vpop.f32.mrf.mxu1 }
 0x199   : > { %v5946_v55 = vadd.f32 %v2391_v54, %v2342_v53  ;;  %v4587_v54 = vld [vmem:[%s5609_s25 + $0x300] sm:$0xf]  ;;  %2778 = vmatpush.bf16.msra.mxu1 %v4216_v51 }
 0x19a   : > { %v4588_v58 = vor.u32 %v4952_v56, %v4587_v54  ;;  %v4147_v51 = vld [vmem:[%s5595_s7 + $0x1c0] sm:$0xf]  ;;  %v4843_v54 = vld [vmem:[%s5595_s7 + $0x1e0] sm:$0xf0] }
 0x19b   : > { %v4141_v56 = vld [vmem:[%s5595_s7 + $0x1dc] sm:$0xf0] }
 0x19c   : > { %v2362_v27 = vpop.f32.mrf.mxu2  ;;  %2632 = vmatpush.bf16.msra.mxu2 %v4588_v58  ;;  %v4149_v58 = vld [vmem:[%s5595_s7 + $0x1e4] sm:$0xf0] }
 0x19d   : > { %v2411_v28 = vpop.f32.mrf.mxu3 }
 0x19e   : > { %v5962_v32 = vadd.f32 %v2411_v28, %v2362_v27  ;;  %v2345_v41 = vpop.f32.mrf.mxu0  ;;  %v4715_v27 = vld [vmem:[%s5609_s25 + $0x400] sm:$0xf]  ;;  %v4984_v28 = vld [vmem:[%s5609_s25 + $0x404] sm:$0xf0] }
 0x19f   : > { %v4716_v49 = vor.u32 %v4984_v28, %v4715_v27  ;;  %v6002_v28 = vor.u32 %v4839_v57, %v4149_v58 }
 0x1a0   : > { %v2394_v50 = vpop.f32.mrf.mxu1 }
 0x1a1   : > { %v5970_v53 = vadd.f32 %v2394_v50, %v2345_v41  ;;  %2462 = vmatmul.bf16.gmra.mxu2 %v5958_v29  ;;  %2560 = vmatmul.bf16.gmra.mxu0 %v5960_v30  ;;  %v4139_v41 = vld [vmem:[%s5595_s7 + $0x1b8] sm:$0xf]  ;;  %v4838_v50 = vld [vmem:[%s5595_s7 + $0x1bc] sm:$0xf]  ;;  %7082 = vst [vmem:[#allocation23_spill] sm:$0xff] %v6002_v28 }
 0x1a2   : > { %2511 = vmatmul.bf16.gmra.mxu3 %v5964_v46  ;;  %2730 = vmatpush.bf16.msra.mxu0 %v4716_v49  ;;  %v5994_v9 = vor.u32 %v4842_v48, %v4139_v41  ;;  %v6000_v27 = vor.u32 %v4838_v50, %v4141_v56  ;;  %v4885_v41 = vld [vmem:[%s5609_s25 + $0xf4] sm:$0xf]  ;;  %v4325_v48 = vld [vmem:[%s5609_s25 + $0xf8] sm:$0xf0]  ;;  %v4799_v30 = vld [vmem:[%s5595_s7 + $0x80] sm:$0xf0] }
 0x1a3   : > { %2609 = vmatmul.bf16.gmra.mxu1 %v5966_v47  ;;  %v4855_v47 = vld [vmem:[%s5609_s25 + $0x4] sm:$0xf]  ;;  %v4901_v50 = vld [vmem:[%s5609_s25 + $0x174] sm:$0xf]  ;;  %v3983_v29 = vld [vmem:[%s5595_s7 + $0x68] sm:$0xf] }
 0x1a4   : > { %v2365_v60 = vpop.f32.mrf.mxu2  ;;  %7079 = vst [vmem:[#allocation20_spill] sm:$0xff] %v5994_v9  ;;  %v4208_v45 = vor.u32 %v4855_v47, %v4205_v22  ;;  %v4328_v22 = vor.u32 %v4885_v41, %v4325_v48  ;;  %v4389_v47 = vld [vmem:[%s5609_s25 + $0x178] sm:$0xf0]  ;;  %v4847_v48 = vld [vmem:[%s5595_s7 + $0x204] sm:$0xf] }
 0x1a5   : > { %v2414_v10 = vpop.f32.mrf.mxu3  ;;  %7081 = vst [vmem:[#allocation22_spill] sm:$0xff] %v6000_v27  ;;  %v4453_v41 = vld [vmem:[%s5609_s25 + $0x1f8] sm:$0xf0]  ;;  %v4800_v46 = vld [vmem:[%s5595_s7 + $0x88] sm:$0xf0] }
 0x1a6   : > { %v5980_v11 = vadd.f32 %v2414_v10, %v2365_v60  ;;  %v2347_v12 = vpop.f32.mrf.mxu0  ;;  %v5996_v10 = vor.u32 %v4843_v54, %v4147_v51  ;;  %2779 = vmatpush.bf16.msra.mxu1 %v4208_v45  ;;  %v4392_v54 = vor.u32 %v4901_v50, %v4389_v47  ;;  %2821 = vmatpush.bf16.msrb.mxu2 %v4328_v22  ;;  %v4175_v45 = vld [vmem:[%s5595_s7 + $0x200] sm:$0xf]  ;;  %v4177_v47 = vld [vmem:[%s5595_s7 + $0x224] sm:$0xf0]  ;;  %v4185_v22 = vld [vmem:[%s5595_s7 + $0x22c] sm:$0xf0] }
 0x1a8   : > { %v2396_v13 = vpop.f32.mrf.mxu1  ;;  %7080 = vst [vmem:[#allocation21_spill] sm:$0xff] %v5996_v10  ;;  %2870 = vmatpush.bf16.msrb.mxu3 %v4392_v54 }
 0x1a9   : > { %v5982_v18 = vadd.f32 %v2396_v13, %v2347_v12 }
 0x1ac   : > { %v2367_v59 = vpop.f32.mrf.mxu2 }
 0x1ad   : > { %v2416_v60 = vpop.f32.mrf.mxu3 }
 0x1ae   : > { %v5998_v12 = vadd.f32 %v2416_v60, %v2367_v59  ;;  %v2350_v13 = vpop.f32.mrf.mxu0 }
 0x1b0   : > { %v2399_v49 = vpop.f32.mrf.mxu1 }
 0x1b1   : > { %v6006_v8 = vadd.f32 %v2399_v49, %v2350_v13  ;;  %2467 = vmatmul.bf16.gmra.mxu2 %v5994_v9  ;;  %2565 = vmatmul.bf16.gmra.mxu0 %v5996_v10  ;;  %v4851_v13 = vld [vmem:[%s5595_s7 + $0x220] sm:$0xf0]  ;;  %v4917_v49 = vld [vmem:[%s5609_s25 + $0x1f4] sm:$0xf] }
 0x1b2   : > { %2516 = vmatmul.bf16.gmra.mxu3 %v6000_v27  ;;  %v4456_v50 = vor.u32 %v4917_v49, %v4453_v41  ;;  %v6030_v54 = vor.u32 %v4851_v13, %v4175_v45  ;;  %v6036_v49 = vor.u32 %v4847_v48, %v4177_v47  ;;  %v6038_v41 = vor.u32 %v4848_v0, %v4185_v22  ;;  %v4933_v45 = vld [vmem:[%s5609_s25 + $0x274] sm:$0xf]  ;;  %v4517_v13 = vld [vmem:[%s5609_s25 + $0x278] sm:$0xf0]  ;;  %v4317_v48 = vld [vmem:[%s5609_s25 + $0xe8] sm:$0xf0] }
 0x1b3   : > { %2614 = vmatmul.bf16.gmra.mxu1 %v6002_v28  ;;  %v4183_v28 = vld [vmem:[%s5595_s7 + $0x208] sm:$0xf] }
 0x1b4   : > { %v2370_v51 = vpop.f32.mrf.mxu2  ;;  %2919 = vmatpush.bf16.msrb.mxu0 %v4456_v50  ;;  %7083 = vst [vmem:[#allocation24_spill] sm:$0xff] %v6030_v54 }
 0x1b5   : > { %v2419_v56 = vpop.f32.mrf.mxu3  ;;  %7085 = vst [vmem:[#allocation26_spill] sm:$0xff] %v6036_v49 }
 0x1b6   : > { %v6016_v57 = vadd.f32 %v2419_v56, %v2370_v51  ;;  %v2352_v58 = vpop.f32.mrf.mxu0  ;;  %7086 = vst [vmem:[#allocation27_spill] sm:$0xff] %v6038_v41 }
 0x1b8   : > { %v2401_v59 = vpop.f32.mrf.mxu1 }
 0x1b9   : > { %v6018_v60 = vadd.f32 %v2401_v59, %v2352_v58  ;;  %v6032_v58 = vor.u32 %v4852_v36, %v4183_v28  ;;  %v4520_v36 = vor.u32 %v4933_v45, %v4517_v13  ;;  %v4883_v28 = vld [vmem:[%s5609_s25 + $0xe4] sm:$0xf] }
 0x1ba   : > { %v4320_v0 = vor.u32 %v4883_v28, %v4317_v48  ;;  %v3939_v28 = vld [vmem:[%s5595_s7 + $0x18] sm:$0xf]  ;;  %v4915_v48 = vld [vmem:[%s5609_s25 + $0x1e4] sm:$0xf] }
 0x1bb   : > { %7084 = vst [vmem:[#allocation25_spill] sm:$0xff] %v6032_v58  ;;  %2968 = vmatpush.bf16.msrb.mxu1 %v4520_v36 }
 0x1bc   : > { %v2372_v51 = vpop.f32.mrf.mxu2  ;;  %2822 = vmatpush.bf16.msrb.mxu2 %v4320_v0 }
 0x1bd   : > { %v2421_v56 = vpop.f32.mrf.mxu3 }
 0x1be   : > { %v6034_v59 = vadd.f32 %v2421_v56, %v2372_v51  ;;  %v2355_v39 = vpop.f32.mrf.mxu0 }
 0x1c0   : > { %v2404_v10 = vpop.f32.mrf.mxu1 }
 0x1c1   : > { %v6040_v9 = vadd.f32 %v2404_v10, %v2355_v39  ;;  %2472 = vmatmul.bf16.gmra.mxu2 %v6030_v54  ;;  %2570 = vmatmul.bf16.gmra.mxu0 %v6032_v58  ;;  %v4899_v39 = vld [vmem:[%s5609_s25 + $0x164] sm:$0xf]  ;;  %v4381_v10 = vld [vmem:[%s5609_s25 + $0x168] sm:$0xf0]  ;;  %v4790_v58 = vld [vmem:[%s5595_s7 + $0x38] sm:$0xf0] }
 0x1c2   : > { %2521 = vmatmul.bf16.gmra.mxu3 %v6036_v49  ;;  %v4384_v47 = vor.u32 %v4899_v39, %v4381_v10  ;;  %v3947_v54 = vld [vmem:[%s5595_s7 + $0x20] sm:$0xf]  ;;  %v4791_v49 = vld [vmem:[%s5595_s7 + $0x40] sm:$0xf0]  ;;  %v4786_v39 = vld [vmem:[%s5595_s7 + $0x1c] sm:$0xf] }
 0x1c3   : > { %2619 = vmatmul.bf16.gmra.mxu1 %v6038_v41  ;;  %v4445_v41 = vld [vmem:[%s5609_s25 + $0x1e8] sm:$0xf0]  ;;  %v3941_v10 = vld [vmem:[%s5595_s7 + $0x3c] sm:$0xf0] }
 0x1c4   : > { %v2375_v50 = vpop.f32.mrf.mxu2  ;;  %2871 = vmatpush.bf16.msrb.mxu3 %v4384_v47  ;;  %v4448_v36 = vor.u32 %v4915_v48, %v4445_v41  ;;  %v6066_v47 = vor.u32 %v4791_v49, %v3947_v54  ;;  %v4931_v41 = vld [vmem:[%s5609_s25 + $0x264] sm:$0xf]  ;;  %v4509_v48 = vld [vmem:[%s5609_s25 + $0x268] sm:$0xf0]  ;;  %v4881_v54 = vld [vmem:[%s5609_s25 + $0xd4] sm:$0xf] }
 0x1c5   : > { %v2424_v22 = vpop.f32.mrf.mxu3  ;;  %v4309_v49 = vld [vmem:[%s5609_s25 + $0xd8] sm:$0xf0] }
 0x1c6   : > { %v6052_v51 = vadd.f32 %v2424_v22, %v2375_v50  ;;  %v2357_v56 = vpop.f32.mrf.mxu0  ;;  %2920 = vmatpush.bf16.msrb.mxu0 %v4448_v36  ;;  %v6064_v50 = vor.u32 %v4790_v58, %v3939_v28  ;;  %7088 = vst [vmem:[#allocation29_spill] sm:$0xff] %v6066_v47  ;;  %v4512_v58 = vor.u32 %v4931_v41, %v4509_v48  ;;  %v4897_v28 = vld [vmem:[%s5609_s25 + $0x154] sm:$0xf]  ;;  %v4373_v36 = vld [vmem:[%s5609_s25 + $0x158] sm:$0xf0] }
 0x1c8   : > { %v2406_v45 = vpop.f32.mrf.mxu1  ;;  %7087 = vst [vmem:[#allocation28_spill] sm:$0xff] %v6064_v50  ;;  %2969 = vmatpush.bf16.msrb.mxu1 %v4512_v58  ;;  %v4795_v58 = vld [vmem:[%s5595_s7 + $0x64] sm:$0xf] }
 0x1c9   : > { %v6054_v13 = vadd.f32 %v2406_v45, %v2357_v56  ;;  %v6070_v45 = vor.u32 %v4786_v39, %v3941_v10  ;;  %v4376_v10 = vor.u32 %v4897_v28, %v4373_v36  ;;  %v3977_v28 = vld [vmem:[%s5595_s7 + $0x84] sm:$0xf0] }
 0x1cb   : > { %7089 = vst [vmem:[#allocation30_spill] sm:$0xff] %v6070_v45  ;;  %2872 = vmatpush.bf16.msrb.mxu3 %v4376_v10  ;;  %v6096_v10 = vor.u32 %v4800_v46, %v3983_v29  ;;  %v4301_v46 = vld [vmem:[%s5609_s25 + $0xc8] sm:$0xf0] }
 0x1cc   : > { %v2377_v27 = vpop.f32.mrf.mxu2 }
 0x1cd   : > { %v2426_v0 = vpop.f32.mrf.mxu3  ;;  %7091 = vst [vmem:[#allocation32_spill] sm:$0xff] %v6096_v10 }
 0x1ce   : > { %v6068_v22 = vadd.f32 %v2426_v0, %v2377_v27  ;;  %v2536_v56 = vpop.f32.mrf.mxu0  ;;  %v4312_v27 = vor.u32 %v4881_v54, %v4309_v49  ;;  %v3975_v49 = vld [vmem:[%s5595_s7 + $0x60] sm:$0xf] }
 0x1d0   : > { %v2585_v4 = vpop.f32.mrf.mxu1  ;;  %2823 = vmatpush.bf16.msrb.mxu2 %v4312_v27 }
 0x1d1   : > { %2633 = vmatmul.bf16.vlgmr.msra.gmra.mxu2 %v6064_v50  ;;  %2731 = vmatmul.bf16.vlgmr.msra.gmra.mxu0 %v6066_v47  ;;  %v4913_v50 = vld [vmem:[%s5609_s25 + $0x1d4] sm:$0xf] }
 0x1d2   : > { %2682 = vmatmul.bf16.vlgmr.msra.gmra.mxu3 %v6070_v45  ;;  %v4437_v45 = vld [vmem:[%s5609_s25 + $0x1d8] sm:$0xf0] }
 0x1d3   : > { %2780 = vmatmul.bf16.vlgmr.msra.gmra.mxu1 %v5665_v21  ;;  %v4440_v23 = vor.u32 %v4913_v50, %v4437_v45  ;;  %v6098_v50 = vor.u32 %v4795_v58, %v3977_v28 }
 0x1d4   : > { %v2438_v39 = vpop.f32.mrf.mxu2 }
 0x1d5   : > { %v2439_v0 = vadd.f32 %v2438_v39, %v5934_v31  ;;  %v2487_v21 = vpop.f32.mrf.mxu3  ;;  %2921 = vmatpush.bf16.msrb.mxu0 %v4440_v23  ;;  %v4929_v23 = vld [vmem:[%s5609_s25 + $0x254] sm:$0xf] }
 0x1d6   : > { %v2538_v41 = vpop.f32.mrf.mxu0 }
 0x1d7   : > { %v2488_v48 = vadd.f32 %v2487_v21, %v2439_v0 }
 0x1d8   : > { %v2587_v47 = vpop.f32.mrf.mxu1 }
 0x1d9   : > { %v2537_v54 = vadd.f32 %v2536_v56, %v2488_v48  ;;  %v6094_v56 = vor.u32 %v4799_v30, %v3975_v49  ;;  %v4879_v30 = vld [vmem:[%s5609_s25 + $0xc4] sm:$0xf]  ;;  %v4365_v49 = vld [vmem:[%s5609_s25 + $0x148] sm:$0xf0] }
 0x1da   : > { %v4304_v48 = vor.u32 %v4879_v30, %v4301_v46  ;;  %v4911_v30 = vld [vmem:[%s5609_s25 + $0x1c4] sm:$0xf]  ;;  %v4019_v46 = vld [vmem:[%s5595_s7 + $0xb0] sm:$0xf] }
 0x1db   : > { %v6091_v31 = vadd.f32 %v2585_v4, %v2537_v54  ;;  %7090 = vst [vmem:[#allocation31_spill] sm:$0xff] %v6094_v56  ;;  %v4895_v54 = vld [vmem:[%s5609_s25 + $0x144] sm:$0xf] }
 0x1dc   : > { %v2440_v36 = vpop.f32.mrf.mxu2  ;;  %v4368_v28 = vor.u32 %v4895_v54, %v4365_v49  ;;  %2824 = vmatpush.bf16.msrb.mxu2 %v4304_v48  ;;  %v4013_v54 = vld [vmem:[%s5595_s7 + $0xcc] sm:$0xf0] }
 0x1dd   : > { %v2441_v27 = vadd.f32 %v2440_v36, %v5946_v55  ;;  %v2489_v39 = vpop.f32.mrf.mxu3  ;;  %v4501_v55 = vld [vmem:[%s5609_s25 + $0x258] sm:$0xf0] }
 0x1de   : > { %v2541_v0 = vpop.f32.mrf.mxu0  ;;  %v4504_v29 = vor.u32 %v4929_v23, %v4501_v55  ;;  %2873 = vmatpush.bf16.msrb.mxu3 %v4368_v28  ;;  %v4011_v55 = vld [vmem:[%s5595_s7 + $0xa8] sm:$0xf] }
 0x1df   : > { %v2490_v45 = vadd.f32 %v2489_v39, %v2441_v27 }
 0x1e0   : > { %v2590_v21 = vpop.f32.mrf.mxu1  ;;  %2970 = vmatpush.bf16.msrb.mxu1 %v4504_v29  ;;  %v4804_v29 = vld [vmem:[%s5595_s7 + $0xac] sm:$0xf] }
 0x1e1   : > { %v2539_v4 = vadd.f32 %v2538_v41, %v2490_v45  ;;  %2638 = vmatmul.bf16.gmra.mxu2 %v6094_v56  ;;  %2736 = vmatmul.bf16.gmra.mxu0 %v6096_v10  ;;  %v4809_v10 = vld [vmem:[%s5595_s7 + $0xd0] sm:$0xf0] }
 0x1e2   : > { %2687 = vmatmul.bf16.gmra.mxu3 %v6098_v50  ;;  %v6126_v28 = vor.u32 %v4809_v10, %v4019_v46  ;;  %v4357_v46 = vld [vmem:[%s5609_s25 + $0x138] sm:$0xf0] }
 0x1e3   : > { %2785 = vmatmul.bf16.gmra.mxu1 %v5717_v17  ;;  %v6110_v41 = vadd.f32 %v2587_v47, %v2539_v4  ;;  %v4429_v47 = vld [vmem:[%s5609_s25 + $0x1c8] sm:$0xf0] }
 0x1e4   : > { %v2443_v58 = vpop.f32.mrf.mxu2  ;;  %v4808_v4 = vld [vmem:[%s5595_s7 + $0xc8] sm:$0xf0]  ;;  %v4432_v56 = vor.u32 %v4911_v30, %v4429_v47  ;;  %7093 = vst [vmem:[#allocation34_spill] sm:$0xff] %v6126_v28 }
 0x1e5   : > { %v2444_v17 = vadd.f32 %v2443_v58, %v5970_v53  ;;  %v2492_v36 = vpop.f32.mrf.mxu3 }
 0x1e6   : > { %v2543_v27 = vpop.f32.mrf.mxu0  ;;  %2922 = vmatpush.bf16.msrb.mxu0 %v4432_v56  ;;  %v4493_v56 = vld [vmem:[%s5609_s25 + $0x248] sm:$0xf0] }
 0x1e7   : > { %v2493_v39 = vadd.f32 %v2492_v36, %v2444_v17  ;;  %v6128_v36 = vor.u32 %v4804_v29, %v4013_v54 }
 0x1e8   : > { %v2592_v45 = vpop.f32.mrf.mxu1 }
 0x1e9   : > { %v2542_v23 = vadd.f32 %v2541_v0, %v2493_v39  ;;  %v6124_v0 = vor.u32 %v4808_v4, %v4011_v55  ;;  %v4293_v55 = vld [vmem:[%s5609_s25 + $0xb8] sm:$0xf0]  ;;  %v4893_v4 = vld [vmem:[%s5609_s25 + $0x134] sm:$0xf] }
 0x1ea   : > { %v4360_v54 = vor.u32 %v4893_v4, %v4357_v46  ;;  %v4049_v4 = vld [vmem:[%s5595_s7 + $0x114] sm:$0xf0] }
 0x1eb   : > { %v6121_v53 = vadd.f32 %v2590_v21, %v2542_v23  ;;  %7092 = vst [vmem:[#allocation33_spill] sm:$0xff] %v6124_v0  ;;  %v4877_v23 = vld [vmem:[%s5609_s25 + $0xb4] sm:$0xf] }
 0x1ec   : > { %v2445_v49 = vpop.f32.mrf.mxu2  ;;  %v4296_v47 = vor.u32 %v4877_v23, %v4293_v55  ;;  %2874 = vmatpush.bf16.msrb.mxu3 %v4360_v54  ;;  %v4909_v23 = vld [vmem:[%s5609_s25 + $0x1b4] sm:$0xf]  ;;  %v4055_v55 = vld [vmem:[%s5595_s7 + $0xf8] sm:$0xf] }
 0x1ed   : > { %v2446_v48 = vadd.f32 %v2445_v49, %v5982_v18  ;;  %v2494_v58 = vpop.f32.mrf.mxu3  ;;  %v4927_v18 = vld [vmem:[%s5609_s25 + $0x244] sm:$0xf] }
 0x1ee   : > { %v2546_v17 = vpop.f32.mrf.mxu0  ;;  %v4496_v10 = vor.u32 %v4927_v18, %v4493_v56  ;;  %2825 = vmatpush.bf16.msrb.mxu2 %v4296_v47  ;;  %v4047_v56 = vld [vmem:[%s5595_s7 + $0xf0] sm:$0xf] }
 0x1ef   : > { %v2495_v39 = vadd.f32 %v2494_v58, %v2446_v48 }
 0x1f0   : > { %v2595_v30 = vpop.f32.mrf.mxu1  ;;  %2971 = vmatpush.bf16.msrb.mxu1 %v4496_v10  ;;  %v4813_v10 = vld [vmem:[%s5595_s7 + $0xf4] sm:$0xf] }
 0x1f1   : > { %v2544_v21 = vadd.f32 %v2543_v27, %v2495_v39  ;;  %2643 = vmatmul.bf16.gmra.mxu2 %v6124_v0  ;;  %2741 = vmatmul.bf16.gmra.mxu0 %v6126_v28  ;;  %v4818_v28 = vld [vmem:[%s5595_s7 + $0x118] sm:$0xf0] }
 0x1f2   : > { %2692 = vmatmul.bf16.gmra.mxu3 %v6128_v36  ;;  %v6156_v54 = vor.u32 %v4818_v28, %v4055_v55  ;;  %v4349_v55 = vld [vmem:[%s5609_s25 + $0x128] sm:$0xf0] }
 0x1f3   : > { %2790 = vmatmul.bf16.gmra.mxu1 %v5758_v3  ;;  %v6140_v27 = vadd.f32 %v2592_v45, %v2544_v21  ;;  %v4421_v45 = vld [vmem:[%s5609_s25 + $0x1b8] sm:$0xf0]  ;;  %v4817_v21 = vld [vmem:[%s5595_s7 + $0x110] sm:$0xf0] }
 0x1f4   : > { %v2448_v29 = vpop.f32.mrf.mxu2  ;;  %v4424_v0 = vor.u32 %v4909_v23, %v4421_v45  ;;  %7095 = vst [vmem:[#allocation36_spill] sm:$0xff] %v6156_v54 }
 0x1f5   : > { %v2449_v3 = vadd.f32 %v2448_v29, %v6006_v8  ;;  %v2497_v49 = vpop.f32.mrf.mxu3 }
 0x1f6   : > { %v2548_v48 = vpop.f32.mrf.mxu0  ;;  %2923 = vmatpush.bf16.msrb.mxu0 %v4424_v0  ;;  %v4485_v0 = vld [vmem:[%s5609_s25 + $0x238] sm:$0xf0] }
 0x1f7   : > { %v2498_v58 = vadd.f32 %v2497_v49, %v2449_v3  ;;  %v6158_v49 = vor.u32 %v4813_v10, %v4049_v4 }
 0x1f8   : > { %v2597_v39 = vpop.f32.mrf.mxu1 }
 0x1f9   : > { %v2547_v18 = vadd.f32 %v2546_v17, %v2498_v58  ;;  %v6154_v17 = vor.u32 %v4817_v21, %v4047_v56  ;;  %v4285_v56 = vld [vmem:[%s5609_s25 + $0xa8] sm:$0xf0]  ;;  %v4891_v21 = vld [vmem:[%s5609_s25 + $0x124] sm:$0xf] }
 0x1fa   : > { %v4352_v4 = vor.u32 %v4891_v21, %v4349_v55  ;;  %v4085_v21 = vld [vmem:[%s5595_s7 + $0x15c] sm:$0xf0] }
 0x1fb   : > { %v6151_v8 = vadd.f32 %v2595_v30, %v2547_v18  ;;  %7094 = vst [vmem:[#allocation35_spill] sm:$0xff] %v6154_v17  ;;  %v4875_v18 = vld [vmem:[%s5609_s25 + $0xa4] sm:$0xf] }
 0x1fc   : > { %v2450_v46 = vpop.f32.mrf.mxu2  ;;  %v4288_v45 = vor.u32 %v4875_v18, %v4285_v56  ;;  %2875 = vmatpush.bf16.msrb.mxu3 %v4352_v4  ;;  %v4907_v18 = vld [vmem:[%s5609_s25 + $0x1a4] sm:$0xf]  ;;  %v4091_v56 = vld [vmem:[%s5595_s7 + $0x140] sm:$0xf] }
 0x1fd   : > { %v2451_v47 = vadd.f32 %v2450_v46, %v6018_v60  ;;  %v2499_v29 = vpop.f32.mrf.mxu3  ;;  %v4925_v60 = vld [vmem:[%s5609_s25 + $0x234] sm:$0xf] }
 0x1fe   : > { %v2551_v3 = vpop.f32.mrf.mxu0  ;;  %v4488_v28 = vor.u32 %v4925_v60, %v4485_v0  ;;  %2826 = vmatpush.bf16.msrb.mxu2 %v4288_v45  ;;  %v4083_v0 = vld [vmem:[%s5595_s7 + $0x138] sm:$0xf] }
 0x1ff   : > { %v2500_v58 = vadd.f32 %v2499_v29, %v2451_v47 }
 0x200   : > { %v2600_v23 = vpop.f32.mrf.mxu1  ;;  %2972 = vmatpush.bf16.msrb.mxu1 %v4488_v28  ;;  %v4822_v28 = vld [vmem:[%s5595_s7 + $0x13c] sm:$0xf] }
 0x201   : > { %v2549_v30 = vadd.f32 %v2548_v48, %v2500_v58  ;;  %2648 = vmatmul.bf16.gmra.mxu2 %v6154_v17  ;;  %2746 = vmatmul.bf16.gmra.mxu0 %v6156_v54  ;;  %v4827_v54 = vld [vmem:[%s5595_s7 + $0x160] sm:$0xf0] }
 0x202   : > { %2697 = vmatmul.bf16.gmra.mxu3 %v6158_v49  ;;  %v6186_v4 = vor.u32 %v4827_v54, %v4091_v56  ;;  %v4341_v56 = vld [vmem:[%s5609_s25 + $0x118] sm:$0xf0] }
 0x203   : > { %2795 = vmatmul.bf16.gmra.mxu1 %v5788_v38  ;;  %v6170_v48 = vadd.f32 %v2597_v39, %v2549_v30  ;;  %v4413_v39 = vld [vmem:[%s5609_s25 + $0x1a8] sm:$0xf0]  ;;  %v4826_v30 = vld [vmem:[%s5595_s7 + $0x158] sm:$0xf0] }
 0x204   : > { %v2453_v10 = vpop.f32.mrf.mxu2  ;;  %v4416_v17 = vor.u32 %v4907_v18, %v4413_v39  ;;  %7097 = vst [vmem:[#allocation38_spill] sm:$0xff] %v6186_v4 }
 0x205   : > { %v2454_v38 = vadd.f32 %v2453_v10, %v6040_v9  ;;  %v2502_v46 = vpop.f32.mrf.mxu3 }
 0x206   : > { %v2553_v47 = vpop.f32.mrf.mxu0  ;;  %2924 = vmatpush.bf16.msrb.mxu0 %v4416_v17  ;;  %v4477_v17 = vld [vmem:[%s5609_s25 + $0x228] sm:$0xf0] }
 0x207   : > { %v2503_v29 = vadd.f32 %v2502_v46, %v2454_v38  ;;  %v6188_v46 = vor.u32 %v4822_v28, %v4085_v21 }
 0x208   : > { %v2602_v58 = vpop.f32.mrf.mxu1 }
 0x209   : > { %v2552_v60 = vadd.f32 %v2551_v3, %v2503_v29  ;;  %v6184_v3 = vor.u32 %v4826_v30, %v4083_v0  ;;  %v4277_v0 = vld [vmem:[%s5609_s25 + $0x98] sm:$0xf0]  ;;  %v4889_v30 = vld [vmem:[%s5609_s25 + $0x114] sm:$0xf] }
 0x20a   : > { %v4344_v21 = vor.u32 %v4889_v30, %v4341_v56  ;;  %v4121_v30 = vld [vmem:[%s5595_s7 + $0x1a4] sm:$0xf0] }
 0x20b   : > { %v6181_v9 = vadd.f32 %v2600_v23, %v2552_v60  ;;  %7096 = vst [vmem:[#allocation37_spill] sm:$0xff] %v6184_v3  ;;  %v4873_v60 = vld [vmem:[%s5609_s25 + $0x94] sm:$0xf] }
 0x20c   : > { %v2455_v55 = vpop.f32.mrf.mxu2  ;;  %v4280_v39 = vor.u32 %v4873_v60, %v4277_v0  ;;  %2876 = vmatpush.bf16.msrb.mxu3 %v4344_v21  ;;  %v4905_v60 = vld [vmem:[%s5609_s25 + $0x194] sm:$0xf]  ;;  %v4127_v0 = vld [vmem:[%s5595_s7 + $0x188] sm:$0xf] }
 0x20d   : > { %v2456_v45 = vadd.f32 %v2455_v55, %v6054_v13  ;;  %v2504_v10 = vpop.f32.mrf.mxu3  ;;  %v4923_v13 = vld [vmem:[%s5609_s25 + $0x224] sm:$0xf] }
 0x20e   : > { %v2556_v38 = vpop.f32.mrf.mxu0  ;;  %v4480_v54 = vor.u32 %v4923_v13, %v4477_v17  ;;  %2827 = vmatpush.bf16.msrb.mxu2 %v4280_v39  ;;  %v4119_v17 = vld [vmem:[%s5595_s7 + $0x180] sm:$0xf] }
 0x20f   : > { %v2505_v29 = vadd.f32 %v2504_v10, %v2456_v45 }
 0x210   : > { %v2605_v18 = vpop.f32.mrf.mxu1  ;;  %2973 = vmatpush.bf16.msrb.mxu1 %v4480_v54  ;;  %v4831_v54 = vld [vmem:[%s5595_s7 + $0x184] sm:$0xf] }
 0x211   : > { %v2554_v23 = vadd.f32 %v2553_v47, %v2505_v29  ;;  %2653 = vmatmul.bf16.gmra.mxu2 %v6184_v3  ;;  %2751 = vmatmul.bf16.gmra.mxu0 %v6186_v4  ;;  %v4836_v4 = vld [vmem:[%s5595_s7 + $0x1a8] sm:$0xf0] }
 0x212   : > { %2702 = vmatmul.bf16.gmra.mxu3 %v6188_v46  ;;  %v6216_v21 = vor.u32 %v4836_v4, %v4127_v0  ;;  %v4333_v0 = vld [vmem:[%s5609_s25 + $0x108] sm:$0xf0] }
 0x213   : > { %2800 = vmatmul.bf16.gmra.mxu1 %v5663_v20  ;;  %v6200_v47 = vadd.f32 %v2602_v58, %v2554_v23  ;;  %v4405_v58 = vld [vmem:[%s5609_s25 + $0x198] sm:$0xf0]  ;;  %v4835_v23 = vld [vmem:[%s5595_s7 + $0x1a0] sm:$0xf0] }
 0x214   : > { %v2458_v28 = vpop.f32.mrf.mxu2  ;;  %v4408_v3 = vor.u32 %v4905_v60, %v4405_v58  ;;  %7099 = vst [vmem:[#allocation40_spill] sm:$0xff] %v6216_v21 }
 0x215   : > { %v2459_v20 = vadd.f32 %v2458_v28, %v5944_v52  ;;  %v2507_v55 = vpop.f32.mrf.mxu3 }
 0x216   : > { %v2558_v45 = vpop.f32.mrf.mxu0  ;;  %2925 = vmatpush.bf16.msrb.mxu0 %v4408_v3  ;;  %v4469_v3 = vld [vmem:[%s5609_s25 + $0x218] sm:$0xf0] }
 0x217   : > { %v2508_v10 = vadd.f32 %v2507_v55, %v2459_v20  ;;  %v6218_v55 = vor.u32 %v4831_v54, %v4121_v30 }
 0x218   : > { %v2607_v29 = vpop.f32.mrf.mxu1 }
 0x219   : > { %v2557_v13 = vadd.f32 %v2556_v38, %v2508_v10  ;;  %v6214_v38 = vor.u32 %v4835_v23, %v4119_v17  ;;  %v4269_v17 = vld [vmem:[%s5609_s25 + $0x88] sm:$0xf0]  ;;  %v4887_v23 = vld [vmem:[%s5609_s25 + $0x104] sm:$0xf] }
 0x21a   : > { %v4336_v30 = vor.u32 %v4887_v23, %v4333_v0  ;;  %v4840_v23 = vld [vmem:[%s5595_s7 + $0x1cc] sm:$0xf]  ;;  %v4157_v0 = vld [vmem:[%s5595_s7 + $0x1ec] sm:$0xf0] }
 0x21b   : > { %v6211_v52 = vadd.f32 %v2605_v18, %v2557_v13  ;;  %7098 = vst [vmem:[#allocation39_spill] sm:$0xff] %v6214_v38  ;;  %v4871_v13 = vld [vmem:[%s5609_s25 + $0x84] sm:$0xf] }
 0x21c   : > { %v2460_v56 = vpop.f32.mrf.mxu2  ;;  %v4272_v58 = vor.u32 %v4871_v13, %v4269_v17  ;;  %2877 = vmatpush.bf16.msrb.mxu3 %v4336_v30  ;;  %v4903_v13 = vld [vmem:[%s5609_s25 + $0x184] sm:$0xf]  ;;  %v4163_v17 = vld [vmem:[%s5595_s7 + $0x1d0] sm:$0xf] }
 0x21d   : > { %v2461_v39 = vadd.f32 %v2460_v56, %v5962_v32  ;;  %v2509_v28 = vpop.f32.mrf.mxu3  ;;  %v4921_v32 = vld [vmem:[%s5609_s25 + $0x214] sm:$0xf] }
 0x21e   : > { %v2561_v20 = vpop.f32.mrf.mxu0  ;;  %v4472_v4 = vor.u32 %v4921_v32, %v4469_v3  ;;  %2828 = vmatpush.bf16.msrb.mxu2 %v4272_v58  ;;  %v4155_v3 = vld [vmem:[%s5595_s7 + $0x1c8] sm:$0xf] }
 0x21f   : > { %v2510_v10 = vadd.f32 %v2509_v28, %v2461_v39 }
 0x220   : > { %v2610_v60 = vpop.f32.mrf.mxu1  ;;  %2974 = vmatpush.bf16.msrb.mxu1 %v4472_v4 }
 0x221   : > { %v2559_v18 = vadd.f32 %v2558_v45, %v2510_v10  ;;  %2658 = vmatmul.bf16.gmra.mxu2 %v6214_v38  ;;  %2756 = vmatmul.bf16.gmra.mxu0 %v6216_v21  ;;  %v4845_v21 = vld [vmem:[%s5595_s7 + $0x1f0] sm:$0xf0] }
 0x222   : > { %2707 = vmatmul.bf16.gmra.mxu3 %v6218_v55 }
 0x223   : > { %2805 = vmatmul.bf16.gmra.mxu1 %v5715_v16  ;;  %v6230_v45 = vadd.f32 %v2607_v29, %v2559_v18  ;;  %v4397_v29 = vld [vmem:[%s5609_s25 + $0x188] sm:$0xf0] }
 0x224   : > { %v2463_v54 = vpop.f32.mrf.mxu2  ;;  %v4844_v18 = vld [vmem:[%s5595_s7 + $0x1e8] sm:$0xf0]  ;;  %v4400_v4 = vor.u32 %v4903_v13, %v4397_v29 }
 0x225   : > { %v2464_v16 = vadd.f32 %v2463_v54, %v5980_v11  ;;  %v2512_v56 = vpop.f32.mrf.mxu3 }
 0x226   : > { %v2563_v39 = vpop.f32.mrf.mxu0  ;;  %2926 = vmatpush.bf16.msrb.mxu0 %v4400_v4  ;;  %v4645_v4 = vld [vmem:[%s5609_s25 + $0x378] sm:$0xf0] }
 0x227   : > { %v2513_v28 = vadd.f32 %v2512_v56, %v2464_v16  ;;  %v6246_v16 = vor.u32 %v4845_v21, %v4163_v17  ;;  %v4949_v21 = vld [vmem:[%s5609_s25 + $0x2f4] sm:$0xf] }
 0x228   : > { %v2612_v10 = vpop.f32.mrf.mxu1 }
 0x229   : > { %v2562_v32 = vadd.f32 %v2561_v20, %v2513_v28  ;;  %v6244_v20 = vor.u32 %v4844_v18, %v4155_v3  ;;  %7101 = vst [vmem:[#allocation42_spill] sm:$0xff] %v6246_v16  ;;  %v6248_v28 = vor.u32 %v4840_v23, %v4157_v0  ;;  %v4581_v3 = vld [vmem:[%s5609_s25 + $0x2f8] sm:$0xf0]  ;;  %v4965_v18 = vld [vmem:[%s5609_s25 + $0x374] sm:$0xf] }
 0x22a   : > { %v4584_v17 = vor.u32 %v4949_v21, %v4581_v3  ;;  %v4648_v0 = vor.u32 %v4965_v18, %v4645_v4  ;;  %v4199_v21 = vld [vmem:[%s5595_s7 + $0x218] sm:$0xf]  ;;  %v4854_v3 = vld [vmem:[%s5595_s7 + $0x238] sm:$0xf0] }
 0x22b   : > { %v6241_v11 = vadd.f32 %v2610_v60, %v2562_v32  ;;  %7100 = vst [vmem:[#allocation41_spill] sm:$0xff] %v6244_v20  ;;  %v4919_v60 = vld [vmem:[%s5609_s25 + $0x204] sm:$0xf]  ;;  %v4461_v32 = vld [vmem:[%s5609_s25 + $0x208] sm:$0xf0] }
 0x22c   : > { %v2465_v54 = vpop.f32.mrf.mxu2  ;;  %3017 = vmatpush.bf16.msra.mxu2 %v4584_v17  ;;  %3066 = vmatpush.bf16.msra.mxu3 %v4648_v0  ;;  %v4981_v0 = vld [vmem:[%s5609_s25 + $0x3f4] sm:$0xf] }
 0x22d   : > { %v2466_v58 = vadd.f32 %v2465_v54, %v5998_v12  ;;  %v2514_v30 = vpop.f32.mrf.mxu3  ;;  %v4464_v12 = vor.u32 %v4919_v60, %v4461_v32  ;;  %v4191_v32 = vld [vmem:[%s5595_s7 + $0x210] sm:$0xf] }
 0x22e   : > { %v2566_v56 = vpop.f32.mrf.mxu0 }
 0x22f   : > { %v2515_v13 = vadd.f32 %v2514_v30, %v2466_v58  ;;  %2975 = vmatpush.bf16.msrb.mxu1 %v4464_v12  ;;  %v4853_v12 = vld [vmem:[%s5595_s7 + $0x230] sm:$0xf0] }
 0x230   : > { %v2615_v29 = vpop.f32.mrf.mxu1  ;;  %v6272_v17 = vor.u32 %v4853_v12, %v4191_v32 }
 0x231   : > { %v2564_v38 = vadd.f32 %v2563_v39, %v2515_v13  ;;  %2663 = vmatmul.bf16.gmra.mxu2 %v6244_v20  ;;  %2761 = vmatmul.bf16.gmra.mxu0 %v6246_v16 }
 0x232   : > { %2712 = vmatmul.bf16.gmra.mxu3 %v6248_v28  ;;  %7102 = vst [vmem:[#allocation43_spill] sm:$0xff] %v6272_v17 }
 0x233   : > { %2810 = vmatmul.bf16.gmra.mxu1 %v5756_v2  ;;  %v6260_v39 = vadd.f32 %v2612_v10, %v2564_v38  ;;  %v4849_v38 = vld [vmem:[%s5595_s7 + $0x214] sm:$0xf]  ;;  %v4193_v10 = vld [vmem:[%s5595_s7 + $0x234] sm:$0xf0] }
 0x234   : > { %v2468_v23 = vpop.f32.mrf.mxu2 }
 0x235   : > { %v2469_v54 = vadd.f32 %v2468_v23, %v6016_v57  ;;  %v2517_v58 = vpop.f32.mrf.mxu3  ;;  %v6274_v23 = vor.u32 %v4854_v3, %v4199_v21  ;;  %v4997_v3 = vld [vmem:[%s5609_s25 + $0x474] sm:$0xf] }
 0x236   : > { %v2568_v2 = vpop.f32.mrf.mxu0 }
 0x237   : > { %v2518_v30 = vadd.f32 %v2517_v58, %v2469_v54  ;;  %7103 = vst [vmem:[#allocation44_spill] sm:$0xff] %v6274_v23  ;;  %v4709_v54 = vld [vmem:[%s5609_s25 + $0x3f8] sm:$0xf0]  ;;  %v6278_v58 = vor.u32 %v4849_v38, %v4193_v10  ;;  %v4947_v10 = vld [vmem:[%s5609_s25 + $0x2e4] sm:$0xf] }
 0x238   : > { %v2617_v13 = vpop.f32.mrf.mxu1  ;;  %v4773_v38 = vld [vmem:[%s5609_s25 + $0x478] sm:$0xf0] }
 0x239   : > { %v2567_v60 = vadd.f32 %v2566_v56, %v2518_v30  ;;  %v4712_v30 = vor.u32 %v4981_v0, %v4709_v54 }
 0x23b   : > { %v6269_v16 = vadd.f32 %v2615_v29, %v2567_v60  ;;  %3115 = vmatpush.bf16.msra.mxu0 %v4712_v30 }
 0x23c   : > { %v2470_v18 = vpop.f32.mrf.mxu2 }
 0x23d   : > { %v2471_v57 = vadd.f32 %v2470_v18, %v6034_v59  ;;  %v2519_v4 = vpop.f32.mrf.mxu3 }
 0x23e   : > { %v2571_v56 = vpop.f32.mrf.mxu0 }
 0x23f   : > { %v2520_v20 = vadd.f32 %v2519_v4, %v2471_v57  ;;  %v4963_v57 = vld [vmem:[%s5609_s25 + $0x364] sm:$0xf]  ;;  %v4637_v4 = vld [vmem:[%s5609_s25 + $0x368] sm:$0xf0] }
 0x240   : > { %v2620_v29 = vpop.f32.mrf.mxu1 }
 0x241   : > { %v2569_v59 = vadd.f32 %v2568_v2, %v2520_v20  ;;  %2668 = vmatmul.bf16.gmra.mxu2 %v6272_v17  ;;  %2766 = vmatmul.bf16.gmra.mxu0 %v6274_v23  ;;  %v4776_v20 = vor.u32 %v4997_v3, %v4773_v38  ;;  %v4573_v2 = vld [vmem:[%s5609_s25 + $0x2e8] sm:$0xf0]  ;;  %v4979_v3 = vld [vmem:[%s5609_s25 + $0x3e4] sm:$0xf] }
 0x242   : > { %2717 = vmatmul.bf16.gmra.mxu3 %v6278_v58  ;;  %v4576_v30 = vor.u32 %v4947_v10, %v4573_v2  ;;  %v4701_v38 = vld [vmem:[%s5609_s25 + $0x3e8] sm:$0xf0]  ;;  %v4995_v2 = vld [vmem:[%s5609_s25 + $0x464] sm:$0xf] }
 0x243   : > { %2815 = vmatmul.bf16.gmra.mxu1 %v5786_v37  ;;  %v6284_v60 = vadd.f32 %v2617_v13, %v2569_v59  ;;  %v4640_v37 = vor.u32 %v4963_v57, %v4637_v4  ;;  %v4765_v57 = vld [vmem:[%s5609_s25 + $0x468] sm:$0xf0]  ;;  %v4945_v4 = vld [vmem:[%s5609_s25 + $0x2d4] sm:$0xf] }
 0x244   : > { %v2473_v32 = vpop.f32.mrf.mxu2  ;;  %3164 = vmatpush.bf16.msra.mxu1 %v4776_v20  ;;  %3018 = vmatpush.bf16.msra.mxu2 %v4576_v30  ;;  %v4565_v30 = vld [vmem:[%s5609_s25 + $0x2d8] sm:$0xf0] }
 0x245   : > { %v2474_v12 = vadd.f32 %v2473_v32, %v6052_v51  ;;  %v2522_v21 = vpop.f32.mrf.mxu3  ;;  %3067 = vmatpush.bf16.msra.mxu3 %v4640_v37  ;;  %v4961_v37 = vld [vmem:[%s5609_s25 + $0x354] sm:$0xf] }
 0x246   : > { %v2573_v18 = vpop.f32.mrf.mxu0 }
 0x247   : > { %v2523_v0 = vadd.f32 %v2522_v21, %v2474_v12  ;;  %v4704_v12 = vor.u32 %v4979_v3, %v4701_v38 }
 0x248   : > { %v2622_v54 = vpop.f32.mrf.mxu1 }
 0x249   : > { %v2572_v13 = vadd.f32 %v2571_v56, %v2523_v0  ;;  %3116 = vmatpush.bf16.msra.mxu0 %v4704_v12  ;;  %v4977_v12 = vld [vmem:[%s5609_s25 + $0x3d4] sm:$0xf] }
 0x24b   : > { %v6293_v51 = vadd.f32 %v2620_v29, %v2572_v13  ;;  %v987_v13 = vld [vmem:[#allocation2 + $0xb0] sm:$0xff] }
 0x24c   : > { %v2475_v59 = vpop.f32.mrf.mxu2 }
 0x24d   : > { %v2476_v32 = vadd.f32 %v2475_v59, %v6068_v22  ;;  %v2524_v23 = vpop.f32.mrf.mxu3 }
 0x24e   : > { %v2732_v17 = vpop.f32.mrf.mxu0 }
 0x24f   : > { %v2525_v21 = vadd.f32 %v2524_v23, %v2476_v32 }
 0x250   : > { %v6298_v10 = vpop.f32.mrf.mxu1 }
 0x251   : > { %v2574_v56 = vadd.f32 %v2573_v18, %v2525_v21  ;;  %2829 = vmatmul.bf16.vlgmr.msrb.gmra.mxu2 %v5672_v26  ;;  %2927 = vmatmul.bf16.vlgmr.msrb.gmra.mxu0 %v5818_v63  ;;  %v4768_v18 = vor.u32 %v4995_v2, %v4765_v57  ;;  %v4629_v26 = vld [vmem:[%s5609_s25 + $0x358] sm:$0xf0] }
 0x252   : > { %2878 = vmatmul.bf16.vlgmr.msrb.gmra.mxu3 %v5814_v61  ;;  %v4693_v21 = vld [vmem:[%s5609_s25 + $0x3d8] sm:$0xf0] }
 0x253   : > { %2976 = vmatmul.bf16.vlgmr.msrb.gmra.mxu1 %v5816_v62  ;;  %v6304_v22 = vadd.f32 %v2622_v54, %v2574_v56  ;;  %v4568_v62 = vor.u32 %v4945_v4, %v4565_v30  ;;  %v4632_v54 = vor.u32 %v4961_v37, %v4629_v26  ;;  %v989_v2 = vld [vmem:[#allocation2 + $0xd8] sm:$0xff]  ;;  %v4993_v30 = vld [vmem:[%s5609_s25 + $0x454] sm:$0xf] }
 0x254   : > { %v2634_v29 = vpop.f32.mrf.mxu2  ;;  %3165 = vmatpush.bf16.msra.mxu1 %v4768_v18  ;;  %v4757_v37 = vld [vmem:[%s5609_s25 + $0x458] sm:$0xf0] }
 0x255   : > { %v2635_v23 = vadd.f32 %v2634_v29, %v6091_v31  ;;  %v2683_v20 = vpop.f32.mrf.mxu3  ;;  %3019 = vmatpush.bf16.msra.mxu2 %v4568_v62  ;;  %3068 = vmatpush.bf16.msra.mxu3 %v4632_v54  ;;  %v4696_v29 = vor.u32 %v4977_v12, %v4693_v21  ;;  %v4557_v62 = vld [vmem:[%s5609_s25 + $0x2c8] sm:$0xf0]  ;;  %v4975_v12 = vld [vmem:[%s5609_s25 + $0x3c4] sm:$0xf] }
 0x256   : > { %v2734_v0 = vpop.f32.mrf.mxu0  ;;  %v4621_v54 = vld [vmem:[%s5609_s25 + $0x348] sm:$0xf0] }
 0x257   : > { %v2684_v63 = vadd.f32 %v2683_v20, %v2635_v23  ;;  %3117 = vmatpush.bf16.msra.mxu0 %v4696_v29  ;;  %v4685_v21 = vld [vmem:[%s5609_s25 + $0x3c8] sm:$0xf0] }
 0x258   : > { %v6313_v61 = vpop.f32.mrf.mxu1 }
 0x259   : > { %v2733_v59 = vadd.f32 %v2732_v17, %v2684_v63  ;;  %v4943_v63 = vld [vmem:[%s5609_s25 + $0x2c4] sm:$0xf] }
 0x25b   : > { %v3213_v31 = vadd.f32 %v2733_v59, %v987_v13  ;;  %v991_v13 = vld [vmem:[#allocation2 + $0x50] sm:$0xff] }
 0x25c   : > { %v2636_v32 = vpop.f32.mrf.mxu2 }
 0x25d   : > { %3245 = vst [vmem:[#allocation2 + $0xb0] sm:$0xff] %v3213_v31  ;;  %v2637_v3 = vadd.f32 %v2636_v32, %v6110_v41  ;;  %v2685_v38 = vpop.f32.mrf.mxu3 }
 0x25e   : > { %v2737_v56 = vpop.f32.mrf.mxu0 }
 0x25f   : > { %v2686_v23 = vadd.f32 %v2685_v38, %v2637_v3 }
 0x260   : > { %v6318_v20 = vpop.f32.mrf.mxu1 }
 0x261   : > { %v2735_v17 = vadd.f32 %v2734_v0, %v2686_v23  ;;  %2834 = vmatmul.bf16.gmra.mxu2 %v5724_v24  ;;  %2932 = vmatmul.bf16.gmra.mxu0 %v5846_v35  ;;  %v4760_v0 = vor.u32 %v4993_v30, %v4757_v37  ;;  %v4959_v24 = vld [vmem:[%s5609_s25 + $0x344] sm:$0xf]  ;;  %v4688_v23 = vor.u32 %v4975_v12, %v4685_v21  ;;  %v4749_v37 = vld [vmem:[%s5609_s25 + $0x448] sm:$0xf0] }
 0x262   : > { %2883 = vmatmul.bf16.gmra.mxu3 %v5842_v33  ;;  %v4624_v59 = vor.u32 %v4959_v24, %v4621_v54  ;;  %v4991_v30 = vld [vmem:[%s5609_s25 + $0x444] sm:$0xf]  ;;  %v4613_v24 = vld [vmem:[%s5609_s25 + $0x338] sm:$0xf0] }
 0x263   : > { %2981 = vmatmul.bf16.gmra.mxu1 %v5844_v34  ;;  %v3215_v41 = vadd.f32 %v2735_v17, %v989_v2  ;;  %v4560_v34 = vor.u32 %v4943_v63, %v4557_v62  ;;  %3118 = vmatpush.bf16.msra.mxu0 %v4688_v23  ;;  %v4941_v63 = vld [vmem:[%s5609_s25 + $0x2b4] sm:$0xf]  ;;  %v4549_v62 = vld [vmem:[%s5609_s25 + $0x2b8] sm:$0xf0]  ;;  %v997_v23 = vld [vmem:[#allocation2 + $0xe8] sm:$0xff] }
 0x264   : > { %v2639_v57 = vpop.f32.mrf.mxu2  ;;  %3166 = vmatpush.bf16.msra.mxu1 %v4760_v0  ;;  %3069 = vmatpush.bf16.msra.mxu3 %v4624_v59 }
 0x265   : > { %3247 = vst [vmem:[#allocation2 + $0xd8] sm:$0xff] %v3215_v41  ;;  %v2640_v4 = vadd.f32 %v2639_v57, %v6121_v53  ;;  %v2688_v18 = vpop.f32.mrf.mxu3  ;;  %3020 = vmatpush.bf16.msra.mxu2 %v4560_v34  ;;  %v993_v41 = vld [vmem:[#allocation2 + $0x30] sm:$0xff] }
 0x266   : > { %v2739_v26 = vpop.f32.mrf.mxu0 }
 0x267   : > { %v2689_v35 = vadd.f32 %v2688_v18, %v2640_v4 }
 0x268   : > { %v6330_v33 = vpop.f32.mrf.mxu1 }
 0x269   : > { %v2738_v31 = vadd.f32 %v2737_v56, %v2689_v35  ;;  %v995_v35 = vld [vmem:[#allocation2 + $0x80] sm:$0xff] }
 0x26b   : > { %v3217_v53 = vadd.f32 %v2738_v31, %v991_v13 }
 0x26c   : > { %v2641_v32 = vpop.f32.mrf.mxu2 }
 0x26d   : > { %3249 = vst [vmem:[#allocation2 + $0x50] sm:$0xff] %v3217_v53  ;;  %v2642_v3 = vadd.f32 %v2641_v32, %v6140_v27  ;;  %v2690_v38 = vpop.f32.mrf.mxu3  ;;  %v4973_v53 = vld [vmem:[%s5609_s25 + $0x3b4] sm:$0xf]  ;;  %v4677_v32 = vld [vmem:[%s5609_s25 + $0x3b8] sm:$0xf0] }
 0x26e   : > { %v2742_v29 = vpop.f32.mrf.mxu0 }
 0x26f   : > { %v2691_v2 = vadd.f32 %v2690_v38, %v2642_v3  ;;  %v4680_v38 = vor.u32 %v4973_v53, %v4677_v32 }
 0x270   : > { %v6336_v17 = vpop.f32.mrf.mxu1 }
 0x271   : > { %v2740_v56 = vadd.f32 %v2739_v26, %v2691_v2  ;;  %2839 = vmatmul.bf16.gmra.mxu2 %v5762_v5  ;;  %2937 = vmatmul.bf16.gmra.mxu0 %v5874_v7  ;;  %v4752_v26 = vor.u32 %v4991_v30, %v4749_v37  ;;  %v4957_v5 = vld [vmem:[%s5609_s25 + $0x334] sm:$0xf]  ;;  %v4939_v30 = vld [vmem:[%s5609_s25 + $0x2a4] sm:$0xf]  ;;  %v4541_v37 = vld [vmem:[%s5609_s25 + $0x2a8] sm:$0xf0] }
 0x272   : > { %2888 = vmatmul.bf16.gmra.mxu3 %v5870_v1  ;;  %v4616_v34 = vor.u32 %v4957_v5, %v4613_v24  ;;  %3119 = vmatpush.bf16.msra.mxu0 %v4680_v38  ;;  %v4971_v24 = vld [vmem:[%s5609_s25 + $0x3a4] sm:$0xf] }
 0x273   : > { %2986 = vmatmul.bf16.gmra.mxu1 %v5872_v6  ;;  %v3219_v27 = vadd.f32 %v2740_v56, %v993_v41  ;;  %v4552_v6 = vor.u32 %v4941_v63, %v4549_v62  ;;  %v4987_v38 = vld [vmem:[%s5609_s25 + $0x424] sm:$0xf] }
 0x274   : > { %v2644_v57 = vpop.f32.mrf.mxu2  ;;  %3167 = vmatpush.bf16.msra.mxu1 %v4752_v26  ;;  %3070 = vmatpush.bf16.msra.mxu3 %v4616_v34  ;;  %v999_v26 = vld [vmem:[#allocation2 + $0x60] sm:$0xff] }
 0x275   : > { %3251 = vst [vmem:[#allocation2 + $0x30] sm:$0xff] %v3219_v27  ;;  %v2645_v4 = vadd.f32 %v2644_v57, %v6151_v8  ;;  %v2693_v18 = vpop.f32.mrf.mxu3  ;;  %3021 = vmatpush.bf16.msra.mxu2 %v4552_v6  ;;  %v4989_v27 = vld [vmem:[%s5609_s25 + $0x434] sm:$0xf]  ;;  %v4741_v57 = vld [vmem:[%s5609_s25 + $0x438] sm:$0xf0] }
 0x276   : > { %v2744_v0 = vpop.f32.mrf.mxu0 }
 0x277   : > { %v2694_v7 = vadd.f32 %v2693_v18, %v2645_v4  ;;  %v4744_v18 = vor.u32 %v4989_v27, %v4741_v57 }
 0x278   : > { %v6348_v1 = vpop.f32.mrf.mxu1 }
 0x279   : > { %v2743_v54 = vadd.f32 %v2742_v29, %v2694_v7  ;;  %3168 = vmatpush.bf16.msra.mxu1 %v4744_v18 }
 0x27b   : > { %v3221_v8 = vadd.f32 %v2743_v54, %v995_v35  ;;  %v4669_v35 = vld [vmem:[%s5609_s25 + $0x3a8] sm:$0xf0] }
 0x27c   : > { %v2646_v13 = vpop.f32.mrf.mxu2  ;;  %v4672_v54 = vor.u32 %v4971_v24, %v4669_v35 }
 0x27d   : > { %3253 = vst [vmem:[#allocation2 + $0x80] sm:$0xff] %v3221_v8  ;;  %v2647_v59 = vadd.f32 %v2646_v13, %v6170_v48  ;;  %v2695_v31 = vpop.f32.mrf.mxu3 }
 0x27e   : > { %v2747_v3 = vpop.f32.mrf.mxu0  ;;  %3120 = vmatpush.bf16.msra.mxu0 %v4672_v54  ;;  %v4985_v54 = vld [vmem:[%s5609_s25 + $0x414] sm:$0xf] }
 0x27f   : > { %v2696_v12 = vadd.f32 %v2695_v31, %v2647_v59  ;;  %v1001_v59 = vld [vmem:[#allocation2 + $0x8] sm:$0xff] }
 0x280   : > { %v6354_v21 = vpop.f32.mrf.mxu1 }
 0x281   : > { %v2745_v29 = vadd.f32 %v2744_v0, %v2696_v12  ;;  %2844 = vmatmul.bf16.gmra.mxu2 %v5792_v40  ;;  %2942 = vmatmul.bf16.gmra.mxu0 %v5900_v44  ;;  %v4955_v40 = vld [vmem:[%s5609_s25 + $0x324] sm:$0xf]  ;;  %v4605_v0 = vld [vmem:[%s5609_s25 + $0x328] sm:$0xf0] }
 0x282   : > { %2893 = vmatmul.bf16.gmra.mxu3 %v5896_v42  ;;  %v4608_v63 = vor.u32 %v4955_v40, %v4605_v0  ;;  %v4733_v12 = vld [vmem:[%s5609_s25 + $0x428] sm:$0xf0]  ;;  %v4661_v40 = vld [vmem:[%s5609_s25 + $0x398] sm:$0xf0] }
 0x283   : > { %2991 = vmatmul.bf16.gmra.mxu1 %v5898_v43  ;;  %v3223_v48 = vadd.f32 %v2745_v29, %v997_v23  ;;  %v4544_v43 = vor.u32 %v4939_v30, %v4541_v37  ;;  %v4736_v29 = vor.u32 %v4987_v38, %v4733_v12  ;;  %v4969_v37 = vld [vmem:[%s5609_s25 + $0x394] sm:$0xf] }
 0x284   : > { %v2649_v2 = vpop.f32.mrf.mxu2  ;;  %3071 = vmatpush.bf16.msra.mxu3 %v4608_v63  ;;  %v1005_v63 = vld [vmem:[#allocation2 + $0x40] sm:$0xff] }
 0x285   : > { %3255 = vst [vmem:[#allocation2 + $0xe8] sm:$0xff] %v3223_v48  ;;  %v2650_v41 = vadd.f32 %v2649_v2, %v6181_v9  ;;  %v2698_v56 = vpop.f32.mrf.mxu3  ;;  %3022 = vmatpush.bf16.msra.mxu2 %v4544_v43  ;;  %v4937_v48 = vld [vmem:[%s5609_s25 + $0x294] sm:$0xf]  ;;  %v4533_v2 = vld [vmem:[%s5609_s25 + $0x298] sm:$0xf0]  ;;  %3169 = vmatpush.bf16.msra.mxu1 %v4736_v29  ;;  %v4664_v43 = vor.u32 %v4969_v37, %v4661_v40  ;;  %v1007_v29 = vld [vmem:[#allocation2 + $0xe0] sm:$0xff] }
 0x286   : > { %v2749_v4 = vpop.f32.mrf.mxu0  ;;  %v4717_v37 = vld [vmem:[%s5609_s25 + $0x408] sm:$0xf0] }
 0x287   : > { %v2699_v44 = vadd.f32 %v2698_v56, %v2650_v41  ;;  %v4597_v41 = vld [vmem:[%s5609_s25 + $0x318] sm:$0xf0]  ;;  %3121 = vmatpush.bf16.msra.mxu0 %v4664_v43  ;;  %v7109_v43 = vld [vmem:[#allocation22_spill] sm:$0xff] }
 0x288   : > { %v6366_v42 = vpop.f32.mrf.mxu1  ;;  %v1003_v56 = vld [vmem:[#allocation2 + $0x38] sm:$0xff] }
 0x289   : > { %v2748_v62 = vadd.f32 %v2747_v3, %v2699_v44 }
 0x28b   : > { %v3225_v9 = vadd.f32 %v2748_v62, %v999_v26 }
 0x28c   : > { %v2651_v5 = vpop.f32.mrf.mxu2 }
 0x28d   : > { %3257 = vst [vmem:[#allocation2 + $0x60] sm:$0xff] %v3225_v9  ;;  %v2652_v7 = vadd.f32 %v2651_v5, %v6200_v47  ;;  %v2700_v6 = vpop.f32.mrf.mxu3  ;;  %v7104_v9 = vld [vmem:[#allocation8_spill] sm:$0xff]  ;;  %v7105_v5 = vld [vmem:[#allocation18_spill] sm:$0xff] }
 0x28e   : > { %v2752_v34 = vpop.f32.mrf.mxu0 }
 0x28f   : > { %v2701_v8 = vadd.f32 %v2700_v6, %v2652_v7  ;;  %v7107_v7 = vld [vmem:[#allocation17_spill] sm:$0xff] }
 0x290   : > { %v6372_v13 = vpop.f32.mrf.mxu1 }
 0x291   : > { %v2750_v31 = vadd.f32 %v2749_v4, %v2701_v8  ;;  %2849 = vmatmul.bf16.gmra.mxu2 %v5670_v25  ;;  %2947 = vmatmul.bf16.gmra.mxu0 %v5928_v19  ;;  %v4953_v25 = vld [vmem:[%s5609_s25 + $0x314] sm:$0xf]  ;;  %v4725_v8 = vld [vmem:[%s5609_s25 + $0x418] sm:$0xf0] }
 0x292   : > { %2898 = vmatmul.bf16.gmra.mxu3 %v5924_v14  ;;  %v4600_v27 = vor.u32 %v4953_v25, %v4597_v41  ;;  %v4967_v41 = vld [vmem:[%s5609_s25 + $0x384] sm:$0xf] }
 0x293   : > { %2996 = vmatmul.bf16.gmra.mxu1 %v5926_v15  ;;  %v3227_v47 = vadd.f32 %v2750_v31, %v1001_v59  ;;  %v4536_v15 = vor.u32 %v4937_v48, %v4533_v2  ;;  %v4728_v31 = vor.u32 %v4985_v54, %v4725_v8 }
 0x294   : > { %v2654_v53 = vpop.f32.mrf.mxu2  ;;  %3072 = vmatpush.bf16.msra.mxu3 %v4600_v27 }
 0x295   : > { %3259 = vst [vmem:[#allocation2 + $0x8] sm:$0xff] %v3227_v47  ;;  %v2655_v32 = vadd.f32 %v2654_v53, %v6211_v52  ;;  %v2703_v3 = vpop.f32.mrf.mxu3  ;;  %3023 = vmatpush.bf16.msra.mxu2 %v4536_v15  ;;  %v4935_v47 = vld [vmem:[%s5609_s25 + $0x284] sm:$0xf]  ;;  %v4525_v53 = vld [vmem:[%s5609_s25 + $0x288] sm:$0xf0]  ;;  %3170 = vmatpush.bf16.msra.mxu1 %v4728_v31 }
 0x296   : > { %v2754_v23 = vpop.f32.mrf.mxu0  ;;  %v4528_v12 = vor.u32 %v4935_v47, %v4525_v53 }
 0x297   : > { %v2704_v19 = vadd.f32 %v2703_v3, %v2655_v32  ;;  %v4951_v32 = vld [vmem:[%s5609_s25 + $0x304] sm:$0xf] }
 0x298   : > { %v6384_v14 = vpop.f32.mrf.mxu1 }
 0x299   : > { %v2753_v57 = vadd.f32 %v2752_v34, %v2704_v19  ;;  %3024 = vmatpush.bf16.msra.mxu2 %v4528_v12 }
 0x29b   : > { %v3229_v52 = vadd.f32 %v2753_v57, %v1003_v56  ;;  %v4653_v56 = vld [vmem:[%s5609_s25 + $0x388] sm:$0xf0] }
 0x29c   : > { %v2656_v4 = vpop.f32.mrf.mxu2  ;;  %v4656_v57 = vor.u32 %v4967_v41, %v4653_v56  ;;  %v1015_v56 = vld [vmem:[#allocation2 + $0xa0] sm:$0xff] }
 0x29d   : > { %3261 = vst [vmem:[#allocation2 + $0x38] sm:$0xff] %v3229_v52  ;;  %v2657_v18 = vadd.f32 %v2656_v4, %v6230_v45  ;;  %v2705_v30 = vpop.f32.mrf.mxu3  ;;  %v7106_v45 = vld [vmem:[#allocation16_spill] sm:$0xff] }
 0x29e   : > { %v2757_v44 = vpop.f32.mrf.mxu0  ;;  %3122 = vmatpush.bf16.msra.mxu0 %v4656_v57 }
 0x29f   : > { %v2706_v0 = vadd.f32 %v2705_v30, %v2657_v18  ;;  %v1009_v18 = vld [vmem:[#allocation2 + $0x70] sm:$0xff]  ;;  %v4983_v30 = vld [vmem:[%s5609_s25 + $0x404] sm:$0xf] }
 0x2a0   : > { %v6390_v26 = vpop.f32.mrf.mxu1 }
 0x2a1   : > { %v2755_v62 = vadd.f32 %v2754_v23, %v2706_v0  ;;  %2854 = vmatmul.bf16.gmra.mxu2 %v7104_v9  ;;  %2952 = vmatmul.bf16.gmra.mxu0 %v7105_v5  ;;  %v4589_v23 = vld [vmem:[%s5609_s25 + $0x308] sm:$0xf0]  ;;  %v4720_v0 = vor.u32 %v4983_v30, %v4717_v37 }
 0x2a2   : > { %2903 = vmatmul.bf16.gmra.mxu3 %v7106_v45  ;;  %v4592_v48 = vor.u32 %v4951_v32, %v4589_v23  ;;  %v7113_v23 = vld [vmem:[#allocation26_spill] sm:$0xff] }
 0x2a3   : > { %3001 = vmatmul.bf16.gmra.mxu1 %v7107_v7  ;;  %v3231_v6 = vadd.f32 %v2755_v62, %v1005_v63  ;;  %v7110_v63 = vld [vmem:[#allocation20_spill] sm:$0xff] }
 0x2a4   : > { %v2659_v24 = vpop.f32.mrf.mxu2  ;;  %3073 = vmatpush.bf16.msra.mxu3 %v4592_v48  ;;  %3171 = vmatpush.bf16.msra.mxu1 %v4720_v0  ;;  %v7115_v48 = vld [vmem:[#allocation25_spill] sm:$0xff] }
 0x2a5   : > { %3263 = vst [vmem:[#allocation2 + $0x40] sm:$0xff] %v3231_v6  ;;  %v2660_v35 = vadd.f32 %v2659_v24, %v6241_v11  ;;  %v2708_v34 = vpop.f32.mrf.mxu3 }
 0x2a6   : > { %v2759_v59 = vpop.f32.mrf.mxu0 }
 0x2a7   : > { %v2709_v3 = vadd.f32 %v2708_v34, %v2660_v35  ;;  %v1011_v35 = vld [vmem:[#allocation2 + $0xa8] sm:$0xff] }
 0x2a8   : > { %v6402_v38 = vpop.f32.mrf.mxu1 }
 0x2a9   : > { %v2758_v2 = vadd.f32 %v2757_v44, %v2709_v3  ;;  %v7108_v44 = vld [vmem:[#allocation9_spill] sm:$0xff]  ;;  %v1013_v3 = vld [vmem:[#allocation2 + $0x10] sm:$0xff] }
 0x2ab   : > { %v3233_v11 = vadd.f32 %v2758_v2, %v1007_v29  ;;  %v7114_v29 = vld [vmem:[#allocation24_spill] sm:$0xff] }
 0x2ac   : > { %v2661_v25 = vpop.f32.mrf.mxu2 }
 0x2ad   : > { %3265 = vst [vmem:[#allocation2 + $0xe0] sm:$0xff] %v3233_v11  ;;  %v2662_v19 = vadd.f32 %v2661_v25, %v6260_v39  ;;  %v2710_v15 = vpop.f32.mrf.mxu3  ;;  %v7111_v39 = vld [vmem:[#allocation21_spill] sm:$0xff] }
 0x2ae   : > { %v2762_v27 = vpop.f32.mrf.mxu0 }
 0x2af   : > { %v2711_v52 = vadd.f32 %v2710_v15, %v2662_v19 }
 0x2b0   : > { %v6408_v4 = vpop.f32.mrf.mxu1 }
 0x2b1   : > { %v2760_v40 = vadd.f32 %v2759_v59, %v2711_v52  ;;  %2859 = vmatmul.bf16.gmra.mxu2 %v7108_v44  ;;  %2957 = vmatmul.bf16.gmra.mxu0 %v7109_v43  ;;  %v1017_v43 = vld [vmem:[#allocation2 + $0x20] sm:$0xff] }
 0x2b2   : > { %2908 = vmatmul.bf16.gmra.mxu3 %v7110_v63  ;;  %v7116_v63 = vld [vmem:[#allocation11_spill] sm:$0xff] }
 0x2b3   : > { %3006 = vmatmul.bf16.gmra.mxu1 %v7111_v39  ;;  %v3235_v62 = vadd.f32 %v2760_v40, %v1009_v18  ;;  %v7118_v39 = vld [vmem:[#allocation28_spill] sm:$0xff] }
 0x2b4   : > { %v2664_v9 = vpop.f32.mrf.mxu2 }
 0x2b5   : > { %3267 = vst [vmem:[#allocation2 + $0x70] sm:$0xff] %v3235_v62  ;;  %v2665_v5 = vadd.f32 %v2664_v9, %v6269_v16  ;;  %v2713_v45 = vpop.f32.mrf.mxu3  ;;  %v7112_v16 = vld [vmem:[#allocation10_spill] sm:$0xff]  ;;  %v7119_v62 = vld [vmem:[#allocation29_spill] sm:$0xff] }
 0x2b6   : > { %v2764_v7 = vpop.f32.mrf.mxu0 }
 0x2b7   : > { %v2714_v6 = vadd.f32 %v2713_v45, %v2665_v5 }
 0x2b8   : > { %v6417_v24 = vpop.f32.mrf.mxu1 }
 0x2b9   : > { %v2763_v34 = vadd.f32 %v2762_v27, %v2714_v6 }
 0x2bb   : > { %v3237_v54 = vadd.f32 %v2763_v34, %v1011_v35 }
 0x2bc   : > { %v2666_v8 = vpop.f32.mrf.mxu2 }
 0x2bd   : > { %3269 = vst [vmem:[#allocation2 + $0xa8] sm:$0xff] %v3237_v54  ;;  %v2667_v59 = vadd.f32 %v2666_v8, %v6284_v60  ;;  %v2715_v31 = vpop.f32.mrf.mxu3 }
 0x2be   : > { %v2767_v47 = vpop.f32.mrf.mxu0 }
 0x2bf   : > { %v2716_v53 = vadd.f32 %v2715_v31, %v2667_v59 }
 0x2c0   : > { %v6420_v32 = vpop.f32.mrf.mxu1 }
 0x2c1   : > { %v2765_v12 = vadd.f32 %v2764_v7, %v2716_v53  ;;  %2864 = vmatmul.bf16.gmra.mxu2 %v7112_v16  ;;  %2962 = vmatmul.bf16.gmra.mxu0 %v7113_v23  ;;  %v7120_v16 = vld [vmem:[#allocation12_spill] sm:$0xff] }
 0x2c2   : > { %2913 = vmatmul.bf16.gmra.mxu3 %v7114_v29  ;;  %v7122_v23 = vld [vmem:[#allocation32_spill] sm:$0xff] }
 0x2c3   : > { %3011 = vmatmul.bf16.gmra.mxu1 %v7115_v48  ;;  %v3239_v2 = vadd.f32 %v2765_v12, %v1013_v3 }
 0x2c4   : > { %v2669_v11 = vpop.f32.mrf.mxu2 }
 0x2c5   : > { %3271 = vst [vmem:[#allocation2 + $0x10] sm:$0xff] %v3239_v2  ;;  %v2670_v60 = vadd.f32 %v2669_v11, %v6293_v51  ;;  %v2718_v25 = vpop.f32.mrf.mxu3  ;;  %v7117_v51 = vld [vmem:[#allocation30_spill] sm:$0xff] }
 0x2c6   : > { %v2769_v19 = vpop.f32.mrf.mxu0 }
 0x2c7   : > { %v2719_v15 = vadd.f32 %v2718_v25, %v2670_v60 }
 0x2c8   : > { %v6427_v41 = vpop.f32.mrf.mxu1 }
 0x2c9   : > { %v2768_v27 = vadd.f32 %v2767_v47, %v2719_v15 }
 0x2cb   : > { %v3241_v57 = vadd.f32 %v2768_v27, %v1015_v56 }
 0x2cc   : > { %v2671_v52 = vpop.f32.mrf.mxu2 }
 0x2cd   : > { %3273 = vst [vmem:[#allocation2 + $0xa0] sm:$0xff] %v3241_v57  ;;  %v2672_v18 = vadd.f32 %v2671_v52, %v6304_v22  ;;  %v2720_v30 = vpop.f32.mrf.mxu3 }
 0x2ce   : > { %v2928_v37 = vpop.f32.mrf.mxu0 }
 0x2cf   : > { %v2721_v40 = vadd.f32 %v2720_v30, %v2672_v18 }
 0x2d0   : > { %v2977_v44 = vpop.f32.mrf.mxu1 }
 0x2d1   : > { %v2770_v0 = vadd.f32 %v2769_v19, %v2721_v40  ;;  %3025 = vmatmul.bf16.vlgmr.msra.gmra.mxu2 %v7116_v63  ;;  %3123 = vmatmul.bf16.vlgmr.msra.gmra.mxu0 %v7117_v51  ;;  %v7125_v40 = vld [vmem:[#allocation34_spill] sm:$0xff] }
 0x2d2   : > { %3074 = vmatmul.bf16.vlgmr.msra.gmra.mxu3 %v7118_v39 }
 0x2d3   : > { %3172 = vmatmul.bf16.vlgmr.msra.gmra.mxu1 %v7119_v62  ;;  %v3243_v9 = vadd.f32 %v2770_v0, %v1017_v43 }
 0x2d4   : > { %v2830_v5 = vpop.f32.mrf.mxu2 }
 0x2d5   : > { %3275 = vst [vmem:[#allocation2 + $0x20] sm:$0xff] %v3243_v9  ;;  %v2831_v45 = vadd.f32 %v2830_v5, %v6298_v10  ;;  %v2879_v22 = vpop.f32.mrf.mxu3  ;;  %v7121_v10 = vld [vmem:[#allocation31_spill] sm:$0xff] }
 0x2d6   : > { %v2930_v7 = vpop.f32.mrf.mxu0 }
 0x2d7   : > { %v2880_v6 = vadd.f32 %v2879_v22, %v2831_v45 }
 0x2d8   : > { %v2979_v35 = vpop.f32.mrf.mxu1 }
 0x2d9   : > { %v2929_v34 = vadd.f32 %v2928_v37, %v2880_v6  ;;  %v7123_v37 = vld [vmem:[#allocation13_spill] sm:$0xff] }
 0x2db   : > { %v6435_v54 = vadd.f32 %v2977_v44, %v2929_v34  ;;  %v7126_v34 = vld [vmem:[#allocation14_spill] sm:$0xff] }
 0x2dc   : > { %v2832_v8 = vpop.f32.mrf.mxu2 }
 0x2dd   : > { %v2833_v59 = vadd.f32 %v2832_v8, %v6313_v61  ;;  %v2881_v31 = vpop.f32.mrf.mxu3  ;;  %v7128_v8 = vld [vmem:[#allocation36_spill] sm:$0xff] }
 0x2de   : > { %v2933_v47 = vpop.f32.mrf.mxu0 }
 0x2df   : > { %v2882_v53 = vadd.f32 %v2881_v31, %v2833_v59 }
 0x2e0   : > { %v2982_v3 = vpop.f32.mrf.mxu1 }
 0x2e1   : > { %v2931_v12 = vadd.f32 %v2930_v7, %v2882_v53  ;;  %3030 = vmatmul.bf16.gmra.mxu2 %v7120_v16  ;;  %3128 = vmatmul.bf16.gmra.mxu0 %v6098_v50 }
 0x2e2   : > { %3079 = vmatmul.bf16.gmra.mxu3 %v7121_v10 }
 0x2e3   : > { %3177 = vmatmul.bf16.gmra.mxu1 %v7122_v23  ;;  %v6442_v29 = vadd.f32 %v2979_v35, %v2931_v12 }
 0x2e4   : > { %v2835_v48 = vpop.f32.mrf.mxu2 }
 0x2e5   : > { %v2836_v2 = vadd.f32 %v2835_v48, %v6318_v20  ;;  %v2884_v11 = vpop.f32.mrf.mxu3  ;;  %v7124_v20 = vld [vmem:[#allocation33_spill] sm:$0xff] }
 0x2e6   : > { %v2935_v61 = vpop.f32.mrf.mxu0 }
 0x2e7   : > { %v2885_v60 = vadd.f32 %v2884_v11, %v2836_v2 }
 0x2e8   : > { %v2984_v25 = vpop.f32.mrf.mxu1 }
 0x2e9   : > { %v2934_v19 = vadd.f32 %v2933_v47, %v2885_v60 }
 0x2eb   : > { %v6445_v15 = vadd.f32 %v2982_v3, %v2934_v19  ;;  %v7131_v19 = vld [vmem:[#allocation38_spill] sm:$0xff] }
 0x2ec   : > { %v2837_v56 = vpop.f32.mrf.mxu2 }
 0x2ed   : > { %v2838_v27 = vadd.f32 %v2837_v56, %v6330_v33  ;;  %v2886_v50 = vpop.f32.mrf.mxu3 }
 0x2ee   : > { %v2938_v57 = vpop.f32.mrf.mxu0 }
 0x2ef   : > { %v2887_v52 = vadd.f32 %v2886_v50, %v2838_v27 }
 0x2f0   : > { %v2987_v18 = vpop.f32.mrf.mxu1 }
 0x2f1   : > { %v2936_v30 = vadd.f32 %v2935_v61, %v2887_v52  ;;  %3035 = vmatmul.bf16.gmra.mxu2 %v7123_v37  ;;  %3133 = vmatmul.bf16.gmra.mxu0 %v6128_v36 }
 0x2f2   : > { %3084 = vmatmul.bf16.gmra.mxu3 %v7124_v20 }
 0x2f3   : > { %3182 = vmatmul.bf16.gmra.mxu1 %v7125_v40  ;;  %v6452_v44 = vadd.f32 %v2984_v25, %v2936_v30  ;;  %v7129_v25 = vld [vmem:[#allocation15_spill] sm:$0xff] }
 0x2f4   : > { %v2840_v43 = vpop.f32.mrf.mxu2 }
 0x2f5   : > { %v2841_v0 = vadd.f32 %v2840_v43, %v6336_v17  ;;  %v2889_v63 = vpop.f32.mrf.mxu3  ;;  %v7127_v17 = vld [vmem:[#allocation35_spill] sm:$0xff] }
 0x2f6   : > { %v2940_v33 = vpop.f32.mrf.mxu0 }
 0x2f7   : > { %v2890_v51 = vadd.f32 %v2889_v63, %v2841_v0 }
 0x2f8   : > { %v2989_v39 = vpop.f32.mrf.mxu1 }
 0x2f9   : > { %v2939_v62 = vadd.f32 %v2938_v57, %v2890_v51  ;;  %v7132_v51 = vld [vmem:[#allocation19_spill] sm:$0xff] }
 0x2fb   : > { %v6455_v9 = vadd.f32 %v2987_v18, %v2939_v62 }
 0x2fc   : > { %v2842_v5 = vpop.f32.mrf.mxu2 }
 0x2fd   : > { %v2843_v45 = vadd.f32 %v2842_v5, %v6348_v1  ;;  %v2891_v36 = vpop.f32.mrf.mxu3 }
 0x2fe   : > { %v2943_v22 = vpop.f32.mrf.mxu0 }
 0x2ff   : > { %v2892_v7 = vadd.f32 %v2891_v36, %v2843_v45 }
 0x300   : > { %v2992_v6 = vpop.f32.mrf.mxu1 }
 0x301   : > { %v2941_v35 = vadd.f32 %v2940_v33, %v2892_v7  ;;  %3040 = vmatmul.bf16.gmra.mxu2 %v7126_v34  ;;  %3138 = vmatmul.bf16.gmra.mxu0 %v6158_v49 }
 0x302   : > { %3089 = vmatmul.bf16.gmra.mxu3 %v7127_v17 }
 0x303   : > { %3187 = vmatmul.bf16.gmra.mxu1 %v7128_v8  ;;  %v6462_v59 = vadd.f32 %v2989_v39, %v2941_v35  ;;  %v7134_v39 = vld [vmem:[#allocation40_spill] sm:$0xff] }
 0x304   : > { %v2845_v31 = vpop.f32.mrf.mxu2 }
 0x305   : > { %v2846_v47 = vadd.f32 %v2845_v31, %v6354_v21  ;;  %v2894_v53 = vpop.f32.mrf.mxu3  ;;  %v7130_v21 = vld [vmem:[#allocation37_spill] sm:$0xff] }
 0x306   : > { %v2945_v1 = vpop.f32.mrf.mxu0 }
 0x307   : > { %v2895_v3 = vadd.f32 %v2894_v53, %v2846_v47 }
 0x308   : > { %v2994_v12 = vpop.f32.mrf.mxu1 }
 0x309   : > { %v2944_v16 = vadd.f32 %v2943_v22, %v2895_v3  ;;  %v7137_v3 = vld [vmem:[#allocation42_spill] sm:$0xff] }
 0x30b   : > { %v6465_v10 = vadd.f32 %v2992_v6, %v2944_v16 }
 0x30c   : > { %v2847_v23 = vpop.f32.mrf.mxu2 }
 0x30d   : > { %v2848_v48 = vadd.f32 %v2847_v23, %v6366_v42  ;;  %v2896_v49 = vpop.f32.mrf.mxu3 }
 0x30e   : > { %v2948_v2 = vpop.f32.mrf.mxu0 }
 0x30f   : > { %v2897_v11 = vadd.f32 %v2896_v49, %v2848_v48 }
 0x310   : > { %v2997_v61 = vpop.f32.mrf.mxu1 }
 0x311   : > { %v2946_v60 = vadd.f32 %v2945_v1, %v2897_v11  ;;  %3045 = vmatmul.bf16.gmra.mxu2 %v7129_v25  ;;  %3143 = vmatmul.bf16.gmra.mxu0 %v6188_v46  ;;  %v7135_v1 = vld [vmem:[#allocation23_spill] sm:$0xff] }
 0x312   : > { %3094 = vmatmul.bf16.gmra.mxu3 %v7130_v21 }
 0x313   : > { %3192 = vmatmul.bf16.gmra.mxu1 %v7131_v19  ;;  %v6472_v56 = vadd.f32 %v2994_v12, %v2946_v60 }
 0x314   : > { %v2850_v27 = vpop.f32.mrf.mxu2 }
 0x315   : > { %v2851_v50 = vadd.f32 %v2850_v27, %v6372_v13  ;;  %v2899_v57 = vpop.f32.mrf.mxu3  ;;  %v7133_v13 = vld [vmem:[#allocation39_spill] sm:$0xff] }
 0x316   : > { %v2950_v42 = vpop.f32.mrf.mxu0 }
 0x317   : > { %v2900_v52 = vadd.f32 %v2899_v57, %v2851_v50  ;;  %v7138_v57 = vld [vmem:[#allocation27_spill] sm:$0xff] }
 0x318   : > { %v2999_v18 = vpop.f32.mrf.mxu1 }
 0x319   : > { %v2949_v30 = vadd.f32 %v2948_v2, %v2900_v52 }
 0x31b   : > { %v6475_v37 = vadd.f32 %v2997_v61, %v2949_v30 }
 0x31c   : > { %v2852_v20 = vpop.f32.mrf.mxu2 }
 0x31d   : > { %v2853_v40 = vadd.f32 %v2852_v20, %v6384_v14  ;;  %v2901_v46 = vpop.f32.mrf.mxu3 }
 0x31e   : > { %v2953_v43 = vpop.f32.mrf.mxu0 }
 0x31f   : > { %v2902_v0 = vadd.f32 %v2901_v46, %v2853_v40 }
 0x320   : > { %v3002_v63 = vpop.f32.mrf.mxu1 }
 0x321   : > { %v2951_v33 = vadd.f32 %v2950_v42, %v2902_v0  ;;  %3050 = vmatmul.bf16.gmra.mxu2 %v7132_v51  ;;  %3148 = vmatmul.bf16.gmra.mxu0 %v6218_v55  ;;  %v7140_v42 = vld [vmem:[#allocation44_spill] sm:$0xff] }
 0x322   : > { %3099 = vmatmul.bf16.gmra.mxu3 %v7133_v13 }
 0x323   : > { %3197 = vmatmul.bf16.gmra.mxu1 %v7134_v39  ;;  %v6482_v62 = vadd.f32 %v2999_v18, %v2951_v33 }
 0x324   : > { %v2855_v5 = vpop.f32.mrf.mxu2 }
 0x325   : > { %v2856_v45 = vadd.f32 %v2855_v5, %v6390_v26  ;;  %v2904_v36 = vpop.f32.mrf.mxu3  ;;  %v7136_v26 = vld [vmem:[#allocation41_spill] sm:$0xff] }
 0x326   : > { %v2955_v14 = vpop.f32.mrf.mxu0 }
 0x327   : > { %v2905_v22 = vadd.f32 %v2904_v36, %v2856_v45 }
 0x328   : > { %v3004_v7 = vpop.f32.mrf.mxu1 }
 0x329   : > { %v2954_v6 = vadd.f32 %v2953_v43, %v2905_v22 }
 0x32b   : > { %v6485_v35 = vadd.f32 %v3002_v63, %v2954_v6 }
 0x32c   : > { %v2857_v34 = vpop.f32.mrf.mxu2 }
 0x32d   : > { %v2858_v17 = vadd.f32 %v2857_v34, %v6402_v38  ;;  %v2906_v55 = vpop.f32.mrf.mxu3 }
 0x32e   : > { %v2958_v8 = vpop.f32.mrf.mxu0 }
 0x32f   : > { %v2907_v31 = vadd.f32 %v2906_v55, %v2858_v17  ;;  %v988_v17 = vld [vmem:[#allocation2] sm:$0xff] }
 0x330   : > { %v3007_v47 = vpop.f32.mrf.mxu1 }
 0x331   : > { %v2956_v53 = vadd.f32 %v2955_v14, %v2907_v31  ;;  %3055 = vmatmul.bf16.gmra.mxu2 %v7135_v1  ;;  %3153 = vmatmul.bf16.gmra.mxu0 %v6248_v28 }
 0x332   : > { %3104 = vmatmul.bf16.gmra.mxu3 %v7136_v26 }
 0x333   : > { %3202 = vmatmul.bf16.gmra.mxu1 %v7137_v3  ;;  %v6492_v12 = vadd.f32 %v3004_v7, %v2956_v53 }
 0x334   : > { %v2860_v16 = vpop.f32.mrf.mxu2 }
 0x335   : > { %v2861_v23 = vadd.f32 %v2860_v16, %v6408_v4  ;;  %v2909_v48 = vpop.f32.mrf.mxu3  ;;  %v7139_v4 = vld [vmem:[#allocation43_spill] sm:$0xff] }
 0x336   : > { %v2960_v38 = vpop.f32.mrf.mxu0  ;;  %v990_v16 = vld [vmem:[#allocation2 + $0x18] sm:$0xff] }
 0x337   : > { %v2910_v49 = vadd.f32 %v2909_v48, %v2861_v23 }
 0x338   : > { %v3009_v2 = vpop.f32.mrf.mxu1 }
 0x339   : > { %v2959_v11 = vadd.f32 %v2958_v8, %v2910_v49 }
 0x33b   : > { %v6495_v61 = vadd.f32 %v3007_v47, %v2959_v11 }
 0x33c   : > { %v2862_v60 = vpop.f32.mrf.mxu2 }
 0x33d   : > { %v2863_v25 = vadd.f32 %v2862_v60, %v6417_v24  ;;  %v2911_v28 = vpop.f32.mrf.mxu3 }
 0x33e   : > { %v2963_v21 = vpop.f32.mrf.mxu0 }
 0x33f   : > { %v2912_v19 = vadd.f32 %v2911_v28, %v2863_v25  ;;  %v992_v28 = vld [vmem:[#allocation2 + $0x68] sm:$0xff] }
 0x340   : > { %v3012_v27 = vpop.f32.mrf.mxu1 }
 0x341   : > { %v2961_v50 = vadd.f32 %v2960_v38, %v2912_v19  ;;  %3060 = vmatmul.bf16.gmra.mxu2 %v7138_v57  ;;  %3158 = vmatmul.bf16.gmra.mxu0 %v6278_v58 }
 0x342   : > { %3109 = vmatmul.bf16.gmra.mxu3 %v7139_v4 }
 0x343   : > { %3207 = vmatmul.bf16.gmra.mxu1 %v7140_v42  ;;  %v6502_v52 = vadd.f32 %v3009_v2, %v2961_v50 }
 0x344   : > { %v2865_v18 = vpop.f32.mrf.mxu2 }
 0x345   : > { %v2866_v30 = vadd.f32 %v2865_v18, %v6420_v32  ;;  %v2914_v20 = vpop.f32.mrf.mxu3 }
 0x346   : > { %v2965_v24 = vpop.f32.mrf.mxu0 }
 0x347   : > { %v2915_v40 = vadd.f32 %v2914_v20, %v2866_v30  ;;  %v994_v30 = vld [vmem:[#allocation2 + $0x48] sm:$0xff] }
 0x348   : > { %v3014_v46 = vpop.f32.mrf.mxu1 }
 0x349   : > { %v2964_v43 = vadd.f32 %v2963_v21, %v2915_v40 }
 0x34b   : > { %v6505_v0 = vadd.f32 %v3012_v27, %v2964_v43 }
 0x34c   : > { %v2867_v63 = vpop.f32.mrf.mxu2 }
 0x34d   : > { %v2868_v33 = vadd.f32 %v2867_v63, %v6427_v41  ;;  %v2916_v58 = vpop.f32.mrf.mxu3 }
 0x34e   : > { %v3124_v51 = vpop.f32.mrf.mxu0 }
 0x34f   : > { %v2917_v13 = vadd.f32 %v2916_v58, %v2868_v33 }
 0x350   : > { %v3173_v39 = vpop.f32.mrf.mxu1 }
 0x351   : > { %v2966_v5 = vadd.f32 %v2965_v24, %v2917_v13 }
 0x353   : > { %v6508_v45 = vadd.f32 %v3014_v46, %v2966_v5 }
 0x354   : > { %v3026_v36 = vpop.f32.mrf.mxu2 }
 0x355   : > { %v3027_v32 = vadd.f32 %v3026_v36, %v6435_v54  ;;  %v3075_v14 = vpop.f32.mrf.mxu3 }
 0x356   : > { %v3126_v22 = vpop.f32.mrf.mxu0 }
 0x357   : > { %v3076_v7 = vadd.f32 %v3075_v14, %v3027_v32 }
 0x358   : > { %v3175_v6 = vpop.f32.mrf.mxu1 }
 0x359   : > { %v3125_v34 = vadd.f32 %v3124_v51, %v3076_v7  ;;  %v996_v51 = vld [vmem:[#allocation2 + $0x88] sm:$0xff] }
 0x35b   : > { %v3174_v55 = vadd.f32 %v3173_v39, %v3125_v34 }
 0x35c   : > { %v3028_v8 = vpop.f32.mrf.mxu2 }
 0x35d   : > { %v3214_v31 = vadd.f32 %v3174_v55, %v988_v17  ;;  %v3029_v41 = vadd.f32 %v3028_v8, %v6442_v29  ;;  %v3077_v47 = vpop.f32.mrf.mxu3 }
 0x35e   : > { %v3129_v53 = vpop.f32.mrf.mxu0 }
 0x35f   : > { %3246 = vst [vmem:[#allocation2] sm:$0xff] %v3214_v31  ;;  %v3078_v1 = vadd.f32 %v3077_v47, %v3029_v41 }
 0x360   : > { %v3178_v26 = vpop.f32.mrf.mxu1 }
 0x361   : > { %v3127_v3 = vadd.f32 %v3126_v22, %v3078_v1  ;;  %v1000_v1 = vld [vmem:[#allocation2 + $0xf0] sm:$0xff] }
 0x363   : > { %v3176_v23 = vadd.f32 %v3175_v6, %v3127_v3  ;;  %v998_v6 = vld [vmem:[#allocation2 + $0xb8] sm:$0xff] }
 0x364   : > { %v3031_v54 = vpop.f32.mrf.mxu2 }
 0x365   : > { %v3216_v48 = vadd.f32 %v3176_v23, %v990_v16  ;;  %v3032_v38 = vadd.f32 %v3031_v54, %v6445_v15  ;;  %v3080_v49 = vpop.f32.mrf.mxu3 }
 0x366   : > { %v3131_v2 = vpop.f32.mrf.mxu0 }
 0x367   : > { %3248 = vst [vmem:[#allocation2 + $0x18] sm:$0xff] %v3216_v48  ;;  %v3081_v11 = vadd.f32 %v3080_v49, %v3032_v38 }
 0x368   : > { %v3180_v60 = vpop.f32.mrf.mxu1 }
 0x369   : > { %v3130_v25 = vadd.f32 %v3129_v53, %v3081_v11 }
 0x36b   : > { %v3179_v29 = vadd.f32 %v3178_v26, %v3130_v25 }
 0x36c   : > { %v3033_v21 = vpop.f32.mrf.mxu2 }
 0x36d   : > { %v3218_v19 = vadd.f32 %v3179_v29, %v992_v28  ;;  %v3034_v27 = vadd.f32 %v3033_v21, %v6452_v44  ;;  %v3082_v50 = vpop.f32.mrf.mxu3 }
 0x36e   : > { %v3134_v57 = vpop.f32.mrf.mxu0 }
 0x36f   : > { %3250 = vst [vmem:[#allocation2 + $0x68] sm:$0xff] %v3218_v19  ;;  %v3083_v4 = vadd.f32 %v3082_v50, %v3034_v27  ;;  %v1004_v50 = vld [vmem:[#allocation2 + $0x58] sm:$0xff] }
 0x370   : > { %v3183_v42 = vpop.f32.mrf.mxu1 }
 0x371   : > { %v3132_v18 = vadd.f32 %v3131_v2, %v3083_v4  ;;  %v1002_v2 = vld [vmem:[#allocation2 + $0x78] sm:$0xff] }
 0x373   : > { %v3181_v15 = vadd.f32 %v3180_v60, %v3132_v18 }
 0x374   : > { %v3036_v20 = vpop.f32.mrf.mxu2 }
 0x375   : > { %v3220_v24 = vadd.f32 %v3181_v15, %v994_v30  ;;  %v3037_v40 = vadd.f32 %v3036_v20, %v6455_v9  ;;  %v3085_v46 = vpop.f32.mrf.mxu3 }
 0x376   : > { %v3136_v43 = vpop.f32.mrf.mxu0 }
 0x377   : > { %3252 = vst [vmem:[#allocation2 + $0x48] sm:$0xff] %v3220_v24  ;;  %v3086_v63 = vadd.f32 %v3085_v46, %v3037_v40  ;;  %v1006_v40 = vld [vmem:[#allocation2 + $0xc8] sm:$0xff] }
 0x378   : > { %v3185_v33 = vpop.f32.mrf.mxu1 }
 0x379   : > { %v3135_v58 = vadd.f32 %v3134_v57, %v3086_v63 }
 0x37b   : > { %v3184_v44 = vadd.f32 %v3183_v42, %v3135_v58 }
 0x37c   : > { %v3038_v13 = vpop.f32.mrf.mxu2 }
 0x37d   : > { %v3222_v39 = vadd.f32 %v3184_v44, %v996_v51  ;;  %v3039_v5 = vadd.f32 %v3038_v13, %v6462_v59  ;;  %v3087_v36 = vpop.f32.mrf.mxu3  ;;  %v1008_v13 = vld [vmem:[#allocation2 + $0x90] sm:$0xff] }
 0x37e   : > { %v3139_v32 = vpop.f32.mrf.mxu0 }
 0x37f   : > { %3254 = vst [vmem:[#allocation2 + $0x88] sm:$0xff] %v3222_v39  ;;  %v3088_v14 = vadd.f32 %v3087_v36, %v3039_v5 }
 0x380   : > { %v3188_v22 = vpop.f32.mrf.mxu1 }
 0x381   : > { %v3137_v7 = vadd.f32 %v3136_v43, %v3088_v14 }
 0x383   : > { %v3186_v9 = vadd.f32 %v3185_v33, %v3137_v7 }
 0x384   : > { %v3041_v34 = vpop.f32.mrf.mxu2 }
 0x385   : > { %v3224_v17 = vadd.f32 %v3186_v9, %v998_v6  ;;  %v3042_v55 = vadd.f32 %v3041_v34, %v6465_v10  ;;  %v3090_v8 = vpop.f32.mrf.mxu3  ;;  %v1010_v6 = vld [vmem:[#allocation2 + $0xc0] sm:$0xff] }
 0x386   : > { %v3141_v31 = vpop.f32.mrf.mxu0 }
 0x387   : > { %3256 = vst [vmem:[#allocation2 + $0xb8] sm:$0xff] %v3224_v17  ;;  %v3091_v41 = vadd.f32 %v3090_v8, %v3042_v55 }
 0x388   : > { %v3190_v47 = vpop.f32.mrf.mxu1 }
 0x389   : > { %v3140_v53 = vadd.f32 %v3139_v32, %v3091_v41 }
 0x38b   : > { %v3189_v59 = vadd.f32 %v3188_v22, %v3140_v53  ;;  %v1012_v53 = vld [vmem:[#allocation2 + $0xd0] sm:$0xff] }
 0x38c   : > { %v3043_v26 = vpop.f32.mrf.mxu2 }
 0x38d   : > { %v3226_v3 = vadd.f32 %v3189_v59, %v1000_v1  ;;  %v3044_v16 = vadd.f32 %v3043_v26, %v6472_v56  ;;  %v3092_v23 = vpop.f32.mrf.mxu3 }
 0x38e   : > { %v3144_v54 = vpop.f32.mrf.mxu0 }
 0x38f   : > { %3258 = vst [vmem:[#allocation2 + $0xf0] sm:$0xff] %v3226_v3  ;;  %v3093_v48 = vadd.f32 %v3092_v23, %v3044_v16 }
 0x390   : > { %v3193_v38 = vpop.f32.mrf.mxu1 }
 0x391   : > { %v3142_v49 = vadd.f32 %v3141_v31, %v3093_v48 }
 0x393   : > { %v3191_v10 = vadd.f32 %v3190_v47, %v3142_v49 }
 0x394   : > { %v3046_v11 = vpop.f32.mrf.mxu2 }
 0x395   : > { %v3228_v60 = vadd.f32 %v3191_v10, %v1002_v2  ;;  %v3047_v25 = vadd.f32 %v3046_v11, %v6475_v37  ;;  %v3095_v28 = vpop.f32.mrf.mxu3 }
 0x396   : > { %v3146_v29 = vpop.f32.mrf.mxu0 }
 0x397   : > { %3260 = vst [vmem:[#allocation2 + $0x78] sm:$0xff] %v3228_v60  ;;  %v3096_v21 = vadd.f32 %v3095_v28, %v3047_v25 }
 0x398   : > { %v3195_v19 = vpop.f32.mrf.mxu1 }
 0x399   : > { %v3145_v27 = vadd.f32 %v3144_v54, %v3096_v21  ;;  %v1016_v21 = vld [vmem:[#allocation2 + $0xf8] sm:$0xff] }
 0x39b   : > { %v3194_v56 = vadd.f32 %v3193_v38, %v3145_v27  ;;  %v1014_v38 = vld [vmem:[#allocation2 + $0x28] sm:$0xff] }
 0x39c   : > { %v3048_v57 = vpop.f32.mrf.mxu2 }
 0x39d   : > { %v3230_v4 = vadd.f32 %v3194_v56, %v1004_v50  ;;  %v3049_v42 = vadd.f32 %v3048_v57, %v6482_v62  ;;  %v3097_v18 = vpop.f32.mrf.mxu3 }
 0x39e   : > { %v3149_v30 = vpop.f32.mrf.mxu0 }
 0x39f   : > { %3262 = vst [vmem:[#allocation2 + $0x58] sm:$0xff] %v3230_v4  ;;  %v3098_v15 = vadd.f32 %v3097_v18, %v3049_v42 }
 0x3a0   : > { %v3198_v20 = vpop.f32.mrf.mxu1 }
 0x3a1   : > { %v3147_v24 = vadd.f32 %v3146_v29, %v3098_v15 }
 0x3a3   : > { %v3196_v37 = vadd.f32 %v3195_v19, %v3147_v24 }
 0x3a4   : > { %v3051_v46 = vpop.f32.mrf.mxu2 }
 0x3a5   : > { %v3232_v43 = vadd.f32 %v3196_v37, %v1006_v40  ;;  %v3052_v63 = vadd.f32 %v3051_v46, %v6485_v35  ;;  %v3100_v33 = vpop.f32.mrf.mxu3 }
 0x3a6   : > { %v3151_v51 = vpop.f32.mrf.mxu0 }
 0x3a7   : > { %3264 = vst [vmem:[#allocation2 + $0xc8] sm:$0xff] %v3232_v43  ;;  %v3101_v58 = vadd.f32 %v3100_v33, %v3052_v63 }
 0x3a8   : > { %v3200_v39 = vpop.f32.mrf.mxu1 }
 0x3a9   : > { %v3150_v44 = vadd.f32 %v3149_v30, %v3101_v58  ;;  %v1018_v30 = vld [vmem:[#allocation2 + $0x98] sm:$0xff] }
 0x3ab   : > { %v3199_v62 = vadd.f32 %v3198_v20, %v3150_v44 }
 0x3ac   : > { %v3053_v5 = vpop.f32.mrf.mxu2 }
 0x3ad   : > { %v3234_v36 = vadd.f32 %v3199_v62, %v1008_v13  ;;  %v3054_v32 = vadd.f32 %v3053_v5, %v6492_v12  ;;  %v3102_v14 = vpop.f32.mrf.mxu3 }
 0x3ae   : > { %v3154_v9 = vpop.f32.mrf.mxu0 }
 0x3af   : > { %3266 = vst [vmem:[#allocation2 + $0x90] sm:$0xff] %v3234_v36  ;;  %v3103_v22 = vadd.f32 %v3102_v14, %v3054_v32 }
 0x3b0   : > { %v3203_v35 = vpop.f32.mrf.mxu1 }
 0x3b1   : > { %v3152_v7 = vadd.f32 %v3151_v51, %v3103_v22 }
 0x3b3   : > { %v3201_v34 = vadd.f32 %v3200_v39, %v3152_v7 }
 0x3b4   : > { %v3056_v17 = vpop.f32.mrf.mxu2 }
 0x3b5   : > { %v3236_v55 = vadd.f32 %v3201_v34, %v1010_v6  ;;  %v3057_v8 = vadd.f32 %v3056_v17, %v6495_v61  ;;  %v3105_v31 = vpop.f32.mrf.mxu3 }
 0x3b6   : > { %v3156_v59 = vpop.f32.mrf.mxu0 }
 0x3b7   : > { %3268 = vst [vmem:[#allocation2 + $0xc0] sm:$0xff] %v3236_v55  ;;  %v3106_v41 = vadd.f32 %v3105_v31, %v3057_v8 }
 0x3b8   : > { %v3205_v23 = vpop.f32.mrf.mxu1 }
 0x3b9   : > { %v3155_v47 = vadd.f32 %v3154_v9, %v3106_v41 }
 0x3bb   : > { %v3204_v1 = vadd.f32 %v3203_v35, %v3155_v47 }
 0x3bc   : > { %v3058_v12 = vpop.f32.mrf.mxu2 }
 0x3bd   : > { %v3238_v26 = vadd.f32 %v3204_v1, %v1012_v53  ;;  %v3059_v3 = vadd.f32 %v3058_v12, %v6502_v52  ;;  %v3107_v16 = vpop.f32.mrf.mxu3 }
 0x3be   : > { %v3159_v60 = vpop.f32.mrf.mxu0 }
 0x3bf   : > { %3270 = vst [vmem:[#allocation2 + $0xd0] sm:$0xff] %v3238_v26  ;;  %v3108_v54 = vadd.f32 %v3107_v16, %v3059_v3 }
 0x3c0   : > { %v3208_v28 = vpop.f32.mrf.mxu1 }
 0x3c1   : > { %v3157_v48 = vadd.f32 %v3156_v59, %v3108_v54 }
 0x3c3   : > { %v3206_v49 = vadd.f32 %v3205_v23, %v3157_v48 }
 0x3c4   : > { %v3061_v2 = vpop.f32.mrf.mxu2 }
 0x3c5   : > { %v3240_v61 = vadd.f32 %v3206_v49, %v1014_v38  ;;  %v3062_v10 = vadd.f32 %v3061_v2, %v6505_v0  ;;  %v3110_v11 = vpop.f32.mrf.mxu3 }
 0x3c6   : > { %v3161_v4 = vpop.f32.mrf.mxu0 }
 0x3c7   : > { %3272 = vst [vmem:[#allocation2 + $0x28] sm:$0xff] %v3240_v61  ;;  %v3111_v25 = vadd.f32 %v3110_v11, %v3062_v10 }
 0x3c8   : > { %v3210_v18 = vpop.f32.mrf.mxu1 }
 0x3c9   : > { %v3160_v29 = vadd.f32 %v3159_v60, %v3111_v25 }
 0x3cb   : > { %v3209_v19 = vadd.f32 %v3208_v28, %v3160_v29 }
 0x3cc   : > { %v3063_v52 = vpop.f32.mrf.mxu2 }
 0x3cd   : > { %v3242_v27 = vadd.f32 %v3209_v19, %v1016_v21  ;;  %v3064_v50 = vadd.f32 %v3063_v52, %v6508_v45  ;;  %v3112_v56 = vpop.f32.mrf.mxu3 }
 0x3cf   : > { %3274 = vst [vmem:[#allocation2 + $0xf8] sm:$0xff] %v3242_v27  ;;  %v3113_v57 = vadd.f32 %v3112_v56, %v3064_v50 }
 0x3d1   : > { %v3162_v42 = vadd.f32 %v3161_v4, %v3113_v57 }
 0x3d3   : > { %v3211_v0 = vadd.f32 %v3210_v18, %v3162_v42  ;;  %3280 = sbr.rel (%p4777_p3) target bundleno = 1108 (0x454), region = 86 }
 0x3d5   : > { %v3244_v15 = vadd.f32 %v3211_v0, %v1018_v30 }
 0x3d7   : > { %3276 = vst [vmem:[#allocation2 + $0x98] sm:$0xff] %v3244_v15 }
 0x3d8   : > { %v3313_v20 = vld [vmem:[%s937_s18] sm:$0x3]  ;;  %v3281_v45 = vld [vmem:[#allocation2 + $0xb0] sm:$0xff]  ;;  %v3283_v46 = vld [vmem:[#allocation2 + $0xd8] sm:$0xff]  ;;  %vm3508_vm7 = vcmask 1040384  }
 0x3d9   : > { %v6532_v24 = vperm.slane %v3313_v20, 0  ;;  %v6534_v40 = vperm.slane %v3313_v20, 1  ;;  %v3282_v37 = vld [vmem:[#allocation2] sm:$0xff]  ;;  %v3284_v43 = vld [vmem:[#allocation2 + $0x18] sm:$0xff]  ;;  %v3285_v63 = vld [vmem:[#allocation2 + $0x50] sm:$0xff] }
 0x3da   : > { %v3286_v33 = vld [vmem:[#allocation2 + $0x68] sm:$0xff]  ;;  %v3287_v39 = vld [vmem:[#allocation2 + $0x30] sm:$0xff]  ;;  %v3289_v32 = vld [vmem:[#allocation2 + $0x80] sm:$0xff] }
 0x3db   : > { %v6537_v58 = vadd.f32 %v6532_v24, %v3281_v45  ;;  %v6540_v51 = vadd.f32 %v6534_v40, %v3282_v37  ;;  %v6543_v44 = vadd.f32 %v6532_v24, %v3283_v46  ;;  %v6546_v13 = vadd.f32 %v6534_v40, %v3284_v43  ;;  %v3288_v62 = vld [vmem:[#allocation2 + $0x48] sm:$0xff]  ;;  %v3292_v35 = vld [vmem:[#allocation2 + $0xb8] sm:$0xff]  ;;  %v3293_v41 = vld [vmem:[#allocation2 + $0x60] sm:$0xff] }
 0x3dc   : > { %v6549_v5 = vadd.f32 %v6532_v24, %v3285_v63  ;;  %v6552_v36 = vadd.f32 %v6534_v40, %v3286_v33  ;;  %v3290_v14 = vld [vmem:[#allocation2 + $0x88] sm:$0xff]  ;;  %v6555_v22 = vadd.f32 %v6532_v24, %v3287_v39  ;;  %v6558_v7 = vadd.f32 %v6534_v40, %v3288_v62  ;;  %v3294_v47 = vld [vmem:[#allocation2 + $0xf0] sm:$0xff]  ;;  %v3296_v3 = vld [vmem:[#allocation2 + $0x78] sm:$0xff] }
 0x3dd   : > { %v3351_v6 = vadd.f32 %v6543_v44, %v6537_v58  ;;  %v3372_v9 = vadd.f32 %v6546_v13, %v6540_v51  ;;  %v3291_v34 = vld [vmem:[#allocation2 + $0xe8] sm:$0xff]  ;;  %v6565_v17 = vadd.f32 %v6532_v24, %v3289_v32  ;;  %v6568_v55 = vadd.f32 %v6534_v40, %v3290_v14  ;;  %v3297_v38 = vld [vmem:[#allocation2 + $0x38] sm:$0xff]  ;;  %v3299_v2 = vld [vmem:[#allocation2 + $0x40] sm:$0xff] }
 0x3de   : > { %v6573_v53 = vadd.f32 %v6532_v24, %v3291_v34  ;;  %v6576_v1 = vadd.f32 %v6534_v40, %v3292_v35  ;;  %v3295_v26 = vld [vmem:[#allocation2 + $0x8] sm:$0xff]  ;;  %v6581_v16 = vadd.f32 %v6532_v24, %v3293_v41  ;;  %v6584_v23 = vadd.f32 %v6534_v40, %v3294_v47  ;;  %v3298_v49 = vld [vmem:[#allocation2 + $0x58] sm:$0xff]  ;;  %v3301_v28 = vld [vmem:[#allocation2 + $0xe0] sm:$0xff] }
 0x3df   : > { %v3352_v8 = vadd.f32 %v3351_v6, %v6549_v5  ;;  %v3373_v31 = vadd.f32 %v3372_v9, %v6552_v36  ;;  %v3300_v61 = vld [vmem:[#allocation2 + $0xc8] sm:$0xff]  ;;  %v6589_v10 = vadd.f32 %v6532_v24, %v3295_v26  ;;  %v6592_v11 = vadd.f32 %v6534_v40, %v3296_v3  ;;  %v3302_v29 = vld [vmem:[#allocation2 + $0x90] sm:$0xff]  ;;  %v3304_v18 = vld [vmem:[#allocation2 + $0xc0] sm:$0xff] }
 0x3e0   : > { %v3402_v21 = vmul.f32 %v6537_v58, %v6537_v58  ;;  %v3403_v19 = vmul.f32 %v6540_v51, %v6540_v51  ;;  %v3404_v52 = vmul.f32 %v6543_v44, %v6543_v44  ;;  %v3405_v27 = vmul.f32 %v6546_v13, %v6546_v13  ;;  %v3303_v42 = vld [vmem:[#allocation2 + $0x70] sm:$0xff]  ;;  %v3305_v63 = vld [vmem:[#allocation2 + $0xa8] sm:$0xff] }
 0x3e1   : > { %v3353_v59 = vadd.f32 %v3352_v8, %v6555_v22  ;;  %v3374_v12 = vadd.f32 %v3373_v31, %v6558_v7  ;;  %v6605_v50 = vadd.f32 %v6532_v24, %v3297_v38  ;;  %v6608_v56 = vadd.f32 %v6534_v40, %v3298_v49  ;;  %v3306_v35 = vld [vmem:[#allocation2 + $0xd0] sm:$0xff] }
 0x3e2   : > { %v6613_v30 = vadd.f32 %v6532_v24, %v3299_v2  ;;  %v6616_v0 = vadd.f32 %v6534_v40, %v3300_v61  ;;  %v3406_v15 = vmul.f32 %v6549_v5, %v6549_v5  ;;  %v3407_v20 = vmul.f32 %v6552_v36, %v6552_v36  ;;  %v3307_v8 = vld [vmem:[#allocation2 + $0x10] sm:$0xff] }
 0x3e3   : > { %v3354_v54 = vadd.f32 %v3353_v59, %v6565_v17  ;;  %v3375_v48 = vadd.f32 %v3374_v12, %v6568_v55  ;;  %v6623_v45 = vadd.f32 %v6532_v24, %v3301_v28  ;;  %v6626_v37 = vadd.f32 %v6534_v40, %v3302_v29  ;;  %v3309_v29 = vld [vmem:[#allocation2 + $0xa0] sm:$0xff] }
 0x3e4   : > { %v3408_v33 = vmul.f32 %v6555_v22, %v6555_v22  ;;  %v3409_v39 = vmul.f32 %v6558_v7, %v6558_v7  ;;  %v3434_v62 = vadd.f32 %v3404_v52, %v3402_v21  ;;  %v3455_v32 = vadd.f32 %v3405_v27, %v3403_v19  ;;  %v3310_v21 = vld [vmem:[#allocation2 + $0xf8] sm:$0xff] }
 0x3e5   : > { %v3355_v60 = vadd.f32 %v3354_v54, %v6573_v53  ;;  %v3376_v25 = vadd.f32 %v3375_v48, %v6576_v1  ;;  %v6635_v14 = vadd.f32 %v6532_v24, %v3303_v42  ;;  %v6638_v6 = vadd.f32 %v6534_v40, %v3304_v18  ;;  %v3308_v54 = vld [vmem:[#allocation2 + $0x28] sm:$0xff] }
 0x3e6   : > { %v3410_v31 = vmul.f32 %v6565_v17, %v6565_v17  ;;  %v3411_v41 = vmul.f32 %v6568_v55, %v6568_v55  ;;  %v3435_v47 = vadd.f32 %v3434_v62, %v3406_v15  ;;  %v3456_v59 = vadd.f32 %v3455_v32, %v3407_v20  ;;  %v3311_v20 = vld [vmem:[#allocation2 + $0x20] sm:$0xff] }
 0x3e7   : > { %v3356_v57 = vadd.f32 %v3355_v60, %v6581_v16  ;;  %v3377_v4 = vadd.f32 %v3376_v25, %v6584_v23  ;;  %v6647_v12 = vadd.f32 %v6532_v24, %v3305_v63  ;;  %v3412_v48 = vmul.f32 %v6573_v53, %v6573_v53 }
 0x3e8   : > { %v3413_v38 = vmul.f32 %v6576_v1, %v6576_v1  ;;  %v3436_v49 = vadd.f32 %v3435_v47, %v3408_v33  ;;  %v3457_v2 = vadd.f32 %v3456_v59, %v3409_v39  ;;  %v6656_v61 = vadd.f32 %v6534_v40, %v3306_v35 }
 0x3e9   : > { %v3357_v46 = vadd.f32 %v3356_v57, %v6589_v10  ;;  %v3378_v43 = vadd.f32 %v3377_v4, %v6592_v11  ;;  %v6659_v60 = vadd.f32 %v6532_v24, %v3307_v8  ;;  %v3414_v19 = vmul.f32 %v6581_v16, %v6581_v16 }
 0x3ea   : > { %v3415_v52 = vmul.f32 %v6584_v23, %v6584_v23  ;;  %v3437_v27 = vadd.f32 %v3436_v49, %v3410_v31  ;;  %v3458_v57 = vadd.f32 %v3457_v2, %v3411_v41  ;;  %v6668_v4 = vadd.f32 %v6534_v40, %v3308_v54 }
 0x3eb   : > { %v3358_v9 = vadd.f32 %v3357_v46, %v6605_v50  ;;  %v3379_v34 = vadd.f32 %v3378_v43, %v6608_v56  ;;  %v5173_v15 = vmov 128.0   ;;  %v3312_v46 = vld [vmem:[#allocation2 + $0x98] sm:$0xff]  ;;  %v3416_v43 = vmul.f32 %v6589_v10, %v6589_v10 }
 0x3ec   : > { %5094 = vrcp.f32 %v5173_v15  ;;  %v3417_v63 = vmul.f32 %v6592_v11, %v6592_v11  ;;  %v3438_v33 = vadd.f32 %v3437_v27, %v3412_v48  ;;  %v3459_v39 = vadd.f32 %v3458_v57, %v3413_v38 }
 0x3ed   : > { %v3359_v26 = vadd.f32 %v3358_v9, %v6613_v30  ;;  %v3380_v3 = vadd.f32 %v3379_v34, %v6616_v0  ;;  %v6677_v62 = vadd.f32 %v6532_v24, %v3309_v29  ;;  %v6680_v32 = vadd.f32 %v6534_v40, %v3310_v21 }
 0x3ee   : > { %v3418_v35 = vmul.f32 %v6605_v50, %v6605_v50  ;;  %v3419_v8 = vmul.f32 %v6608_v56, %v6608_v56  ;;  %v3439_v31 = vadd.f32 %v3438_v33, %v3414_v19  ;;  %v3460_v41 = vadd.f32 %v3459_v39, %v3415_v52 }
 0x3ef   : > { %v3360_v25 = vadd.f32 %v3359_v26, %v6623_v45  ;;  %v3381_v28 = vadd.f32 %v3380_v3, %v6626_v37  ;;  %v6689_v47 = vadd.f32 %v6532_v24, %v3311_v20  ;;  %v6692_v59 = vadd.f32 %v6534_v40, %v3312_v46 }
 0x3f0   : > { %v3420_v54 = vmul.f32 %v6613_v30, %v6613_v30  ;;  %v3421_v48 = vmul.f32 %v6616_v0, %v6616_v0  ;;  %v3440_v38 = vadd.f32 %v3439_v31, %v3416_v43  ;;  %v3461_v49 = vadd.f32 %v3460_v41, %v3417_v63 }
 0x3f1   : > { %v3361_v42 = vadd.f32 %v3360_v25, %v6635_v14  ;;  %v3382_v18 = vadd.f32 %v3381_v28, %v6638_v6  ;;  %7141 = vst [vmem:[#allocation45_spill] sm:$0xff] %v6692_v59  ;;  %v3422_v40 = vmul.f32 %v6623_v45, %v6623_v45  ;;  %v3423_v28 = vmul.f32 %v6626_v37, %v6626_v37 }
 0x3f2   : > { %v5095_v2 = vpop.eup %5094  ;;  %v3441_v29 = vadd.f32 %v3440_v38, %v3418_v35  ;;  %v3462_v21 = vadd.f32 %v3461_v49, %v3419_v8  ;;  %v3424_v27 = vmul.f32 %v6635_v14, %v6635_v14  ;;  %v3425_v57 = vmul.f32 %v6638_v6, %v6638_v6 }
 0x3f3   : > { %v3362_v9 = vadd.f32 %v3361_v42, %v6647_v12  ;;  %v3383_v34 = vadd.f32 %v3382_v18, %v6656_v61  ;;  %v3394_v46 = vmul.f32 128.0, %v5095_v2  ;;  %v3426_v43 = vmul.f32 %v6647_v12, %v6647_v12 }
 0x3f4   : > { %v3442_v42 = vadd.f32 %v3441_v29, %v3420_v54  ;;  %v3463_v18 = vadd.f32 %v3462_v21, %v3421_v48  ;;  %v3427_v63 = vmul.f32 %v6656_v61, %v6656_v61  ;;  %v3428_v35 = vmul.f32 %v6659_v60, %v6659_v60 }
 0x3f5   : > { %v3363_v26 = vadd.f32 %v3362_v9, %v6659_v60  ;;  %v3384_v3 = vadd.f32 %v3383_v34, %v6668_v4  ;;  %v3429_v8 = vmul.f32 %v6668_v4, %v6668_v4  ;;  %v3395_v54 = vsub.f32 1.0, %v3394_v46 }
 0x3f6   : > { %v3443_v33 = vadd.f32 %v3442_v42, %v3422_v40  ;;  %v3464_v39 = vadd.f32 %v3463_v18, %v3423_v28  ;;  %v3430_v48 = vmul.f32 %v6677_v62, %v6677_v62  ;;  %v3431_v38 = vmul.f32 %v6680_v32, %v6680_v32 }
 0x3f7   : > { %v3364_v25 = vadd.f32 %v3363_v26, %v6677_v62  ;;  %v3385_v24 = vadd.f32 %v3384_v3, %v6680_v32  ;;  %v3433_v40 = vmul.f32 %v6692_v59, %v6692_v59  ;;  %vm3398_vm0 = vweird.f32 %v5095_v2 }
 0x3f8   : > { %v3444_v31 = vadd.f32 %v3443_v33, %v3424_v27  ;;  %v3465_v41 = vadd.f32 %v3464_v39, %v3425_v57 }
 0x3f9   : > { %v3365_v19 = vadd.f32 %v3364_v25, %v6689_v47  ;;  %v3386_v52 = vadd.f32 %v3385_v24, %v6692_v59  ;;  %v3432_v24 = vmul.f32 %v6689_v47, %v6689_v47 }
 0x3fa   : > { %v3445_v49 = vadd.f32 %v3444_v31, %v3426_v43  ;;  %v3466_v25 = vadd.f32 %v3465_v41, %v3427_v63 }
 0x3fb   : > { %v3366_v15 = vrot.slane %v3365_v19, 4  ;;  %v3387_v20 = vrot.slane %v3386_v52, 4 }
 0x3fc   : > { %v3446_v21 = vadd.f32 %v3445_v49, %v3428_v35 }
 0x3fd   : > { %v3367_v9 = vadd.f32 %v3366_v15, %v3365_v19  ;;  %v3388_v34 = vadd.f32 %v3387_v20, %v3386_v52  ;;  %v3467_v19 = vadd.f32 %v3466_v25, %v3429_v8  ;;  %v3396_v52 = vmul.f32 %v5095_v2, %v3395_v54 }
 0x3fe   : > { %v3447_v27 = vadd.f32 %v3446_v21, %v3430_v48 }
 0x3ff   : > { %v3368_v26 = vrot.slane %v3367_v9, 2  ;;  %v3389_v3 = vrot.slane %v3388_v34, 2  ;;  %v3468_v57 = vadd.f32 %v3467_v19, %v3431_v38  ;;  %v3397_v46 = vadd.f32 %v5095_v2, %v3396_v52 }
 0x400   : > { %v3448_v15 = vadd.f32 %v3447_v27, %v3432_v24 }
 0x401   : > { %v3369_v28 = vadd.f32 %v3368_v26, %v3367_v9  ;;  %v3390_v29 = vadd.f32 %v3389_v3, %v3388_v34  ;;  %v3469_v20 = vadd.f32 %v3468_v57, %v3433_v40  ;;  %v3399_v59 = vsel %vm3398_vm0, %v5095_v2, %v3397_v46 }
 0x402   : > { %v3449_v43 = vrot.slane %v3448_v15, 4 }
 0x403   : > { %v3370_v42 = vrot.slane %v3369_v28, 1  ;;  %v3391_v18 = vrot.slane %v3390_v29, 1  ;;  %v3470_v63 = vrot.slane %v3469_v20, 4 }
 0x404   : > { %v3450_v31 = vadd.f32 %v3449_v43, %v3448_v15 }
 0x405   : > { %v3371_v33 = vadd.f32 %v3370_v42, %v3369_v28  ;;  %v3392_v39 = vadd.f32 %v3391_v18, %v3390_v29  ;;  %v3471_v41 = vadd.f32 %v3470_v63, %v3469_v20 }
 0x406   : > { %v3451_v9 = vrot.slane %v3450_v31, 2 }
 0x407   : > { %v3472_v34 = vrot.slane %v3471_v41, 2  ;;  %v6728_v35 = vmul.f32 %v3399_v59, %v3371_v33  ;;  %v6730_v8 = vmul.f32 %v3399_v59, %v3392_v39 }
 0x408   : > { %v3452_v26 = vadd.f32 %v3451_v9, %v3450_v31  ;;  %v3482_v9 = vld [vmem:[%s942_s1] sm:$0x3] }
 0x409   : > { %v3473_v3 = vadd.f32 %v3472_v34, %v3471_v41  ;;  %v3478_v25 = vmul.f32 %v6728_v35, %v6728_v35  ;;  %v3479_v24 = vmul.f32 %v6730_v8, %v6730_v8  ;;  %v3581_v41 = vld [vmem:[%s947_s27] sm:$0x3] }
 0x40a   : > { %v3453_v54 = vrot.slane %v3452_v26, 1 }
 0x40b   : > { %v3474_v48 = vrot.slane %v3473_v3, 1 }
 0x40c   : > { %v3454_v38 = vadd.f32 %v3453_v54, %v3452_v26  ;;  %v3512_v26 = vsub.f32 %v6537_v58, %v6728_v35  ;;  %v3517_v58 = vsub.f32 %v6552_v36, %v6730_v8  ;;  %v3523_v36 = vsub.f32 %v6576_v1, %v6730_v8 }
 0x40d   : > { %v3475_v49 = vadd.f32 %v3474_v48, %v3473_v3  ;;  %v3513_v3 = vsub.f32 %v6540_v51, %v6730_v8  ;;  %v6750_v48 = vperm.slane %v3581_v41, 0  ;;  %v3518_v51 = vsub.f32 %v6555_v22, %v6728_v35 }
 0x40e   : > { %v3476_v40 = vmul.f32 %v3454_v38, %v3399_v59  ;;  %v6752_v38 = vperm.slane %v3581_v41, 1  ;;  %v3524_v22 = vsub.f32 %v6581_v16, %v6728_v35 }
 0x40f   : > { %v3477_v2 = vmul.f32 %v3475_v49, %v3399_v59  ;;  %v3514_v49 = vsub.f32 %v6543_v44, %v6728_v35  ;;  %v3521_v44 = vsub.f32 %v6568_v55, %v6730_v8  ;;  %v3527_v55 = vsub.f32 %v6592_v11, %v6730_v8 }
 0x410   : > { %v3480_v28 = vsub.f32 %v3476_v40, %v3478_v25  ;;  %v3516_v40 = vsub.f32 %v6549_v5, %v6728_v35  ;;  %v3522_v5 = vsub.f32 %v6573_v53, %v6728_v35 }
 0x411   : > { %v3481_v29 = vsub.f32 %v3477_v2, %v3479_v24  ;;  %v3515_v24 = vsub.f32 %v6546_v13, %v6730_v8  ;;  %v3519_v2 = vsub.f32 %v6558_v7, %v6730_v8  ;;  %v3525_v7 = vsub.f32 %v6584_v23, %v6730_v8 }
 0x412   : > { %v3483_v21 = vadd.f32 1e-05, %v3480_v28  ;;  %v3520_v28 = vsub.f32 %v6565_v17, %v6728_v35  ;;  %v3526_v17 = vsub.f32 %v6589_v10, %v6728_v35 }
 0x413   : > { %v3484_v19 = vadd.f32 1e-05, %v3481_v29 }
 0x414   : > { %5096 = vrsqrt.f32 %v3483_v21  ;;  %vm3491_vm1 = vweird.f32 %v3483_v21 }
 0x415   : > { %5098 = vrsqrt.f32 %v3484_v19  ;;  %vm3501_vm3 = vweird.f32 %v3484_v19 }
 0x41a   : > { %v5097_v52 = vpop.eup %5096 }
 0x41b   : > { %v5099_v27 = vpop.eup %5098  ;;  %v3486_v57 = vmul.f32 %v5097_v52, %v3483_v21  ;;  %vm3492_vm2 = vweird.f32 %v5097_v52 }
 0x41c   : > { %v3496_v42 = vmul.f32 %v5099_v27, %v3484_v19  ;;  %vm3502_vm4 = vweird.f32 %v5099_v27  ;;  %vm3493_vm5 = vmor %vm3491_vm1, %vm3492_vm2 }
 0x41d   : > { %v3487_v18 = vmul.f32 %v5097_v52, %v3486_v57  ;;  %vm3503_vm6 = vmor %vm3501_vm3, %vm3502_vm4 }
 0x41e   : > { %v3497_v15 = vmul.f32 %v5099_v27, %v3496_v42 }
 0x41f   : > { %v3488_v20 = vmul.f32 0.5, %v3487_v18 }
 0x420   : > { %v3498_v46 = vmul.f32 0.5, %v3497_v15 }
 0x421   : > { %v3489_v59 = vsub.f32 1.5, %v3488_v20  ;;  %v3528_v20 = vsub.f32 %v6605_v50, %v6728_v35 }
 0x422   : > { %v3499_v43 = vsub.f32 1.5, %v3498_v46  ;;  %v3529_v46 = vsub.f32 %v6608_v56, %v6730_v8 }
 0x423   : > { %v3490_v63 = vmul.f32 %v5097_v52, %v3489_v59 }
 0x424   : > { %v3500_v33 = vmul.f32 %v5099_v27, %v3499_v43 }
 0x425   : > { %v3494_v39 = vsel %vm3493_vm5, %v5097_v52, %v3490_v63 }
 0x426   : > { %v3504_v31 = vsel %vm3503_vm6, %v5099_v27, %v3500_v33 }
 0x427   : > { %v3507_v34 = vrot.slane %v3504_v31, 7 }
 0x429   : > { %v3509_v54 = vsel %vm3508_vm7, %v3494_v39, %v3507_v34 }
 0x42a   : > { %v3511_v25 = vmul.f32 %v3509_v54, %v3482_v9  ;;  %v3530_v9 = vsub.f32 %v6613_v30, %v6728_v35 }
 0x42c   : > { %v6770_v29 = vperm.slane %v3511_v25, 0  ;;  %v6772_v13 = vperm.slane %v3511_v25, 1 }
 0x42e   : > { %v3549_v21 = vmul.f32 %v6770_v29, %v3512_v26  ;;  %v3550_v19 = vmul.f32 %v6772_v13, %v3513_v3  ;;  %v3551_v53 = vmul.f32 %v6770_v29, %v3514_v49  ;;  %v3552_v1 = vmul.f32 %v6772_v13, %v3515_v24 }
 0x42f   : > { %v3553_v52 = vmul.f32 %v6770_v29, %v3516_v40  ;;  %v3554_v16 = vmul.f32 %v6772_v13, %v3517_v58  ;;  %v3555_v23 = vmul.f32 %v6770_v29, %v3518_v51  ;;  %v3556_v27 = vmul.f32 %v6772_v13, %v3519_v2 }
 0x430   : > { %v3587_v10 = vadd.f32 %v6750_v48, %v3549_v21  ;;  %v3588_v11 = vadd.f32 %v6752_v38, %v3550_v19  ;;  %v3589_v57 = vadd.f32 %v6750_v48, %v3551_v53  ;;  %v3590_v42 = vadd.f32 %v6752_v38, %v3552_v1 }
 0x431   : > { %v3591_v18 = vadd.f32 %v6750_v48, %v3553_v52  ;;  %v3592_v15 = vadd.f32 %v6752_v38, %v3554_v16  ;;  %v3593_v33 = vadd.f32 %v6750_v48, %v3555_v23  ;;  %v3594_v41 = vadd.f32 %v6752_v38, %v3556_v27 }
 0x432   : > { %v3619_v59 = vmax.f32 %v3587_v10, 0.0  ;;  %v3620_v43 = vmax.f32 %v3588_v11, 0.0  ;;  %v3621_v63 = vmax.f32 %v3589_v57, 0.0  ;;  %v3622_v39 = vmax.f32 %v3590_v42, 0.0 }
 0x433   : > { %v3623_v31 = vmax.f32 %v3591_v18, 0.0  ;;  %v3557_v50 = vmul.f32 %v6770_v29, %v3520_v28  ;;  %v3558_v34 = vmul.f32 %v6772_v13, %v3521_v44  ;;  %v3559_v56 = vmul.f32 %v6770_v29, %v3522_v5 }
 0x434   : > { %3651 = vst [vmem:[%s5611_s8] sm:$0xff] %v3619_v59  ;;  %v3560_v26 = vmul.f32 %v6772_v13, %v3523_v36  ;;  %v3624_v3 = vmax.f32 %v3592_v15, 0.0  ;;  %v3561_v54 = vmul.f32 %v6770_v29, %v3524_v22  ;;  %v3562_v49 = vmul.f32 %v6772_v13, %v3525_v7 }
 0x435   : > { %3652 = vst [vmem:[%s5611_s8 + $0x8] sm:$0xff] %v3620_v43  ;;  %v3563_v25 = vmul.f32 %v6770_v29, %v3526_v17  ;;  %v3625_v30 = vmax.f32 %v3593_v33, 0.0  ;;  %v3595_v24 = vadd.f32 %v6750_v48, %v3557_v50  ;;  %v3596_v40 = vadd.f32 %v6752_v38, %v3558_v34 }
 0x436   : > { %3653 = vst [vmem:[%s5611_s8 + $0x10] sm:$0xff] %v3621_v63  ;;  %v3597_v58 = vadd.f32 %v6750_v48, %v3559_v56  ;;  %v3626_v51 = vmax.f32 %v3594_v41, 0.0  ;;  %v3598_v2 = vadd.f32 %v6752_v38, %v3560_v26  ;;  %v3564_v28 = vmul.f32 %v6772_v13, %v3527_v55 }
 0x437   : > { %3654 = vst [vmem:[%s5611_s8 + $0x18] sm:$0xff] %v3622_v39  ;;  %v3531_v44 = vsub.f32 %v6616_v0, %v6730_v8  ;;  %v3627_v5 = vmax.f32 %v3595_v24, 0.0  ;;  %v3599_v36 = vadd.f32 %v6750_v48, %v3561_v54  ;;  %v3532_v22 = vsub.f32 %v6623_v45, %v6728_v35 }
 0x438   : > { %3655 = vst [vmem:[%s5611_s8 + $0x20] sm:$0xff] %v3623_v31  ;;  %v3533_v7 = vsub.f32 %v6626_v37, %v6730_v8  ;;  %v3628_v17 = vmax.f32 %v3596_v40, 0.0  ;;  %v3600_v21 = vadd.f32 %v6752_v38, %v3562_v49  ;;  %v3601_v55 = vadd.f32 %v6750_v48, %v3563_v25  ;;  %v7142_v25 = vld [vmem:[#allocation45_spill] sm:$0xff] }
 0x439   : > { %3656 = vst [vmem:[%s5611_s8 + $0x28] sm:$0xff] %v3624_v3  ;;  %v3534_v0 = vsub.f32 %v6635_v14, %v6728_v35  ;;  %v3629_v19 = vmax.f32 %v3597_v58, 0.0  ;;  %v3565_v53 = vmul.f32 %v6770_v29, %v3528_v20  ;;  %v3566_v45 = vmul.f32 %v6772_v13, %v3529_v46 }
 0x43a   : > { %3657 = vst [vmem:[%s5611_s8 + $0x30] sm:$0xff] %v3625_v30  ;;  %v3567_v1 = vmul.f32 %v6770_v29, %v3530_v9  ;;  %v3630_v37 = vmax.f32 %v3598_v2, 0.0  ;;  %v3602_v52 = vadd.f32 %v6752_v38, %v3564_v28  ;;  %v3568_v16 = vmul.f32 %v6772_v13, %v3531_v44 }
 0x43b   : > { %3658 = vst [vmem:[%s5611_s8 + $0x38] sm:$0xff] %v3626_v51  ;;  %v3535_v23 = vsub.f32 %v6638_v6, %v6730_v8  ;;  %v3631_v14 = vmax.f32 %v3599_v36, 0.0  ;;  %v3603_v27 = vadd.f32 %v6750_v48, %v3565_v53  ;;  %v3569_v10 = vmul.f32 %v6770_v29, %v3532_v22 }
 0x43c   : > { %3659 = vst [vmem:[%s5611_s8 + $0x40] sm:$0xff] %v3627_v5  ;;  %v3536_v11 = vsub.f32 %v6647_v12, %v6728_v35  ;;  %v3632_v57 = vmax.f32 %v3600_v21, 0.0  ;;  %v3604_v42 = vadd.f32 %v6752_v38, %v3566_v45  ;;  %v3570_v18 = vmul.f32 %v6772_v13, %v3533_v7 }
 0x43d   : > { %3660 = vst [vmem:[%s5611_s8 + $0x48] sm:$0xff] %v3628_v17  ;;  %v3537_v6 = vsub.f32 %v6656_v61, %v6730_v8  ;;  %v3633_v15 = vmax.f32 %v3601_v55, 0.0  ;;  %v3605_v20 = vadd.f32 %v6750_v48, %v3567_v1  ;;  %v3571_v46 = vmul.f32 %v6770_v29, %v3534_v0 }
 0x43e   : > { %3661 = vst [vmem:[%s5611_s8 + $0x50] sm:$0xff] %v3629_v19  ;;  %v3538_v12 = vsub.f32 %v6659_v60, %v6728_v35  ;;  %v3634_v59 = vmax.f32 %v3602_v52, 0.0  ;;  %v3606_v43 = vadd.f32 %v6752_v38, %v3568_v16  ;;  %v3572_v63 = vmul.f32 %v6772_v13, %v3535_v23 }
 0x43f   : > { %3662 = vst [vmem:[%s5611_s8 + $0x58] sm:$0xff] %v3630_v37  ;;  %v3539_v61 = vsub.f32 %v6668_v4, %v6730_v8  ;;  %v3635_v33 = vmax.f32 %v3603_v27, 0.0  ;;  %v3607_v39 = vadd.f32 %v6750_v48, %v3569_v10  ;;  %v3573_v31 = vmul.f32 %v6770_v29, %v3536_v11 }
 0x440   : > { %3663 = vst [vmem:[%s5611_s8 + $0x60] sm:$0xff] %v3631_v14  ;;  %v3540_v60 = vsub.f32 %v6677_v62, %v6728_v35  ;;  %v3636_v41 = vmax.f32 %v3604_v42, 0.0  ;;  %v3608_v9 = vadd.f32 %v6752_v38, %v3570_v18  ;;  %v3574_v50 = vmul.f32 %v6772_v13, %v3537_v6 }
 0x441   : > { %3664 = vst [vmem:[%s5611_s8 + $0x68] sm:$0xff] %v3632_v57  ;;  %v3541_v4 = vsub.f32 %v6680_v32, %v6730_v8  ;;  %v3637_v34 = vmax.f32 %v3605_v20, 0.0  ;;  %v3609_v56 = vadd.f32 %v6750_v48, %v3571_v46  ;;  %v3575_v26 = vmul.f32 %v6770_v29, %v3538_v12 }
 0x442   : > { %3665 = vst [vmem:[%s5611_s8 + $0x70] sm:$0xff] %v3633_v15  ;;  %v3542_v62 = vsub.f32 %v6689_v47, %v6728_v35  ;;  %v3638_v3 = vmax.f32 %v3606_v43, 0.0  ;;  %v3610_v54 = vadd.f32 %v6752_v38, %v3572_v63  ;;  %v3576_v49 = vmul.f32 %v6772_v13, %v3539_v61 }
 0x443   : > { %3666 = vst [vmem:[%s5611_s8 + $0x78] sm:$0xff] %v3634_v59  ;;  %v3543_v32 = vsub.f32 %v7142_v25, %v6730_v8  ;;  %v3639_v30 = vmax.f32 %v3607_v39, 0.0  ;;  %v3611_v24 = vadd.f32 %v6750_v48, %v3573_v31  ;;  %v3577_v40 = vmul.f32 %v6770_v29, %v3540_v60 }
 0x444   : > { %3667 = vst [vmem:[%s5611_s8 + $0x80] sm:$0xff] %v3635_v33  ;;  %v3640_v47 = vmax.f32 %v3608_v9, 0.0  ;;  %v3612_v35 = vadd.f32 %v6752_v38, %v3574_v50  ;;  %v3578_v58 = vmul.f32 %v6772_v13, %v3541_v4  ;;  %v3641_v51 = vmax.f32 %v3609_v56, 0.0 }
 0x445   : > { %3668 = vst [vmem:[%s5611_s8 + $0x88] sm:$0xff] %v3636_v41  ;;  %v3613_v8 = vadd.f32 %v6750_v48, %v3575_v26  ;;  %v3579_v2 = vmul.f32 %v6770_v29, %v3542_v62  ;;  %v3642_v28 = vmax.f32 %v3610_v54, 0.0  ;;  %v3614_v44 = vadd.f32 %v6752_v38, %v3576_v49 }
 0x446   : > { %3669 = vst [vmem:[%s5611_s8 + $0x90] sm:$0xff] %v3637_v34  ;;  %v3580_v5 = vmul.f32 %v6772_v13, %v3543_v32  ;;  %v3643_v36 = vmax.f32 %v3611_v24, 0.0  ;;  %v3615_v22 = vadd.f32 %v6750_v48, %v3577_v40  ;;  %v3644_v7 = vmax.f32 %v3612_v35, 0.0 }
 0x447   : > { %3670 = vst [vmem:[%s5611_s8 + $0x98] sm:$0xff] %v3638_v3  ;;  %v3616_v17 = vadd.f32 %v6752_v38, %v3578_v58  ;;  %v3645_v29 = vmax.f32 %v3613_v8, 0.0  ;;  %v3617_v21 = vadd.f32 %v6750_v48, %v3579_v2  ;;  %v3646_v13 = vmax.f32 %v3614_v44, 0.0 }
 0x448   : > { %3671 = vst [vmem:[%s5611_s8 + $0xa0] sm:$0xff] %v3639_v30  ;;  %v3618_v55 = vadd.f32 %v6752_v38, %v3580_v5  ;;  %v3647_v0 = vmax.f32 %v3615_v22, 0.0 }
 0x449   : > { %3672 = vst [vmem:[%s5611_s8 + $0xa8] sm:$0xff] %v3640_v47  ;;  %v3648_v19 = vmax.f32 %v3616_v17, 0.0  ;;  %v3649_v53 = vmax.f32 %v3617_v21, 0.0 }
 0x44a   : > { %3673 = vst [vmem:[%s5611_s8 + $0xb0] sm:$0xff] %v3641_v51  ;;  %v3650_v45 = vmax.f32 %v3618_v55, 0.0 }
 0x44b   : > { %3674 = vst [vmem:[%s5611_s8 + $0xb8] sm:$0xff] %v3642_v28 }
 0x44c   : > { %3675 = vst [vmem:[%s5611_s8 + $0xc0] sm:$0xff] %v3643_v36 }
 0x44d   : > { %3676 = vst [vmem:[%s5611_s8 + $0xc8] sm:$0xff] %v3644_v7 }
 0x44e   : > { %3677 = vst [vmem:[%s5611_s8 + $0xd0] sm:$0xff] %v3645_v29 }
 0x44f   : > { %3678 = vst [vmem:[%s5611_s8 + $0xd8] sm:$0xff] %v3646_v13 }
 0x450   : > { %3679 = vst [vmem:[%s5611_s8 + $0xe0] sm:$0xff] %v3647_v0 }
 0x451   : > { %3680 = vst [vmem:[%s5611_s8 + $0xe8] sm:$0xff] %v3648_v19 }
 0x452   : > { %3681 = vst [vmem:[%s5611_s8 + $0xf0] sm:$0xff] %v3649_v53 }
 0x453   : > { %3682 = vst [vmem:[%s5611_s8 + $0xf8] sm:$0xff] %v3650_v45 }
 0x454 PF: > { %3689 = sbr.rel (!%p5272_p9) target bundleno = 1142 (0x476), region = 90  ;;  %s4999_s1 = sshll.u32 (%p5272_p9), %s5158_s23, 4  ;;  %v3708_v48 = vld [vmem:[%s5611_s8] sm:$0xff] (%p5272_p9)  ;;  %v3710_v38 = vld [vmem:[%s5611_s8 + $0x8] sm:$0xff] (%p5272_p9)  ;;  %v3712_v1 = vld [vmem:[%s5611_s8 + $0x10] sm:$0xff] (%p5272_p9) }
 0x455   : > { %s6922_s9 = scalar_lea.vmem (%p5272_p9), %s7018_s5, %s4999_s1  ;;  %v3714_v37 = vld [vmem:[%s5611_s8 + $0x18] sm:$0xff] (%p5272_p9)  ;;  %v3716_v52 = vld [vmem:[%s5611_s8 + $0x20] sm:$0xff] (%p5272_p9)  ;;  %v3718_v16 = vld [vmem:[%s5611_s8 + $0x28] sm:$0xff] (%p5272_p9) }
 0x456   : > { %3709 = vst [vmem:[%s6922_s9] sm:$0xff] (%p5272_p9), %v3708_v48  ;;  %v3720_v23 = vld [vmem:[%s5611_s8 + $0x30] sm:$0xff] (%p5272_p9)  ;;  %v3722_v14 = vld [vmem:[%s5611_s8 + $0x38] sm:$0xff] (%p5272_p9)  ;;  %v3724_v27 = vld [vmem:[%s5611_s8 + $0x40] sm:$0xff] (%p5272_p9) }
 0x457   : > { %3711 = vst [vmem:[%s6922_s9 + $0x8] sm:$0xff] (%p5272_p9), %v3710_v38  ;;  %v3726_v10 = vld [vmem:[%s5611_s8 + $0x48] sm:$0xff] (%p5272_p9)  ;;  %v3728_v11 = vld [vmem:[%s5611_s8 + $0x50] sm:$0xff] (%p5272_p9)  ;;  %v3730_v57 = vld [vmem:[%s5611_s8 + $0x58] sm:$0xff] (%p5272_p9) }
 0x458   : > { %3713 = vst [vmem:[%s6922_s9 + $0x20] sm:$0xff] (%p5272_p9), %v3712_v1  ;;  %v3732_v42 = vld [vmem:[%s5611_s8 + $0x60] sm:$0xff] (%p5272_p9)  ;;  %v3734_v18 = vld [vmem:[%s5611_s8 + $0x68] sm:$0xff] (%p5272_p9)  ;;  %v3736_v6 = vld [vmem:[%s5611_s8 + $0x70] sm:$0xff] (%p5272_p9) }
 0x459   : > { %3715 = vst [vmem:[%s6922_s9 + $0x28] sm:$0xff] %v3714_v37  ;;  %v3738_v15 = vld [vmem:[%s5611_s8 + $0x78] sm:$0xff]  ;;  %v3740_v20 = vld [vmem:[%s5611_s8 + $0x80] sm:$0xff]  ;;  %v3742_v46 = vld [vmem:[%s5611_s8 + $0x88] sm:$0xff] }
 0x45a   : > { %3717 = vst [vmem:[%s6922_s9 + $0x40] sm:$0xff] %v3716_v52  ;;  %v3744_v12 = vld [vmem:[%s5611_s8 + $0x90] sm:$0xff]  ;;  %v3746_v59 = vld [vmem:[%s5611_s8 + $0x98] sm:$0xff]  ;;  %v3748_v43 = vld [vmem:[%s5611_s8 + $0xa0] sm:$0xff] }
 0x45b   : > { %3719 = vst [vmem:[%s6922_s9 + $0x48] sm:$0xff] %v3718_v16  ;;  %v3750_v63 = vld [vmem:[%s5611_s8 + $0xa8] sm:$0xff]  ;;  %v3752_v61 = vld [vmem:[%s5611_s8 + $0xb0] sm:$0xff]  ;;  %v3754_v33 = vld [vmem:[%s5611_s8 + $0xb8] sm:$0xff] }
 0x45c   : > { %3721 = vst [vmem:[%s6922_s9 + $0x60] sm:$0xff] %v3720_v23  ;;  %v3756_v39 = vld [vmem:[%s5611_s8 + $0xc0] sm:$0xff]  ;;  %v3758_v31 = vld [vmem:[%s5611_s8 + $0xc8] sm:$0xff]  ;;  %v3760_v60 = vld [vmem:[%s5611_s8 + $0xd0] sm:$0xff] }
 0x45d   : > { %3723 = vst [vmem:[%s6922_s9 + $0x68] sm:$0xff] %v3722_v14  ;;  %v3762_v41 = vld [vmem:[%s5611_s8 + $0xd8] sm:$0xff]  ;;  %v3764_v9 = vld [vmem:[%s5611_s8 + $0xe0] sm:$0xff]  ;;  %v3766_v50 = vld [vmem:[%s5611_s8 + $0xe8] sm:$0xff] }
 0x45e   : > { %3725 = vst [vmem:[%s6922_s9 + $0x80] sm:$0xff] %v3724_v27  ;;  %v3768_v4 = vld [vmem:[%s5611_s8 + $0xf0] sm:$0xff]  ;;  %v3770_v34 = vld [vmem:[%s5611_s8 + $0xf8] sm:$0xff] }
 0x45f   : > { %3727 = vst [vmem:[%s6922_s9 + $0x88] sm:$0xff] %v3726_v10 }
 0x460   : > { %3729 = vst [vmem:[%s6922_s9 + $0xa0] sm:$0xff] %v3728_v11 }
 0x461   : > { %3731 = vst [vmem:[%s6922_s9 + $0xa8] sm:$0xff] %v3730_v57 }
 0x462   : > { %3733 = vst [vmem:[%s6922_s9 + $0xc0] sm:$0xff] %v3732_v42 }
 0x463   : > { %3735 = vst [vmem:[%s6922_s9 + $0xc8] sm:$0xff] %v3734_v18 }
 0x464   : > { %3737 = vst [vmem:[%s6922_s9 + $0xe0] sm:$0xff] %v3736_v6 }
 0x465   : > { %3739 = vst [vmem:[%s6922_s9 + $0xe8] sm:$0xff] %v3738_v15 }
 0x466   : > { %3741 = vst [vmem:[%s6922_s9 + $0x100] sm:$0xff] %v3740_v20 }
 0x467   : > { %3743 = vst [vmem:[%s6922_s9 + $0x108] sm:$0xff] %v3742_v46 }
 0x468   : > { %3745 = vst [vmem:[%s6922_s9 + $0x120] sm:$0xff] %v3744_v12 }
 0x469   : > { %3747 = vst [vmem:[%s6922_s9 + $0x128] sm:$0xff] %v3746_v59 }
 0x46a   : > { %3749 = vst [vmem:[%s6922_s9 + $0x140] sm:$0xff] %v3748_v43 }
 0x46b   : > { %3751 = vst [vmem:[%s6922_s9 + $0x148] sm:$0xff] %v3750_v63 }
 0x46c   : > { %3753 = vst [vmem:[%s6922_s9 + $0x160] sm:$0xff] %v3752_v61 }
 0x46d   : > { %3755 = vst [vmem:[%s6922_s9 + $0x168] sm:$0xff] %v3754_v33 }
 0x46e   : > { %3757 = vst [vmem:[%s6922_s9 + $0x180] sm:$0xff] %v3756_v39 }
 0x46f   : > { %3759 = vst [vmem:[%s6922_s9 + $0x188] sm:$0xff] %v3758_v31 }
 0x470   : > { %3761 = vst [vmem:[%s6922_s9 + $0x1a0] sm:$0xff] %v3760_v60 }
 0x471   : > { %3763 = vst [vmem:[%s6922_s9 + $0x1a8] sm:$0xff] %v3762_v41 }
 0x472   : > { %3765 = vst [vmem:[%s6922_s9 + $0x1c0] sm:$0xff] %v3764_v9 }
 0x473   : > { %3767 = vst [vmem:[%s6922_s9 + $0x1c8] sm:$0xff] %v3766_v50 }
 0x474   : > { %3769 = vst [vmem:[%s6922_s9 + $0x1e0] sm:$0xff] %v3768_v4 }
 0x475   : > { %3771 = vst [vmem:[%s6922_s9 + $0x1e8] sm:$0xff] %v3770_v34 }
 0x476 PF: > { %s15_s26 = sadd.s32 1, %s5170_s26   ;;  %s7143_s23 = sld [smem:[#allocation5_spill]] }
 0x477   : > { %p12_p4 = scmp.ge.s32.totalorder %s15_s26, 20   ;;  %s7144_s11 = sld [smem:[#allocation6_spill]] }
 0x478   : > { %s7145_s25 = sld [smem:[#allocation7_spill]]  ;;  %s7146_s18 = smov %s5142_s19 }
 0x479   : > { %s7147_s19 = smov %s5277_s12  ;;  %s7148_s20 = smov %s5150_s21 }
 0x47a   : > { %s7149_s21 = smov %s5280_s13  ;;  %s7150_s22 = smov %s5162_s24 }
 0x47b   :  { %14 = sbr.rel (!%p12_p4) target bundleno = 7 (0x7), region = 156 }
 0x47d   : > { %s7151_s24 = smov %s7144_s11 }

// kernel: encoder_block_forward.7
= control target key start
LH: loop header
LB: loop body
LE: loop exit
PB: predicated region body
PF: predicated region fallthrough
CT: control target
= control target key end

     0   :  { %s2972_s18 = smov 0   ;;  %s2974_s19 = smov 0   ;;  %s4167_s0 = inlined_call_operand.vmem [shape: bf16[1,128,512], index: 0, kind: input, shape index: {}]   ;;  %s4168_s1 = inlined_call_operand.vmem [shape: bf16[1,512,512], index: 1, kind: input, shape index: {}]   ;;  %s4169_s2 = inlined_call_operand.vmem [shape: f32[1,512], index: 2, kind: input, shape index: {}]   ;;  %s4170_s3 = inlined_call_operand.vmem [shape: f32[1,512], index: 3, kind: input, shape index: {}]   ;;  %s4171_s4 = inlined_call_operand.vmem [shape: f32[1,512], index: 4, kind: input, shape index: {}]   ;;  %s4172_s5 = inlined_call_operand.vmem [shape: f32[128,512], index: 5, kind: output, shape index: {}]  }
   0x1   :  { %s2976_s20 = smov 0   ;;  %s2978_s21 = smov 0  }
   0x2   :  { %s2980_s22 = smov 0  }
   0x3 LB: > { %s30_s23 = sadd.s32 1, %s2935_s21  ;;  %s2353_s24 = sadd.s32 4294967295, %s2939_s22   ;;  %s2939_s22 = sphi %s2980_s22, %s15_s22   ;;  %s2935_s21 = sphi %s2978_s21, %s4193_s21   ;;  %s2931_s20 = sphi %s2976_s20, %s4192_s20   ;;  %s2927_s19 = sphi %s2974_s19, %s4191_s19   ;;  %s2923_s18 = sphi %s2972_s18, %s4190_s18  }
   0x4   : > { %p32_p0 = scmp.ge.s32.totalorder %s30_s23, 2  ;;  %p78_p1 = scmp.ne.s32.totalorder %s2927_s19, %s2923_s18 }
   0x5   : > { %p79_p2 = scmp.eq.s32.totalorder %s2939_s22, 0  ;;  %p188_p4 = scmp.eq.s32.totalorder %s2353_s24, 1 }
   0x6   : > { %s4195_s23 = smov (%p32_p0, %s30_s23), 0  ;;  %s71_s26 = sadd.s32 1, %s2927_s19 }
   0x7   : > { %p80_p3 = por %p79_p2, %p78_p1  ;;  %s67_s25 = ssub.s32 %s2935_s21, %s4195_s23 }
   0x8   : > { %p69_p5 = scmp.eq.s32.totalorder %s67_s25, 0  ;;  %p3007_p6 = por %p188_p4, %p78_p1 }
   0x9   : > { %p2357_p7 = scmp.ge.s32.totalorder %s2939_s22, 2 }
   0xa   : > { %s3012_s28 = scalar_select %p69_p5, %s2927_s19, %s71_s26  }
   0xb   : > { %224 = sbr.rel (%p2357_p7) target bundleno = 84 (0x54), region = 20 }
  0x10   : > { %227 = sbr.rel (!%p80_p3) target bundleno = 84 (0x54), region = 24  ;;  %s229_s29 = sand.u32 (%p80_p3), 1, %s2927_s19  }
  0x11   : > { %s2756_s30 = sshll.u32 (%p80_p3), %s2935_s21, 3  ;;  %s2358_s6 = sshll.u32 (%p80_p3), %s229_s29, 9 }
  0x12   : > { %s3020_s9 = scalar_lea.vmem (%p80_p3), %s4168_s1, %s2756_s30  ;;  %s3025_s10 = scalar_lea.vmem (%p80_p3), [#allocation3], %s2358_s6 }
  0x13   : > { %v391_v0 = vld [vmem:[%s3020_s9] sm:$0xff] (%p80_p3)  ;;  %v393_v1 = vld [vmem:[%s3020_s9 + $0x10] sm:$0xff] (%p80_p3) }
  0x14   : > { %v395_v2 = vld [vmem:[%s3020_s9 + $0x20] sm:$0xff] (%p80_p3)  ;;  %392 = vst [vmem:[%s3025_s10] sm:$0xff] (%p80_p3), %v391_v0  ;;  %v397_v3 = vld [vmem:[%s3020_s9 + $0x30] sm:$0xff] (%p80_p3) }
  0x15   : > { %394 = vst [vmem:[%s3025_s10 + $0x8] sm:$0xff] %v393_v1  ;;  %v399_v4 = vld [vmem:[%s3020_s9 + $0x40] sm:$0xff]  ;;  %v401_v5 = vld [vmem:[%s3020_s9 + $0x50] sm:$0xff] }
  0x16   : > { %396 = vst [vmem:[%s3025_s10 + $0x10] sm:$0xff] %v395_v2  ;;  %v403_v6 = vld [vmem:[%s3020_s9 + $0x60] sm:$0xff]  ;;  %v405_v7 = vld [vmem:[%s3020_s9 + $0x70] sm:$0xff] }
  0x17   : > { %398 = vst [vmem:[%s3025_s10 + $0x18] sm:$0xff] %v397_v3  ;;  %v407_v8 = vld [vmem:[%s3020_s9 + $0x80] sm:$0xff]  ;;  %v409_v9 = vld [vmem:[%s3020_s9 + $0x90] sm:$0xff] }
  0x18   : > { %400 = vst [vmem:[%s3025_s10 + $0x20] sm:$0xff] %v399_v4  ;;  %v411_v10 = vld [vmem:[%s3020_s9 + $0xa0] sm:$0xff]  ;;  %v413_v11 = vld [vmem:[%s3020_s9 + $0xb0] sm:$0xff] }
  0x19   : > { %402 = vst [vmem:[%s3025_s10 + $0x28] sm:$0xff] %v401_v5  ;;  %v415_v12 = vld [vmem:[%s3020_s9 + $0xc0] sm:$0xff]  ;;  %v417_v13 = vld [vmem:[%s3020_s9 + $0xd0] sm:$0xff] }
  0x1a   : > { %404 = vst [vmem:[%s3025_s10 + $0x30] sm:$0xff] %v403_v6  ;;  %v419_v14 = vld [vmem:[%s3020_s9 + $0xe0] sm:$0xff]  ;;  %v421_v15 = vld [vmem:[%s3020_s9 + $0xf0] sm:$0xff] }
  0x1b   : > { %406 = vst [vmem:[%s3025_s10 + $0x38] sm:$0xff] %v405_v7  ;;  %v423_v16 = vld [vmem:[%s3020_s9 + $0x100] sm:$0xff]  ;;  %v425_v17 = vld [vmem:[%s3020_s9 + $0x110] sm:$0xff] }
  0x1c   : > { %408 = vst [vmem:[%s3025_s10 + $0x40] sm:$0xff] %v407_v8  ;;  %v427_v18 = vld [vmem:[%s3020_s9 + $0x120] sm:$0xff]  ;;  %v429_v19 = vld [vmem:[%s3020_s9 + $0x130] sm:$0xff] }
  0x1d   : > { %410 = vst [vmem:[%s3025_s10 + $0x48] sm:$0xff] %v409_v9  ;;  %v431_v20 = vld [vmem:[%s3020_s9 + $0x140] sm:$0xff]  ;;  %v433_v21 = vld [vmem:[%s3020_s9 + $0x150] sm:$0xff] }
  0x1e   : > { %412 = vst [vmem:[%s3025_s10 + $0x50] sm:$0xff] %v411_v10  ;;  %v435_v22 = vld [vmem:[%s3020_s9 + $0x160] sm:$0xff]  ;;  %v437_v23 = vld [vmem:[%s3020_s9 + $0x170] sm:$0xff] }
  0x1f   : > { %414 = vst [vmem:[%s3025_s10 + $0x58] sm:$0xff] %v413_v11  ;;  %v439_v24 = vld [vmem:[%s3020_s9 + $0x180] sm:$0xff]  ;;  %v441_v25 = vld [vmem:[%s3020_s9 + $0x190] sm:$0xff] }
  0x20   : > { %416 = vst [vmem:[%s3025_s10 + $0x60] sm:$0xff] %v415_v12  ;;  %v443_v26 = vld [vmem:[%s3020_s9 + $0x1a0] sm:$0xff]  ;;  %v445_v27 = vld [vmem:[%s3020_s9 + $0x1b0] sm:$0xff] }
  0x21   : > { %418 = vst [vmem:[%s3025_s10 + $0x68] sm:$0xff] %v417_v13  ;;  %v447_v28 = vld [vmem:[%s3020_s9 + $0x1c0] sm:$0xff]  ;;  %v449_v29 = vld [vmem:[%s3020_s9 + $0x1d0] sm:$0xff] }
  0x22   : > { %420 = vst [vmem:[%s3025_s10 + $0x70] sm:$0xff] %v419_v14  ;;  %v451_v30 = vld [vmem:[%s3020_s9 + $0x1e0] sm:$0xff]  ;;  %v453_v31 = vld [vmem:[%s3020_s9 + $0x1f0] sm:$0xff] }
  0x23   : > { %422 = vst [vmem:[%s3025_s10 + $0x78] sm:$0xff] %v421_v15  ;;  %v455_v32 = vld [vmem:[%s3020_s9 + $0x200] sm:$0xff]  ;;  %v457_v33 = vld [vmem:[%s3020_s9 + $0x210] sm:$0xff] }
  0x24   : > { %424 = vst [vmem:[%s3025_s10 + $0x80] sm:$0xff] %v423_v16  ;;  %v459_v34 = vld [vmem:[%s3020_s9 + $0x220] sm:$0xff]  ;;  %v461_v35 = vld [vmem:[%s3020_s9 + $0x230] sm:$0xff] }
  0x25   : > { %426 = vst [vmem:[%s3025_s10 + $0x88] sm:$0xff] %v425_v17  ;;  %v463_v36 = vld [vmem:[%s3020_s9 + $0x240] sm:$0xff]  ;;  %v465_v37 = vld [vmem:[%s3020_s9 + $0x250] sm:$0xff] }
  0x26   : > { %428 = vst [vmem:[%s3025_s10 + $0x90] sm:$0xff] %v427_v18  ;;  %v467_v38 = vld [vmem:[%s3020_s9 + $0x260] sm:$0xff]  ;;  %v469_v39 = vld [vmem:[%s3020_s9 + $0x270] sm:$0xff] }
  0x27   : > { %430 = vst [vmem:[%s3025_s10 + $0x98] sm:$0xff] %v429_v19  ;;  %v471_v40 = vld [vmem:[%s3020_s9 + $0x280] sm:$0xff]  ;;  %v473_v41 = vld [vmem:[%s3020_s9 + $0x290] sm:$0xff] }
  0x28   : > { %432 = vst [vmem:[%s3025_s10 + $0xa0] sm:$0xff] %v431_v20  ;;  %v475_v42 = vld [vmem:[%s3020_s9 + $0x2a0] sm:$0xff]  ;;  %v477_v43 = vld [vmem:[%s3020_s9 + $0x2b0] sm:$0xff] }
  0x29   : > { %434 = vst [vmem:[%s3025_s10 + $0xa8] sm:$0xff] %v433_v21  ;;  %v479_v44 = vld [vmem:[%s3020_s9 + $0x2c0] sm:$0xff]  ;;  %v481_v45 = vld [vmem:[%s3020_s9 + $0x2d0] sm:$0xff] }
  0x2a   : > { %436 = vst [vmem:[%s3025_s10 + $0xb0] sm:$0xff] %v435_v22  ;;  %v483_v46 = vld [vmem:[%s3020_s9 + $0x2e0] sm:$0xff]  ;;  %v485_v47 = vld [vmem:[%s3020_s9 + $0x2f0] sm:$0xff] }
  0x2b   : > { %438 = vst [vmem:[%s3025_s10 + $0xb8] sm:$0xff] %v437_v23  ;;  %v487_v48 = vld [vmem:[%s3020_s9 + $0x300] sm:$0xff]  ;;  %v489_v49 = vld [vmem:[%s3020_s9 + $0x310] sm:$0xff] }
  0x2c   : > { %440 = vst [vmem:[%s3025_s10 + $0xc0] sm:$0xff] %v439_v24  ;;  %v491_v50 = vld [vmem:[%s3020_s9 + $0x320] sm:$0xff]  ;;  %v493_v51 = vld [vmem:[%s3020_s9 + $0x330] sm:$0xff] }
  0x2d   : > { %442 = vst [vmem:[%s3025_s10 + $0xc8] sm:$0xff] %v441_v25  ;;  %v495_v52 = vld [vmem:[%s3020_s9 + $0x340] sm:$0xff]  ;;  %v497_v53 = vld [vmem:[%s3020_s9 + $0x350] sm:$0xff] }
  0x2e   : > { %444 = vst [vmem:[%s3025_s10 + $0xd0] sm:$0xff] %v443_v26  ;;  %v499_v54 = vld [vmem:[%s3020_s9 + $0x360] sm:$0xff]  ;;  %v501_v55 = vld [vmem:[%s3020_s9 + $0x370] sm:$0xff] }
  0x2f   : > { %446 = vst [vmem:[%s3025_s10 + $0xd8] sm:$0xff] %v445_v27  ;;  %v503_v56 = vld [vmem:[%s3020_s9 + $0x380] sm:$0xff]  ;;  %v505_v57 = vld [vmem:[%s3020_s9 + $0x390] sm:$0xff] }
  0x30   : > { %448 = vst [vmem:[%s3025_s10 + $0xe0] sm:$0xff] %v447_v28  ;;  %v507_v58 = vld [vmem:[%s3020_s9 + $0x3a0] sm:$0xff]  ;;  %v509_v59 = vld [vmem:[%s3020_s9 + $0x3b0] sm:$0xff] }
  0x31   : > { %450 = vst [vmem:[%s3025_s10 + $0xe8] sm:$0xff] %v449_v29  ;;  %v511_v60 = vld [vmem:[%s3020_s9 + $0x3c0] sm:$0xff]  ;;  %v513_v61 = vld [vmem:[%s3020_s9 + $0x3d0] sm:$0xff] }
  0x32   : > { %452 = vst [vmem:[%s3025_s10 + $0xf0] sm:$0xff] %v451_v30  ;;  %v515_v62 = vld [vmem:[%s3020_s9 + $0x3e0] sm:$0xff]  ;;  %v517_v63 = vld [vmem:[%s3020_s9 + $0x3f0] sm:$0xff] }
  0x33   : > { %454 = vst [vmem:[%s3025_s10 + $0xf8] sm:$0xff] %v453_v31 }
  0x34   : > { %456 = vst [vmem:[%s3025_s10 + $0x100] sm:$0xff] %v455_v32 }
  0x35   : > { %458 = vst [vmem:[%s3025_s10 + $0x108] sm:$0xff] %v457_v33 }
  0x36   : > { %460 = vst [vmem:[%s3025_s10 + $0x110] sm:$0xff] %v459_v34 }
  0x37   : > { %462 = vst [vmem:[%s3025_s10 + $0x118] sm:$0xff] %v461_v35 }
  0x38   : > { %464 = vst [vmem:[%s3025_s10 + $0x120] sm:$0xff] %v463_v36 }
  0x39   : > { %466 = vst [vmem:[%s3025_s10 + $0x128] sm:$0xff] %v465_v37 }
  0x3a   : > { %468 = vst [vmem:[%s3025_s10 + $0x130] sm:$0xff] %v467_v38 }
  0x3b   : > { %470 = vst [vmem:[%s3025_s10 + $0x138] sm:$0xff] %v469_v39 }
  0x3c   : > { %472 = vst [vmem:[%s3025_s10 + $0x140] sm:$0xff] %v471_v40 }
  0x3d   : > { %474 = vst [vmem:[%s3025_s10 + $0x148] sm:$0xff] %v473_v41 }
  0x3e   : > { %476 = vst [vmem:[%s3025_s10 + $0x150] sm:$0xff] %v475_v42 }
  0x3f   : > { %478 = vst [vmem:[%s3025_s10 + $0x158] sm:$0xff] %v477_v43 }
  0x40   : > { %480 = vst [vmem:[%s3025_s10 + $0x160] sm:$0xff] %v479_v44 }
  0x41   : > { %482 = vst [vmem:[%s3025_s10 + $0x168] sm:$0xff] %v481_v45 }
  0x42   : > { %484 = vst [vmem:[%s3025_s10 + $0x170] sm:$0xff] %v483_v46 }
  0x43   : > { %486 = vst [vmem:[%s3025_s10 + $0x178] sm:$0xff] %v485_v47 }
  0x44   : > { %488 = vst [vmem:[%s3025_s10 + $0x180] sm:$0xff] %v487_v48 }
  0x45   : > { %490 = vst [vmem:[%s3025_s10 + $0x188] sm:$0xff] %v489_v49 }
  0x46   : > { %492 = vst [vmem:[%s3025_s10 + $0x190] sm:$0xff] %v491_v50 }
  0x47   : > { %494 = vst [vmem:[%s3025_s10 + $0x198] sm:$0xff] %v493_v51 }
  0x48   : > { %496 = vst [vmem:[%s3025_s10 + $0x1a0] sm:$0xff] %v495_v52 }
  0x49   : > { %498 = vst [vmem:[%s3025_s10 + $0x1a8] sm:$0xff] %v497_v53 }
  0x4a   : > { %500 = vst [vmem:[%s3025_s10 + $0x1b0] sm:$0xff] %v499_v54 }
  0x4b   : > { %502 = vst [vmem:[%s3025_s10 + $0x1b8] sm:$0xff] %v501_v55 }
  0x4c   : > { %504 = vst [vmem:[%s3025_s10 + $0x1c0] sm:$0xff] %v503_v56 }
  0x4d   : > { %506 = vst [vmem:[%s3025_s10 + $0x1c8] sm:$0xff] %v505_v57 }
  0x4e   : > { %508 = vst [vmem:[%s3025_s10 + $0x1d0] sm:$0xff] %v507_v58 }
  0x4f   : > { %510 = vst [vmem:[%s3025_s10 + $0x1d8] sm:$0xff] %v509_v59 }
  0x50   : > { %512 = vst [vmem:[%s3025_s10 + $0x1e0] sm:$0xff] %v511_v60 }
  0x51   : > { %514 = vst [vmem:[%s3025_s10 + $0x1e8] sm:$0xff] %v513_v61 }
  0x52   : > { %516 = vst [vmem:[%s3025_s10 + $0x1f0] sm:$0xff] %v515_v62 }
  0x53   : > { %518 = vst [vmem:[%s3025_s10 + $0x1f8] sm:$0xff] %v517_v63 }
  0x54 PF: > { %p2361_p8 = scmp.ge.s32.totalorder %s2939_s22, 1  ;;  %p547_p9 = scmp.lt.s32.totalorder %s2939_s22, 3 }
  0x56   : > { %p548_p10 = pnand %p2361_p8, %p547_p9 }
  0x58   : > { %551 = sbr.rel (%p548_p10) target bundleno = 640 (0x280), region = 74 }
  0x5d   : > { %s554_s11 = sand.u32 1, %s2923_s18   ;;  %s2364_s26 = sshll.u32 %s2931_s20, 1  ;;  %vm1961_vm6 = vcmask 1040384  }
  0x5e   : > { %s2362_s12 = sshll.u32 %s554_s11, 9  ;;  %p615_p11 = scmp.lt.s32.totalorder %s2364_s26, 3 }
  0x5f   : > { %s3157_s13 = scalar_lea.vmem [#allocation3], %s2362_s12  ;;  %s2363_s14 = sshll.u32 %s554_s11, 8 }
  0x60   : > { %v2553_v0 = vld [vmem:[%s3157_s13 + $0x70] sm:$0xf]  ;;  %v2804_v1 = vld [vmem:[%s3157_s13 + $0x74] sm:$0xf0]  ;;  %v2545_v11 = vld [vmem:[%s3157_s13 + $0x60] sm:$0xf] }
  0x61   : > { %v2617_v2 = vld [vmem:[%s3157_s13 + $0xf0] sm:$0xf]  ;;  %v2554_v3 = vor.u32 %v2804_v1, %v2553_v0  ;;  %v2820_v4 = vld [vmem:[%s3157_s13 + $0xf4] sm:$0xf0]  ;;  %v2802_v13 = vld [vmem:[%s3157_s13 + $0x64] sm:$0xf0] }
  0x62   : > { %v2681_v5 = vld [vmem:[%s3157_s13 + $0x170] sm:$0xf]  ;;  %v2836_v6 = vld [vmem:[%s3157_s13 + $0x174] sm:$0xf0]  ;;  %v2618_v7 = vor.u32 %v2820_v4, %v2617_v2  ;;  %v2609_v14 = vld [vmem:[%s3157_s13 + $0xe0] sm:$0xf]  ;;  %v2546_v16 = vor.u32 %v2802_v13, %v2545_v11 }
  0x63   : > { %v2682_v8 = vor.u32 %v2836_v6, %v2681_v5  ;;  %v2745_v9 = vld [vmem:[%s3157_s13 + $0x1f0] sm:$0xf]  ;;  %v2852_v10 = vld [vmem:[%s3157_s13 + $0x1f4] sm:$0xf0]  ;;  %1275 = vmatpush.bf16.msra.mxu0 %v2554_v3  ;;  %v2818_v15 = vld [vmem:[%s3157_s13 + $0xe4] sm:$0xf0] }
  0x64   : > { %v2746_v12 = vor.u32 %v2852_v10, %v2745_v9  ;;  %1324 = vmatpush.bf16.msra.mxu1 %v2618_v7  ;;  %v2610_v17 = vor.u32 %v2818_v15, %v2609_v14  ;;  %v2673_v18 = vld [vmem:[%s3157_s13 + $0x160] sm:$0xf]  ;;  %v2834_v19 = vld [vmem:[%s3157_s13 + $0x164] sm:$0xf0]  ;;  %v2537_v23 = vld [vmem:[%s3157_s13 + $0x50] sm:$0xf] }
  0x65   : > { %1373 = vmatpush.bf16.msra.mxu2 %v2682_v8  ;;  %v2737_v20 = vld [vmem:[%s3157_s13 + $0x1e0] sm:$0xf]  ;;  %v2674_v21 = vor.u32 %v2834_v19, %v2673_v18  ;;  %v2850_v22 = vld [vmem:[%s3157_s13 + $0x1e4] sm:$0xf0]  ;;  %v2800_v24 = vld [vmem:[%s3157_s13 + $0x54] sm:$0xf0] }
  0x66   : > { %1422 = vmatpush.bf16.msra.mxu3 %v2746_v12  ;;  %v2738_v25 = vor.u32 %v2850_v22, %v2737_v20  ;;  %v2601_v26 = vld [vmem:[%s3157_s13 + $0xd0] sm:$0xf]  ;;  %v2816_v27 = vld [vmem:[%s3157_s13 + $0xd4] sm:$0xf0]  ;;  %v2538_v29 = vor.u32 %v2800_v24, %v2537_v23  ;;  %v2529_v35 = vld [vmem:[%s3157_s13 + $0x40] sm:$0xf] }
  0x67   : > { %v2665_v28 = vld [vmem:[%s3157_s13 + $0x150] sm:$0xf]  ;;  %1276 = vmatpush.bf16.msra.mxu0 %v2546_v16  ;;  %v2832_v30 = vld [vmem:[%s3157_s13 + $0x154] sm:$0xf0]  ;;  %v2602_v33 = vor.u32 %v2816_v27, %v2601_v26  ;;  %v2798_v36 = vld [vmem:[%s3157_s13 + $0x44] sm:$0xf0] }
  0x68   : > { %v2729_v31 = vld [vmem:[%s3157_s13 + $0x1d0] sm:$0xf]  ;;  %v2848_v32 = vld [vmem:[%s3157_s13 + $0x1d4] sm:$0xf0]  ;;  %1325 = vmatpush.bf16.msra.mxu1 %v2610_v17  ;;  %v2666_v34 = vor.u32 %v2832_v30, %v2665_v28  ;;  %v2593_v37 = vld [vmem:[%s3157_s13 + $0xc0] sm:$0xf]  ;;  %v2530_v44 = vor.u32 %v2798_v36, %v2529_v35 }
  0x69   : > { %1374 = vmatpush.bf16.msra.mxu2 %v2674_v21  ;;  %v2730_v38 = vor.u32 %v2848_v32, %v2729_v31  ;;  %v2814_v39 = vld [vmem:[%s3157_s13 + $0xc4] sm:$0xf0]  ;;  %v2657_v40 = vld [vmem:[%s3157_s13 + $0x140] sm:$0xf]  ;;  %v2521_v47 = vld [vmem:[%s3157_s13 + $0x30] sm:$0xf] }
  0x6a   : > { %1423 = vmatpush.bf16.msra.mxu3 %v2738_v25  ;;  %v2830_v41 = vld [vmem:[%s3157_s13 + $0x144] sm:$0xf0]  ;;  %v2721_v42 = vld [vmem:[%s3157_s13 + $0x1c0] sm:$0xf]  ;;  %v2594_v45 = vor.u32 %v2814_v39, %v2593_v37  ;;  %v2796_v48 = vld [vmem:[%s3157_s13 + $0x34] sm:$0xf0] }
  0x6b   : > { %v2846_v43 = vld [vmem:[%s3157_s13 + $0x1c4] sm:$0xf0]  ;;  %1277 = vmatpush.bf16.msra.mxu0 %v2538_v29  ;;  %v2658_v46 = vor.u32 %v2830_v41, %v2657_v40  ;;  %v2585_v49 = vld [vmem:[%s3157_s13 + $0xb0] sm:$0xf]  ;;  %v2812_v51 = vld [vmem:[%s3157_s13 + $0xb4] sm:$0xf0]  ;;  %v2522_v56 = vor.u32 %v2796_v48, %v2521_v47 }
  0x6c   : > { %1326 = vmatpush.bf16.msra.mxu1 %v2602_v33  ;;  %v2722_v50 = vor.u32 %v2846_v43, %v2721_v42  ;;  %v2649_v52 = vld [vmem:[%s3157_s13 + $0x130] sm:$0xf]  ;;  %v2828_v53 = vld [vmem:[%s3157_s13 + $0x134] sm:$0xf0]  ;;  %v2586_v57 = vor.u32 %v2812_v51, %v2585_v49  ;;  %v2513_v59 = vld [vmem:[%s3157_s13 + $0x20] sm:$0xf] }
  0x6d   : > { %1375 = vmatpush.bf16.msra.mxu2 %v2666_v34  ;;  %v2713_v54 = vld [vmem:[%s3157_s13 + $0x1b0] sm:$0xf]  ;;  %v2844_v55 = vld [vmem:[%s3157_s13 + $0x1b4] sm:$0xf0]  ;;  %v2650_v58 = vor.u32 %v2828_v53, %v2649_v52  ;;  %v2794_v60 = vld [vmem:[%s3157_s13 + $0x24] sm:$0xf0] }
  0x6e   : > { %1424 = vmatpush.bf16.msra.mxu3 %v2730_v38  ;;  %v2577_v61 = vld [vmem:[%s3157_s13 + $0xa0] sm:$0xf]  ;;  %v2714_v62 = vor.u32 %v2844_v55, %v2713_v54  ;;  %v2810_v63 = vld [vmem:[%s3157_s13 + $0xa4] sm:$0xf0]  ;;  %v2514_v4 = vor.u32 %v2794_v60, %v2513_v59  ;;  %v2505_v7 = vld [vmem:[%s3157_s13 + $0x10] sm:$0xf] }
  0x6f   : > { %1278 = vmatpush.bf16.msra.mxu0 %v2530_v44  ;;  %v2641_v0 = vld [vmem:[%s3157_s13 + $0x120] sm:$0xf]  ;;  %v2826_v1 = vld [vmem:[%s3157_s13 + $0x124] sm:$0xf0]  ;;  %v2578_v5 = vor.u32 %v2810_v63, %v2577_v61  ;;  %v2792_v8 = vld [vmem:[%s3157_s13 + $0x14] sm:$0xf0] }
  0x70   : > { %1327 = vmatpush.bf16.msra.mxu1 %v2594_v45  ;;  %v2705_v2 = vld [vmem:[%s3157_s13 + $0x1a0] sm:$0xf]  ;;  %v2842_v3 = vld [vmem:[%s3157_s13 + $0x1a4] sm:$0xf0]  ;;  %v2642_v6 = vor.u32 %v2826_v1, %v2641_v0  ;;  %v2569_v9 = vld [vmem:[%s3157_s13 + $0x90] sm:$0xf]  ;;  %v2506_v17 = vor.u32 %v2792_v8, %v2505_v7 }
  0x71   : > { %1376 = vmatpush.bf16.msra.mxu2 %v2658_v46  ;;  %v2706_v10 = vor.u32 %v2842_v3, %v2705_v2  ;;  %v2808_v11 = vld [vmem:[%s3157_s13 + $0x94] sm:$0xf0]  ;;  %v2633_v12 = vld [vmem:[%s3157_s13 + $0x110] sm:$0xf]  ;;  %v2497_v16 = vld [vmem:[%s3157_s13] sm:$0xf] }
  0x72   : > { %1425 = vmatpush.bf16.msra.mxu3 %v2722_v50  ;;  %v2824_v13 = vld [vmem:[%s3157_s13 + $0x114] sm:$0xf0]  ;;  %v2697_v14 = vld [vmem:[%s3157_s13 + $0x190] sm:$0xf]  ;;  %v2790_v18 = vld [vmem:[%s3157_s13 + $0x4] sm:$0xf0]  ;;  %v2570_v21 = vor.u32 %v2808_v11, %v2569_v9 }
  0x73   : > { %1279 = vmatpush.bf16.msra.mxu0 %v2522_v56  ;;  %v2840_v15 = vld [vmem:[%s3157_s13 + $0x194] sm:$0xf0]  ;;  %v2561_v19 = vld [vmem:[%s3157_s13 + $0x80] sm:$0xf]  ;;  %v2806_v20 = vld [vmem:[%s3157_s13 + $0x84] sm:$0xf0]  ;;  %v2634_v22 = vor.u32 %v2824_v13, %v2633_v12  ;;  %v2498_v34 = vor.u32 %v2790_v18, %v2497_v16 }
  0x74   : > { %1328 = vmatpush.bf16.msra.mxu1 %v2586_v57  ;;  %v2625_v23 = vld [vmem:[%s3157_s13 + $0x100] sm:$0xf]  ;;  %v2822_v24 = vld [vmem:[%s3157_s13 + $0x104] sm:$0xf0]  ;;  %v2698_v26 = vor.u32 %v2840_v15, %v2697_v14  ;;  %v2759_v29 = vld [vmem:[%s4167_s0 + $0xc] sm:$0xf0]  ;;  %v2562_v38 = vor.u32 %v2806_v20, %v2561_v19 }
  0x75   : > { %1377 = vmatpush.bf16.msra.mxu2 %v2650_v58  ;;  %v2689_v25 = vld [vmem:[%s3157_s13 + $0x180] sm:$0xf]  ;;  %v2838_v27 = vld [vmem:[%s3157_s13 + $0x184] sm:$0xf0]  ;;  %v2757_v30 = vld [vmem:[%s4167_s0 + $0x4] sm:$0xf]  ;;  %v2626_v39 = vor.u32 %v2822_v24, %v2625_v23 }
  0x76   : > { %1426 = vmatpush.bf16.msra.mxu3 %v2714_v62  ;;  %v2369_v28 = vld [vmem:[%s4167_s0] sm:$0xf]  ;;  %v2371_v31 = vld [vmem:[%s4167_s0 + $0x10] sm:$0xf0]  ;;  %v2683_v33 = vld [vmem:[%s3157_s13 + $0x178] sm:$0xf0]  ;;  %v2690_v43 = vor.u32 %v2838_v27, %v2689_v25 }
  0x77   : > { %1280 = vmatpush.bf16.msra.mxu0 %v2514_v4  ;;  %v2835_v32 = vld [vmem:[%s3157_s13 + $0x174] sm:$0xf]  ;;  %v2377_v35 = vld [vmem:[%s4167_s0 + $0x8] sm:$0xf]  ;;  %v2747_v37 = vld [vmem:[%s3157_s13 + $0x1f8] sm:$0xf0]  ;;  %v3254_v48 = vor.u32 %v2759_v29, %v2369_v28  ;;  %v3259_v53 = vor.u32 %v2757_v30, %v2371_v31 }
  0x78   : > { %1329 = vmatpush.bf16.msra.mxu1 %v2578_v5  ;;  %v2851_v36 = vld [vmem:[%s3157_s13 + $0x1f4] sm:$0xf]  ;;  %v2760_v40 = vld [vmem:[%s4167_s0 + $0x14] sm:$0xf0]  ;;  %v2758_v41 = vld [vmem:[%s4167_s0 + $0xc] sm:$0xf]  ;;  %v2686_v44 = vor.u32 %v2835_v32, %v2683_v33 }
  0x79   : > { %1378 = vmatpush.bf16.msra.mxu2 %v2642_v6  ;;  %v2379_v42 = vld [vmem:[%s4167_s0 + $0x18] sm:$0xf0]  ;;  %v2803_v45 = vld [vmem:[%s3157_s13 + $0x74] sm:$0xf]  ;;  %v2750_v49 = vor.u32 %v2851_v36, %v2747_v37  ;;  %v2833_v51 = vld [vmem:[%s3157_s13 + $0x164] sm:$0xf]  ;;  %v3261_v54 = vor.u32 %v2760_v40, %v2377_v35 }
  0x7a   : > { %1427 = vmatpush.bf16.msra.mxu3 %v2706_v10  ;;  %v2555_v46 = vld [vmem:[%s3157_s13 + $0x78] sm:$0xf0]  ;;  %v2819_v47 = vld [vmem:[%s3157_s13 + $0xf4] sm:$0xf]  ;;  %v2675_v52 = vld [vmem:[%s3157_s13 + $0x168] sm:$0xf0]  ;;  %v3265_v57 = vor.u32 %v2758_v41, %v2379_v42 }
  0x7b   : > { %1281 = vmatpush.bf16.msra.mxu0 %v2506_v17  ;;  %v2619_v50 = vld [vmem:[%s3157_s13 + $0xf8] sm:$0xf0]  ;;  %v2849_v55 = vld [vmem:[%s3157_s13 + $0x1e4] sm:$0xf]  ;;  %v2739_v56 = vld [vmem:[%s3157_s13 + $0x1e8] sm:$0xf0]  ;;  %v2558_v58 = vor.u32 %v2803_v45, %v2555_v46  ;;  %v2678_v60 = vor.u32 %v2833_v51, %v2675_v52 }
  0x7c   : > { %1330 = vmatpush.bf16.msra.mxu1 %v2570_v21  ;;  %v2622_v59 = vor.u32 %v2819_v47, %v2619_v50  ;;  %v2801_v61 = vld [vmem:[%s3157_s13 + $0x64] sm:$0xf]  ;;  %v2547_v62 = vld [vmem:[%s3157_s13 + $0x68] sm:$0xf0]  ;;  %v2742_v63 = vor.u32 %v2849_v55, %v2739_v56  ;;  %v2831_v3 = vld [vmem:[%s3157_s13 + $0x154] sm:$0xf] }
  0x7d   : > { %1379 = vmatpush.bf16.msra.mxu2 %v2634_v22  ;;  %v2817_v0 = vld [vmem:[%s3157_s13 + $0xe4] sm:$0xf]  ;;  %v2611_v1 = vld [vmem:[%s3157_s13 + $0xe8] sm:$0xf0]  ;;  %v2550_v2 = vor.u32 %v2801_v61, %v2547_v62  ;;  %v2667_v4 = vld [vmem:[%s3157_s13 + $0x158] sm:$0xf0] }
  0x7e   : > { %1428 = vmatpush.bf16.msra.mxu3 %v2698_v26  ;;  %v2847_v5 = vld [vmem:[%s3157_s13 + $0x1d4] sm:$0xf]  ;;  %v2614_v6 = vor.u32 %v2817_v0, %v2611_v1  ;;  %v2670_v7 = vor.u32 %v2831_v3, %v2667_v4  ;;  %v2731_v8 = vld [vmem:[%s3157_s13 + $0x1d8] sm:$0xf0]  ;;  %v2385_v16 = vld [vmem:[%s4167_s0 + $0x20] sm:$0xf] }
  0x7f   : > { %1282 = vmatpush.bf16.msra.mxu0 %v2498_v34  ;;  %v2799_v9 = vld [vmem:[%s3157_s13 + $0x54] sm:$0xf]  ;;  %v2539_v10 = vld [vmem:[%s3157_s13 + $0x58] sm:$0xf0]  ;;  %v2734_v11 = vor.u32 %v2847_v5, %v2731_v8  ;;  %v2763_v17 = vld [vmem:[%s4167_s0 + $0x2c] sm:$0xf0] }
  0x80   : > { %1331 = vmatpush.bf16.msra.mxu1 %v2562_v38  ;;  %v2815_v12 = vld [vmem:[%s3157_s13 + $0xd4] sm:$0xf]  ;;  %v2603_v13 = vld [vmem:[%s3157_s13 + $0xd8] sm:$0xf0]  ;;  %v2542_v14 = vor.u32 %v2799_v9, %v2539_v10  ;;  %v2761_v18 = vld [vmem:[%s4167_s0 + $0x24] sm:$0xf]  ;;  %v3307_v24 = vor.u32 %v2763_v17, %v2385_v16 }
  0x81   : > { %1380 = vmatpush.bf16.msra.mxu2 %v2626_v39  ;;  %v2606_v15 = vor.u32 %v2815_v12, %v2603_v13  ;;  %v2387_v19 = vld [vmem:[%s4167_s0 + $0x30] sm:$0xf0]  ;;  %v2393_v20 = vld [vmem:[%s4167_s0 + $0x28] sm:$0xf]  ;;  %v2764_v21 = vld [vmem:[%s4167_s0 + $0x34] sm:$0xf0] }
  0x82   : > { %1429 = vmatpush.bf16.msra.mxu3 %v2690_v43  ;;  %1283 = vmatmul.bf16.vlgmr.msra.gmra.mxu0 %v3254_v48  ;;  %v2762_v22 = vld [vmem:[%s4167_s0 + $0x2c] sm:$0xf]  ;;  %v2395_v23 = vld [vmem:[%s4167_s0 + $0x38] sm:$0xf0]  ;;  %v3309_v25 = vor.u32 %v2761_v18, %v2387_v19  ;;  %v3311_v26 = vor.u32 %v2764_v21, %v2393_v20  ;;  %v2829_v28 = vld [vmem:[%s3157_s13 + $0x144] sm:$0xf] }
  0x83   : > { %1332 = vmatmul.bf16.vlgmr.msra.gmra.mxu1 %v3259_v53  ;;  %1471 = vmatpush.bf16.msrb.mxu0 %v2558_v58  ;;  %v3313_v27 = vor.u32 %v2762_v22, %v2395_v23  ;;  %v2659_v29 = vld [vmem:[%s3157_s13 + $0x148] sm:$0xf0]  ;;  %v2845_v30 = vld [vmem:[%s3157_s13 + $0x1c4] sm:$0xf]  ;;  %v2401_v40 = vld [vmem:[%s4167_s0 + $0x40] sm:$0xf] }
  0x84   : > { %1381 = vmatmul.bf16.vlgmr.msra.gmra.mxu2 %v3261_v54  ;;  %1520 = vmatpush.bf16.msrb.mxu1 %v2622_v59  ;;  %v2662_v31 = vor.u32 %v2829_v28, %v2659_v29  ;;  %v2723_v32 = vld [vmem:[%s3157_s13 + $0x1c8] sm:$0xf0]  ;;  %v2797_v33 = vld [vmem:[%s3157_s13 + $0x44] sm:$0xf]  ;;  %v2767_v41 = vld [vmem:[%s4167_s0 + $0x4c] sm:$0xf0] }
  0x85   : > { %1569 = vmatpush.bf16.msrb.mxu2 %v2686_v44  ;;  %1430 = vmatmul.bf16.vlgmr.msra.gmra.mxu3 %v3265_v57  ;;  %v2531_v34 = vld [vmem:[%s3157_s13 + $0x48] sm:$0xf0]  ;;  %v2726_v35 = vor.u32 %v2845_v30, %v2723_v32  ;;  %v2813_v37 = vld [vmem:[%s3157_s13 + $0xc4] sm:$0xf]  ;;  %v2403_v43 = vld [vmem:[%s4167_s0 + $0x50] sm:$0xf0] }
  0x86   : > { %1618 = vmatpush.bf16.msrb.mxu3 %v2750_v49  ;;  %v2534_v36 = vor.u32 %v2797_v33, %v2531_v34  ;;  %v2595_v38 = vld [vmem:[%s3157_s13 + $0xc8] sm:$0xf0]  ;;  %v2765_v42 = vld [vmem:[%s4167_s0 + $0x44] sm:$0xf]  ;;  %v2409_v44 = vld [vmem:[%s4167_s0 + $0x48] sm:$0xf]  ;;  %v3351_v49 = vor.u32 %v2767_v41, %v2401_v40 }
  0x87   : > { %1472 = vmatpush.bf16.msrb.mxu0 %v2550_v2  ;;  %v2598_v39 = vor.u32 %v2813_v37, %v2595_v38  ;;  %v2768_v45 = vld [vmem:[%s4167_s0 + $0x54] sm:$0xf0]  ;;  %v2766_v46 = vld [vmem:[%s4167_s0 + $0x4c] sm:$0xf]  ;;  %v2411_v47 = vld [vmem:[%s4167_s0 + $0x58] sm:$0xf0]  ;;  %v3353_v50 = vor.u32 %v2765_v42, %v2403_v43 }
  0x88   : > { %1521 = vmatpush.bf16.msrb.mxu1 %v2614_v6  ;;  %v3355_v51 = vor.u32 %v2768_v45, %v2409_v44  ;;  %v3357_v52 = vor.u32 %v2766_v46, %v2411_v47  ;;  %v2827_v55 = vld [vmem:[%s3157_s13 + $0x134] sm:$0xf]  ;;  %v2651_v56 = vld [vmem:[%s3157_s13 + $0x138] sm:$0xf0]  ;;  %v2417_v4 = vld [vmem:[%s4167_s0 + $0x60] sm:$0xf] }
  0x89   : > { %1570 = vmatpush.bf16.msrb.mxu2 %v2678_v60  ;;  %v2843_v58 = vld [vmem:[%s3157_s13 + $0x1b4] sm:$0xf]  ;;  %v2654_v59 = vor.u32 %v2827_v55, %v2651_v56  ;;  %v2715_v60 = vld [vmem:[%s3157_s13 + $0x1b8] sm:$0xf0]  ;;  %v2771_v5 = vld [vmem:[%s4167_s0 + $0x6c] sm:$0xf0] }
  0x8a   : > { %1619 = vmatpush.bf16.msrb.mxu3 %v2742_v63  ;;  %v2795_v61 = vld [vmem:[%s3157_s13 + $0x34] sm:$0xf]  ;;  %v2523_v62 = vld [vmem:[%s3157_s13 + $0x38] sm:$0xf0]  ;;  %v2718_v63 = vor.u32 %v2843_v58, %v2715_v60  ;;  %v2769_v6 = vld [vmem:[%s4167_s0 + $0x64] sm:$0xf]  ;;  %v3395_v12 = vor.u32 %v2771_v5, %v2417_v4 }
  0x8b   : > { %1473 = vmatpush.bf16.msrb.mxu0 %v2542_v14  ;;  %v2526_v0 = vor.u32 %v2795_v61, %v2523_v62  ;;  %v2811_v1 = vld [vmem:[%s3157_s13 + $0xb4] sm:$0xf]  ;;  %v2587_v2 = vld [vmem:[%s3157_s13 + $0xb8] sm:$0xf0]  ;;  %v2425_v8 = vld [vmem:[%s4167_s0 + $0x68] sm:$0xf] }
  0x8c   : > { %1522 = vmatpush.bf16.msrb.mxu1 %v2606_v15  ;;  %v2590_v3 = vor.u32 %v2811_v1, %v2587_v2  ;;  %v2772_v9 = vld [vmem:[%s4167_s0 + $0x74] sm:$0xf0]  ;;  %v2770_v10 = vld [vmem:[%s4167_s0 + $0x6c] sm:$0xf]  ;;  %v2825_v16 = vld [vmem:[%s3157_s13 + $0x124] sm:$0xf] }
  0x8d   : > { %1571 = vmatpush.bf16.msrb.mxu2 %v2670_v7  ;;  %v2419_v7 = vld [vmem:[%s4167_s0 + $0x70] sm:$0xf0]  ;;  %v3399_v14 = vor.u32 %v2772_v9, %v2425_v8  ;;  %v2643_v17 = vld [vmem:[%s3157_s13 + $0x128] sm:$0xf0]  ;;  %v2841_v18 = vld [vmem:[%s3157_s13 + $0x1a4] sm:$0xf] }
  0x8e   : > { %1620 = vmatpush.bf16.msrb.mxu3 %v2734_v11  ;;  %v2427_v11 = vld [vmem:[%s4167_s0 + $0x78] sm:$0xf0]  ;;  %v3397_v13 = vor.u32 %v2769_v6, %v2419_v7  ;;  %v2646_v19 = vor.u32 %v2825_v16, %v2643_v17  ;;  %v2707_v20 = vld [vmem:[%s3157_s13 + $0x1a8] sm:$0xf0]  ;;  %v2793_v21 = vld [vmem:[%s3157_s13 + $0x24] sm:$0xf] }
  0x8f   : > { %1474 = vmatpush.bf16.msrb.mxu0 %v2534_v36  ;;  %v3401_v15 = vor.u32 %v2770_v10, %v2427_v11  ;;  %v2515_v22 = vld [vmem:[%s3157_s13 + $0x28] sm:$0xf0]  ;;  %v2710_v23 = vor.u32 %v2841_v18, %v2707_v20  ;;  %v2809_v29 = vld [vmem:[%s3157_s13 + $0xa4] sm:$0xf]  ;;  %v2433_v32 = vld [vmem:[%s4167_s0 + $0x80] sm:$0xf] }
  0x90   : > { %1523 = vmatpush.bf16.msrb.mxu1 %v2598_v39  ;;  %v2518_v28 = vor.u32 %v2793_v21, %v2515_v22  ;;  %v2579_v30 = vld [vmem:[%s3157_s13 + $0xa8] sm:$0xf0]  ;;  %v2775_v33 = vld [vmem:[%s4167_s0 + $0x8c] sm:$0xf0]  ;;  %v2773_v34 = vld [vmem:[%s4167_s0 + $0x84] sm:$0xf] }
  0x91   : > { %1572 = vmatpush.bf16.msrb.mxu2 %v2662_v31  ;;  %v2582_v31 = vor.u32 %v2809_v29, %v2579_v30  ;;  %v2441_v36 = vld [vmem:[%s4167_s0 + $0x88] sm:$0xf]  ;;  %v2776_v37 = vld [vmem:[%s4167_s0 + $0x94] sm:$0xf0]  ;;  %v2774_v38 = vld [vmem:[%s4167_s0 + $0x8c] sm:$0xf]  ;;  %v3439_v40 = vor.u32 %v2775_v33, %v2433_v32 }
  0x92   : > { %1288 = vmatmul.bf16.gmra.mxu0 %v3307_v24  ;;  %1621 = vmatpush.bf16.msrb.mxu3 %v2726_v35  ;;  %v2435_v35 = vld [vmem:[%s4167_s0 + $0x90] sm:$0xf0]  ;;  %v2443_v39 = vld [vmem:[%s4167_s0 + $0x98] sm:$0xf0]  ;;  %v3443_v42 = vor.u32 %v2776_v37, %v2441_v36  ;;  %v2779_v1 = vld [vmem:[%s4167_s0 + $0xac] sm:$0xf0] }
  0x93   : > { %1337 = vmatmul.bf16.gmra.mxu1 %v3309_v25  ;;  %1475 = vmatpush.bf16.msrb.mxu0 %v2526_v0  ;;  %v3441_v41 = vor.u32 %v2773_v34, %v2435_v35  ;;  %v3445_v43 = vor.u32 %v2774_v38, %v2443_v39  ;;  %v2823_v44 = vld [vmem:[%s3157_s13 + $0x114] sm:$0xf]  ;;  %v2635_v45 = vld [vmem:[%s3157_s13 + $0x118] sm:$0xf0]  ;;  %v2449_v0 = vld [vmem:[%s4167_s0 + $0xa0] sm:$0xf] }
  0x94   : > { %1386 = vmatmul.bf16.gmra.mxu2 %v3311_v26  ;;  %1524 = vmatpush.bf16.msrb.mxu1 %v2590_v3  ;;  %v2839_v46 = vld [vmem:[%s3157_s13 + $0x194] sm:$0xf]  ;;  %v2638_v47 = vor.u32 %v2823_v44, %v2635_v45  ;;  %v2699_v55 = vld [vmem:[%s3157_s13 + $0x198] sm:$0xf0]  ;;  %v2777_v2 = vld [vmem:[%s4167_s0 + $0xa4] sm:$0xf]  ;;  %v3483_v8 = vor.u32 %v2779_v1, %v2449_v0 }
  0x95   : > { %1435 = vmatmul.bf16.gmra.mxu3 %v3313_v27  ;;  %1573 = vmatpush.bf16.msrb.mxu2 %v2654_v59  ;;  %v2791_v56 = vld [vmem:[%s3157_s13 + $0x14] sm:$0xf]  ;;  %v2507_v58 = vld [vmem:[%s3157_s13 + $0x18] sm:$0xf0]  ;;  %v2702_v59 = vor.u32 %v2839_v46, %v2699_v55  ;;  %v2457_v4 = vld [vmem:[%s4167_s0 + $0xa8] sm:$0xf] }
  0x96   : > { %1622 = vmatpush.bf16.msrb.mxu3 %v2718_v63  ;;  %v2510_v60 = vor.u32 %v2791_v56, %v2507_v58  ;;  %v2807_v61 = vld [vmem:[%s3157_s13 + $0x94] sm:$0xf]  ;;  %v2571_v62 = vld [vmem:[%s3157_s13 + $0x98] sm:$0xf0]  ;;  %v2780_v5 = vld [vmem:[%s4167_s0 + $0xb4] sm:$0xf0] }
  0x97   : > { %1476 = vmatpush.bf16.msrb.mxu0 %v2518_v28  ;;  %v2574_v63 = vor.u32 %v2807_v61, %v2571_v62  ;;  %v2451_v3 = vld [vmem:[%s4167_s0 + $0xb0] sm:$0xf0]  ;;  %v2778_v6 = vld [vmem:[%s4167_s0 + $0xac] sm:$0xf]  ;;  %v2459_v7 = vld [vmem:[%s4167_s0 + $0xb8] sm:$0xf0]  ;;  %v3487_v10 = vor.u32 %v2780_v5, %v2457_v4 }
  0x98   : > { %1525 = vmatpush.bf16.msrb.mxu1 %v2582_v31  ;;  %v3485_v9 = vor.u32 %v2777_v2, %v2451_v3  ;;  %v3489_v11 = vor.u32 %v2778_v6, %v2459_v7  ;;  %v2821_v16 = vld [vmem:[%s3157_s13 + $0x104] sm:$0xf]  ;;  %v2627_v17 = vld [vmem:[%s3157_s13 + $0x108] sm:$0xf0]  ;;  %v2465_v32 = vld [vmem:[%s4167_s0 + $0xc0] sm:$0xf] }
  0x99   : > { %1574 = vmatpush.bf16.msrb.mxu2 %v2646_v19  ;;  %v2837_v18 = vld [vmem:[%s3157_s13 + $0x184] sm:$0xf]  ;;  %v2630_v19 = vor.u32 %v2821_v16, %v2627_v17  ;;  %v2691_v20 = vld [vmem:[%s3157_s13 + $0x188] sm:$0xf0]  ;;  %v2783_v33 = vld [vmem:[%s4167_s0 + $0xcc] sm:$0xf0] }
  0x9a   : > { %1623 = vmatpush.bf16.msrb.mxu3 %v2710_v23  ;;  %v2789_v21 = vld [vmem:[%s3157_s13 + $0x4] sm:$0xf]  ;;  %v2499_v22 = vld [vmem:[%s3157_s13 + $0x8] sm:$0xf0]  ;;  %v2694_v23 = vor.u32 %v2837_v18, %v2691_v20  ;;  %v2467_v35 = vld [vmem:[%s4167_s0 + $0xd0] sm:$0xf0]  ;;  %v3527_v44 = vor.u32 %v2783_v33, %v2465_v32 }
  0x9b   : > { %1477 = vmatpush.bf16.msrb.mxu0 %v2510_v60  ;;  %v2502_v28 = vor.u32 %v2789_v21, %v2499_v22  ;;  %v2805_v29 = vld [vmem:[%s3157_s13 + $0x84] sm:$0xf]  ;;  %v2563_v30 = vld [vmem:[%s3157_s13 + $0x88] sm:$0xf0]  ;;  %v2473_v36 = vld [vmem:[%s4167_s0 + $0xc8] sm:$0xf] }
  0x9c   : > { %1526 = vmatpush.bf16.msrb.mxu1 %v2574_v63  ;;  %v2566_v31 = vor.u32 %v2805_v29, %v2563_v30  ;;  %v2781_v34 = vld [vmem:[%s4167_s0 + $0xc4] sm:$0xf]  ;;  %v2784_v37 = vld [vmem:[%s4167_s0 + $0xd4] sm:$0xf0]  ;;  %v2782_v38 = vld [vmem:[%s4167_s0 + $0xcc] sm:$0xf] }
  0x9d   : > { %1575 = vmatpush.bf16.msrb.mxu2 %v2638_v47  ;;  %v2475_v39 = vld [vmem:[%s4167_s0 + $0xd8] sm:$0xf0]  ;;  %v3529_v45 = vor.u32 %v2781_v34, %v2467_v35  ;;  %v3531_v46 = vor.u32 %v2784_v37, %v2473_v36  ;;  %v2481_v55 = vld [vmem:[%s4167_s0 + $0xe0] sm:$0xf]  ;;  %v2787_v56 = vld [vmem:[%s4167_s0 + $0xec] sm:$0xf0] }
  0x9e   : > { %1624 = vmatpush.bf16.msrb.mxu3 %v2702_v59  ;;  %v3533_v47 = vor.u32 %v2782_v38, %v2475_v39  ;;  %v2785_v58 = vld [vmem:[%s4167_s0 + $0xe4] sm:$0xf]  ;;  %v2483_v59 = vld [vmem:[%s4167_s0 + $0xf0] sm:$0xf0]  ;;  %v2489_v60 = vld [vmem:[%s4167_s0 + $0xe8] sm:$0xf]  ;;  %v3563_v0 = vor.u32 %v2787_v56, %v2481_v55 }
  0x9f   : > { %1478 = vmatpush.bf16.msrb.mxu0 %v2502_v28  ;;  %v2788_v61 = vld [vmem:[%s4167_s0 + $0xf4] sm:$0xf0]  ;;  %v2786_v62 = vld [vmem:[%s4167_s0 + $0xec] sm:$0xf]  ;;  %v2491_v63 = vld [vmem:[%s4167_s0 + $0xf8] sm:$0xf0]  ;;  %v3565_v1 = vor.u32 %v2785_v58, %v2483_v59 }
  0xa0   : > { %1527 = vmatpush.bf16.msrb.mxu1 %v2566_v31  ;;  %v3567_v2 = vor.u32 %v2788_v61, %v2489_v60  ;;  %v3569_v3 = vor.u32 %v2786_v62, %v2491_v63  ;;  %s4197_s26 = smov (!%p615_p11, %s2364_s26), 3  ;;  %s3998_s18 = scalar_lea.vmem [#allocation4], %s2363_s14 }
  0xa1   : > { %1576 = vmatpush.bf16.msrb.mxu2 %v2630_v19  ;;  %s617_s6 = scalar_lea.vmem %s4169_s2, %s4197_s26  ;;  %s622_s9 = scalar_lea.vmem %s4170_s3, %s4197_s26 }
  0xa2   : > { %1293 = vmatmul.bf16.gmra.mxu0 %v3351_v49  ;;  %1625 = vmatpush.bf16.msrb.mxu3 %v2694_v23  ;;  %s627_s12 = scalar_lea.vmem %s4171_s4, %s4197_s26  ;;  %s2853_s11 = sshll.u32 (%p3007_p6), %s2931_s20, 4 }
  0xa3   : > { %1342 = vmatmul.bf16.gmra.mxu1 %v3353_v50  ;;  %s4088_s17 = scalar_lea.vmem (%p3007_p6), %s4172_s5, %s2853_s11 }
  0xa4   : > { %1391 = vmatmul.bf16.gmra.mxu2 %v3355_v51 }
  0xa5   : > { %1440 = vmatmul.bf16.gmra.mxu3 %v3357_v52 }
  0xb2   : > { %1298 = vmatmul.bf16.gmra.mxu0 %v3395_v12 }
  0xb3   : > { %1347 = vmatmul.bf16.gmra.mxu1 %v3397_v13 }
  0xb4   : > { %1396 = vmatmul.bf16.gmra.mxu2 %v3399_v14 }
  0xb5   : > { %1445 = vmatmul.bf16.gmra.mxu3 %v3401_v15 }
  0xc2   : > { %1303 = vmatmul.bf16.gmra.mxu0 %v3439_v40 }
  0xc3   : > { %1352 = vmatmul.bf16.gmra.mxu1 %v3441_v41 }
  0xc4   : > { %1401 = vmatmul.bf16.gmra.mxu2 %v3443_v42 }
  0xc5   : > { %1450 = vmatmul.bf16.gmra.mxu3 %v3445_v43 }
  0xd2   : > { %1308 = vmatmul.bf16.gmra.mxu0 %v3483_v8 }
  0xd3   : > { %1357 = vmatmul.bf16.gmra.mxu1 %v3485_v9 }
  0xd4   : > { %1406 = vmatmul.bf16.gmra.mxu2 %v3487_v10 }
  0xd5   : > { %1455 = vmatmul.bf16.gmra.mxu3 %v3489_v11 }
  0xe2   : > { %1313 = vmatmul.bf16.gmra.mxu0 %v3527_v44 }
  0xe3   : > { %1362 = vmatmul.bf16.gmra.mxu1 %v3529_v45 }
  0xe4   : > { %1411 = vmatmul.bf16.gmra.mxu2 %v3531_v46 }
  0xe5   : > { %1460 = vmatmul.bf16.gmra.mxu3 %v3533_v47 }
  0xf2   : > { %1318 = vmatmul.bf16.gmra.mxu0 %v3563_v0 }
  0xf3   : > { %1367 = vmatmul.bf16.gmra.mxu1 %v3565_v1 }
  0xf4   : > { %1416 = vmatmul.bf16.gmra.mxu2 %v3567_v2 }
  0xf5   : > { %1465 = vmatmul.bf16.gmra.mxu3 %v3569_v3 }
  0xff   : > { %v1284_v4 = vpop.f32.mrf.mxu0 }
 0x100   : > { %v1333_v5 = vpop.f32.mrf.mxu1 }
 0x101   : > { %v1334_v6 = vadd.f32 %v1333_v5, %v1284_v4 }
 0x102   : > { %1479 = vmatmul.bf16.vlgmr.msrb.gmra.mxu0 %v3254_v48 }
 0x103   : > { %1528 = vmatmul.bf16.vlgmr.msrb.gmra.mxu1 %v3259_v53 }
 0x104   : > { %1577 = vmatmul.bf16.vlgmr.msrb.gmra.mxu2 %v3261_v54 }
 0x105   : > { %1626 = vmatmul.bf16.vlgmr.msrb.gmra.mxu3 %v3265_v57 }
 0x107   : > { %v1382_v7 = vpop.f32.mrf.mxu2  ;;  %v1286_v18 = vpop.f32.mrf.mxu0 }
 0x108   : > { %v1383_v16 = vadd.f32 %v1382_v7, %v1334_v6  ;;  %v1431_v17 = vpop.f32.mrf.mxu3  ;;  %v1335_v19 = vpop.f32.mrf.mxu1 }
 0x109   : > { %v1336_v21 = vadd.f32 %v1335_v19, %v1286_v18 }
 0x10a   : > { %v3579_v20 = vadd.f32 %v1431_v17, %v1383_v16 }
 0x10f   : > { %v1384_v22 = vpop.f32.mrf.mxu2  ;;  %v1289_v29 = vpop.f32.mrf.mxu0 }
 0x110   : > { %v1385_v23 = vadd.f32 %v1384_v22, %v1336_v21  ;;  %v1433_v28 = vpop.f32.mrf.mxu3  ;;  %v1338_v30 = vpop.f32.mrf.mxu1 }
 0x111   : > { %v1339_v53 = vadd.f32 %v1338_v30, %v1289_v29 }
 0x112   : > { %v3581_v48 = vadd.f32 %v1433_v28, %v1385_v23  ;;  %1484 = vmatmul.bf16.gmra.mxu0 %v3307_v24 }
 0x113   : > { %1533 = vmatmul.bf16.gmra.mxu1 %v3309_v25 }
 0x114   : > { %1582 = vmatmul.bf16.gmra.mxu2 %v3311_v26 }
 0x115   : > { %1631 = vmatmul.bf16.gmra.mxu3 %v3313_v27 }
 0x117   : > { %v1387_v54 = vpop.f32.mrf.mxu2  ;;  %v1291_v32 = vpop.f32.mrf.mxu0 }
 0x118   : > { %v1388_v57 = vadd.f32 %v1387_v54, %v1339_v53  ;;  %v1436_v31 = vpop.f32.mrf.mxu3  ;;  %v1340_v33 = vpop.f32.mrf.mxu1 }
 0x119   : > { %v1341_v35 = vadd.f32 %v1340_v33, %v1291_v32 }
 0x11a   : > { %v3587_v34 = vadd.f32 %v1436_v31, %v1388_v57 }
 0x11f   : > { %v1389_v36 = vpop.f32.mrf.mxu2  ;;  %v1294_v39 = vpop.f32.mrf.mxu0 }
 0x120   : > { %v1390_v37 = vadd.f32 %v1389_v36, %v1341_v35  ;;  %v1438_v38 = vpop.f32.mrf.mxu3  ;;  %v1343_v55 = vpop.f32.mrf.mxu1 }
 0x121   : > { %v1344_v56 = vadd.f32 %v1343_v55, %v1294_v39 }
 0x122   : > { %v1439_v24 = vadd.f32 %v1438_v38, %v1390_v37  ;;  %1489 = vmatmul.bf16.gmra.mxu0 %v3351_v49 }
 0x123   : > { %1538 = vmatmul.bf16.gmra.mxu1 %v3353_v50 }
 0x124   : > { %1587 = vmatmul.bf16.gmra.mxu2 %v3355_v51 }
 0x125   : > { %1636 = vmatmul.bf16.gmra.mxu3 %v3357_v52 }
 0x127   : > { %v1392_v25 = vpop.f32.mrf.mxu2  ;;  %v1296_v58 = vpop.f32.mrf.mxu0 }
 0x128   : > { %v1393_v26 = vadd.f32 %v1392_v25, %v1344_v56  ;;  %v1441_v27 = vpop.f32.mrf.mxu3  ;;  %v1345_v59 = vpop.f32.mrf.mxu1 }
 0x129   : > { %v1346_v61 = vadd.f32 %v1345_v59, %v1296_v58 }
 0x12a   : > { %v1442_v60 = vadd.f32 %v1441_v27, %v1393_v26 }
 0x12f   : > { %v1394_v62 = vpop.f32.mrf.mxu2  ;;  %v1299_v5 = vpop.f32.mrf.mxu0 }
 0x130   : > { %v1395_v63 = vadd.f32 %v1394_v62, %v1346_v61  ;;  %v1443_v4 = vpop.f32.mrf.mxu3  ;;  %v1348_v6 = vpop.f32.mrf.mxu1 }
 0x131   : > { %v1349_v7 = vadd.f32 %v1348_v6, %v1299_v5 }
 0x132   : > { %v1444_v49 = vadd.f32 %v1443_v4, %v1395_v63  ;;  %1494 = vmatmul.bf16.gmra.mxu0 %v3395_v12 }
 0x133   : > { %1543 = vmatmul.bf16.gmra.mxu1 %v3397_v13 }
 0x134   : > { %1592 = vmatmul.bf16.gmra.mxu2 %v3399_v14 }
 0x135   : > { %1641 = vmatmul.bf16.gmra.mxu3 %v3401_v15  ;;  %v3608_v15 = vld [vmem:[%s617_s6] sm:$0x3] }
 0x136   : > { %v3611_v57 = vperm.slane %v3608_v15, 0 }
 0x137   : > { %v1397_v50 = vpop.f32.mrf.mxu2  ;;  %v1301_v16 = vpop.f32.mrf.mxu0 }
 0x138   : > { %v1398_v51 = vadd.f32 %v1397_v50, %v1349_v7  ;;  %v1446_v52 = vpop.f32.mrf.mxu3  ;;  %v1350_v17 = vpop.f32.mrf.mxu1  ;;  %v3628_v35 = vadd.f32 %v3611_v57, %v1439_v24  ;;  %v3635_v55 = vadd.f32 %v3611_v57, %v1442_v60  ;;  %v3642_v58 = vadd.f32 %v3611_v57, %v1444_v49 }
 0x139   : > { %v1351_v19 = vadd.f32 %v1350_v17, %v1301_v16 }
 0x13a   : > { %v1447_v18 = vadd.f32 %v1446_v52, %v1398_v51  ;;  %v1861_v27 = vmul.f32 %v3628_v35, %v3628_v35  ;;  %v1863_v61 = vmul.f32 %v3635_v55, %v3635_v55 }
 0x13c   : > { %v3651_v62 = vadd.f32 %v3611_v57, %v1447_v18 }
 0x13e   : > { %v1867_v51 = vmul.f32 %v3651_v62, %v3651_v62 }
 0x13f   : > { %v1399_v21 = vpop.f32.mrf.mxu2  ;;  %v1304_v13 = vpop.f32.mrf.mxu0 }
 0x140   : > { %v1400_v12 = vadd.f32 %v1399_v21, %v1351_v19  ;;  %v1448_v22 = vpop.f32.mrf.mxu3  ;;  %v1353_v23 = vpop.f32.mrf.mxu1 }
 0x141   : > { %v1354_v28 = vadd.f32 %v1353_v23, %v1304_v13 }
 0x142   : > { %v1449_v14 = vadd.f32 %v1448_v22, %v1400_v12  ;;  %1499 = vmatmul.bf16.gmra.mxu0 %v3439_v40  ;;  %v3615_v40 = vadd.f32 %v3611_v57, %v3581_v48 }
 0x143   : > { %1548 = vmatmul.bf16.gmra.mxu1 %v3441_v41  ;;  %v3619_v41 = vadd.f32 %v3611_v57, %v3579_v20 }
 0x144   : > { %1597 = vmatmul.bf16.gmra.mxu2 %v3443_v42  ;;  %v3623_v42 = vadd.f32 %v3611_v57, %v3587_v34  ;;  %v3658_v5 = vadd.f32 %v3611_v57, %v1449_v14 }
 0x145   : > { %1646 = vmatmul.bf16.gmra.mxu3 %v3445_v43  ;;  %v1857_v43 = vmul.f32 %v3615_v40, %v3615_v40  ;;  %v1855_v48 = vmul.f32 %v3619_v41, %v3619_v41  ;;  %v1804_v56 = vadd.f32 %v3615_v40, %v3619_v41 }
 0x146   : > { %v1859_v20 = vmul.f32 %v3623_v42, %v3623_v42  ;;  %v1869_v21 = vmul.f32 %v3658_v5, %v3658_v5 }
 0x147   : > { %v1402_v29 = vpop.f32.mrf.mxu2  ;;  %v1306_v54 = vpop.f32.mrf.mxu0  ;;  %v1887_v26 = vadd.f32 %v1857_v43, %v1855_v48  ;;  %v1805_v59 = vadd.f32 %v1804_v56, %v3623_v42 }
 0x148   : > { %v1403_v30 = vadd.f32 %v1402_v29, %v1354_v28  ;;  %v1451_v53 = vpop.f32.mrf.mxu3  ;;  %v1355_v31 = vpop.f32.mrf.mxu1 }
 0x149   : > { %v1356_v33 = vadd.f32 %v1355_v31, %v1306_v54  ;;  %v1888_v60 = vadd.f32 %v1887_v26, %v1859_v20  ;;  %v1806_v63 = vadd.f32 %v1805_v59, %v3628_v35 }
 0x14a   : > { %v1452_v32 = vadd.f32 %v1451_v53, %v1403_v30 }
 0x14b   : > { %v1889_v4 = vadd.f32 %v1888_v60, %v1861_v27 }
 0x14d   : > { %v1890_v50 = vadd.f32 %v1889_v4, %v1863_v61 }
 0x14f   : > { %v1404_v36 = vpop.f32.mrf.mxu2  ;;  %v1309_v39 = vpop.f32.mrf.mxu0 }
 0x150   : > { %v1405_v37 = vadd.f32 %v1404_v36, %v1356_v33  ;;  %v1453_v38 = vpop.f32.mrf.mxu3  ;;  %v1358_v34 = vpop.f32.mrf.mxu1 }
 0x151   : > { %v1359_v24 = vadd.f32 %v1358_v34, %v1309_v39 }
 0x152   : > { %v1454_v25 = vadd.f32 %v1453_v38, %v1405_v37  ;;  %1504 = vmatmul.bf16.gmra.mxu0 %v3483_v8  ;;  %v1865_v8 = vmul.f32 %v3642_v58, %v3642_v58 }
 0x153   : > { %1553 = vmatmul.bf16.gmra.mxu1 %v3485_v9 }
 0x154   : > { %1602 = vmatmul.bf16.gmra.mxu2 %v3487_v10  ;;  %v1807_v10 = vadd.f32 %v1806_v63, %v3635_v55  ;;  %v1891_v19 = vadd.f32 %v1890_v50, %v1865_v8  ;;  %v3671_v22 = vadd.f32 %v3611_v57, %v1454_v25 }
 0x155   : > { %1651 = vmatmul.bf16.gmra.mxu3 %v3489_v11  ;;  %v3664_v11 = vadd.f32 %v3611_v57, %v1452_v32 }
 0x156   : > { %v1808_v16 = vadd.f32 %v1807_v10, %v3642_v58  ;;  %v1892_v13 = vadd.f32 %v1891_v19, %v1867_v51  ;;  %v1873_v54 = vmul.f32 %v3671_v22, %v3671_v22 }
 0x157   : > { %v1407_v9 = vpop.f32.mrf.mxu2  ;;  %v1311_v7 = vpop.f32.mrf.mxu0  ;;  %v1871_v23 = vmul.f32 %v3664_v11, %v3664_v11 }
 0x158   : > { %v1408_v6 = vadd.f32 %v1407_v9, %v1359_v24  ;;  %v1456_v49 = vpop.f32.mrf.mxu3  ;;  %v1360_v52 = vpop.f32.mrf.mxu1  ;;  %v1809_v12 = vadd.f32 %v1808_v16, %v3651_v62  ;;  %v1893_v29 = vadd.f32 %v1892_v13, %v1869_v21 }
 0x159   : > { %v1361_v18 = vadd.f32 %v1360_v52, %v1311_v7 }
 0x15a   : > { %v1457_v17 = vadd.f32 %v1456_v49, %v1408_v6  ;;  %v1810_v14 = vadd.f32 %v1809_v12, %v3658_v5  ;;  %v1894_v43 = vadd.f32 %v1893_v29, %v1871_v23 }
 0x15c   : > { %v3677_v28 = vadd.f32 %v3611_v57, %v1457_v17  ;;  %v1811_v53 = vadd.f32 %v1810_v14, %v3664_v11  ;;  %v1895_v20 = vadd.f32 %v1894_v43, %v1873_v54 }
 0x15e   : > { %v1812_v37 = vadd.f32 %v1811_v53, %v3671_v22  ;;  %v1875_v38 = vmul.f32 %v3677_v28, %v3677_v28 }
 0x15f   : > { %v1409_v30 = vpop.f32.mrf.mxu2  ;;  %v1314_v33 = vpop.f32.mrf.mxu0 }
 0x160   : > { %v1410_v31 = vadd.f32 %v1409_v30, %v1361_v18  ;;  %v1458_v32 = vpop.f32.mrf.mxu3  ;;  %v1363_v36 = vpop.f32.mrf.mxu1  ;;  %v1813_v34 = vadd.f32 %v1812_v37, %v3677_v28  ;;  %v1896_v25 = vadd.f32 %v1895_v20, %v1875_v38 }
 0x161   : > { %v1364_v48 = vadd.f32 %v1363_v36, %v1314_v33 }
 0x162   : > { %v1459_v39 = vadd.f32 %v1458_v32, %v1410_v31  ;;  %1509 = vmatmul.bf16.gmra.mxu0 %v3527_v44 }
 0x163   : > { %1558 = vmatmul.bf16.gmra.mxu1 %v3529_v45 }
 0x164   : > { %v3688_v56 = vadd.f32 %v3611_v57, %v1459_v39  ;;  %1607 = vmatmul.bf16.gmra.mxu2 %v3531_v46 }
 0x165   : > { %1656 = vmatmul.bf16.gmra.mxu3 %v3533_v47 }
 0x166   : > { %v1814_v24 = vadd.f32 %v1813_v34, %v3688_v56  ;;  %v1877_v26 = vmul.f32 %v3688_v56, %v3688_v56 }
 0x167   : > { %v1412_v27 = vpop.f32.mrf.mxu2  ;;  %v1316_v61 = vpop.f32.mrf.mxu0 }
 0x168   : > { %v1897_v44 = vadd.f32 %v1896_v25, %v1877_v26  ;;  %v1413_v59 = vadd.f32 %v1412_v27, %v1364_v48  ;;  %v1461_v60 = vpop.f32.mrf.mxu3  ;;  %v1365_v63 = vpop.f32.mrf.mxu1 }
 0x169   : > { %v1366_v8 = vadd.f32 %v1365_v63, %v1316_v61 }
 0x16a   : > { %v1462_v4 = vadd.f32 %v1461_v60, %v1413_v59 }
 0x16c   : > { %v3697_v45 = vadd.f32 %v3611_v57, %v1462_v4 }
 0x16e   : > { %v1815_v46 = vadd.f32 %v1814_v24, %v3697_v45  ;;  %v1879_v47 = vmul.f32 %v3697_v45, %v3697_v45 }
 0x16f   : > { %v1414_v9 = vpop.f32.mrf.mxu2  ;;  %v1319_v7 = vpop.f32.mrf.mxu0 }
 0x170   : > { %v1898_v10 = vadd.f32 %v1897_v44, %v1879_v47  ;;  %v1415_v6 = vadd.f32 %v1414_v9, %v1366_v8  ;;  %v1463_v49 = vpop.f32.mrf.mxu3  ;;  %v1368_v50 = vpop.f32.mrf.mxu1 }
 0x171   : > { %v1369_v52 = vadd.f32 %v1368_v50, %v1319_v7 }
 0x172   : > { %v1464_v51 = vadd.f32 %v1463_v49, %v1415_v6  ;;  %1514 = vmatmul.bf16.gmra.mxu0 %v3563_v0  ;;  %v2941_v0 = vmov 128.0  }
 0x173   : > { %1563 = vmatmul.bf16.gmra.mxu1 %v3565_v1  ;;  %2895 = vrcp.f32 %v2941_v0 }
 0x174   : > { %v3704_v16 = vadd.f32 %v3611_v57, %v1464_v51  ;;  %1612 = vmatmul.bf16.gmra.mxu2 %v3567_v2 }
 0x175   : > { %1661 = vmatmul.bf16.gmra.mxu3 %v3569_v3 }
 0x176   : > { %4177 = vst [vmem:[#allocation5_spill] sm:$0xff] %v3704_v16  ;;  %v1816_v17 = vadd.f32 %v1815_v46, %v3704_v16  ;;  %v1881_v18 = vmul.f32 %v3704_v16, %v3704_v16 }
 0x177   : > { %v1417_v19 = vpop.f32.mrf.mxu2  ;;  %v1321_v23 = vpop.f32.mrf.mxu0 }
 0x178   : > { %v1899_v21 = vadd.f32 %v1898_v10, %v1881_v18  ;;  %v1418_v12 = vadd.f32 %v1417_v19, %v1369_v52  ;;  %v1466_v13 = vpop.f32.mrf.mxu3  ;;  %v1370_v14 = vpop.f32.mrf.mxu1 }
 0x179   : > { %v1371_v30 = vadd.f32 %v1370_v14, %v1321_v23  ;;  %v2896_v2 = vpop.eup %2895 }
 0x17a   : > { %v1467_v29 = vadd.f32 %v1466_v13, %v1418_v12  ;;  %v1847_v36 = vmul.f32 128.0, %v2896_v2  ;;  %vm1851_vm0 = vweird.f32 %v2896_v2 }
 0x17c   : > { %v3713_v1 = vadd.f32 %v3611_v57, %v1467_v29  ;;  %v1848_v20 = vsub.f32 1.0, %v1847_v36 }
 0x17e   : > { %4178 = vst [vmem:[#allocation6_spill] sm:$0xff] %v3713_v1  ;;  %v1817_v3 = vadd.f32 %v1816_v17, %v3713_v1  ;;  %v1883_v53 = vmul.f32 %v3713_v1, %v3713_v1  ;;  %v1849_v61 = vmul.f32 %v2896_v2, %v1848_v20 }
 0x17f   : > { %v1419_v54 = vpop.f32.mrf.mxu2  ;;  %v1480_v43 = vpop.f32.mrf.mxu0 }
 0x180   : > { %v1900_v31 = vadd.f32 %v1899_v21, %v1883_v53  ;;  %v1420_v32 = vadd.f32 %v1419_v54, %v1371_v30  ;;  %v1468_v33 = vpop.f32.mrf.mxu3  ;;  %v1529_v37 = vpop.f32.mrf.mxu1  ;;  %v1850_v10 = vadd.f32 %v2896_v2, %v1849_v61 }
 0x181   : > { %v1530_v39 = vadd.f32 %v1529_v37, %v1480_v43 }
 0x182   : > { %v1469_v38 = vadd.f32 %v1468_v33, %v1420_v32  ;;  %v3726_v19 = vsel %vm1851_vm0, %v2896_v2, %v1850_v10 }
 0x184   : > { %v3719_v48 = vadd.f32 %v3611_v57, %v1469_v38 }
 0x186   : > { %4179 = vst [vmem:[#allocation7_spill] sm:$0xff] %v3719_v48  ;;  %v1818_v34 = vadd.f32 %v1817_v3, %v3719_v48  ;;  %v1885_v25 = vmul.f32 %v3719_v48, %v3719_v48 }
 0x187   : > { %v1578_v24 = vpop.f32.mrf.mxu2  ;;  %v1482_v60 = vpop.f32.mrf.mxu0 }
 0x188   : > { %v1819_v26 = vrot.slane %v1818_v34, 4  ;;  %v1901_v27 = vadd.f32 %v1900_v31, %v1885_v25  ;;  %v1579_v44 = vadd.f32 %v1578_v24, %v1530_v39  ;;  %v1627_v59 = vpop.f32.mrf.mxu3  ;;  %v1531_v63 = vpop.f32.mrf.mxu1 }
 0x189   : > { %v1532_v57 = vadd.f32 %v1531_v63, %v1482_v60 }
 0x18a   : > { %v1820_v4 = vadd.f32 %v1819_v26, %v1818_v34  ;;  %v1902_v8 = vrot.slane %v1901_v27, 4  ;;  %v3724_v46 = vadd.f32 %v1627_v59, %v1579_v44 }
 0x18c   : > { %v1821_v47 = vrot.slane %v1820_v4, 2  ;;  %v1903_v9 = vadd.f32 %v1902_v8, %v1901_v27 }
 0x18e   : > { %v1822_v6 = vadd.f32 %v1821_v47, %v1820_v4  ;;  %v1904_v49 = vrot.slane %v1903_v9, 2 }
 0x18f   : > { %v1580_v7 = vpop.f32.mrf.mxu2  ;;  %v1485_v18 = vpop.f32.mrf.mxu0 }
 0x190   : > { %v1823_v50 = vrot.slane %v1822_v6, 1  ;;  %v1905_v51 = vadd.f32 %v1904_v49, %v1903_v9  ;;  %v1581_v52 = vadd.f32 %v1580_v7, %v1532_v57  ;;  %v1629_v17 = vpop.f32.mrf.mxu3  ;;  %v1534_v21 = vpop.f32.mrf.mxu1 }
 0x191   : > { %v1535_v0 = vadd.f32 %v1534_v21, %v1485_v18 }
 0x192   : > { %v1824_v12 = vadd.f32 %v1823_v50, %v1822_v6  ;;  %v1906_v13 = vrot.slane %v1905_v51, 1  ;;  %v3728_v23 = vadd.f32 %v1629_v17, %v1581_v52 }
 0x194   : > { %v3731_v14 = vmul.f32 %v3726_v19, %v1824_v12  ;;  %v1907_v29 = vadd.f32 %v1906_v13, %v1905_v51 }
 0x196   : > { %v3734_v30 = vmul.f32 %v1907_v29, %v3726_v19  ;;  %v3738_v3 = vmul.f32 %v3731_v14, %v3731_v14 }
 0x197   : > { %v1583_v53 = vpop.f32.mrf.mxu2  ;;  %v1487_v31 = vpop.f32.mrf.mxu0 }
 0x198   : > { %v1632_v54 = vpop.f32.mrf.mxu3  ;;  %v1536_v36 = vpop.f32.mrf.mxu1  ;;  %v1584_v20 = vadd.f32 %v1583_v53, %v1535_v0 }
 0x199   : > { %v1537_v34 = vadd.f32 %v1536_v36, %v1487_v31 }
 0x19a   : > { %v1633_v25 = vadd.f32 %v1632_v54, %v1584_v20 }
 0x19f   : > { %v1585_v24 = vpop.f32.mrf.mxu2  ;;  %v1490_v44 = vpop.f32.mrf.mxu0 }
 0x1a0   : > { %v1586_v26 = vadd.f32 %v1585_v24, %v1537_v34  ;;  %v1634_v27 = vpop.f32.mrf.mxu3  ;;  %v1539_v59 = vpop.f32.mrf.mxu1 }
 0x1a1   : > { %v1540_v61 = vadd.f32 %v1539_v59, %v1490_v44 }
 0x1a2   : > { %v1635_v60 = vadd.f32 %v1634_v27, %v1586_v26 }
 0x1a7   : > { %v1588_v63 = vpop.f32.mrf.mxu2  ;;  %v1492_v57 = vpop.f32.mrf.mxu0 }
 0x1a8   : > { %v1589_v4 = vadd.f32 %v1588_v63, %v1540_v61  ;;  %v1637_v8 = vpop.f32.mrf.mxu3  ;;  %v1541_v47 = vpop.f32.mrf.mxu1  ;;  %v3755_v61 = vperm.slane %v3608_v15, 1 }
 0x1aa   : > { %v1638_v9 = vadd.f32 %v1637_v8, %v1589_v4  ;;  %v1542_v8 = vadd.f32 %v1541_v47, %v1492_v57  ;;  %v3761_v37 = vadd.f32 %v3755_v61, %v3728_v23  ;;  %v3765_v33 = vadd.f32 %v3755_v61, %v3724_v46 }
 0x1ab   : > { %v3768_v32 = vadd.f32 %v3755_v61, %v1633_v25  ;;  %v3773_v47 = vadd.f32 %v3755_v61, %v1635_v60 }
 0x1ac   : > { %v1858_v57 = vmul.f32 %v3761_v37, %v3761_v37  ;;  %v3780_v25 = vadd.f32 %v3755_v61, %v1638_v9 }
 0x1ad   : > { %v1860_v46 = vmul.f32 %v3768_v32, %v3768_v32 }
 0x1af   : > { %v1590_v10 = vpop.f32.mrf.mxu2  ;;  %v1495_v49 = vpop.f32.mrf.mxu0 }
 0x1b0   : > { %v1639_v6 = vpop.f32.mrf.mxu3  ;;  %v1544_v7 = vpop.f32.mrf.mxu1  ;;  %v1591_v43 = vadd.f32 %v1590_v10, %v1542_v8  ;;  %v1856_v10 = vmul.f32 %v3765_v33, %v3765_v33 }
 0x1b1   : > { %v1545_v39 = vadd.f32 %v1544_v7, %v1495_v49 }
 0x1b2   : > { %v1640_v49 = vadd.f32 %v1639_v6, %v1591_v43  ;;  %v1908_v43 = vadd.f32 %v1858_v57, %v1856_v10  ;;  %v1862_v6 = vmul.f32 %v3773_v47, %v3773_v47 }
 0x1b4   : > { %v1909_v16 = vadd.f32 %v1908_v43, %v1860_v46 }
 0x1b7   : > { %v1593_v50 = vpop.f32.mrf.mxu2  ;;  %v1497_v52 = vpop.f32.mrf.mxu0 }
 0x1b8   : > { %v1642_v51 = vpop.f32.mrf.mxu3  ;;  %v1546_v17 = vpop.f32.mrf.mxu1  ;;  %v1594_v15 = vadd.f32 %v1593_v50, %v1545_v39 }
 0x1b9   : > { %v1547_v2 = vadd.f32 %v1546_v17, %v1497_v52 }
 0x1ba   : > { %v1643_v52 = vadd.f32 %v1642_v51, %v1594_v15  ;;  %v1910_v15 = vadd.f32 %v1909_v16, %v1862_v6 }
 0x1bc   : > { %v3793_v51 = vadd.f32 %v3755_v61, %v1643_v52 }
 0x1bf   : > { %v1595_v18 = vpop.f32.mrf.mxu2  ;;  %v1500_v12 = vpop.f32.mrf.mxu0 }
 0x1c0   : > { %v1644_v21 = vpop.f32.mrf.mxu3  ;;  %v1549_v13 = vpop.f32.mrf.mxu1  ;;  %v1596_v23 = vadd.f32 %v1595_v18, %v1547_v2  ;;  %v1825_v2 = vadd.f32 %v3761_v37, %v3765_v33  ;;  %v3787_v18 = vadd.f32 %v3755_v61, %v1640_v49 }
 0x1c1   : > { %v1550_v48 = vadd.f32 %v1549_v13, %v1500_v12 }
 0x1c2   : > { %v1645_v8 = vadd.f32 %v1644_v21, %v1596_v23  ;;  %v1826_v1 = vadd.f32 %v1825_v2, %v3768_v32  ;;  %v1866_v21 = vmul.f32 %v3787_v18, %v3787_v18 }
 0x1c7   : > { %v1598_v0 = vpop.f32.mrf.mxu2  ;;  %v1502_v53 = vpop.f32.mrf.mxu0 }
 0x1c8   : > { %v1647_v29 = vpop.f32.mrf.mxu3  ;;  %v1551_v54 = vpop.f32.mrf.mxu1  ;;  %v1599_v17 = vadd.f32 %v1598_v0, %v1550_v48  ;;  %v1864_v48 = vmul.f32 %v3780_v25, %v3780_v25 }
 0x1c9   : > { %v1552_v12 = vadd.f32 %v1551_v54, %v1502_v53  ;;  %v1827_v54 = vadd.f32 %v1826_v1, %v3773_v47 }
 0x1ca   : > { %v1648_v0 = vadd.f32 %v1647_v29, %v1599_v17  ;;  %v1911_v52 = vadd.f32 %v1910_v15, %v1864_v48  ;;  %v1868_v29 = vmul.f32 %v3793_v51, %v3793_v51 }
 0x1cb   : > { %v1828_v23 = vadd.f32 %v1827_v54, %v3780_v25 }
 0x1cc   : > { %v3805_v1 = vadd.f32 %v3755_v61, %v1648_v0 }
 0x1ce   : > { %v1872_v6 = vmul.f32 %v3805_v1, %v3805_v1 }
 0x1cf   : > { %v1600_v31 = vpop.f32.mrf.mxu2  ;;  %v1505_v20 = vpop.f32.mrf.mxu0 }
 0x1d0   : > { %v1649_v36 = vpop.f32.mrf.mxu3  ;;  %v1554_v34 = vpop.f32.mrf.mxu1  ;;  %v1601_v9 = vadd.f32 %v1600_v31, %v1552_v12  ;;  %v3799_v31 = vadd.f32 %v3755_v61, %v1645_v8 }
 0x1d1   : > { %v1555_v13 = vadd.f32 %v1554_v34, %v1505_v20 }
 0x1d2   : > { %v1650_v57 = vadd.f32 %v1649_v36, %v1601_v9  ;;  %v1912_v36 = vadd.f32 %v1911_v52, %v1866_v21  ;;  %v1870_v17 = vmul.f32 %v3799_v31, %v3799_v31 }
 0x1d7   : > { %v1603_v24 = vpop.f32.mrf.mxu2  ;;  %v1507_v27 = vpop.f32.mrf.mxu0 }
 0x1d8   : > { %v1652_v26 = vpop.f32.mrf.mxu3  ;;  %v1556_v44 = vpop.f32.mrf.mxu1  ;;  %v1604_v53 = vadd.f32 %v1603_v24, %v1555_v13 }
 0x1d9   : > { %v1557_v20 = vadd.f32 %v1556_v44, %v1507_v27  ;;  %v1829_v27 = vadd.f32 %v1828_v23, %v3787_v18 }
 0x1da   : > { %v1653_v16 = vadd.f32 %v1652_v26, %v1604_v53  ;;  %v1913_v26 = vadd.f32 %v1912_v36, %v1868_v29 }
 0x1db   : > { %v1830_v12 = vadd.f32 %v1829_v27, %v3793_v51 }
 0x1dc   : > { %v1914_v8 = vadd.f32 %v1913_v26, %v1870_v17 }
 0x1df   : > { %v1605_v59 = vpop.f32.mrf.mxu2  ;;  %v1510_v4 = vpop.f32.mrf.mxu0 }
 0x1e0   : > { %v3757_v63 = vpop.f32.mrf.mxu3  ;;  %v1559_v38 = vpop.f32.mrf.mxu1  ;;  %v1606_v10 = vadd.f32 %v1605_v59, %v1557_v20  ;;  %v3811_v59 = vadd.f32 %v3755_v61, %v1650_v57 }
 0x1e1   : > { %v1560_v34 = vadd.f32 %v1559_v38, %v1510_v4 }
 0x1e2   : > { %v1655_v13 = vadd.f32 %v3757_v63, %v1606_v10  ;;  %v1874_v9 = vmul.f32 %v3811_v59, %v3811_v59 }
 0x1e4   : > { %v3825_v63 = vadd.f32 %v3755_v61, %v1655_v13 }
 0x1e7   : > { %v1608_v7 = vpop.f32.mrf.mxu2  ;;  %v1512_v50 = vpop.f32.mrf.mxu0 }
 0x1e8   : > { %v1657_v39 = vpop.f32.mrf.mxu3  ;;  %v1561_v60 = vpop.f32.mrf.mxu1  ;;  %v1609_v44 = vadd.f32 %v1608_v7, %v1560_v34  ;;  %v3818_v7 = vadd.f32 %v3755_v61, %v1653_v16  ;;  %v1915_v34 = vadd.f32 %v1914_v8, %v1872_v6 }
 0x1e9   : > { %v1562_v4 = vadd.f32 %v1561_v60, %v1512_v50  ;;  %v1831_v50 = vadd.f32 %v1830_v12, %v3799_v31 }
 0x1ea   : > { %v1658_v60 = vadd.f32 %v1657_v39, %v1609_v44  ;;  %v1876_v15 = vmul.f32 %v3818_v7, %v3818_v7 }
 0x1eb   : > { %v1832_v0 = vadd.f32 %v1831_v50, %v3805_v1 }
 0x1ec   : > { %v3831_v39 = vadd.f32 %v3755_v61, %v1658_v60 }
 0x1ed   : > { %v1833_v21 = vadd.f32 %v1832_v0, %v3811_v59 }
 0x1ef   : > { %v1610_v49 = vpop.f32.mrf.mxu2  ;;  %v1515_v38 = vpop.f32.mrf.mxu0  ;;  %v1834_v52 = vadd.f32 %v1833_v21, %v3818_v7 }
 0x1f0   : > { %v1659_v46 = vpop.f32.mrf.mxu3  ;;  %v1564_v24 = vpop.f32.mrf.mxu1  ;;  %v1611_v2 = vadd.f32 %v1610_v49, %v1562_v4  ;;  %v1916_v49 = vadd.f32 %v1915_v34, %v1874_v9 }
 0x1f1   : > { %v1565_v43 = vadd.f32 %v1564_v24, %v1515_v38  ;;  %v1835_v38 = vadd.f32 %v1834_v52, %v3825_v63  ;;  %v1880_v24 = vmul.f32 %v3831_v39, %v3831_v39 }
 0x1f2   : > { %v1660_v53 = vadd.f32 %v1659_v46, %v1611_v2  ;;  %v1878_v46 = vmul.f32 %v3825_v63, %v3825_v63  ;;  %v1917_v16 = vadd.f32 %v1916_v49, %v1876_v15  ;;  %v4180_v49 = vsub.f32 %v3734_v30, %v3738_v3 }
 0x1f3   : > { %v1836_v17 = vadd.f32 %v1835_v38, %v3831_v39 }
 0x1f4   : > { %v3837_v29 = vadd.f32 %v3755_v61, %v1660_v53  ;;  %v1918_v36 = vadd.f32 %v1917_v16, %v1878_v46 }
 0x1f6   : > { %v1882_v12 = vmul.f32 %v3837_v29, %v3837_v29  ;;  %v1837_v26 = vadd.f32 %v1836_v17, %v3837_v29 }
 0x1f7   : > { %v1613_v48 = vpop.f32.mrf.mxu2  ;;  %v1517_v23 = vpop.f32.mrf.mxu0 }
 0x1f8   : > { %v1614_v54 = vadd.f32 %v1613_v48, %v1565_v43  ;;  %v1662_v20 = vpop.f32.mrf.mxu3  ;;  %v1566_v10 = vpop.f32.mrf.mxu1  ;;  %v1919_v43 = vadd.f32 %v1918_v36, %v1880_v24 }
 0x1f9   : > { %v1567_v44 = vadd.f32 %v1566_v10, %v1517_v23  ;;  %v1936_v23 = vadd.f32 1e-05, %v4180_v49  ;;  %v1969_v49 = vsub.f32 %v3623_v42, %v3731_v14  ;;  %v1981_v42 = vsub.f32 %v3664_v11, %v3731_v14 }
 0x1fa   : > { %v1663_v57 = vadd.f32 %v1662_v20, %v1614_v54  ;;  %v1920_v60 = vadd.f32 %v1919_v43, %v1882_v12 }
 0x1fb   : > { %2897 = vrsqrt.f32 %v1936_v23  ;;  %vm1944_vm5 = vweird.f32 %v1936_v23 }
 0x1fc   : > { %v3843_v27 = vadd.f32 %v3755_v61, %v1663_v57 }
 0x1fe   : > { %v1884_v6 = vmul.f32 %v3843_v27, %v3843_v27  ;;  %v1838_v8 = vadd.f32 %v1837_v26, %v3843_v27 }
 0x1ff   : > { %v1615_v4 = vpop.f32.mrf.mxu2 }
 0x200   : > { %v1616_v13 = vadd.f32 %v1615_v4, %v1567_v44  ;;  %v1664_v2 = vpop.f32.mrf.mxu3  ;;  %v1921_v48 = vadd.f32 %v1920_v60, %v1884_v6 }
 0x201   : > { %v2898_v17 = vpop.eup %2897 }
 0x202   : > { %v1665_v50 = vadd.f32 %v1664_v2, %v1616_v13  ;;  %v1939_v12 = vmul.f32 %v2898_v17, %v1936_v23  ;;  %vm1945_vm2 = vweird.f32 %v2898_v17  ;;  %v1971_v23 = vsub.f32 %v3628_v35, %v3731_v14 }
 0x203   : > { %vm1946_vm7 = vmor %vm1944_vm5, %vm1945_vm2 }
 0x204   : > { %v3853_v9 = vadd.f32 %v3755_v61, %v1665_v50  ;;  %v1940_v13 = vmul.f32 %v2898_v17, %v1939_v12  ;;  %v4181_v12 = vsub.f32 %v3677_v28, %v3731_v14 }
 0x206   : > { %v1839_v0 = vadd.f32 %v1838_v8, %v3853_v9  ;;  %v1886_v53 = vmul.f32 %v3853_v9, %v3853_v9  ;;  %v1941_v43 = vmul.f32 0.5, %v1940_v13  ;;  %v4182_v13 = vsub.f32 %v3688_v56, %v3731_v14 }
 0x208   : > { %v1840_v54 = vrot.slane %v1839_v0, 4  ;;  %v1922_v20 = vadd.f32 %v1921_v48, %v1886_v53  ;;  %v1942_v50 = vsub.f32 1.5, %v1941_v43  ;;  %v1935_v53 = vld [vmem:[%s622_s9] sm:$0x3]  ;;  %v4183_v43 = vsub.f32 %v3697_v45, %v3731_v14 }
 0x20a   : > { %v1841_v34 = vadd.f32 %v1840_v54, %v1839_v0  ;;  %v1923_v15 = vrot.slane %v1922_v20, 4  ;;  %v1943_v48 = vmul.f32 %v2898_v17, %v1942_v50 }
 0x20c   : > { %v1842_v21 = vrot.slane %v1841_v34, 2  ;;  %v1924_v57 = vadd.f32 %v1923_v15, %v1922_v20  ;;  %v1947_v20 = vsel %vm1946_vm7, %v2898_v17, %v1943_v48 }
 0x20e   : > { %v1843_v10 = vadd.f32 %v1842_v21, %v1841_v34  ;;  %v1925_v52 = vrot.slane %v1924_v57, 2  ;;  %v1965_v21 = vsub.f32 %v3619_v41, %v3731_v14  ;;  %v1977_v41 = vsub.f32 %v3651_v62, %v3731_v14 }
 0x210   : > { %v1844_v61 = vrot.slane %v1843_v10, 1  ;;  %v1926_v46 = vadd.f32 %v1925_v52, %v1924_v57  ;;  %v1967_v57 = vsub.f32 %v3615_v40, %v3731_v14  ;;  %v1979_v40 = vsub.f32 %v3658_v5, %v3731_v14 }
 0x212   : > { %v1845_v16 = vadd.f32 %v1844_v61, %v1843_v10  ;;  %v1927_v38 = vrot.slane %v1926_v46, 1  ;;  %v1973_v10 = vsub.f32 %v3635_v55, %v3731_v14  ;;  %v1975_v61 = vsub.f32 %v3642_v58, %v3731_v14 }
 0x214   : > { %v3862_v24 = vmul.f32 %v3726_v19, %v1845_v16  ;;  %v1928_v44 = vadd.f32 %v1927_v38, %v1926_v46  ;;  %v1983_v46 = vsub.f32 %v3671_v22, %v3731_v14 }
 0x216   : > { %v1930_v4 = vmul.f32 %v1928_v44, %v3726_v19  ;;  %v1932_v36 = vmul.f32 %v3862_v24, %v3862_v24  ;;  %v1966_v35 = vsub.f32 %v3765_v33, %v3862_v24  ;;  %v1968_v58 = vsub.f32 %v3761_v37, %v3862_v24 }
 0x217   : > { %v1986_v5 = vsub.f32 %v3818_v7, %v3862_v24  ;;  %v1988_v11 = vsub.f32 %v3825_v63, %v3862_v24  ;;  %v1992_v37 = vsub.f32 %v3837_v29, %v3862_v24  ;;  %v1996_v7 = vsub.f32 %v3853_v9, %v3862_v24  ;;  %v2034_v9 = vld [vmem:[%s627_s12] sm:$0x3] }
 0x218   : > { %v1934_v30 = vsub.f32 %v1930_v4, %v1932_v36  ;;  %v1990_v4 = vsub.f32 %v3831_v39, %v3862_v24 }
 0x21a   : > { %v1937_v3 = vadd.f32 1e-05, %v1934_v30  ;;  %v1994_v30 = vsub.f32 %v3843_v27, %v3862_v24 }
 0x21c   : > { %2899 = vrsqrt.f32 %v1937_v3  ;;  %vm1954_vm3 = vweird.f32 %v1937_v3 }
 0x222   : > { %v2900_v2 = vpop.eup %2899 }
 0x223   : > { %v1949_v26 = vmul.f32 %v2900_v2, %v1937_v3  ;;  %vm1955_vm1 = vweird.f32 %v2900_v2 }
 0x224   : > { %vm1956_vm4 = vmor %vm1954_vm3, %vm1955_vm1 }
 0x225   : > { %v1950_v6 = vmul.f32 %v2900_v2, %v1949_v26 }
 0x227   : > { %v1951_v60 = vmul.f32 0.5, %v1950_v6  ;;  %v4184_v6 = vld [vmem:[#allocation5_spill] sm:$0xff] }
 0x228   : > { %v4185_v50 = vsub.f32 %v4184_v6, %v3731_v14 }
 0x229   : > { %v1952_v8 = vsub.f32 1.5, %v1951_v60 }
 0x22b   : > { %v1953_v19 = vmul.f32 %v2900_v2, %v1952_v8  ;;  %v4186_v8 = vld [vmem:[#allocation6_spill] sm:$0xff] }
 0x22c   : > { %v4187_v48 = vsub.f32 %v4186_v8, %v3731_v14 }
 0x22d   : > { %v1957_v0 = vsel %vm1956_vm4, %v2900_v2, %v1953_v19 }
 0x22e   : > { %v1960_v54 = vrot.slane %v1957_v0, 7  ;;  %v4188_v0 = vld [vmem:[#allocation7_spill] sm:$0xff] }
 0x230   : > { %v1962_v34 = vsel %vm1961_vm6, %v1947_v20, %v1960_v54 }
 0x231   : > { %v1964_v15 = vmul.f32 %v1962_v34, %v1935_v53  ;;  %v4189_v53 = vsub.f32 %v4188_v0, %v3731_v14 }
 0x233   : > { %v1998_v52 = vperm.slane %v1964_v15, 0  ;;  %v3895_v38 = vperm.slane %v1964_v15, 1  ;;  %v3968_v15 = vperm.slane %v2034_v9, 0 }
 0x235   : > { %v2002_v55 = vmul.f32 %v1998_v52, %v1965_v21  ;;  %v2004_v16 = vmul.f32 %v1998_v52, %v1967_v57  ;;  %v2006_v62 = vmul.f32 %v1998_v52, %v1969_v49  ;;  %v2008_v44 = vmul.f32 %v1998_v52, %v1971_v23 }
 0x236   : > { %v2010_v22 = vmul.f32 %v1998_v52, %v1973_v10  ;;  %v2012_v33 = vmul.f32 %v1998_v52, %v1975_v61  ;;  %v2014_v36 = vmul.f32 %v1998_v52, %v1977_v41  ;;  %v3909_v17 = vmul.f32 %v1998_v52, %v1979_v40 }
 0x237   : > { %v3915_v3 = vmul.f32 %v1998_v52, %v1981_v42  ;;  %v3917_v63 = vmul.f32 %v1998_v52, %v1983_v46  ;;  %v3922_v39 = vmul.f32 %v1998_v52, %v4181_v12  ;;  %v3925_v29 = vmul.f32 %v3895_v38, %v1986_v5 }
 0x238   : > { %v3930_v2 = vmul.f32 %v1998_v52, %v4182_v13  ;;  %v3933_v27 = vmul.f32 %v3895_v38, %v1988_v11  ;;  %v3938_v26 = vmul.f32 %v1998_v52, %v4183_v43  ;;  %v3941_v28 = vmul.f32 %v3895_v38, %v1990_v4 }
 0x239   : > { %v3946_v60 = vmul.f32 %v1998_v52, %v4185_v50  ;;  %v3949_v56 = vmul.f32 %v3895_v38, %v1992_v37  ;;  %v3954_v19 = vmul.f32 %v1998_v52, %v4187_v48  ;;  %v3957_v45 = vmul.f32 %v3895_v38, %v1994_v30 }
 0x23a   : > { %v3962_v54 = vmul.f32 %v1998_v52, %v4189_v53  ;;  %v3965_v20 = vmul.f32 %v3895_v38, %v1996_v7  ;;  %v2003_v34 = vmul.f32 %v3895_v38, %v1966_v35  ;;  %v3970_v21 = vperm.slane %v2034_v9, 1 }
 0x23b   : > { %v1970_v57 = vsub.f32 %v3768_v32, %v3862_v24  ;;  %v2005_v49 = vmul.f32 %v3895_v38, %v1968_v58  ;;  %v1972_v23 = vsub.f32 %v3773_v47, %v3862_v24  ;;  %v2040_v10 = vadd.f32 %v3968_v15, %v2002_v55 }
 0x23c   : > { %v2041_v52 = vadd.f32 %v3970_v21, %v2003_v34  ;;  %v2042_v61 = vadd.f32 %v3968_v15, %v2004_v16  ;;  %v1974_v41 = vsub.f32 %v3780_v25, %v3862_v24  ;;  %v2044_v42 = vadd.f32 %v3968_v15, %v2006_v62 }
 0x23d   : > { %v2007_v14 = vmul.f32 %v3895_v38, %v1970_v57  ;;  %v2009_v32 = vmul.f32 %v3895_v38, %v1972_v23  ;;  %v2043_v40 = vadd.f32 %v3970_v21, %v2005_v49  ;;  %v1976_v47 = vsub.f32 %v3787_v18, %v3862_v24 }
 0x23e   : > { %v2011_v46 = vmul.f32 %v3895_v38, %v1974_v41  ;;  %v2046_v55 = vadd.f32 %v3968_v15, %v2008_v44  ;;  %v2072_v58 = vmax.f32 %v2040_v10, 0.0  ;;  %v2073_v16 = vmax.f32 %v2041_v52, 0.0 }
 0x23f   : > { %v2045_v35 = vadd.f32 %v3970_v21, %v2007_v14  ;;  %v2074_v5 = vmax.f32 %v2042_v61, 0.0  ;;  %v1978_v25 = vsub.f32 %v3793_v51, %v3862_v24  ;;  %v2013_v11 = vmul.f32 %v3895_v38, %v1976_v47 }
 0x240   : > { %v2047_v4 = vadd.f32 %v3970_v21, %v2009_v32  ;;  %v2075_v62 = vmax.f32 %v2043_v40, 0.0  ;;  %v2048_v37 = vadd.f32 %v3968_v15, %v2010_v22  ;;  %v2076_v18 = vmax.f32 %v2044_v42, 0.0  ;;  %2104 = vst [vmem:[%s3998_s18] sm:$0xff] %v2072_v58 }
 0x241   : > { %v1980_v44 = vsub.f32 %v3799_v31, %v3862_v24  ;;  %v2015_v51 = vmul.f32 %v3895_v38, %v1978_v25  ;;  %v2049_v30 = vadd.f32 %v3970_v21, %v2011_v46  ;;  %v2077_v7 = vmax.f32 %v2045_v35, 0.0  ;;  %2105 = vst [vmem:[%s3998_s18 + $0x8] sm:$0xff] %v2073_v16 }
 0x242   : > { %v2050_v22 = vadd.f32 %v3968_v15, %v2012_v33  ;;  %v2078_v12 = vmax.f32 %v2046_v55, 0.0  ;;  %2106 = vst [vmem:[%s3998_s18 + $0x10] sm:$0xff] %v2074_v5  ;;  %v1982_v13 = vsub.f32 %v3805_v1, %v3862_v24  ;;  %v2051_v43 = vadd.f32 %v3970_v21, %v2013_v11 }
 0x243   : > { %v2017_v9 = vmul.f32 %v3895_v38, %v1980_v44  ;;  %v2079_v31 = vmax.f32 %v2047_v4, 0.0  ;;  %2107 = vst [vmem:[%s3998_s18 + $0x18] sm:$0xff] %v2075_v62  ;;  %v2052_v6 = vadd.f32 %v3968_v15, %v2014_v36  ;;  %v2080_v50 = vmax.f32 %v2048_v37, 0.0 }
 0x244   : > { %2108 = vst [vmem:[%s3998_s18 + $0x20] sm:$0xff] %v2076_v18  ;;  %v1984_v33 = vsub.f32 %v3811_v59, %v3862_v24  ;;  %v2019_v8 = vmul.f32 %v3895_v38, %v1982_v13  ;;  %v2053_v1 = vadd.f32 %v3970_v21, %v2015_v51  ;;  %v2081_v48 = vmax.f32 %v2049_v30, 0.0 }
 0x245   : > { %2109 = vst [vmem:[%s3998_s18 + $0x28] sm:$0xff] %v2077_v7  ;;  %v2054_v0 = vadd.f32 %v3968_v15, %v3909_v17  ;;  %v2082_v53 = vmax.f32 %v2050_v22, 0.0  ;;  %v2055_v34 = vadd.f32 %v3970_v21, %v2017_v9  ;;  %v2083_v57 = vmax.f32 %v2051_v43, 0.0 }
 0x246   : > { %2110 = vst [vmem:[%s3998_s18 + $0x30] sm:$0xff] %v2078_v12  ;;  %v2021_v36 = vmul.f32 %v3895_v38, %v1984_v33  ;;  %v2056_v59 = vadd.f32 %v3968_v15, %v3915_v3  ;;  %v2084_v24 = vmax.f32 %v2052_v6, 0.0  ;;  %v2057_v49 = vadd.f32 %v3970_v21, %v2019_v8 }
 0x247   : > { %2111 = vst [vmem:[%s3998_s18 + $0x38] sm:$0xff] %v2079_v31  ;;  %v2085_v23 = vmax.f32 %v2053_v1, 0.0  ;;  %v2058_v17 = vadd.f32 %v3968_v15, %v3917_v63  ;;  %v2086_v38 = vmax.f32 %v2054_v0, 0.0  ;;  %v2087_v10 = vmax.f32 %v2055_v34, 0.0 }
 0x248   : > { %2112 = vst [vmem:[%s3998_s18 + $0x40] sm:$0xff] %v2080_v50  ;;  %v2059_v14 = vadd.f32 %v3970_v21, %v2021_v36  ;;  %v2060_v3 = vadd.f32 %v3968_v15, %v3922_v39  ;;  %v2088_v52 = vmax.f32 %v2056_v59, 0.0  ;;  %v2061_v61 = vadd.f32 %v3970_v21, %v3925_v29 }
 0x249   : > { %2113 = vst [vmem:[%s3998_s18 + $0x48] sm:$0xff] %v2081_v48  ;;  %v2089_v41 = vmax.f32 %v2057_v49, 0.0  ;;  %v2062_v63 = vadd.f32 %v3968_v15, %v3930_v2  ;;  %v2090_v32 = vmax.f32 %v2058_v17, 0.0  ;;  %v2063_v40 = vadd.f32 %v3970_v21, %v3933_v27 }
 0x24a   : > { %2114 = vst [vmem:[%s3998_s18 + $0x50] sm:$0xff] %v2082_v53  ;;  %v2091_v42 = vmax.f32 %v2059_v14, 0.0  ;;  %v2064_v39 = vadd.f32 %v3968_v15, %v3938_v26  ;;  %v2092_v47 = vmax.f32 %v2060_v3, 0.0  ;;  %v2065_v29 = vadd.f32 %v3970_v21, %v3941_v28 }
 0x24b   : > { %2115 = vst [vmem:[%s3998_s18 + $0x58] sm:$0xff] %v2083_v57  ;;  %v2093_v46 = vmax.f32 %v2061_v61, 0.0  ;;  %v2066_v2 = vadd.f32 %v3968_v15, %v3946_v60  ;;  %v2094_v35 = vmax.f32 %v2062_v63, 0.0  ;;  %v2067_v27 = vadd.f32 %v3970_v21, %v3949_v56  ;;  %v2169_v62 = vld [vmem:[%s3998_s18 + $0x20] sm:$0xff] (%p3007_p6) }
 0x24c   : > { %2116 = vst [vmem:[%s3998_s18 + $0x60] sm:$0xff] %v2084_v24  ;;  %v2095_v26 = vmax.f32 %v2063_v40, 0.0  ;;  %v2068_v55 = vadd.f32 %v3968_v15, %v3954_v19  ;;  %v2096_v28 = vmax.f32 %v2064_v39, 0.0  ;;  %v2069_v58 = vadd.f32 %v3970_v21, %v3957_v45  ;;  %v2171_v37 = vld [vmem:[%s3998_s18 + $0x28] sm:$0xff] (%p3007_p6) }
 0x24d   : > { %2117 = vst [vmem:[%s3998_s18 + $0x68] sm:$0xff] %v2085_v23  ;;  %v2097_v60 = vmax.f32 %v2065_v29, 0.0  ;;  %v2070_v56 = vadd.f32 %v3968_v15, %v3962_v54  ;;  %v2098_v16 = vmax.f32 %v2066_v2, 0.0  ;;  %v2071_v19 = vadd.f32 %v3970_v21, %v3965_v20  ;;  %v2161_v54 = vld [vmem:[%s3998_s18] sm:$0xff] (%p3007_p6)  ;;  %v2163_v20 = vld [vmem:[%s3998_s18 + $0x8] sm:$0xff] (%p3007_p6)  ;;  %v2165_v15 = vld [vmem:[%s3998_s18 + $0x10] sm:$0xff] (%p3007_p6) }
 0x24e   : > { %2118 = vst [vmem:[%s3998_s18 + $0x70] sm:$0xff] %v2086_v38  ;;  %v2099_v5 = vmax.f32 %v2067_v27, 0.0  ;;  %v2100_v25 = vmax.f32 %v2068_v55, 0.0  ;;  %v2101_v45 = vmax.f32 %v2069_v58, 0.0  ;;  %v2167_v21 = vld [vmem:[%s3998_s18 + $0x18] sm:$0xff] (%p3007_p6)  ;;  %v2173_v18 = vld [vmem:[%s3998_s18 + $0x30] sm:$0xff] (%p3007_p6) }
 0x24f   : > { %2119 = vst [vmem:[%s3998_s18 + $0x78] sm:$0xff] %v2087_v10  ;;  %v2102_v11 = vmax.f32 %v2070_v56, 0.0  ;;  %v2103_v4 = vmax.f32 %v2071_v19, 0.0  ;;  %v2175_v44 = vld [vmem:[%s3998_s18 + $0x38] sm:$0xff] (%p3007_p6)  ;;  %v2177_v51 = vld [vmem:[%s3998_s18 + $0x40] sm:$0xff] (%p3007_p6) }
 0x250   : > { %2120 = vst [vmem:[%s3998_s18 + $0x80] sm:$0xff] %v2088_v52  ;;  %v2179_v30 = vld [vmem:[%s3998_s18 + $0x48] sm:$0xff] (%p3007_p6) }
 0x251   : > { %2121 = vst [vmem:[%s3998_s18 + $0x88] sm:$0xff] %v2089_v41  ;;  %v2181_v7 = vld [vmem:[%s3998_s18 + $0x50] sm:$0xff] (%p3007_p6) }
 0x252   : > { %2122 = vst [vmem:[%s3998_s18 + $0x90] sm:$0xff] %v2090_v32  ;;  %v2183_v22 = vld [vmem:[%s3998_s18 + $0x58] sm:$0xff] (%p3007_p6) }
 0x253   : > { %2123 = vst [vmem:[%s3998_s18 + $0x98] sm:$0xff] %v2091_v42  ;;  %v2185_v12 = vld [vmem:[%s3998_s18 + $0x60] sm:$0xff] (%p3007_p6) }
 0x254   : > { %2124 = vst [vmem:[%s3998_s18 + $0xa0] sm:$0xff] %v2092_v47  ;;  %v2187_v13 = vld [vmem:[%s3998_s18 + $0x68] sm:$0xff] (%p3007_p6) }
 0x255   : > { %2125 = vst [vmem:[%s3998_s18 + $0xa8] sm:$0xff] %v2093_v46  ;;  %v2189_v9 = vld [vmem:[%s3998_s18 + $0x70] sm:$0xff] (%p3007_p6) }
 0x256   : > { %2126 = vst [vmem:[%s3998_s18 + $0xb0] sm:$0xff] %v2094_v35  ;;  %v2191_v43 = vld [vmem:[%s3998_s18 + $0x78] sm:$0xff] (%p3007_p6) }
 0x257   : > { %2127 = vst [vmem:[%s3998_s18 + $0xb8] sm:$0xff] %v2095_v26  ;;  %v2193_v31 = vld [vmem:[%s3998_s18 + $0x80] sm:$0xff] (%p3007_p6) }
 0x258   : > { %2128 = vst [vmem:[%s3998_s18 + $0xc0] sm:$0xff] %v2096_v28  ;;  %v2195_v6 = vld [vmem:[%s3998_s18 + $0x88] sm:$0xff] (%p3007_p6) }
 0x259   : > { %2129 = vst [vmem:[%s3998_s18 + $0xc8] sm:$0xff] %v2097_v60  ;;  %v2197_v50 = vld [vmem:[%s3998_s18 + $0x90] sm:$0xff] (%p3007_p6) }
 0x25a   : > { %2130 = vst [vmem:[%s3998_s18 + $0xd0] sm:$0xff] %v2098_v16  ;;  %v2199_v33 = vld [vmem:[%s3998_s18 + $0x98] sm:$0xff] (%p3007_p6) }
 0x25b   : > { %2131 = vst [vmem:[%s3998_s18 + $0xd8] sm:$0xff] %v2099_v5  ;;  %2142 = sbr.rel (!%p3007_p6) target bundleno = 640 (0x280), region = 90  ;;  %v2201_v8 = vld [vmem:[%s3998_s18 + $0xa0] sm:$0xff] (%p3007_p6) }
 0x25c   : > { %2132 = vst [vmem:[%s3998_s18 + $0xe0] sm:$0xff] %v2100_v25  ;;  %v2203_v1 = vld [vmem:[%s3998_s18 + $0xa8] sm:$0xff] (%p3007_p6) }
 0x25d   : > { %2133 = vst [vmem:[%s3998_s18 + $0xe8] sm:$0xff] %v2101_v45  ;;  %v2205_v48 = vld [vmem:[%s3998_s18 + $0xb0] sm:$0xff] (%p3007_p6) }
 0x25e   : > { %2134 = vst [vmem:[%s3998_s18 + $0xf0] sm:$0xff] %v2102_v11  ;;  %v2207_v0 = vld [vmem:[%s3998_s18 + $0xb8] sm:$0xff] (%p3007_p6) }
 0x25f   : > { %2135 = vst [vmem:[%s3998_s18 + $0xf8] sm:$0xff] %v2103_v4  ;;  %v2209_v53 = vld [vmem:[%s3998_s18 + $0xc0] sm:$0xff] (%p3007_p6) }
 0x260   : > { %2162 = vst [vmem:[%s4088_s17] sm:$0xff] %v2161_v54  ;;  %v2211_v36 = vld [vmem:[%s3998_s18 + $0xc8] sm:$0xff] }
 0x261   : > { %2164 = vst [vmem:[%s4088_s17 + $0x8] sm:$0xff] %v2163_v20  ;;  %v2213_v34 = vld [vmem:[%s3998_s18 + $0xd0] sm:$0xff] }
 0x262   : > { %2166 = vst [vmem:[%s4088_s17 + $0x20] sm:$0xff] %v2165_v15  ;;  %v2215_v57 = vld [vmem:[%s3998_s18 + $0xd8] sm:$0xff] }
 0x263   : > { %2168 = vst [vmem:[%s4088_s17 + $0x28] sm:$0xff] %v2167_v21  ;;  %v2217_v59 = vld [vmem:[%s3998_s18 + $0xe0] sm:$0xff] }
 0x264   : > { %2170 = vst [vmem:[%s4088_s17 + $0x40] sm:$0xff] %v2169_v62  ;;  %v2219_v24 = vld [vmem:[%s3998_s18 + $0xe8] sm:$0xff] }
 0x265   : > { %2172 = vst [vmem:[%s4088_s17 + $0x48] sm:$0xff] %v2171_v37  ;;  %v2221_v49 = vld [vmem:[%s3998_s18 + $0xf0] sm:$0xff] }
 0x266   : > { %2174 = vst [vmem:[%s4088_s17 + $0x60] sm:$0xff] %v2173_v18  ;;  %v2223_v23 = vld [vmem:[%s3998_s18 + $0xf8] sm:$0xff] }
 0x267   : > { %2176 = vst [vmem:[%s4088_s17 + $0x68] sm:$0xff] %v2175_v44 }
 0x268   : > { %2178 = vst [vmem:[%s4088_s17 + $0x80] sm:$0xff] %v2177_v51 }
 0x269   : > { %2180 = vst [vmem:[%s4088_s17 + $0x88] sm:$0xff] %v2179_v30 }
 0x26a   : > { %2182 = vst [vmem:[%s4088_s17 + $0xa0] sm:$0xff] %v2181_v7 }
 0x26b   : > { %2184 = vst [vmem:[%s4088_s17 + $0xa8] sm:$0xff] %v2183_v22 }
 0x26c   : > { %2186 = vst [vmem:[%s4088_s17 + $0xc0] sm:$0xff] %v2185_v12 }
 0x26d   : > { %2188 = vst [vmem:[%s4088_s17 + $0xc8] sm:$0xff] %v2187_v13 }
 0x26e   : > { %2190 = vst [vmem:[%s4088_s17 + $0xe0] sm:$0xff] %v2189_v9 }
 0x26f   : > { %2192 = vst [vmem:[%s4088_s17 + $0xe8] sm:$0xff] %v2191_v43 }
 0x270   : > { %2194 = vst [vmem:[%s4088_s17 + $0x100] sm:$0xff] %v2193_v31 }
 0x271   : > { %2196 = vst [vmem:[%s4088_s17 + $0x108] sm:$0xff] %v2195_v6 }
 0x272   : > { %2198 = vst [vmem:[%s4088_s17 + $0x120] sm:$0xff] %v2197_v50 }
 0x273   : > { %2200 = vst [vmem:[%s4088_s17 + $0x128] sm:$0xff] %v2199_v33 }
 0x274   : > { %2202 = vst [vmem:[%s4088_s17 + $0x140] sm:$0xff] %v2201_v8 }
 0x275   : > { %2204 = vst [vmem:[%s4088_s17 + $0x148] sm:$0xff] %v2203_v1 }
 0x276   : > { %2206 = vst [vmem:[%s4088_s17 + $0x160] sm:$0xff] %v2205_v48 }
 0x277   : > { %2208 = vst [vmem:[%s4088_s17 + $0x168] sm:$0xff] %v2207_v0 }
 0x278   : > { %2210 = vst [vmem:[%s4088_s17 + $0x180] sm:$0xff] %v2209_v53 }
 0x279   : > { %2212 = vst [vmem:[%s4088_s17 + $0x188] sm:$0xff] %v2211_v36 }
 0x27a   : > { %2214 = vst [vmem:[%s4088_s17 + $0x1a0] sm:$0xff] %v2213_v34 }
 0x27b   : > { %2216 = vst [vmem:[%s4088_s17 + $0x1a8] sm:$0xff] %v2215_v57 }
 0x27c   : > { %2218 = vst [vmem:[%s4088_s17 + $0x1c0] sm:$0xff] %v2217_v59 }
 0x27d   : > { %2220 = vst [vmem:[%s4088_s17 + $0x1c8] sm:$0xff] %v2219_v24 }
 0x27e   : > { %2222 = vst [vmem:[%s4088_s17 + $0x1e0] sm:$0xff] %v2221_v49 }
 0x27f   : > { %2224 = vst [vmem:[%s4088_s17 + $0x1e8] sm:$0xff] %v2223_v23 }
 0x280 PF: > { %s15_s22 = sadd.s32 1, %s2939_s22   ;;  %s4190_s18 = smov %s2927_s19 }
 0x281   : > { %p12_p12 = scmp.ge.s32.totalorder %s15_s22, 4   ;;  %s4191_s19 = smov %s3012_s28 }
 0x282   : > { %s4192_s20 = smov %s2935_s21  ;;  %s4193_s21 = smov %s4195_s23 }
 0x283   :  { %14 = sbr.rel (!%p12_p12) target bundleno = 3 (0x3), region = 156 }

// kernel: encoder_block_forward.8
= control target key start
LH: loop header
LB: loop body
LE: loop exit
PB: predicated region body
PF: predicated region fallthrough
CT: control target
= control target key end

     0   :  { %s1770_s18 = smov 0   ;;  %s1772_s19 = smov 0   ;;  %s2066_s0 = inlined_call_operand.vmem [shape: bf16[9,32,512], index: 0, kind: input, shape index: {}]   ;;  %s2067_s1 = inlined_call_operand.vmem [shape: bf16[9,512,256], index: 1, kind: input, shape index: {}]   ;;  %s2068_s2 = inlined_call_operand.vmem [shape: f32[1,256], index: 2, kind: input, shape index: {}]   ;;  %s2069_s3 = inlined_call_operand.vmem [shape: f32[1,256], index: 3, kind: input, shape index: {}]   ;;  %s2070_s4 = inlined_call_operand.vmem [shape: f32[1,256], index: 4, kind: input, shape index: {}]   ;;  %s2071_s5 = inlined_call_operand.vmem [shape: f32[32,256], index: 5, kind: output, shape index: {}]  }
   0x1   :  { %s1774_s20 = smov 0  }
   0x2 LB: > { %s27_s21 = sadd.s32 1, %s1732_s19  ;;  %p1309_p0 = scmp.ge.s32.totalorder %s1736_s20, 1  ;;  %s1736_s20 = sphi %s1774_s20, %s15_s20   ;;  %s1732_s19 = sphi %s1772_s19, %s2073_s19   ;;  %s1728_s18 = sphi %s1770_s18, %s2072_s18  }
   0x3   : > { %p28_p1 = scmp.ge.s32.totalorder %s27_s21, 9  ;;  %p263_p2 = scmp.lt.s32.totalorder %s1736_s20, 10 }
   0x5   : > { %s2075_s21 = smov (%p28_p1, %s27_s21), 0  ;;  %p264_p3 = pnand %p1309_p0, %p263_p2 }
   0x6   : > { %p323_p4 = scmp.lt.s32.totalorder (!%p264_p3), %s1728_s18, 8  ;;  %p1314_p5 = scmp.ne.s32.totalorder (!%p264_p3), %s1728_s18, 0 }
   0x7   : > { %267 = sbr.rel (%p264_p3) target bundleno = 331 (0x14b), region = 40 }
   0xc   : > { %s324_s22 = scalar_select %p323_p4, %s1728_s18, 8 }
   0xd   : > { %373 = sbr.rel (%p1314_p5) target bundleno = 27 (0x1b), region = 44 }
   0xe   : > { %s1608_s23 = sshll.u32 %s324_s22, 6  ;;  %s1609_s24 = sshll.u32 %s324_s22, 9 }
   0xf   : > { %s1795_s27 = scalar_lea.vmem %s2066_s0, %s1608_s23  ;;  %s1800_s30 = scalar_lea.vmem %s2067_s1, %s1609_s24 }
  0x12   : > { %v1738_v0 = vmov 0.0  }
  0x13   : > { %374 = vst [vmem:[#allocation2 + $0x30] sm:$0xff] %v1738_v0 }
  0x14   : > { %375 = vst [vmem:[#allocation2] sm:$0xff] %v1738_v0 }
  0x15   : > { %376 = vst [vmem:[#allocation2 + $0x18] sm:$0xff] %v1738_v0 }
  0x16   : > { %377 = vst [vmem:[#allocation2 + $0x10] sm:$0xff] %v1738_v0 }
  0x17   : > { %378 = vst [vmem:[#allocation2 + $0x8] sm:$0xff] %v1738_v0 }
  0x18   : > { %379 = vst [vmem:[#allocation2 + $0x20] sm:$0xff] %v1738_v0 }
  0x19   : > { %380 = vst [vmem:[#allocation2 + $0x28] sm:$0xff] %v1738_v0 }
  0x1a   : > { %381 = vst [vmem:[#allocation2 + $0x38] sm:$0xff] %v1738_v0 }
  0x1b PF: > { %v1405_v1 = vld [vmem:[%s1800_s30 + $0x70] sm:$0xf]  ;;  %v1633_v2 = vld [vmem:[%s1800_s30 + $0x74] sm:$0xf0]  ;;  %v1397_v12 = vld [vmem:[%s1800_s30 + $0x60] sm:$0xf] }
  0x1c   : > { %v1469_v3 = vld [vmem:[%s1800_s30 + $0xf0] sm:$0xf]  ;;  %v1406_v4 = vor.u32 %v1633_v2, %v1405_v1  ;;  %v1649_v5 = vld [vmem:[%s1800_s30 + $0xf4] sm:$0xf0]  ;;  %v1631_v14 = vld [vmem:[%s1800_s30 + $0x64] sm:$0xf0] }
  0x1d   : > { %v1533_v6 = vld [vmem:[%s1800_s30 + $0x170] sm:$0xf]  ;;  %v1665_v7 = vld [vmem:[%s1800_s30 + $0x174] sm:$0xf0]  ;;  %v1470_v8 = vor.u32 %v1649_v5, %v1469_v3  ;;  %v1461_v15 = vld [vmem:[%s1800_s30 + $0xe0] sm:$0xf]  ;;  %v1398_v17 = vor.u32 %v1631_v14, %v1397_v12 }
  0x1e   : > { %v1534_v9 = vor.u32 %v1665_v7, %v1533_v6  ;;  %v1597_v10 = vld [vmem:[%s1800_s30 + $0x1f0] sm:$0xf]  ;;  %v1681_v11 = vld [vmem:[%s1800_s30 + $0x1f4] sm:$0xf0]  ;;  %822 = vmatpush.bf16.msra.mxu0 %v1406_v4  ;;  %v1647_v16 = vld [vmem:[%s1800_s30 + $0xe4] sm:$0xf0] }
  0x1f   : > { %v1598_v13 = vor.u32 %v1681_v11, %v1597_v10  ;;  %841 = vmatpush.bf16.msra.mxu1 %v1470_v8  ;;  %v1462_v18 = vor.u32 %v1647_v16, %v1461_v15  ;;  %v1525_v19 = vld [vmem:[%s1800_s30 + $0x160] sm:$0xf]  ;;  %v1663_v20 = vld [vmem:[%s1800_s30 + $0x164] sm:$0xf0]  ;;  %v1389_v24 = vld [vmem:[%s1800_s30 + $0x50] sm:$0xf] }
  0x20   : > { %860 = vmatpush.bf16.msra.mxu2 %v1534_v9  ;;  %v1589_v21 = vld [vmem:[%s1800_s30 + $0x1e0] sm:$0xf]  ;;  %v1526_v22 = vor.u32 %v1663_v20, %v1525_v19  ;;  %v1679_v23 = vld [vmem:[%s1800_s30 + $0x1e4] sm:$0xf0]  ;;  %v1629_v25 = vld [vmem:[%s1800_s30 + $0x54] sm:$0xf0] }
  0x21   : > { %879 = vmatpush.bf16.msra.mxu3 %v1598_v13  ;;  %v1590_v26 = vor.u32 %v1679_v23, %v1589_v21  ;;  %v1453_v27 = vld [vmem:[%s1800_s30 + $0xd0] sm:$0xf]  ;;  %v1645_v28 = vld [vmem:[%s1800_s30 + $0xd4] sm:$0xf0]  ;;  %v1390_v30 = vor.u32 %v1629_v25, %v1389_v24  ;;  %v1381_v36 = vld [vmem:[%s1800_s30 + $0x40] sm:$0xf] }
  0x22   : > { %v1517_v29 = vld [vmem:[%s1800_s30 + $0x150] sm:$0xf]  ;;  %823 = vmatpush.bf16.msra.mxu0 %v1398_v17  ;;  %v1661_v31 = vld [vmem:[%s1800_s30 + $0x154] sm:$0xf0]  ;;  %v1454_v34 = vor.u32 %v1645_v28, %v1453_v27  ;;  %v1627_v37 = vld [vmem:[%s1800_s30 + $0x44] sm:$0xf0] }
  0x23   : > { %v1581_v32 = vld [vmem:[%s1800_s30 + $0x1d0] sm:$0xf]  ;;  %v1677_v33 = vld [vmem:[%s1800_s30 + $0x1d4] sm:$0xf0]  ;;  %842 = vmatpush.bf16.msra.mxu1 %v1462_v18  ;;  %v1518_v35 = vor.u32 %v1661_v31, %v1517_v29  ;;  %v1445_v38 = vld [vmem:[%s1800_s30 + $0xc0] sm:$0xf]  ;;  %v1382_v45 = vor.u32 %v1627_v37, %v1381_v36 }
  0x24   : > { %861 = vmatpush.bf16.msra.mxu2 %v1526_v22  ;;  %v1582_v39 = vor.u32 %v1677_v33, %v1581_v32  ;;  %v1643_v40 = vld [vmem:[%s1800_s30 + $0xc4] sm:$0xf0]  ;;  %v1509_v41 = vld [vmem:[%s1800_s30 + $0x140] sm:$0xf]  ;;  %v1373_v48 = vld [vmem:[%s1800_s30 + $0x30] sm:$0xf] }
  0x25   : > { %880 = vmatpush.bf16.msra.mxu3 %v1590_v26  ;;  %v1659_v42 = vld [vmem:[%s1800_s30 + $0x144] sm:$0xf0]  ;;  %v1573_v43 = vld [vmem:[%s1800_s30 + $0x1c0] sm:$0xf]  ;;  %v1446_v46 = vor.u32 %v1643_v40, %v1445_v38  ;;  %v1625_v49 = vld [vmem:[%s1800_s30 + $0x34] sm:$0xf0] }
  0x26   : > { %v1675_v44 = vld [vmem:[%s1800_s30 + $0x1c4] sm:$0xf0]  ;;  %824 = vmatpush.bf16.msra.mxu0 %v1390_v30  ;;  %v1510_v47 = vor.u32 %v1659_v42, %v1509_v41  ;;  %v1437_v50 = vld [vmem:[%s1800_s30 + $0xb0] sm:$0xf]  ;;  %v1641_v52 = vld [vmem:[%s1800_s30 + $0xb4] sm:$0xf0]  ;;  %v1374_v57 = vor.u32 %v1625_v49, %v1373_v48 }
  0x27   : > { %843 = vmatpush.bf16.msra.mxu1 %v1454_v34  ;;  %v1574_v51 = vor.u32 %v1675_v44, %v1573_v43  ;;  %v1501_v53 = vld [vmem:[%s1800_s30 + $0x130] sm:$0xf]  ;;  %v1657_v54 = vld [vmem:[%s1800_s30 + $0x134] sm:$0xf0]  ;;  %v1438_v58 = vor.u32 %v1641_v52, %v1437_v50  ;;  %v1365_v60 = vld [vmem:[%s1800_s30 + $0x20] sm:$0xf] }
  0x28   : > { %862 = vmatpush.bf16.msra.mxu2 %v1518_v35  ;;  %v1565_v55 = vld [vmem:[%s1800_s30 + $0x1b0] sm:$0xf]  ;;  %v1673_v56 = vld [vmem:[%s1800_s30 + $0x1b4] sm:$0xf0]  ;;  %v1502_v59 = vor.u32 %v1657_v54, %v1501_v53  ;;  %v1623_v61 = vld [vmem:[%s1800_s30 + $0x24] sm:$0xf0] }
  0x29   : > { %881 = vmatpush.bf16.msra.mxu3 %v1582_v39  ;;  %v1429_v62 = vld [vmem:[%s1800_s30 + $0xa0] sm:$0xf]  ;;  %v1566_v63 = vor.u32 %v1673_v56, %v1565_v55  ;;  %v1639_v0 = vld [vmem:[%s1800_s30 + $0xa4] sm:$0xf0]  ;;  %v1366_v5 = vor.u32 %v1623_v61, %v1365_v60  ;;  %v1357_v8 = vld [vmem:[%s1800_s30 + $0x10] sm:$0xf] }
  0x2a   : > { %825 = vmatpush.bf16.msra.mxu0 %v1382_v45  ;;  %v1493_v1 = vld [vmem:[%s1800_s30 + $0x120] sm:$0xf]  ;;  %v1655_v2 = vld [vmem:[%s1800_s30 + $0x124] sm:$0xf0]  ;;  %v1430_v6 = vor.u32 %v1639_v0, %v1429_v62  ;;  %v1621_v9 = vld [vmem:[%s1800_s30 + $0x14] sm:$0xf0] }
  0x2b   : > { %844 = vmatpush.bf16.msra.mxu1 %v1446_v46  ;;  %v1557_v3 = vld [vmem:[%s1800_s30 + $0x1a0] sm:$0xf]  ;;  %v1671_v4 = vld [vmem:[%s1800_s30 + $0x1a4] sm:$0xf0]  ;;  %v1494_v7 = vor.u32 %v1655_v2, %v1493_v1  ;;  %v1421_v10 = vld [vmem:[%s1800_s30 + $0x90] sm:$0xf]  ;;  %v1358_v18 = vor.u32 %v1621_v9, %v1357_v8 }
  0x2c   : > { %863 = vmatpush.bf16.msra.mxu2 %v1510_v47  ;;  %v1558_v11 = vor.u32 %v1671_v4, %v1557_v3  ;;  %v1637_v12 = vld [vmem:[%s1800_s30 + $0x94] sm:$0xf0]  ;;  %v1485_v13 = vld [vmem:[%s1800_s30 + $0x110] sm:$0xf]  ;;  %v1349_v17 = vld [vmem:[%s1800_s30] sm:$0xf] }
  0x2d   : > { %882 = vmatpush.bf16.msra.mxu3 %v1574_v51  ;;  %v1653_v14 = vld [vmem:[%s1800_s30 + $0x114] sm:$0xf0]  ;;  %v1549_v15 = vld [vmem:[%s1800_s30 + $0x190] sm:$0xf]  ;;  %v1619_v19 = vld [vmem:[%s1800_s30 + $0x4] sm:$0xf0]  ;;  %v1422_v22 = vor.u32 %v1637_v12, %v1421_v10 }
  0x2e   : > { %826 = vmatpush.bf16.msra.mxu0 %v1374_v57  ;;  %v1669_v16 = vld [vmem:[%s1800_s30 + $0x194] sm:$0xf0]  ;;  %v1413_v20 = vld [vmem:[%s1800_s30 + $0x80] sm:$0xf]  ;;  %v1635_v21 = vld [vmem:[%s1800_s30 + $0x84] sm:$0xf0]  ;;  %v1486_v23 = vor.u32 %v1653_v14, %v1485_v13  ;;  %v1350_v35 = vor.u32 %v1619_v19, %v1349_v17 }
  0x2f   : > { %845 = vmatpush.bf16.msra.mxu1 %v1438_v58  ;;  %v1477_v24 = vld [vmem:[%s1800_s30 + $0x100] sm:$0xf]  ;;  %v1651_v25 = vld [vmem:[%s1800_s30 + $0x104] sm:$0xf0]  ;;  %v1550_v27 = vor.u32 %v1669_v16, %v1549_v15  ;;  %v1612_v30 = vld [vmem:[%s1795_s27 + $0xc] sm:$0xf0]  ;;  %v1414_v39 = vor.u32 %v1635_v21, %v1413_v20 }
  0x30   : > { %864 = vmatpush.bf16.msra.mxu2 %v1502_v59  ;;  %v1541_v26 = vld [vmem:[%s1800_s30 + $0x180] sm:$0xf]  ;;  %v1667_v28 = vld [vmem:[%s1800_s30 + $0x184] sm:$0xf0]  ;;  %v1610_v31 = vld [vmem:[%s1795_s27 + $0x4] sm:$0xf]  ;;  %v1478_v40 = vor.u32 %v1651_v25, %v1477_v24 }
  0x31   : > { %883 = vmatpush.bf16.msra.mxu3 %v1566_v63  ;;  %v1317_v29 = vld [vmem:[%s1795_s27] sm:$0xf]  ;;  %v1319_v32 = vld [vmem:[%s1795_s27 + $0x10] sm:$0xf0]  ;;  %v1535_v34 = vld [vmem:[%s1800_s30 + $0x178] sm:$0xf0]  ;;  %v1542_v44 = vor.u32 %v1667_v28, %v1541_v26 }
  0x32   : > { %827 = vmatpush.bf16.msra.mxu0 %v1366_v5  ;;  %v1664_v33 = vld [vmem:[%s1800_s30 + $0x174] sm:$0xf]  ;;  %v1325_v36 = vld [vmem:[%s1795_s27 + $0x8] sm:$0xf]  ;;  %v1471_v38 = vld [vmem:[%s1800_s30 + $0xf8] sm:$0xf0]  ;;  %v1882_v49 = vor.u32 %v1612_v30, %v1317_v29  ;;  %v1887_v54 = vor.u32 %v1610_v31, %v1319_v32 }
  0x33   : > { %846 = vmatpush.bf16.msra.mxu1 %v1430_v6  ;;  %v1648_v37 = vld [vmem:[%s1800_s30 + $0xf4] sm:$0xf]  ;;  %v1613_v41 = vld [vmem:[%s1795_s27 + $0x14] sm:$0xf0]  ;;  %v1611_v42 = vld [vmem:[%s1795_s27 + $0xc] sm:$0xf]  ;;  %v1538_v45 = vor.u32 %v1664_v33, %v1535_v34 }
  0x34   : > { %865 = vmatpush.bf16.msra.mxu2 %v1494_v7  ;;  %v1327_v43 = vld [vmem:[%s1795_s27 + $0x18] sm:$0xf0]  ;;  %v1632_v46 = vld [vmem:[%s1800_s30 + $0x74] sm:$0xf]  ;;  %v1474_v50 = vor.u32 %v1648_v37, %v1471_v38  ;;  %v1662_v52 = vld [vmem:[%s1800_s30 + $0x164] sm:$0xf]  ;;  %v1889_v55 = vor.u32 %v1613_v41, %v1325_v36 }
  0x35   : > { %884 = vmatpush.bf16.msra.mxu3 %v1558_v11  ;;  %v1407_v47 = vld [vmem:[%s1800_s30 + $0x78] sm:$0xf0]  ;;  %v1680_v48 = vld [vmem:[%s1800_s30 + $0x1f4] sm:$0xf]  ;;  %v1527_v53 = vld [vmem:[%s1800_s30 + $0x168] sm:$0xf0]  ;;  %v1893_v58 = vor.u32 %v1611_v42, %v1327_v43 }
  0x36   : > { %828 = vmatpush.bf16.msra.mxu0 %v1358_v18  ;;  %v1599_v51 = vld [vmem:[%s1800_s30 + $0x1f8] sm:$0xf0]  ;;  %v1646_v56 = vld [vmem:[%s1800_s30 + $0xe4] sm:$0xf]  ;;  %v1463_v57 = vld [vmem:[%s1800_s30 + $0xe8] sm:$0xf0]  ;;  %v1410_v59 = vor.u32 %v1632_v46, %v1407_v47  ;;  %v1530_v61 = vor.u32 %v1662_v52, %v1527_v53 }
  0x37   : > { %847 = vmatpush.bf16.msra.mxu1 %v1422_v22  ;;  %v1602_v60 = vor.u32 %v1680_v48, %v1599_v51  ;;  %v1630_v62 = vld [vmem:[%s1800_s30 + $0x64] sm:$0xf]  ;;  %v1399_v63 = vld [vmem:[%s1800_s30 + $0x68] sm:$0xf0]  ;;  %v1466_v1 = vor.u32 %v1646_v56, %v1463_v57  ;;  %v1660_v3 = vld [vmem:[%s1800_s30 + $0x154] sm:$0xf] }
  0x38   : > { %866 = vmatpush.bf16.msra.mxu2 %v1486_v23  ;;  %v1678_v0 = vld [vmem:[%s1800_s30 + $0x1e4] sm:$0xf]  ;;  %v1591_v2 = vld [vmem:[%s1800_s30 + $0x1e8] sm:$0xf0]  ;;  %v1519_v4 = vld [vmem:[%s1800_s30 + $0x158] sm:$0xf0]  ;;  %v1402_v7 = vor.u32 %v1630_v62, %v1399_v63 }
  0x39   : > { %885 = vmatpush.bf16.msra.mxu3 %v1550_v27  ;;  %v1644_v5 = vld [vmem:[%s1800_s30 + $0xd4] sm:$0xf]  ;;  %v1455_v6 = vld [vmem:[%s1800_s30 + $0xd8] sm:$0xf0]  ;;  %v1594_v8 = vor.u32 %v1678_v0, %v1591_v2  ;;  %v1522_v9 = vor.u32 %v1660_v3, %v1519_v4  ;;  %v1658_v15 = vld [vmem:[%s1800_s30 + $0x144] sm:$0xf] }
  0x3a   : > { %829 = vmatpush.bf16.msra.mxu0 %v1350_v35  ;;  %v1628_v10 = vld [vmem:[%s1800_s30 + $0x54] sm:$0xf]  ;;  %v1391_v11 = vld [vmem:[%s1800_s30 + $0x58] sm:$0xf0]  ;;  %v1458_v13 = vor.u32 %v1644_v5, %v1455_v6  ;;  %v1511_v16 = vld [vmem:[%s1800_s30 + $0x148] sm:$0xf0] }
  0x3b   : > { %848 = vmatpush.bf16.msra.mxu1 %v1414_v39  ;;  %v1676_v12 = vld [vmem:[%s1800_s30 + $0x1d4] sm:$0xf]  ;;  %v1583_v14 = vld [vmem:[%s1800_s30 + $0x1d8] sm:$0xf0]  ;;  %v1642_v17 = vld [vmem:[%s1800_s30 + $0xc4] sm:$0xf]  ;;  %v1394_v19 = vor.u32 %v1628_v10, %v1391_v11  ;;  %v1514_v24 = vor.u32 %v1658_v15, %v1511_v16 }
  0x3c   : > { %867 = vmatpush.bf16.msra.mxu2 %v1478_v40  ;;  %v1447_v18 = vld [vmem:[%s1800_s30 + $0xc8] sm:$0xf0]  ;;  %v1626_v20 = vld [vmem:[%s1800_s30 + $0x44] sm:$0xf]  ;;  %v1586_v23 = vor.u32 %v1676_v12, %v1583_v14  ;;  %v1333_v26 = vld [vmem:[%s1795_s27 + $0x20] sm:$0xf] }
  0x3d   : > { %886 = vmatpush.bf16.msra.mxu3 %v1542_v44  ;;  %830 = vmatmul.bf16.vlgmr.msra.gmra.mxu0 %v1882_v49  ;;  %v1383_v21 = vld [vmem:[%s1800_s30 + $0x48] sm:$0xf0]  ;;  %v1674_v22 = vld [vmem:[%s1800_s30 + $0x1c4] sm:$0xf]  ;;  %v1616_v27 = vld [vmem:[%s1795_s27 + $0x2c] sm:$0xf0]  ;;  %v1450_v28 = vor.u32 %v1642_v17, %v1447_v18 }
  0x3e   : > { %849 = vmatmul.bf16.vlgmr.msra.gmra.mxu1 %v1887_v54  ;;  %898 = vmatpush.bf16.msrb.mxu0 %v1410_v59  ;;  %v1575_v25 = vld [vmem:[%s1800_s30 + $0x1c8] sm:$0xf0]  ;;  %v1614_v29 = vld [vmem:[%s1795_s27 + $0x24] sm:$0xf]  ;;  %v1335_v30 = vld [vmem:[%s1795_s27 + $0x30] sm:$0xf0]  ;;  %v1386_v36 = vor.u32 %v1626_v20, %v1383_v21 }
  0x3f   : > { %917 = vmatpush.bf16.msrb.mxu1 %v1474_v50  ;;  %868 = vmatmul.bf16.vlgmr.msra.gmra.mxu2 %v1889_v55  ;;  %v1656_v31 = vld [vmem:[%s1800_s30 + $0x134] sm:$0xf]  ;;  %v1503_v32 = vld [vmem:[%s1800_s30 + $0x138] sm:$0xf0]  ;;  %v1341_v33 = vld [vmem:[%s1795_s27 + $0x28] sm:$0xf]  ;;  %v1578_v40 = vor.u32 %v1674_v22, %v1575_v25  ;;  %v1939_v51 = vor.u32 %v1614_v29, %v1335_v30 }
  0x40   : > { %936 = vmatpush.bf16.msrb.mxu2 %v1538_v45  ;;  %887 = vmatmul.bf16.vlgmr.msra.gmra.mxu3 %v1893_v58  ;;  %v1640_v34 = vld [vmem:[%s1800_s30 + $0xb4] sm:$0xf]  ;;  %v1439_v35 = vld [vmem:[%s1800_s30 + $0xb8] sm:$0xf0]  ;;  %v1617_v37 = vld [vmem:[%s1795_s27 + $0x34] sm:$0xf0]  ;;  %v1506_v41 = vor.u32 %v1656_v31, %v1503_v32  ;;  %v1934_v45 = vor.u32 %v1616_v27, %v1333_v26 }
  0x41   : > { %955 = vmatpush.bf16.msrb.mxu3 %v1602_v60  ;;  %v1615_v38 = vld [vmem:[%s1795_s27 + $0x2c] sm:$0xf]  ;;  %v1343_v39 = vld [vmem:[%s1795_s27 + $0x38] sm:$0xf0]  ;;  %v1624_v42 = vld [vmem:[%s1800_s30 + $0x34] sm:$0xf]  ;;  %v1442_v46 = vor.u32 %v1640_v34, %v1439_v35  ;;  %v1941_v52 = vor.u32 %v1617_v37, %v1341_v33 }
  0x42   : > { %899 = vmatpush.bf16.msrb.mxu0 %v1402_v7  ;;  %v1375_v43 = vld [vmem:[%s1800_s30 + $0x38] sm:$0xf0]  ;;  %v1672_v44 = vld [vmem:[%s1800_s30 + $0x1b4] sm:$0xf]  ;;  %v1654_v48 = vld [vmem:[%s1800_s30 + $0x124] sm:$0xf]  ;;  %v1346_v57 = vor.u32 %v1615_v38, %v1343_v39 }
  0x43   : > { %918 = vmatpush.bf16.msrb.mxu1 %v1466_v1  ;;  %v1567_v47 = vld [vmem:[%s1800_s30 + $0x1b8] sm:$0xf0]  ;;  %v1495_v50 = vld [vmem:[%s1800_s30 + $0x128] sm:$0xf0]  ;;  %v1638_v53 = vld [vmem:[%s1800_s30 + $0xa4] sm:$0xf]  ;;  %v1378_v59 = vor.u32 %v1624_v42, %v1375_v43 }
  0x44   : > { %937 = vmatpush.bf16.msrb.mxu2 %v1530_v61  ;;  %v1431_v56 = vld [vmem:[%s1800_s30 + $0xa8] sm:$0xf0]  ;;  %v1570_v60 = vor.u32 %v1672_v44, %v1567_v47  ;;  %v1498_v61 = vor.u32 %v1654_v48, %v1495_v50  ;;  %v1622_v62 = vld [vmem:[%s1800_s30 + $0x24] sm:$0xf]  ;;  %v1652_v3 = vld [vmem:[%s1800_s30 + $0x114] sm:$0xf] }
  0x45   : > { %956 = vmatpush.bf16.msrb.mxu3 %v1594_v8  ;;  %v1367_v63 = vld [vmem:[%s1800_s30 + $0x28] sm:$0xf0]  ;;  %v1670_v0 = vld [vmem:[%s1800_s30 + $0x1a4] sm:$0xf]  ;;  %v1434_v1 = vor.u32 %v1638_v53, %v1431_v56  ;;  %v1487_v4 = vld [vmem:[%s1800_s30 + $0x118] sm:$0xf0] }
  0x46   : > { %900 = vmatpush.bf16.msrb.mxu0 %v1394_v19  ;;  %v1559_v2 = vld [vmem:[%s1800_s30 + $0x1a8] sm:$0xf0]  ;;  %v1636_v5 = vld [vmem:[%s1800_s30 + $0x94] sm:$0xf]  ;;  %v1423_v6 = vld [vmem:[%s1800_s30 + $0x98] sm:$0xf0]  ;;  %v1370_v7 = vor.u32 %v1622_v62, %v1367_v63 }
  0x47   : > { %919 = vmatpush.bf16.msrb.mxu1 %v1458_v13  ;;  %v1562_v8 = vor.u32 %v1670_v0, %v1559_v2  ;;  %v1620_v10 = vld [vmem:[%s1800_s30 + $0x14] sm:$0xf]  ;;  %v1359_v11 = vld [vmem:[%s1800_s30 + $0x18] sm:$0xf0]  ;;  %v1426_v13 = vor.u32 %v1636_v5, %v1423_v6  ;;  %v1650_v15 = vld [vmem:[%s1800_s30 + $0x104] sm:$0xf] }
  0x48   : > { %938 = vmatpush.bf16.msrb.mxu2 %v1522_v9  ;;  %v1490_v9 = vor.u32 %v1652_v3, %v1487_v4  ;;  %v1668_v12 = vld [vmem:[%s1800_s30 + $0x194] sm:$0xf]  ;;  %v1551_v14 = vld [vmem:[%s1800_s30 + $0x198] sm:$0xf0]  ;;  %v1479_v16 = vld [vmem:[%s1800_s30 + $0x108] sm:$0xf0]  ;;  %v1362_v19 = vor.u32 %v1620_v10, %v1359_v11 }
  0x49   : > { %957 = vmatpush.bf16.msrb.mxu3 %v1586_v23  ;;  %v1634_v17 = vld [vmem:[%s1800_s30 + $0x84] sm:$0xf]  ;;  %v1415_v18 = vld [vmem:[%s1800_s30 + $0x88] sm:$0xf0]  ;;  %v1554_v20 = vor.u32 %v1668_v12, %v1551_v14  ;;  %v1482_v21 = vor.u32 %v1650_v15, %v1479_v16  ;;  %v382_v35 = vld [vmem:[#allocation2 + $0x30] sm:$0xff]  ;;  %p1603_p6 = scmp.ne.s32.totalorder %s1728_s18, 8 }
  0x4a   : > { %901 = vmatpush.bf16.msrb.mxu0 %v1386_v36  ;;  %v1618_v22 = vld [vmem:[%s1800_s30 + $0x4] sm:$0xf]  ;;  %v1351_v23 = vld [vmem:[%s1800_s30 + $0x8] sm:$0xf0]  ;;  %v385_v16 = vld [vmem:[#allocation2 + $0x10] sm:$0xff] }
  0x4b   : > { %920 = vmatpush.bf16.msrb.mxu1 %v1450_v28  ;;  %v1666_v25 = vld [vmem:[%s1800_s30 + $0x184] sm:$0xf]  ;;  %v1543_v26 = vld [vmem:[%s1800_s30 + $0x188] sm:$0xf0]  ;;  %v1354_v27 = vor.u32 %v1618_v22, %v1351_v23 }
  0x4c   : > { %939 = vmatpush.bf16.msrb.mxu2 %v1514_v24  ;;  %v1418_v24 = vor.u32 %v1634_v17, %v1415_v18  ;;  %v1546_v28 = vor.u32 %v1666_v25, %v1543_v26  ;;  %v388_v62 = vld [vmem:[#allocation2 + $0x28] sm:$0xff]  ;;  %v387_v25 = vld [vmem:[#allocation2 + $0x20] sm:$0xff] }
  0x4d   : > { %958 = vmatpush.bf16.msrb.mxu3 %v1578_v40  ;;  %835 = vmatmul.bf16.gmra.mxu0 %v1934_v45 }
  0x4e   : > { %854 = vmatmul.bf16.gmra.mxu1 %v1939_v51  ;;  %902 = vmatpush.bf16.msrb.mxu0 %v1378_v59 }
  0x4f   : > { %921 = vmatpush.bf16.msrb.mxu1 %v1442_v46  ;;  %873 = vmatmul.bf16.gmra.mxu2 %v1941_v52 }
  0x50   : > { %940 = vmatpush.bf16.msrb.mxu2 %v1506_v41  ;;  %892 = vmatmul.bf16.gmra.mxu3 %v1346_v57  ;;  %v384_v41 = vld [vmem:[#allocation2 + $0x18] sm:$0xff] }
  0x51   : > { %959 = vmatpush.bf16.msrb.mxu3 %v1570_v60 }
  0x52   : > { %903 = vmatpush.bf16.msrb.mxu0 %v1370_v7 }
  0x53   : > { %922 = vmatpush.bf16.msrb.mxu1 %v1434_v1 }
  0x54   : > { %941 = vmatpush.bf16.msrb.mxu2 %v1498_v61 }
  0x55   : > { %960 = vmatpush.bf16.msrb.mxu3 %v1562_v8 }
  0x56   : > { %904 = vmatpush.bf16.msrb.mxu0 %v1362_v19 }
  0x57   : > { %923 = vmatpush.bf16.msrb.mxu1 %v1426_v13 }
  0x58   : > { %942 = vmatpush.bf16.msrb.mxu2 %v1490_v9  ;;  %v383_v9 = vld [vmem:[#allocation2] sm:$0xff] }
  0x59   : > { %961 = vmatpush.bf16.msrb.mxu3 %v1554_v20 }
  0x5a   : > { %905 = vmatpush.bf16.msrb.mxu0 %v1354_v27 }
  0x5b   : > { %924 = vmatpush.bf16.msrb.mxu1 %v1418_v24 }
  0x5c   : > { %943 = vmatpush.bf16.msrb.mxu2 %v1482_v21 }
  0x5d   : > { %962 = vmatpush.bf16.msrb.mxu3 %v1546_v28  ;;  %906 = vmatmul.bf16.vlgmr.msrb.gmra.mxu0 %v1882_v49 }
  0x5e   : > { %925 = vmatmul.bf16.vlgmr.msrb.gmra.mxu1 %v1887_v54 }
  0x5f   : > { %944 = vmatmul.bf16.vlgmr.msrb.gmra.mxu2 %v1889_v55 }
  0x60   : > { %963 = vmatmul.bf16.vlgmr.msrb.gmra.mxu3 %v1893_v58 }
  0x6d   : > { %911 = vmatmul.bf16.gmra.mxu0 %v1934_v45 }
  0x6e   : > { %930 = vmatmul.bf16.gmra.mxu1 %v1939_v51  ;;  %v386_v51 = vld [vmem:[#allocation2 + $0x8] sm:$0xff] }
  0x6f   : > { %949 = vmatmul.bf16.gmra.mxu2 %v1941_v52 }
  0x70   : > { %968 = vmatmul.bf16.gmra.mxu3 %v1346_v57 }
  0xba   : > { %v831_v29 = vpop.f32.mrf.mxu0 }
  0xbb   : > { %v850_v30 = vpop.f32.mrf.mxu1 }
  0xbc   : > { %v851_v31 = vadd.f32 %v850_v30, %v831_v29 }
  0xc2   : > { %v869_v32 = vpop.f32.mrf.mxu2  ;;  %v833_v49 = vpop.f32.mrf.mxu0 }
  0xc3   : > { %v870_v33 = vadd.f32 %v869_v32, %v851_v31  ;;  %v888_v34 = vpop.f32.mrf.mxu3  ;;  %v852_v54 = vpop.f32.mrf.mxu1 }
  0xc4   : > { %v853_v58 = vadd.f32 %v852_v54, %v833_v49 }
  0xc5   : > { %v889_v36 = vadd.f32 %v888_v34, %v870_v33  ;;  %v389_v33 = vld [vmem:[#allocation2 + $0x38] sm:$0xff] }
  0xc7   : > { %v974_v55 = vadd.f32 %v889_v36, %v382_v35 }
  0xc9   : > { %982 = vst [vmem:[#allocation2 + $0x30] sm:$0xff] %v974_v55 }
  0xca   : > { %v871_v37 = vpop.f32.mrf.mxu2  ;;  %v836_v40 = vpop.f32.mrf.mxu0 }
  0xcb   : > { %v872_v38 = vadd.f32 %v871_v37, %v853_v58  ;;  %v890_v39 = vpop.f32.mrf.mxu3  ;;  %v855_v42 = vpop.f32.mrf.mxu1 }
  0xcc   : > { %v856_v45 = vadd.f32 %v855_v42, %v836_v40 }
  0xcd   : > { %v891_v43 = vadd.f32 %v890_v39, %v872_v38 }
  0xcf   : > { %v976_v44 = vadd.f32 %v891_v43, %v384_v41 }
  0xd1   : > { %984 = vst [vmem:[#allocation2 + $0x18] sm:$0xff] %v976_v44 }
  0xd2   : > { %v874_v46 = vpop.f32.mrf.mxu2  ;;  %v838_v50 = vpop.f32.mrf.mxu0 }
  0xd3   : > { %v875_v47 = vadd.f32 %v874_v46, %v856_v45  ;;  %v893_v48 = vpop.f32.mrf.mxu3  ;;  %v857_v52 = vpop.f32.mrf.mxu1 }
  0xd4   : > { %v858_v57 = vadd.f32 %v857_v52, %v838_v50 }
  0xd5   : > { %v894_v53 = vadd.f32 %v893_v48, %v875_v47 }
  0xd7   : > { %v978_v56 = vadd.f32 %v894_v53, %v386_v51 }
  0xd9   : > { %986 = vst [vmem:[#allocation2 + $0x8] sm:$0xff] %v978_v56 }
  0xda   : > { %v876_v59 = vpop.f32.mrf.mxu2  ;;  %v907_v63 = vpop.f32.mrf.mxu0 }
  0xdb   : > { %v877_v60 = vadd.f32 %v876_v59, %v858_v57  ;;  %v895_v61 = vpop.f32.mrf.mxu3  ;;  %v926_v0 = vpop.f32.mrf.mxu1 }
  0xdc   : > { %v927_v3 = vadd.f32 %v926_v0, %v907_v63 }
  0xdd   : > { %v896_v1 = vadd.f32 %v895_v61, %v877_v60 }
  0xdf   : > { %v980_v2 = vadd.f32 %v896_v1, %v388_v62 }
  0xe1   : > { %988 = vst [vmem:[#allocation2 + $0x28] sm:$0xff] %v980_v2 }
  0xe2   : > { %v945_v4 = vpop.f32.mrf.mxu2  ;;  %v909_v7 = vpop.f32.mrf.mxu0 }
  0xe3   : > { %v964_v5 = vpop.f32.mrf.mxu3  ;;  %v946_v6 = vadd.f32 %v945_v4, %v927_v3  ;;  %v928_v8 = vpop.f32.mrf.mxu1 }
  0xe4   : > { %v929_v12 = vadd.f32 %v928_v8, %v909_v7 }
  0xe5   : > { %v965_v10 = vadd.f32 %v964_v5, %v946_v6 }
  0xe7   : > { %v975_v11 = vadd.f32 %v965_v10, %v383_v9 }
  0xe9   : > { %983 = vst [vmem:[#allocation2] sm:$0xff] %v975_v11 }
  0xea   : > { %v947_v13 = vpop.f32.mrf.mxu2  ;;  %v912_v17 = vpop.f32.mrf.mxu0 }
  0xeb   : > { %v966_v14 = vpop.f32.mrf.mxu3  ;;  %v948_v15 = vadd.f32 %v947_v13, %v929_v12  ;;  %v931_v18 = vpop.f32.mrf.mxu1 }
  0xec   : > { %v932_v21 = vadd.f32 %v931_v18, %v912_v17 }
  0xed   : > { %v967_v19 = vadd.f32 %v966_v14, %v948_v15 }
  0xef   : > { %v977_v20 = vadd.f32 %v967_v19, %v385_v16 }
  0xf1   : > { %985 = vst [vmem:[#allocation2 + $0x10] sm:$0xff] %v977_v20 }
  0xf2   : > { %v950_v22 = vpop.f32.mrf.mxu2  ;;  %v914_v27 = vpop.f32.mrf.mxu0 }
  0xf3   : > { %v969_v23 = vpop.f32.mrf.mxu3  ;;  %v951_v24 = vadd.f32 %v950_v22, %v932_v21  ;;  %v933_v28 = vpop.f32.mrf.mxu1 }
  0xf4   : > { %v934_v30 = vadd.f32 %v933_v28, %v914_v27 }
  0xf5   : > { %v970_v26 = vadd.f32 %v969_v23, %v951_v24 }
  0xf7   : > { %v979_v29 = vadd.f32 %v970_v26, %v387_v25 }
  0xf9   : > { %987 = vst [vmem:[#allocation2 + $0x20] sm:$0xff] %v979_v29 }
  0xfa   : > { %v952_v31 = vpop.f32.mrf.mxu2 }
  0xfb   : > { %v953_v32 = vadd.f32 %v952_v31, %v934_v30  ;;  %v971_v34 = vpop.f32.mrf.mxu3 }
  0xfd   : > { %v972_v49 = vadd.f32 %v971_v34, %v953_v32  ;;  %993 = sbr.rel (%p1603_p6) target bundleno = 331 (0x14b), region = 48 }
  0xff   : > { %v981_v35 = vadd.f32 %v972_v49, %v389_v33 }
 0x101   : > { %989 = vst [vmem:[#allocation2 + $0x38] sm:$0xff] %v981_v35 }
 0x102   : > { %v994_v54 = vld [vmem:[#allocation2 + $0x30] sm:$0xff]  ;;  %v995_v36 = vld [vmem:[#allocation2] sm:$0xff]  ;;  %v996_v55 = vld [vmem:[#allocation2 + $0x18] sm:$0xff]  ;;  %v1739_v58 = vmov 32.0   ;;  %vm1101_vm7 = vcmask 1040384  }
 0x103   : > { %1708 = vrcp.f32 %v1739_v58  ;;  %v997_v37 = vld [vmem:[#allocation2 + $0x10] sm:$0xff]  ;;  %v998_v38 = vld [vmem:[#allocation2 + $0x8] sm:$0xff]  ;;  %v1002_v39 = vld [vmem:[%s2068_s2] sm:$0x3] }
 0x104   : > { %v999_v40 = vld [vmem:[#allocation2 + $0x20] sm:$0xff]  ;;  %v1000_v41 = vld [vmem:[#allocation2 + $0x28] sm:$0xff]  ;;  %v1004_v43 = vperm.slane %v1002_v39, 0  ;;  %v1005_v44 = vperm.slane %v1002_v39, 1 }
 0x106   : > { %v1979_v45 = vadd.f32 %v1004_v43, %v994_v54  ;;  %v1981_v46 = vadd.f32 %v1005_v44, %v995_v36  ;;  %v1983_v47 = vadd.f32 %v1004_v43, %v996_v55  ;;  %v1985_v48 = vadd.f32 %v1005_v44, %v997_v37 }
 0x107   : > { %v1987_v50 = vadd.f32 %v1004_v43, %v998_v38  ;;  %v1989_v51 = vadd.f32 %v1005_v44, %v999_v40  ;;  %v1991_v52 = vadd.f32 %v1004_v43, %v1000_v41 }
 0x108   : > { %v1001_v42 = vld [vmem:[#allocation2 + $0x38] sm:$0xff]  ;;  %v1016_v57 = vadd.f32 %v1983_v47, %v1979_v45  ;;  %v1025_v59 = vadd.f32 %v1985_v48, %v1981_v46  ;;  %v1043_v60 = vmul.f32 %v1979_v45, %v1979_v45  ;;  %v1044_v61 = vmul.f32 %v1981_v46, %v1981_v46 }
 0x109   : > { %v1993_v53 = vadd.f32 %v1005_v44, %v1001_v42  ;;  %v1709_v56 = vpop.eup %1708  ;;  %v1045_v63 = vmul.f32 %v1983_v47, %v1983_v47  ;;  %v1046_v0 = vmul.f32 %v1985_v48, %v1985_v48  ;;  %v1047_v3 = vmul.f32 %v1987_v50, %v1987_v50 }
 0x10a   : > { %v1035_v62 = vmul.f32 32.0, %v1709_v56  ;;  %v1017_v1 = vadd.f32 %v1016_v57, %v1987_v50  ;;  %v1026_v2 = vadd.f32 %v1025_v59, %v1989_v51  ;;  %v1048_v4 = vmul.f32 %v1989_v51, %v1989_v51 }
 0x10b   : > { %v1049_v6 = vmul.f32 %v1991_v52, %v1991_v52  ;;  %v1051_v7 = vadd.f32 %v1045_v63, %v1043_v60  ;;  %v1050_v10 = vmul.f32 %v1993_v53, %v1993_v53  ;;  %v1060_v11 = vadd.f32 %v1046_v0, %v1044_v61 }
 0x10c   : > { %v1036_v5 = vsub.f32 1.0, %v1035_v62  ;;  %v1018_v8 = vadd.f32 %v1017_v1, %v1991_v52  ;;  %v1027_v9 = vadd.f32 %v1026_v2, %v1993_v53  ;;  %vm1039_vm0 = vweird.f32 %v1709_v56 }
 0x10d   : > { %v1052_v12 = vadd.f32 %v1051_v7, %v1047_v3  ;;  %v1061_v15 = vadd.f32 %v1060_v11, %v1048_v4  ;;  %v1075_v11 = vld [vmem:[%s2069_s3] sm:$0x3] }
 0x10e   : > { %v1019_v13 = vrot.slane %v1018_v8, 4  ;;  %v1028_v14 = vrot.slane %v1027_v9, 4  ;;  %v1037_v16 = vmul.f32 %v1709_v56, %v1036_v5 }
 0x10f   : > { %v1053_v17 = vadd.f32 %v1052_v12, %v1049_v6  ;;  %v1062_v20 = vadd.f32 %v1061_v15, %v1050_v10  ;;  %v1126_v15 = vld [vmem:[%s2070_s4] sm:$0x3] }
 0x110   : > { %v1020_v18 = vadd.f32 %v1019_v13, %v1018_v8  ;;  %v1029_v19 = vadd.f32 %v1028_v14, %v1027_v9  ;;  %v1038_v25 = vadd.f32 %v1709_v56, %v1037_v16 }
 0x111   : > { %v1054_v21 = vrot.slane %v1053_v17, 4  ;;  %v1063_v24 = vrot.slane %v1062_v20, 4 }
 0x112   : > { %v1021_v22 = vrot.slane %v1020_v18, 2  ;;  %v1030_v23 = vrot.slane %v1029_v19, 2  ;;  %v1040_v34 = vsel %vm1039_vm0, %v1709_v56, %v1038_v25 }
 0x113   : > { %v1055_v26 = vadd.f32 %v1054_v21, %v1053_v17  ;;  %v1064_v29 = vadd.f32 %v1063_v24, %v1062_v20  ;;  %v1128_v24 = vperm.slane %v1126_v15, 0 }
 0x114   : > { %v1022_v27 = vadd.f32 %v1021_v22, %v1020_v18  ;;  %v1031_v28 = vadd.f32 %v1030_v23, %v1029_v19 }
 0x115   : > { %v1056_v30 = vrot.slane %v1055_v26, 2  ;;  %v1065_v33 = vrot.slane %v1064_v29, 2 }
 0x116   : > { %v1023_v31 = vrot.slane %v1022_v27, 1  ;;  %v1032_v32 = vrot.slane %v1031_v28, 1 }
 0x117   : > { %v1057_v49 = vadd.f32 %v1056_v30, %v1055_v26  ;;  %v1066_v36 = vadd.f32 %v1065_v33, %v1064_v29  ;;  %v1129_v26 = vperm.slane %v1126_v15, 1 }
 0x118   : > { %v1024_v35 = vadd.f32 %v1023_v31, %v1022_v27  ;;  %v1033_v54 = vadd.f32 %v1032_v32, %v1031_v28 }
 0x119   : > { %v1058_v55 = vrot.slane %v1057_v49, 1  ;;  %v1067_v38 = vrot.slane %v1066_v36, 1 }
 0x11a   : > { %v1041_v58 = vmul.f32 %v1040_v34, %v1024_v35  ;;  %v1042_v37 = vmul.f32 %v1040_v34, %v1033_v54 }
 0x11b   : > { %v1059_v39 = vadd.f32 %v1058_v55, %v1057_v49  ;;  %v1068_v40 = vadd.f32 %v1067_v38, %v1066_v36 }
 0x11c   : > { %v1071_v41 = vmul.f32 %v1041_v58, %v1041_v58  ;;  %v1072_v42 = vmul.f32 %v1042_v37, %v1042_v37  ;;  %v1105_v14 = vsub.f32 %v1979_v45, %v1041_v58  ;;  %v1106_v17 = vsub.f32 %v1981_v46, %v1042_v37 }
 0x11d   : > { %v1069_v43 = vmul.f32 %v1059_v39, %v1040_v34  ;;  %v1070_v44 = vmul.f32 %v1068_v40, %v1040_v34  ;;  %v1107_v18 = vsub.f32 %v1983_v47, %v1041_v58  ;;  %v1108_v19 = vsub.f32 %v1985_v48, %v1042_v37 }
 0x11e   : > { %v1109_v20 = vsub.f32 %v1987_v50, %v1041_v58  ;;  %v1110_v21 = vsub.f32 %v1989_v51, %v1042_v37  ;;  %v1111_v22 = vsub.f32 %v1991_v52, %v1041_v58  ;;  %v1112_v23 = vsub.f32 %v1993_v53, %v1042_v37 }
 0x11f   : > { %v1073_v57 = vsub.f32 %v1069_v43, %v1071_v41  ;;  %v1074_v59 = vsub.f32 %v1070_v44, %v1072_v42 }
 0x121   : > { %v1076_v60 = vadd.f32 1e-05, %v1073_v57  ;;  %v1077_v61 = vadd.f32 1e-05, %v1074_v59 }
 0x123   : > { %1710 = vrsqrt.f32 %v1076_v60  ;;  %vm1084_vm1 = vweird.f32 %v1076_v60  ;;  %vm1094_vm3 = vweird.f32 %v1077_v61 }
 0x124   : > { %1712 = vrsqrt.f32 %v1077_v61 }
 0x129   : > { %v1711_v56 = vpop.eup %1710 }
 0x12a   : > { %v1713_v62 = vpop.eup %1712  ;;  %v1079_v63 = vmul.f32 %v1711_v56, %v1076_v60  ;;  %vm1085_vm2 = vweird.f32 %v1711_v56 }
 0x12b   : > { %v1089_v0 = vmul.f32 %v1713_v62, %v1077_v61  ;;  %vm1095_vm4 = vweird.f32 %v1713_v62  ;;  %vm1086_vm5 = vmor %vm1084_vm1, %vm1085_vm2 }
 0x12c   : > { %v1080_v1 = vmul.f32 %v1711_v56, %v1079_v63  ;;  %vm1096_vm6 = vmor %vm1094_vm3, %vm1095_vm4 }
 0x12d   : > { %v1090_v2 = vmul.f32 %v1713_v62, %v1089_v0 }
 0x12e   : > { %v1081_v3 = vmul.f32 0.5, %v1080_v1 }
 0x12f   : > { %v1091_v4 = vmul.f32 0.5, %v1090_v2 }
 0x130   : > { %v1082_v5 = vsub.f32 1.5, %v1081_v3 }
 0x131   : > { %v1092_v6 = vsub.f32 1.5, %v1091_v4 }
 0x132   : > { %v1083_v7 = vmul.f32 %v1711_v56, %v1082_v5 }
 0x133   : > { %v1093_v8 = vmul.f32 %v1713_v62, %v1092_v6 }
 0x134   : > { %v1087_v9 = vsel %vm1086_vm5, %v1711_v56, %v1083_v7 }
 0x135   : > { %v1097_v10 = vsel %vm1096_vm6, %v1713_v62, %v1093_v8 }
 0x136   : > { %v1100_v12 = vrot.slane %v1097_v10, 7 }
 0x138   : > { %v1102_v13 = vsel %vm1101_vm7, %v1087_v9, %v1100_v12 }
 0x139   : > { %v1104_v16 = vmul.f32 %v1102_v13, %v1075_v11 }
 0x13b   : > { %v1114_v45 = vperm.slane %v1104_v16, 0  ;;  %v1115_v25 = vperm.slane %v1104_v16, 1 }
 0x13d   : > { %v1118_v27 = vmul.f32 %v1114_v45, %v1105_v14  ;;  %v1119_v28 = vmul.f32 %v1115_v25, %v1106_v17  ;;  %v1120_v29 = vmul.f32 %v1114_v45, %v1107_v18  ;;  %v1121_v46 = vmul.f32 %v1115_v25, %v1108_v19 }
 0x13e   : > { %v1122_v30 = vmul.f32 %v1114_v45, %v1109_v20  ;;  %v1123_v47 = vmul.f32 %v1115_v25, %v1110_v21  ;;  %v1124_v31 = vmul.f32 %v1114_v45, %v1111_v22  ;;  %v1125_v48 = vmul.f32 %v1115_v25, %v1112_v23 }
 0x13f   : > { %v1132_v32 = vadd.f32 %v1128_v24, %v1118_v27  ;;  %v1133_v50 = vadd.f32 %v1129_v26, %v1119_v28  ;;  %v1134_v33 = vadd.f32 %v1128_v24, %v1120_v29  ;;  %v1135_v51 = vadd.f32 %v1129_v26, %v1121_v46 }
 0x140   : > { %v1136_v34 = vadd.f32 %v1128_v24, %v1122_v30  ;;  %v1137_v52 = vadd.f32 %v1129_v26, %v1123_v47  ;;  %v1138_v54 = vadd.f32 %v1128_v24, %v1124_v31  ;;  %v1139_v55 = vadd.f32 %v1129_v26, %v1125_v48 }
 0x141   : > { %v1140_v49 = vmax.f32 %v1132_v32, 0.0  ;;  %v1141_v53 = vmax.f32 %v1133_v50, 0.0  ;;  %v1142_v35 = vmax.f32 %v1134_v33, 0.0  ;;  %v1143_v36 = vmax.f32 %v1135_v51, 0.0 }
 0x142   : > { %v1144_v58 = vmax.f32 %v1136_v34, 0.0  ;;  %v1145_v37 = vmax.f32 %v1137_v52, 0.0  ;;  %v1146_v38 = vmax.f32 %v1138_v54, 0.0  ;;  %v1147_v39 = vmax.f32 %v1139_v55, 0.0 }
 0x143   : > { %1148 = vst [vmem:[%s2071_s5] sm:$0xff] %v1140_v49 }
 0x144   : > { %1149 = vst [vmem:[%s2071_s5 + $0x8] sm:$0xff] %v1141_v53 }
 0x145   : > { %1150 = vst [vmem:[%s2071_s5 + $0x10] sm:$0xff] %v1142_v35 }
 0x146   : > { %1151 = vst [vmem:[%s2071_s5 + $0x18] sm:$0xff] %v1143_v36 }
 0x147   : > { %1152 = vst [vmem:[%s2071_s5 + $0x20] sm:$0xff] %v1144_v58 }
 0x148   : > { %1153 = vst [vmem:[%s2071_s5 + $0x28] sm:$0xff] %v1145_v37 }
 0x149   : > { %1154 = vst [vmem:[%s2071_s5 + $0x30] sm:$0xff] %v1146_v38 }
 0x14a   : > { %1155 = vst [vmem:[%s2071_s5 + $0x38] sm:$0xff] %v1147_v39 }
 0x14b PF: > { %s15_s20 = sadd.s32 1, %s1736_s20   ;;  %s2072_s18 = smov %s1732_s19 }
 0x14c   : > { %p12_p7 = scmp.ge.s32.totalorder %s15_s20, 11   ;;  %s2073_s19 = smov %s2075_s21 }
 0x14e   :  { %14 = sbr.rel (!%p12_p7) target bundleno = 2 (0x2), region = 90 }

// kernel: encoder_block_forward.9
= control target key start
LH: loop header
LB: loop body
LE: loop exit
PB: predicated region body
PF: predicated region fallthrough
CT: control target
= control target key end

     0   :  { %s529_s0 = inlined_call_operand.vmem [shape: bf16[1,32,256], index: 0, kind: input, shape index: {}]   ;;  %s530_s1 = inlined_call_operand.vmem [shape: bf16[1,256,128], index: 1, kind: input, shape index: {}]   ;;  %s531_s2 = inlined_call_operand.vmem [shape: f32[1,128], index: 2, kind: input, shape index: {}]   ;;  %s532_s3 = inlined_call_operand.vmem [shape: f32[1,128], index: 3, kind: input, shape index: {}]   ;;  %s533_s4 = inlined_call_operand.vmem [shape: f32[1,128], index: 4, kind: input, shape index: {}]   ;;  %s534_s5 = inlined_call_operand.hbm [shape: f32[32,128], index: 5, kind: output, shape index: {}]  }
   0x1   :  { %v363_v0 = vld [vmem:[%s530_s1 + $0x38] sm:$0xff]  ;;  %v362_v2 = vld [vmem:[%s530_s1 + $0x30] sm:$0xff]  ;;  %v361_v4 = vld [vmem:[%s530_s1 + $0x28] sm:$0xff] }
   0x2   :  { %v371_v1 = vld [vmem:[%s530_s1 + $0x78] sm:$0xff]  ;;  %185 = vmatpush.bf16.msra.mxu0 %v363_v0  ;;  %372 = vmatpush.bf16.msra.mxu2 %v363_v0  ;;  %v370_v3 = vld [vmem:[%s530_s1 + $0x70] sm:$0xff]  ;;  %v369_v5 = vld [vmem:[%s530_s1 + $0x68] sm:$0xff] }
   0x3   :  { %204 = vmatpush.bf16.msra.mxu1 %v371_v1  ;;  %380 = vmatpush.bf16.msra.mxu3 %v371_v1 }
   0x6   :  { %186 = vmatpush.bf16.msra.mxu0 %v362_v2  ;;  %373 = vmatpush.bf16.msra.mxu2 %v362_v2 }
   0x7   :  { %205 = vmatpush.bf16.msra.mxu1 %v370_v3  ;;  %381 = vmatpush.bf16.msra.mxu3 %v370_v3 }
   0x8   :  { %10 = vsyncpa [#allocation4], 0  ;;  %v360_v6 = vld [vmem:[%s530_s1 + $0x20] sm:$0xff]  ;;  %v359_v8 = vld [vmem:[%s530_s1 + $0x18] sm:$0xff]  ;;  %s260_s15 = sshll.u32 %s534_s5, 4  ;;  %s419_s16 = smov 128   ;;  %s261_s15 = int_to_ptr.hbm [resolvable:$true] %s260_s15 }
   0x9   :  { %v368_v7 = vld [vmem:[%s530_s1 + $0x60] sm:$0xff]  ;;  %v367_v9 = vld [vmem:[%s530_s1 + $0x58] sm:$0xff]  ;;  %v358_v10 = vld [vmem:[%s530_s1 + $0x10] sm:$0xff]  ;;  %s420_s17 = smov 8  }
   0xa   :  { %187 = vmatpush.bf16.msra.mxu0 %v361_v4  ;;  %374 = vmatpush.bf16.msra.mxu2 %v361_v4  ;;  %v366_v11 = vld [vmem:[%s530_s1 + $0x50] sm:$0xff]  ;;  %v357_v12 = vld [vmem:[%s530_s1 + $0x8] sm:$0xff]  ;;  %v356_v14 = vld [vmem:[%s530_s1] sm:$0xff] }
   0xb   :  { %206 = vmatpush.bf16.msra.mxu1 %v369_v5  ;;  %382 = vmatpush.bf16.msra.mxu3 %v369_v5  ;;  %v365_v13 = vld [vmem:[%s530_s1 + $0x48] sm:$0xff]  ;;  %v364_v15 = vld [vmem:[%s530_s1 + $0x40] sm:$0xff]  ;;  %v282_v18 = vld [vmem:[%s529_s0 + $0x10] sm:$0xf] }
   0xc   :  { %v274_v16 = vld [vmem:[%s529_s0] sm:$0xf]  ;;  %v353_v17 = vld [vmem:[%s529_s0 + $0x4] sm:$0xf0]  ;;  %v355_v19 = vld [vmem:[%s529_s0 + $0x14] sm:$0xf0] }
   0xd   :  { %v352_v20 = vld [vmem:[%s529_s0 + $0x4] sm:$0xf]  ;;  %v276_v21 = vld [vmem:[%s529_s0 + $0x8] sm:$0xf0]  ;;  %v354_v22 = vld [vmem:[%s529_s0 + $0x14] sm:$0xf]  ;;  %v275_v24 = vor.u32 %v353_v17, %v274_v16  ;;  %v283_v25 = vor.u32 %v355_v19, %v282_v18 }
   0xe   :  { %188 = vmatpush.bf16.msra.mxu0 %v360_v6  ;;  %375 = vmatpush.bf16.msra.mxu2 %v360_v6  ;;  %v284_v23 = vld [vmem:[%s529_s0 + $0x18] sm:$0xf0]  ;;  %v279_v26 = vor.u32 %v352_v20, %v276_v21  ;;  %v391_v29 = vld [vmem:[%s531_s2] ss:$0 sm:$0xff]  ;;  %s418_s0 = smov [#allocation3]  }
   0xf   :  { %207 = vmatpush.bf16.msra.mxu1 %v368_v7  ;;  %383 = vmatpush.bf16.msra.mxu3 %v368_v7  ;;  %v287_v27 = vor.u32 %v354_v22, %v284_v23  ;;  %s258_s2 = sshll.u32 %s418_s0, 4  ;;  %s259_s2 = int_to_ptr.vmem [resolvable:$true] %s258_s2 }
  0x12   :  { %189 = vmatpush.bf16.msra.mxu0 %v359_v8  ;;  %376 = vmatpush.bf16.msra.mxu2 %v359_v8 }
  0x13   :  { %208 = vmatpush.bf16.msra.mxu1 %v367_v9  ;;  %384 = vmatpush.bf16.msra.mxu3 %v367_v9 }
  0x16   :  { %190 = vmatpush.bf16.msra.mxu0 %v358_v10  ;;  %377 = vmatpush.bf16.msra.mxu2 %v358_v10 }
  0x17   :  { %209 = vmatpush.bf16.msra.mxu1 %v366_v11  ;;  %385 = vmatpush.bf16.msra.mxu3 %v366_v11 }
  0x1a   :  { %191 = vmatpush.bf16.msra.mxu0 %v357_v12  ;;  %378 = vmatpush.bf16.msra.mxu2 %v357_v12 }
  0x1b   :  { %210 = vmatpush.bf16.msra.mxu1 %v365_v13  ;;  %386 = vmatpush.bf16.msra.mxu3 %v365_v13 }
  0x1e   :  { %192 = vmatpush.bf16.msra.mxu0 %v356_v14  ;;  %379 = vmatpush.bf16.msra.mxu2 %v356_v14 }
  0x1f   :  { %211 = vmatpush.bf16.msra.mxu1 %v364_v15  ;;  %387 = vmatpush.bf16.msra.mxu3 %v364_v15 }
  0x21   :  { %193 = vmatmul.bf16.vlgmr.msra.gmra.mxu0 %v275_v24  ;;  %198 = vmatmul.bf16.vlgmr.msra.gmra.mxu2 %v283_v25 }
  0x22   :  { %212 = vmatmul.bf16.vlgmr.msra.gmra.mxu1 %v279_v26  ;;  %217 = vmatmul.bf16.vlgmr.msra.gmra.mxu3 %v287_v27 }
  0x9e   :  { %v194_v28 = vpop.f32.mrf.mxu0 }
  0x9f   :  { %v213_v30 = vpop.f32.mrf.mxu1 }
  0xa0   :  { %v214_v31 = vadd.f32 %v213_v30, %v194_v28 }
  0xa2   :  { %v242_v32 = vadd.f32 %v391_v29, %v214_v31 }
  0xa4   :  { %v246_v33 = vmax.f32 %v242_v32, 0.0  ;;  %v199_v34 = vpop.f32.mrf.mxu2 }
  0xa5   :  { %v218_v35 = vpop.f32.mrf.mxu3 }
  0xa6   :  { %250 = vst [vmem:[#allocation3] sm:$0xff] %v246_v33  ;;  %v219_v36 = vadd.f32 %v218_v35, %v199_v34  ;;  %v196_v37 = vpop.f32.mrf.mxu0 }
  0xa7   :  { %v215_v38 = vpop.f32.mrf.mxu1 }
  0xa8   :  { %v244_v39 = vadd.f32 %v391_v29, %v219_v36  ;;  %v216_v40 = vadd.f32 %v215_v38, %v196_v37 }
  0xaa   :  { %v248_v41 = vmax.f32 %v244_v39, 0.0  ;;  %v243_v42 = vadd.f32 %v391_v29, %v216_v40 }
  0xac   :  { %252 = vst [vmem:[#allocation3 + $0x10] sm:$0xff] %v248_v41  ;;  %v247_v43 = vmax.f32 %v243_v42, 0.0  ;;  %v201_v44 = vpop.f32.mrf.mxu2 }
  0xad   :  { %v220_v45 = vpop.f32.mrf.mxu3 }
  0xae   :  { %251 = vst [vmem:[#allocation3 + $0x8] sm:$0xff] %v247_v43  ;;  %v221_v46 = vadd.f32 %v220_v45, %v201_v44 }
  0xb0   :  { %v245_v47 = vadd.f32 %v391_v29, %v221_v46 }
  0xb2   :  { %v249_v48 = vmax.f32 %v245_v47, 0.0 }
  0xb4   :  { %253 = vst [vmem:[#allocation3 + $0x18] sm:$0xff] %v249_v48 }
  0xb5   :  { %266 = dma.vmem_to_hbm [thread:$0]  %s259_s2, 512, %s261_s15, [#allocation4], %s419_s16, %s419_s16, %s420_s17  }
  0xb6   :  { %416 = dma.done.wait [#allocation4], 512  }
  0xb7   :  { %417 = vsyncadd [#allocation4], 4294966784 }
  0xb8   :  { %271 = vsyncpa [#allocation4], 1 }

</bundles_post_ra>
